<compile_context>
chip_gen: v7x
topology: tpu7x:2x2x1
jax: 0.10.0
libtpu: 0.0.40
codegen_flags: <defaults>
</compile_context>

<pallas_src>
import jax
import jax.numpy as jnp
from jax.experimental import pallas as pl
from jax.experimental.pallas import tpu as pltpu


# ---------------------------------------------------------------------------
# Kernel 1: encoder conv1 (3 -> 64, 3x3, padding=1).
# ---------------------------------------------------------------------------
def _conv1_kernel(p_ref, w_ref, b_ref, o_ref):
    # p_ref: (1, H, W, 27) im2col of the RGB input; w_ref: (27, 64); b_ref: (1, 64)
    # o_ref: (1, H, W, 64)
    _, H, W, KC = p_ref.shape
    Cout = w_ref.shape[1]
    patch = p_ref[0].reshape(H * W, KC)
    acc = jnp.dot(patch, w_ref[...], preferred_element_type=jnp.float32)
    acc = acc + b_ref[...]
    o_ref[...] = acc.reshape(H, W, Cout)[None].astype(o_ref.dtype)


# ---------------------------------------------------------------------------
# Kernel 2: conv2 (64 -> 128, 3x3, padding=1) + MaxPool2d(2) + ReLU, fused.
# ---------------------------------------------------------------------------
def _conv2_pool_relu_kernel(x_ref, w_ref, b_ref, o_ref, xpad_ref, y_ref):
    # x_ref: (1, H, W, 64); w_ref: (9*128, 128) with zero rows for padded channels
    # b_ref: (1, 128); o_ref: (1, H//2, W//2, 128)
    # xpad_ref: VMEM (H+2, W+2, 128) scratch; y_ref: VMEM (H*W, 128) scratch
    _, H, W, Cin = x_ref.shape
    Cp = xpad_ref.shape[-1]
    Cout = w_ref.shape[-1]

    # Zero-padded (spatial halo + channel 64 -> 128) copy of the tile, VMEM only.
    xpad_ref[...] = jnp.zeros_like(xpad_ref)
    xpad_ref[1:H + 1, 1:W + 1, 0:Cin] = x_ref[0]

    # Fold the 3x3 taps into a single lane-aligned (H*W, 9*128) x (9*128, 128) dot.
    taps = [xpad_ref[ky:ky + H, kx:kx + W, :] for ky in range(3) for kx in range(3)]
    patch = jnp.concatenate(taps, axis=-1).reshape(H * W, 9 * Cp)
    y = jnp.dot(patch, w_ref[...], preferred_element_type=jnp.float32) + b_ref[...]

    # Fused ReLU(MaxPool2x2): rows of y are ordered h*W + w and W is even, so
    # even/odd w == even/odd rows -> column pairs via stride-2 VMEM loads,
    # row pairs via a leading-dim split.
    y_ref[...] = y
    half = H * W // 2
    cm = jnp.maximum(y_ref[pl.ds(0, half, 2), :], y_ref[pl.ds(1, half, 2), :])
    cm = cm.reshape(H // 2, 2, W // 2, Cout)
    pooled = jnp.maximum(cm[:, 0], cm[:, 1])
    o_ref[...] = jnp.maximum(pooled, 0.0)[None].astype(o_ref.dtype)


# ---------------------------------------------------------------------------
# Kernel 3: bilinear x2 + conv3 (128->64, 3x3) + conv4 (64->1, 1x1) + sigmoid.
# ---------------------------------------------------------------------------
def _decoder_kernel(x_ref, w3_ref, b3_ref, w4_ref, b4_ref,
                    o00_ref, o01_ref, o10_ref, o11_ref,
                    xext_ref, p00_ref, p01_ref, p10_ref, p11_ref):
    # x_ref: (1, Hp, Wp, 128) pooled encoder output.
    # Produces the four output phases (row parity r, col parity s) of the
    # upsampled grid; the trailing F.relu of the module is the identity on
    # sigmoid outputs, so it is folded away.
    _, Hp, Wp, C = x_ref.shape
    Cmid = w3_ref.shape[1]
    a, b = 0.75, 0.25
    aa, ab, bb = a * a, a * b, b * b

    # Clamp-extended copy of x (the bilinear blend uses edge-clamped neighbours).
    xext_ref[1:Hp + 1, 1:Wp + 1, :] = x_ref[0]
    xext_ref[0:1, 1:Wp + 1, :] = x_ref[0, 0:1, :, :]
    xext_ref[Hp + 1:Hp + 2, 1:Wp + 1, :] = x_ref[0, Hp - 1:Hp, :, :]
    xext_ref[:, 0:1, :] = xext_ref[:, 1:2, :]
    xext_ref[:, Wp + 1:Wp + 2, :] = xext_ref[:, Wp:Wp + 1, :]

    x00 = xext_ref[1:Hp + 1, 1:Wp + 1, :]
    xm0 = xext_ref[0:Hp, 1:Wp + 1, :]
    xp0 = xext_ref[2:Hp + 2, 1:Wp + 1, :]
    x0m = xext_ref[1:Hp + 1, 0:Wp, :]
    x0p = xext_ref[1:Hp + 1, 2:Wp + 2, :]
    xmm = xext_ref[0:Hp, 0:Wp, :]
    xmp = xext_ref[0:Hp, 2:Wp + 2, :]
    xpm = xext_ref[2:Hp + 2, 0:Wp, :]
    xpp = xext_ref[2:Hp + 2, 2:Wp + 2, :]

    # Bilinear x2 (align_corners=False) phase images, zero-padded by 1 for conv3.
    phase_vals = [[aa * x00 + ab * xm0 + ab * x0m + bb * xmm,   # even row, even col
                   aa * x00 + ab * xm0 + ab * x0p + bb * xmp],  # even row, odd col
                  [aa * x00 + ab * xp0 + ab * x0m + bb * xpm,   # odd row, even col
                   aa * x00 + ab * xp0 + ab * x0p + bb * xpp]]  # odd row, odd col
    phase_refs = [[p00_ref, p01_ref], [p10_ref, p11_ref]]
    for r in range(2):
        for s in range(2):
            phase_refs[r][s][...] = jnp.zeros_like(phase_refs[r][s])
            phase_refs[r][s][1:Hp + 1, 1:Wp + 1, :] = phase_vals[r][s]

    out_refs = [[o00_ref, o01_ref], [o10_ref, o11_ref]]
    w4row = w4_ref[...].reshape(1, 1, Cmid)
    for r in range(2):
        for s in range(2):
            # 3x3 conv on the (virtual) upsampled map evaluated at phase (r, s):
            # tap (ky, kx) reads upsampled row 2i + r + ky - 1, i.e. phase parity
            # (r+ky-1) % 2 at row i + (r+ky-1)//2 (zero outside bounds; same for
            # columns).  All taps are lane-aligned 128-wide slices -> one 1152-deep
            # contraction.
            taps = []
            for ky in range(3):
                u = r + ky - 1
                pr, qr = u % 2, u // 2
                for kx in range(3):
                    v = s + kx - 1
                    pc, qc = v % 2, v // 2
                    taps.append(phase_refs[pr][pc][qr + 1:qr + 1 + Hp,
                                                   qc + 1:qc + 1 + Wp, :])
            patch = jnp.concatenate(taps, axis=-1).reshape(Hp * Wp, 9 * C)
            acc = jnp.dot(patch, w3_ref[...], preferred_element_type=jnp.float32)
            acc = (acc + b3_ref[...]).reshape(Hp, Wp, Cmid)
            # 1x1 conv head (Cout=1) as a VPU multiply + lane reduction.
            head = jnp.sum(acc * w4row, axis=-1, keepdims=True) + b4_ref[...]
            out_refs[r][s][...] = jax.nn.sigmoid(head)[None].astype(
                out_refs[r][s].dtype)


# ---------------------------------------------------------------------------
# Wrapper
# ---------------------------------------------------------------------------
def lanenet_forward(x_nchw, params):
    x = jnp.transpose(x_nchw, (0, 2, 3, 1)).astype(jnp.float32)   # NCHW -> NHWC
    N, H, W, Cin = x.shape
    assert H % 2 == 0 and W % 2 == 0, "demo shapes: even spatial dims"
    Hp, Wp = H // 2, W // 2
    parallel = pltpu.CompilerParams(dimension_semantics=("parallel",))

    # ---- K1: conv1 (3 -> 64).  The 27-channel im2col of the 3-channel input is
    # built in JAX (it is smaller than the layer's own 64-channel output) and
    # turns nine 3-deep matmuls into one 27-deep contraction.
    xp = jnp.pad(x, ((0, 0), (1, 1), (1, 1), (0, 0)))
    patch1 = jnp.concatenate(
        [xp[:, ky:ky + H, kx:kx + W, :] for ky in range(3) for kx in range(3)],
        axis=-1)                                                   # (N, H, W, 27)
    w1f = params["w1"].reshape(9 * Cin, 64)
    b1 = params["b1"].reshape(1, 64)
    c1 = pl.pallas_call(
        _conv1_kernel,
        out_shape=jax.ShapeDtypeStruct((N, H, W, 64), jnp.float32),
        grid=(N,),
        in_specs=[
            pl.BlockSpec((1, H, W, 9 * Cin), lambda n: (n, 0, 0, 0)),
            pl.BlockSpec((9 * Cin, 64), lambda n: (0, 0)),
            pl.BlockSpec((1, 64), lambda n: (0, 0)),
        ],
        out_specs=pl.BlockSpec((1, H, W, 64), lambda n: (n, 0, 0, 0)),
        compiler_params=parallel,
    )(patch1, w1f, b1)

    # ---- K2: conv2 (64 -> 128) + MaxPool2d(2) + ReLU, fused.
    # Weight gets zero rows for the in-kernel 64->128 channel zero-padding.
    w2f = jnp.pad(params["w2"], ((0, 0), (0, 0), (0, 128 - 64), (0, 0))
                  ).reshape(9 * 128, 128)
    b2 = params["b2"].reshape(1, 128)
    pooled = pl.pallas_call(
        _conv2_pool_relu_kernel,
        out_shape=jax.ShapeDtypeStruct((N, Hp, Wp, 128), jnp.float32),
        grid=(N,),
        in_specs=[
            pl.BlockSpec((1, H, W, 64), lambda n: (n, 0, 0, 0)),
            pl.BlockSpec((9 * 128, 128), lambda n: (0, 0)),
            pl.BlockSpec((1, 128), lambda n: (0, 0)),
        ],
        out_specs=pl.BlockSpec((1, Hp, Wp, 128), lambda n: (n, 0, 0, 0)),
        scratch_shapes=[
            pltpu.VMEM((H + 2, W + 2, 128), jnp.float32),
            pltpu.VMEM((H * W, 128), jnp.float32),
        ],
        compiler_params=parallel,
    )(c1, w2f, b2)

    # ---- K3: bilinear x2 + conv3 (128 -> 64) + conv4 (64 -> 1) + sigmoid, fused.
    w3f = params["w3"].reshape(9 * 128, 64)
    b3 = params["b3"].reshape(1, 64)
    w4 = params["w4"].reshape(1, 64)
    b4 = params["b4"].reshape(1, 1)
    phase_sds = jax.ShapeDtypeStruct((N, Hp, Wp, 1), jnp.float32)
    phase_spec = pl.BlockSpec((1, Hp, Wp, 1), lambda n: (n, 0, 0, 0))
    ee, eo, oe, oo = pl.pallas_call(
        _decoder_kernel,
        out_shape=(phase_sds, phase_sds, phase_sds, phase_sds),
        grid=(N,),
        in_specs=[
            pl.BlockSpec((1, Hp, Wp, 128), lambda n: (n, 0, 0, 0)),
            pl.BlockSpec((9 * 128, 64), lambda n: (0, 0)),
            pl.BlockSpec((1, 64), lambda n: (0, 0)),
            pl.BlockSpec((1, 64), lambda n: (0, 0)),
            pl.BlockSpec((1, 1), lambda n: (0, 0)),
        ],
        out_specs=(phase_spec, phase_spec, phase_spec, phase_spec),
        scratch_shapes=[pltpu.VMEM((Hp + 2, Wp + 2, 128), jnp.float32)
                        for _ in range(5)],
        compiler_params=parallel,
    )(pooled, w3f, b3, w4, b4)

    # Interleave the four 1-channel phase maps (tiny) back to (N, H, W, 1).
    row_e = jnp.stack([ee, eo], axis=3).reshape(N, Hp, W, 1)
    row_o = jnp.stack([oe, oo], axis=3).reshape(N, Hp, W, 1)
    out = jnp.stack([row_e, row_o], axis=2).reshape(N, H, W, 1)
    return jnp.transpose(out, (0, 3, 1, 2))                        # NHWC -> NCHW


# ---------------------------------------------------------------------------
# Pure-JAX reference (correctness check of the Pallas kernels)
# ---------------------------------------------------------------------------
def _bilinear_ref(x):
    N, H, W, C = x.shape

    def coords(n_in, n_out):
        src = jnp.clip((jnp.arange(n_out) + 0.5) / 2.0 - 0.5, 0.0, n_in - 1.0)
        i0 = jnp.floor(src).astype(jnp.int32)
        i1 = jnp.minimum(i0 + 1, n_in - 1)
        return i0, i1, (src - i0).astype(x.dtype)

    i0, i1, fi = coords(H, 2 * H)
    j0, j1, fj = coords(W, 2 * W)
    xr = (1 - fi)[None, :, None, None] * x[:, i0] + fi[None, :, None, None] * x[:, i1]
    return (1 - fj)[None, None, :, None] * xr[:, :, j0] + fj[None, None, :, None] * xr[:, :, j1]


def lanenet_reference(x_nchw, params):
    dn = ("NHWC", "HWIO", "NHWC")
    x = jnp.transpose(x_nchw, (0, 2, 3, 1))
    x = jax.lax.conv_general_dilated(x, params["w1"], (1, 1), "SAME", dimension_numbers=dn) + params["b1"]
    x = jax.lax.conv_general_dilated(x, params["w2"], (1, 1), "SAME", dimension_numbers=dn) + params["b2"]
    x = jax.lax.reduce_window(x, -jnp.inf, jax.lax.max, (1, 2, 2, 1), (1, 2, 2, 1), "VALID")
    x = jnp.maximum(x, 0.0)
    x = _bilinear_ref(x)
    x = jax.lax.conv_general_dilated(x, params["w3"], (1, 1), "SAME", dimension_numbers=dn) + params["b3"]
    x = jax.lax.conv_general_dilated(x, params["w4"], (1, 1), "SAME", dimension_numbers=dn) + params["b4"]
    x = jnp.maximum(jax.nn.sigmoid(x), 0.0)
    return jnp.transpose(x, (0, 3, 1, 2))


# ---------------------------------------------------------------------------
if __name__ == "__main__":
    key = jax.random.PRNGKey(0)
    ks = jax.random.split(key, 9)
    params = {
        "w1": 0.1 * jax.random.normal(ks[0], (3, 3, 3, 64), jnp.float32),
        "b1": 0.1 * jax.random.normal(ks[1], (64,), jnp.float32),
        "w2": 0.05 * jax.random.normal(ks[2], (3, 3, 64, 128), jnp.float32),
        "b2": 0.1 * jax.random.normal(ks[3], (128,), jnp.float32),
        "w3": 0.05 * jax.random.normal(ks[4], (3, 3, 128, 64), jnp.float32),
        "b3": 0.1 * jax.random.normal(ks[5], (64,), jnp.float32),
        "w4": 0.1 * jax.random.normal(ks[6], (1, 1, 64, 1), jnp.float32),
        "b4": 0.1 * jax.random.normal(ks[7], (1,), jnp.float32),
    }
    x = jax.random.normal(ks[8], (2, 3, 16, 16), jnp.float32)  # NCHW, like the PyTorch module

    out = jax.jit(lanenet_forward)(x, params)
    out = jax.block_until_ready(out)

    ref = lanenet_reference(x, params)
    assert out.shape == (2, 1, 16, 16), out.shape
    assert jnp.allclose(out, ref, atol=1e-4, rtol=1e-4), float(jnp.max(jnp.abs(out - ref)))
    print("KERNEL_OK")
</pallas_src>

<mosaic_0001>
module attributes {stable_mosaic.version = 11 : i64} {
  func.func @_conv1_kernel(%arg0: i32, %arg1: memref<1x16x16x27xf32, #tpu.memory_space<vmem>>, %arg2: memref<27x64xf32, #tpu.memory_space<vmem>>, %arg3: memref<1x64xf32, #tpu.memory_space<vmem>>, %arg4: memref<1x16x16x64xf32, #tpu.memory_space<vmem>>) attributes {dimension_semantics = [#tpu.dimension_semantics<parallel>], iteration_bounds = array<i64: 2>, scalar_prefetch = 0 : i64, scratch_operands = 0 : i64, tpu.core_type = #tpu.core_type<tc>, window_params = [{transform_indices = @transform_0, window_bounds = array<i64: 1, 16, 16, 27>}, {pipeline_mode = #tpu.pipeline_mode<synchronous>, transform_indices = @transform_1, window_bounds = array<i64: 27, 64>}, {pipeline_mode = #tpu.pipeline_mode<synchronous>, transform_indices = @transform_2, window_bounds = array<i64: 1, 64>}, {transform_indices = @transform_3, window_bounds = array<i64: 1, 16, 16, 64>}]} {
    %c0 = arith.constant 0 : index
    %c0_0 = arith.constant 0 : index
    %c0_1 = arith.constant 0 : index
    %c0_2 = arith.constant 0 : index
    %0 = vector.load %arg1[%c0, %c0_0, %c0_1, %c0_2] : memref<1x16x16x27xf32, #tpu.memory_space<vmem>>, vector<1x16x16x27xf32>
    %1 = vector.shape_cast %0 : vector<1x16x16x27xf32> to vector<16x16x27xf32>
    %2 = vector.shape_cast %1 : vector<16x16x27xf32> to vector<256x27xf32>
    %c0_3 = arith.constant 0 : index
    %c0_4 = arith.constant 0 : index
    %3 = vector.load %arg2[%c0_3, %c0_4] : memref<27x64xf32, #tpu.memory_space<vmem>>, vector<27x64xf32>
    %cst = arith.constant dense<0.000000e+00> : vector<256x64xf32>
    %4 = tpu.matmul %2, %3, %cst {dimension_numbers = #tpu.dot_dimension_numbers<[1], [0], [0], [1], [0, 0, 1, 1], [], []>} : vector<256x27xf32>, vector<27x64xf32>, vector<256x64xf32> -> vector<256x64xf32>
    %c0_5 = arith.constant 0 : index
    %c0_6 = arith.constant 0 : index
    %5 = vector.load %arg3[%c0_5, %c0_6] : memref<1x64xf32, #tpu.memory_space<vmem>>, vector<1x64xf32>
    %6 = vector.broadcast %5 : vector<1x64xf32> to vector<256x64xf32>
    %7 = arith.addf %4, %6 : vector<256x64xf32>
    %8 = vector.shape_cast %7 : vector<256x64xf32> to vector<16x16x64xf32>
    %9 = vector.shape_cast %8 : vector<16x16x64xf32> to vector<1x16x16x64xf32>
    %c0_7 = arith.constant 0 : index
    %c0_8 = arith.constant 0 : index
    %c0_9 = arith.constant 0 : index
    %c0_10 = arith.constant 0 : index
    %10 = vector.load %arg4[%c0_7, %c0_8, %c0_9, %c0_10] : memref<1x16x16x64xf32, #tpu.memory_space<vmem>>, vector<1x16x16x64xf32>
    tpu.vector_store %arg4[%c0_7, %c0_8, %c0_9, %c0_10], %9 {strides = array<i32>} : memref<1x16x16x64xf32, #tpu.memory_space<vmem>>, vector<1x16x16x64xf32>,
    return
  }
  func.func @transform_0(%arg0: i32) -> (i32, i32, i32, i32) {
    %c0_i32 = arith.constant 0 : i32
    %c0_i32_0 = arith.constant 0 : i32
    %c0_i32_1 = arith.constant 0 : i32
    %c0_i32_2 = arith.constant 0 : i32
    return %arg0, %c0_i32, %c0_i32_0, %c0_i32_1 : i32, i32, i32, i32
  }
  func.func @transform_1(%arg0: i32) -> (i32, i32) {
    %c0_i32 = arith.constant 0 : i32
    %c0_i32_0 = arith.constant 0 : i32
    %c0_i32_1 = arith.constant 0 : i32
    return %c0_i32, %c0_i32_0 : i32, i32
  }
  func.func @transform_2(%arg0: i32) -> (i32, i32) {
    %c0_i32 = arith.constant 0 : i32
    %c0_i32_0 = arith.constant 0 : i32
    %c0_i32_1 = arith.constant 0 : i32
    return %c0_i32, %c0_i32_0 : i32, i32
  }
  func.func @transform_3(%arg0: i32) -> (i32, i32, i32, i32) {
    %c0_i32 = arith.constant 0 : i32
    %c0_i32_0 = arith.constant 0 : i32
    %c0_i32_1 = arith.constant 0 : i32
    %c0_i32_2 = arith.constant 0 : i32
    return %arg0, %c0_i32, %c0_i32_0, %c0_i32_1 : i32, i32, i32, i32
  }
}

module attributes {stable_mosaic.version = 11 : i64} {
  func.func @_conv2_pool_relu_kernel(%arg0: i32, %arg1: memref<1x16x16x64xf32, #tpu.memory_space<vmem>>, %arg2: memref<1152x128xf32, #tpu.memory_space<vmem>>, %arg3: memref<1x128xf32, #tpu.memory_space<vmem>>, %arg4: memref<1x8x8x128xf32, #tpu.memory_space<vmem>>, %arg5: memref<18x18x128xf32, #tpu.memory_space<vmem>>, %arg6: memref<256x128xf32, #tpu.memory_space<vmem>>) attributes {dimension_semantics = [#tpu.dimension_semantics<parallel>], iteration_bounds = array<i64: 2>, scalar_prefetch = 0 : i64, scratch_operands = 2 : i64, tpu.core_type = #tpu.core_type<tc>, window_params = [{transform_indices = @transform_0, window_bounds = array<i64: 1, 16, 16, 64>}, {pipeline_mode = #tpu.pipeline_mode<synchronous>, transform_indices = @transform_1, window_bounds = array<i64: 1152, 128>}, {pipeline_mode = #tpu.pipeline_mode<synchronous>, transform_indices = @transform_2, window_bounds = array<i64: 1, 128>}, {transform_indices = @transform_3, window_bounds = array<i64: 1, 8, 8, 128>}]} {
    %cst = arith.constant 0.000000e+00 : f32
    %0 = vector.broadcast %cst : f32 to vector<18x18x128xf32>
    %c0 = arith.constant 0 : index
    %c0_0 = arith.constant 0 : index
    %c0_1 = arith.constant 0 : index
    %1 = vector.load %arg5[%c0, %c0_0, %c0_1] : memref<18x18x128xf32, #tpu.memory_space<vmem>>, vector<18x18x128xf32>
    tpu.vector_store %arg5[%c0, %c0_0, %c0_1], %0 {strides = array<i32>} : memref<18x18x128xf32, #tpu.memory_space<vmem>>, vector<18x18x128xf32>,
    %c0_2 = arith.constant 0 : index
    %c0_3 = arith.constant 0 : index
    %c0_4 = arith.constant 0 : index
    %c0_5 = arith.constant 0 : index
    %2 = vector.load %arg1[%c0_2, %c0_3, %c0_4, %c0_5] : memref<1x16x16x64xf32, #tpu.memory_space<vmem>>, vector<1x16x16x64xf32>
    %3 = vector.shape_cast %2 : vector<1x16x16x64xf32> to vector<16x16x64xf32>
    %c1 = arith.constant 1 : index
    %c1_6 = arith.constant 1 : index
    %c0_7 = arith.constant 0 : index
    %4 = vector.load %arg5[%c1, %c1_6, %c0_7] : memref<18x18x128xf32, #tpu.memory_space<vmem>>, vector<16x16x64xf32>
    tpu.vector_store %arg5[%c1, %c1_6, %c0_7], %3 {strides = array<i32>} : memref<18x18x128xf32, #tpu.memory_space<vmem>>, vector<16x16x64xf32>,
    %c0_8 = arith.constant 0 : index
    %c0_9 = arith.constant 0 : index
    %c0_10 = arith.constant 0 : index
    %5 = vector.load %arg5[%c0_8, %c0_9, %c0_10] : memref<18x18x128xf32, #tpu.memory_space<vmem>>, vector<16x16x128xf32>
    %c0_11 = arith.constant 0 : index
    %c1_12 = arith.constant 1 : index
    %c0_13 = arith.constant 0 : index
    %6 = vector.load %arg5[%c0_11, %c1_12, %c0_13] : memref<18x18x128xf32, #tpu.memory_space<vmem>>, vector<16x16x128xf32>
    %c0_14 = arith.constant 0 : index
    %c2 = arith.constant 2 : index
    %c0_15 = arith.constant 0 : index
    %7 = vector.load %arg5[%c0_14, %c2, %c0_15] : memref<18x18x128xf32, #tpu.memory_space<vmem>>, vector<16x16x128xf32>
    %c1_16 = arith.constant 1 : index
    %c0_17 = arith.constant 0 : index
    %c0_18 = arith.constant 0 : index
    %8 = vector.load %arg5[%c1_16, %c0_17, %c0_18] : memref<18x18x128xf32, #tpu.memory_space<vmem>>, vector<16x16x128xf32>
    %c1_19 = arith.constant 1 : index
    %c1_20 = arith.constant 1 : index
    %c0_21 = arith.constant 0 : index
    %9 = vector.load %arg5[%c1_19, %c1_20, %c0_21] : memref<18x18x128xf32, #tpu.memory_space<vmem>>, vector<16x16x128xf32>
    %c1_22 = arith.constant 1 : index
    %c2_23 = arith.constant 2 : index
    %c0_24 = arith.constant 0 : index
    %10 = vector.load %arg5[%c1_22, %c2_23, %c0_24] : memref<18x18x128xf32, #tpu.memory_space<vmem>>, vector<16x16x128xf32>
    %c2_25 = arith.constant 2 : index
    %c0_26 = arith.constant 0 : index
    %c0_27 = arith.constant 0 : index
    %11 = vector.load %arg5[%c2_25, %c0_26, %c0_27] : memref<18x18x128xf32, #tpu.memory_space<vmem>>, vector<16x16x128xf32>
    %c2_28 = arith.constant 2 : index
    %c1_29 = arith.constant 1 : index
    %c0_30 = arith.constant 0 : index
    %12 = vector.load %arg5[%c2_28, %c1_29, %c0_30] : memref<18x18x128xf32, #tpu.memory_space<vmem>>, vector<16x16x128xf32>
    %c2_31 = arith.constant 2 : index
    %c2_32 = arith.constant 2 : index
    %c0_33 = arith.constant 0 : index
    %13 = vector.load %arg5[%c2_31, %c2_32, %c0_33] : memref<18x18x128xf32, #tpu.memory_space<vmem>>, vector<16x16x128xf32>
    %14 = tpu.concatenate %5, %6, %7, %8, %9, %10, %11, %12, %13 in 2 : vector<16x16x128xf32>, vector<16x16x128xf32>, vector<16x16x128xf32>, vector<16x16x128xf32>, vector<16x16x128xf32>, vector<16x16x128xf32>, vector<16x16x128xf32>, vector<16x16x128xf32>, vector<16x16x128xf32> -> vector<16x16x1152xf32>
    %15 = vector.shape_cast %14 : vector<16x16x1152xf32> to vector<256x1152xf32>
    %c0_34 = arith.constant 0 : index
    %c0_35 = arith.constant 0 : index
    %16 = vector.load %arg2[%c0_34, %c0_35] : memref<1152x128xf32, #tpu.memory_space<vmem>>, vector<1152x128xf32>
    %cst_36 = arith.constant dense<0.000000e+00> : vector<256x128xf32>
    %17 = tpu.matmul %15, %16, %cst_36 {dimension_numbers = #tpu.dot_dimension_numbers<[1], [0], [0], [1], [0, 0, 1, 1], [], []>} : vector<256x1152xf32>, vector<1152x128xf32>, vector<256x128xf32> -> vector<256x128xf32>
    %c0_37 = arith.constant 0 : index
    %c0_38 = arith.constant 0 : index
    %18 = vector.load %arg3[%c0_37, %c0_38] : memref<1x128xf32, #tpu.memory_space<vmem>>, vector<1x128xf32>
    %19 = vector.broadcast %18 : vector<1x128xf32> to vector<256x128xf32>
    %20 = arith.addf %17, %19 : vector<256x128xf32>
    %c0_39 = arith.constant 0 : index
    %c0_40 = arith.constant 0 : index
    %21 = vector.load %arg6[%c0_39, %c0_40] : memref<256x128xf32, #tpu.memory_space<vmem>>, vector<256x128xf32>
    tpu.vector_store %arg6[%c0_39, %c0_40], %20 {strides = array<i32>} : memref<256x128xf32, #tpu.memory_space<vmem>>, vector<256x128xf32>,
    %c0_41 = arith.constant 0 : index
    %c0_42 = arith.constant 0 : index
    %22 = tpu.strided_load %arg6[%c0_41, %c0_42] {strides = array<i32: 2, 1>} : memref<256x128xf32, #tpu.memory_space<vmem>>, vector<128x128xf32>
    %c1_43 = arith.constant 1 : index
    %c0_44 = arith.constant 0 : index
    %23 = tpu.strided_load %arg6[%c1_43, %c0_44] {strides = array<i32: 2, 1>} : memref<256x128xf32, #tpu.memory_space<vmem>>, vector<128x128xf32>
    %24 = arith.maximumf %22, %23 : vector<128x128xf32>
    %25 = vector.shape_cast %24 : vector<128x128xf32> to vector<8x2x8x128xf32>
    %26 = vector.extract_strided_slice %25 {offsets = [0, 0, 0, 0], sizes = [8, 1, 8, 128], strides = [1, 1, 1, 1]} : vector<8x2x8x128xf32> to vector<8x1x8x128xf32>
    %27 = vector.shape_cast %26 : vector<8x1x8x128xf32> to vector<8x8x128xf32>
    %28 = vector.extract_strided_slice %25 {offsets = [0, 1, 0, 0], sizes = [8, 1, 8, 128], strides = [1, 1, 1, 1]} : vector<8x2x8x128xf32> to vector<8x1x8x128xf32>
    %29 = vector.shape_cast %28 : vector<8x1x8x128xf32> to vector<8x8x128xf32>
    %30 = arith.maximumf %27, %29 : vector<8x8x128xf32>
    %cst_45 = arith.constant 0.000000e+00 : f32
    %31 = vector.broadcast %cst_45 : f32 to vector<8x8x128xf32>
    %32 = arith.maximumf %30, %31 : vector<8x8x128xf32>
    %33 = vector.shape_cast %32 : vector<8x8x128xf32> to vector<1x8x8x128xf32>
    %c0_46 = arith.constant 0 : index
    %c0_47 = arith.constant 0 : index
    %c0_48 = arith.constant 0 : index
    %c0_49 = arith.constant 0 : index
    %34 = vector.load %arg4[%c0_46, %c0_47, %c0_48, %c0_49] : memref<1x8x8x128xf32, #tpu.memory_space<vmem>>, vector<1x8x8x128xf32>
    tpu.vector_store %arg4[%c0_46, %c0_47, %c0_48, %c0_49], %33 {strides = array<i32>} : memref<1x8x8x128xf32, #tpu.memory_space<vmem>>, vector<1x8x8x128xf32>,
    return
  }
  func.func @transform_0(%arg0: i32) -> (i32, i32, i32, i32) {
    %c0_i32 = arith.constant 0 : i32
    %c0_i32_0 = arith.constant 0 : i32
    %c0_i32_1 = arith.constant 0 : i32
    %c0_i32_2 = arith.constant 0 : i32
    return %arg0, %c0_i32, %c0_i32_0, %c0_i32_1 : i32, i32, i32, i32
  }
  func.func @transform_1(%arg0: i32) -> (i32, i32) {
    %c0_i32 = arith.constant 0 : i32
    %c0_i32_0 = arith.constant 0 : i32
    %c0_i32_1 = arith.constant 0 : i32
    return %c0_i32, %c0_i32_0 : i32, i32
  }
  func.func @transform_2(%arg0: i32) -> (i32, i32) {
    %c0_i32 = arith.constant 0 : i32
    %c0_i32_0 = arith.constant 0 : i32
    %c0_i32_1 = arith.constant 0 : i32
    return %c0_i32, %c0_i32_0 : i32, i32
  }
  func.func @transform_3(%arg0: i32) -> (i32, i32, i32, i32) {
    %c0_i32 = arith.constant 0 : i32
    %c0_i32_0 = arith.constant 0 : i32
    %c0_i32_1 = arith.constant 0 : i32
    %c0_i32_2 = arith.constant 0 : i32
    return %arg0, %c0_i32, %c0_i32_0, %c0_i32_1 : i32, i32, i32, i32
  }
}

module attributes {stable_mosaic.version = 11 : i64} {
  func.func @_decoder_kernel(%arg0: i32, %arg1: memref<1x8x8x128xf32, #tpu.memory_space<vmem>>, %arg2: memref<1152x64xf32, #tpu.memory_space<vmem>>, %arg3: memref<1x64xf32, #tpu.memory_space<vmem>>, %arg4: memref<1x64xf32, #tpu.memory_space<vmem>>, %arg5: memref<1x1xf32, #tpu.memory_space<vmem>>, %arg6: memref<1x8x8x1xf32, #tpu.memory_space<vmem>>, %arg7: memref<1x8x8x1xf32, #tpu.memory_space<vmem>>, %arg8: memref<1x8x8x1xf32, #tpu.memory_space<vmem>>, %arg9: memref<1x8x8x1xf32, #tpu.memory_space<vmem>>, %arg10: memref<10x10x128xf32, #tpu.memory_space<vmem>>, %arg11: memref<10x10x128xf32, #tpu.memory_space<vmem>>, %arg12: memref<10x10x128xf32, #tpu.memory_space<vmem>>, %arg13: memref<10x10x128xf32, #tpu.memory_space<vmem>>, %arg14: memref<10x10x128xf32, #tpu.memory_space<vmem>>) attributes {dimension_semantics = [#tpu.dimension_semantics<parallel>], iteration_bounds = array<i64: 2>, scalar_prefetch = 0 : i64, scratch_operands = 5 : i64, tpu.core_type = #tpu.core_type<tc>, window_params = [{transform_indices = @transform_0, window_bounds = array<i64: 1, 8, 8, 128>}, {pipeline_mode = #tpu.pipeline_mode<synchronous>, transform_indices = @transform_1, window_bounds = array<i64: 1152, 64>}, {pipeline_mode = #tpu.pipeline_mode<synchronous>, transform_indices = @transform_2, window_bounds = array<i64: 1, 64>}, {pipeline_mode = #tpu.pipeline_mode<synchronous>, transform_indices = @transform_3, window_bounds = array<i64: 1, 64>}, {pipeline_mode = #tpu.pipeline_mode<synchronous>, transform_indices = @transform_4, window_bounds = array<i64: 1, 1>}, {transform_indices = @transform_5, window_bounds = array<i64: 1, 8, 8, 1>}, {transform_indices = @transform_6, window_bounds = array<i64: 1, 8, 8, 1>}, {transform_indices = @transform_7, window_bounds = array<i64: 1, 8, 8, 1>}, {transform_indices = @transform_8, window_bounds = array<i64: 1, 8, 8, 1>}]} {
    %c0 = arith.constant 0 : index
    %c0_0 = arith.constant 0 : index
    %c0_1 = arith.constant 0 : index
    %c0_2 = arith.constant 0 : index
    %0 = vector.load %arg1[%c0, %c0_0, %c0_1, %c0_2] : memref<1x8x8x128xf32, #tpu.memory_space<vmem>>, vector<1x8x8x128xf32>
    %1 = vector.shape_cast %0 : vector<1x8x8x128xf32> to vector<8x8x128xf32>
    %c1 = arith.constant 1 : index
    %c1_3 = arith.constant 1 : index
    %c0_4 = arith.constant 0 : index
    %2 = vector.load %arg10[%c1, %c1_3, %c0_4] : memref<10x10x128xf32, #tpu.memory_space<vmem>>, vector<8x8x128xf32>
    tpu.vector_store %arg10[%c1, %c1_3, %c0_4], %1 {strides = array<i32>} : memref<10x10x128xf32, #tpu.memory_space<vmem>>, vector<8x8x128xf32>,
    %c0_5 = arith.constant 0 : index
    %c0_6 = arith.constant 0 : index
    %c0_7 = arith.constant 0 : index
    %c0_8 = arith.constant 0 : index
    %3 = vector.load %arg1[%c0_5, %c0_6, %c0_7, %c0_8] : memref<1x8x8x128xf32, #tpu.memory_space<vmem>>, vector<1x1x8x128xf32>
    %4 = vector.shape_cast %3 : vector<1x1x8x128xf32> to vector<1x8x128xf32>
    %c0_9 = arith.constant 0 : index
    %c1_10 = arith.constant 1 : index
    %c0_11 = arith.constant 0 : index
    %5 = vector.load %arg10[%c0_9, %c1_10, %c0_11] : memref<10x10x128xf32, #tpu.memory_space<vmem>>, vector<1x8x128xf32>
    tpu.vector_store %arg10[%c0_9, %c1_10, %c0_11], %4 {strides = array<i32>} : memref<10x10x128xf32, #tpu.memory_space<vmem>>, vector<1x8x128xf32>,
    %c0_12 = arith.constant 0 : index
    %c7 = arith.constant 7 : index
    %c0_13 = arith.constant 0 : index
    %c0_14 = arith.constant 0 : index
    %6 = vector.load %arg1[%c0_12, %c7, %c0_13, %c0_14] : memref<1x8x8x128xf32, #tpu.memory_space<vmem>>, vector<1x1x8x128xf32>
    %7 = vector.shape_cast %6 : vector<1x1x8x128xf32> to vector<1x8x128xf32>
    %c9 = arith.constant 9 : index
    %c1_15 = arith.constant 1 : index
    %c0_16 = arith.constant 0 : index
    %8 = vector.load %arg10[%c9, %c1_15, %c0_16] : memref<10x10x128xf32, #tpu.memory_space<vmem>>, vector<1x8x128xf32>
    tpu.vector_store %arg10[%c9, %c1_15, %c0_16], %7 {strides = array<i32>} : memref<10x10x128xf32, #tpu.memory_space<vmem>>, vector<1x8x128xf32>,
    %c0_17 = arith.constant 0 : index
    %c1_18 = arith.constant 1 : index
    %c0_19 = arith.constant 0 : index
    %9 = vector.load %arg10[%c0_17, %c1_18, %c0_19] : memref<10x10x128xf32, #tpu.memory_space<vmem>>, vector<10x1x128xf32>
    %c0_20 = arith.constant 0 : index
    %c0_21 = arith.constant 0 : index
    %c0_22 = arith.constant 0 : index
    %10 = vector.load %arg10[%c0_20, %c0_21, %c0_22] : memref<10x10x128xf32, #tpu.memory_space<vmem>>, vector<10x1x128xf32>
    tpu.vector_store %arg10[%c0_20, %c0_21, %c0_22], %9 {strides = array<i32>} : memref<10x10x128xf32, #tpu.memory_space<vmem>>, vector<10x1x128xf32>,
    %c0_23 = arith.constant 0 : index
    %c8 = arith.constant 8 : index
    %c0_24 = arith.constant 0 : index
    %11 = vector.load %arg10[%c0_23, %c8, %c0_24] : memref<10x10x128xf32, #tpu.memory_space<vmem>>, vector<10x1x128xf32>
    %c0_25 = arith.constant 0 : index
    %c9_26 = arith.constant 9 : index
    %c0_27 = arith.constant 0 : index
    %12 = vector.load %arg10[%c0_25, %c9_26, %c0_27] : memref<10x10x128xf32, #tpu.memory_space<vmem>>, vector<10x1x128xf32>
    tpu.vector_store %arg10[%c0_25, %c9_26, %c0_27], %11 {strides = array<i32>} : memref<10x10x128xf32, #tpu.memory_space<vmem>>, vector<10x1x128xf32>,
    %c1_28 = arith.constant 1 : index
    %c1_29 = arith.constant 1 : index
    %c0_30 = arith.constant 0 : index
    %13 = vector.load %arg10[%c1_28, %c1_29, %c0_30] : memref<10x10x128xf32, #tpu.memory_space<vmem>>, vector<8x8x128xf32>
    %c0_31 = arith.constant 0 : index
    %c1_32 = arith.constant 1 : index
    %c0_33 = arith.constant 0 : index
    %14 = vector.load %arg10[%c0_31, %c1_32, %c0_33] : memref<10x10x128xf32, #tpu.memory_space<vmem>>, vector<8x8x128xf32>
    %c2 = arith.constant 2 : index
    %c1_34 = arith.constant 1 : index
    %c0_35 = arith.constant 0 : index
    %15 = vector.load %arg10[%c2, %c1_34, %c0_35] : memref<10x10x128xf32, #tpu.memory_space<vmem>>, vector<8x8x128xf32>
    %c1_36 = arith.constant 1 : index
    %c0_37 = arith.constant 0 : index
    %c0_38 = arith.constant 0 : index
    %16 = vector.load %arg10[%c1_36, %c0_37, %c0_38] : memref<10x10x128xf32, #tpu.memory_space<vmem>>, vector<8x8x128xf32>
    %c1_39 = arith.constant 1 : index
    %c2_40 = arith.constant 2 : index
    %c0_41 = arith.constant 0 : index
    %17 = vector.load %arg10[%c1_39, %c2_40, %c0_41] : memref<10x10x128xf32, #tpu.memory_space<vmem>>, vector<8x8x128xf32>
    %c0_42 = arith.constant 0 : index
    %c0_43 = arith.constant 0 : index
    %c0_44 = arith.constant 0 : index
    %18 = vector.load %arg10[%c0_42, %c0_43, %c0_44] : memref<10x10x128xf32, #tpu.memory_space<vmem>>, vector<8x8x128xf32>
    %c0_45 = arith.constant 0 : index
    %c2_46 = arith.constant 2 : index
    %c0_47 = arith.constant 0 : index
    %19 = vector.load %arg10[%c0_45, %c2_46, %c0_47] : memref<10x10x128xf32, #tpu.memory_space<vmem>>, vector<8x8x128xf32>
    %c2_48 = arith.constant 2 : index
    %c0_49 = arith.constant 0 : index
    %c0_50 = arith.constant 0 : index
    %20 = vector.load %arg10[%c2_48, %c0_49, %c0_50] : memref<10x10x128xf32, #tpu.memory_space<vmem>>, vector<8x8x128xf32>
    %c2_51 = arith.constant 2 : index
    %c2_52 = arith.constant 2 : index
    %c0_53 = arith.constant 0 : index
    %21 = vector.load %arg10[%c2_51, %c2_52, %c0_53] : memref<10x10x128xf32, #tpu.memory_space<vmem>>, vector<8x8x128xf32>
    %cst = arith.constant 5.625000e-01 : f32
    %22 = vector.broadcast %cst : f32 to vector<8x8x128xf32>
    %23 = arith.mulf %22, %13 : vector<8x8x128xf32>
    %cst_54 = arith.constant 1.875000e-01 : f32
    %24 = vector.broadcast %cst_54 : f32 to vector<8x8x128xf32>
    %25 = arith.mulf %24, %14 : vector<8x8x128xf32>
    %26 = arith.addf %23, %25 : vector<8x8x128xf32>
    %cst_55 = arith.constant 1.875000e-01 : f32
    %27 = vector.broadcast %cst_55 : f32 to vector<8x8x128xf32>
    %28 = arith.mulf %27, %16 : vector<8x8x128xf32>
    %29 = arith.addf %26, %28 : vector<8x8x128xf32>
    %cst_56 = arith.constant 6.250000e-02 : f32
    %30 = vector.broadcast %cst_56 : f32 to vector<8x8x128xf32>
    %31 = arith.mulf %30, %18 : vector<8x8x128xf32>
    %32 = arith.addf %29, %31 : vector<8x8x128xf32>
    %cst_57 = arith.constant 5.625000e-01 : f32
    %33 = vector.broadcast %cst_57 : f32 to vector<8x8x128xf32>
    %34 = arith.mulf %33, %13 : vector<8x8x128xf32>
    %cst_58 = arith.constant 1.875000e-01 : f32
    %35 = vector.broadcast %cst_58 : f32 to vector<8x8x128xf32>
    %36 = arith.mulf %35, %14 : vector<8x8x128xf32>
    %37 = arith.addf %34, %36 : vector<8x8x128xf32>
    %cst_59 = arith.constant 1.875000e-01 : f32
    %38 = vector.broadcast %cst_59 : f32 to vector<8x8x128xf32>
    %39 = arith.mulf %38, %17 : vector<8x8x128xf32>
    %40 = arith.addf %37, %39 : vector<8x8x128xf32>
    %cst_60 = arith.constant 6.250000e-02 : f32
    %41 = vector.broadcast %cst_60 : f32 to vector<8x8x128xf32>
    %42 = arith.mulf %41, %19 : vector<8x8x128xf32>
    %43 = arith.addf %40, %42 : vector<8x8x128xf32>
    %cst_61 = arith.constant 5.625000e-01 : f32
    %44 = vector.broadcast %cst_61 : f32 to vector<8x8x128xf32>
    %45 = arith.mulf %44, %13 : vector<8x8x128xf32>
    %cst_62 = arith.constant 1.875000e-01 : f32
    %46 = vector.broadcast %cst_62 : f32 to vector<8x8x128xf32>
    %47 = arith.mulf %46, %15 : vector<8x8x128xf32>
    %48 = arith.addf %45, %47 : vector<8x8x128xf32>
    %cst_63 = arith.constant 1.875000e-01 : f32
    %49 = vector.broadcast %cst_63 : f32 to vector<8x8x128xf32>
    %50 = arith.mulf %49, %16 : vector<8x8x128xf32>
    %51 = arith.addf %48, %50 : vector<8x8x128xf32>
    %cst_64 = arith.constant 6.250000e-02 : f32
    %52 = vector.broadcast %cst_64 : f32 to vector<8x8x128xf32>
    %53 = arith.mulf %52, %20 : vector<8x8x128xf32>
    %54 = arith.addf %51, %53 : vector<8x8x128xf32>
    %cst_65 = arith.constant 5.625000e-01 : f32
    %55 = vector.broadcast %cst_65 : f32 to vector<8x8x128xf32>
    %56 = arith.mulf %55, %13 : vector<8x8x128xf32>
    %cst_66 = arith.constant 1.875000e-01 : f32
    %57 = vector.broadcast %cst_66 : f32 to vector<8x8x128xf32>
    %58 = arith.mulf %57, %15 : vector<8x8x128xf32>
    %59 = arith.addf %56, %58 : vector<8x8x128xf32>
    %cst_67 = arith.constant 1.875000e-01 : f32
    %60 = vector.broadcast %cst_67 : f32 to vector<8x8x128xf32>
    %61 = arith.mulf %60, %17 : vector<8x8x128xf32>
    %62 = arith.addf %59, %61 : vector<8x8x128xf32>
    %cst_68 = arith.constant 6.250000e-02 : f32
    %63 = vector.broadcast %cst_68 : f32 to vector<8x8x128xf32>
    %64 = arith.mulf %63, %21 : vector<8x8x128xf32>
    %65 = arith.addf %62, %64 : vector<8x8x128xf32>
    %cst_69 = arith.constant 0.000000e+00 : f32
    %66 = vector.broadcast %cst_69 : f32 to vector<10x10x128xf32>
    %c0_70 = arith.constant 0 : index
    %c0_71 = arith.constant 0 : index
    %c0_72 = arith.constant 0 : index
    %67 = vector.load %arg11[%c0_70, %c0_71, %c0_72] : memref<10x10x128xf32, #tpu.memory_space<vmem>>, vector<10x10x128xf32>
    tpu.vector_store %arg11[%c0_70, %c0_71, %c0_72], %66 {strides = array<i32>} : memref<10x10x128xf32, #tpu.memory_space<vmem>>, vector<10x10x128xf32>,
    %c1_73 = arith.constant 1 : index
    %c1_74 = arith.constant 1 : index
    %c0_75 = arith.constant 0 : index
    %68 = vector.load %arg11[%c1_73, %c1_74, %c0_75] : memref<10x10x128xf32, #tpu.memory_space<vmem>>, vector<8x8x128xf32>
    tpu.vector_store %arg11[%c1_73, %c1_74, %c0_75], %32 {strides = array<i32>} : memref<10x10x128xf32, #tpu.memory_space<vmem>>, vector<8x8x128xf32>,
    %cst_76 = arith.constant 0.000000e+00 : f32
    %69 = vector.broadcast %cst_76 : f32 to vector<10x10x128xf32>
    %c0_77 = arith.constant 0 : index
    %c0_78 = arith.constant 0 : index
    %c0_79 = arith.constant 0 : index
    %70 = vector.load %arg12[%c0_77, %c0_78, %c0_79] : memref<10x10x128xf32, #tpu.memory_space<vmem>>, vector<10x10x128xf32>
    tpu.vector_store %arg12[%c0_77, %c0_78, %c0_79], %69 {strides = array<i32>} : memref<10x10x128xf32, #tpu.memory_space<vmem>>, vector<10x10x128xf32>,
    %c1_80 = arith.constant 1 : index
    %c1_81 = arith.constant 1 : index
    %c0_82 = arith.constant 0 : index
    %71 = vector.load %arg12[%c1_80, %c1_81, %c0_82] : memref<10x10x128xf32, #tpu.memory_space<vmem>>, vector<8x8x128xf32>
    tpu.vector_store %arg12[%c1_80, %c1_81, %c0_82], %43 {strides = array<i32>} : memref<10x10x128xf32, #tpu.memory_space<vmem>>, vector<8x8x128xf32>,
    %cst_83 = arith.constant 0.000000e+00 : f32
    %72 = vector.broadcast %cst_83 : f32 to vector<10x10x128xf32>
    %c0_84 = arith.constant 0 : index
    %c0_85 = arith.constant 0 : index
    %c0_86 = arith.constant 0 : index
    %73 = vector.load %arg13[%c0_84, %c0_85, %c0_86] : memref<10x10x128xf32, #tpu.memory_space<vmem>>, vector<10x10x128xf32>
    tpu.vector_store %arg13[%c0_84, %c0_85, %c0_86], %72 {strides = array<i32>} : memref<10x10x128xf32, #tpu.memory_space<vmem>>, vector<10x10x128xf32>,
    %c1_87 = arith.constant 1 : index
    %c1_88 = arith.constant 1 : index
    %c0_89 = arith.constant 0 : index
    %74 = vector.load %arg13[%c1_87, %c1_88, %c0_89] : memref<10x10x128xf32, #tpu.memory_space<vmem>>, vector<8x8x128xf32>
    tpu.vector_store %arg13[%c1_87, %c1_88, %c0_89], %54 {strides = array<i32>} : memref<10x10x128xf32, #tpu.memory_space<vmem>>, vector<8x8x128xf32>,
    %cst_90 = arith.constant 0.000000e+00 : f32
    %75 = vector.broadcast %cst_90 : f32 to vector<10x10x128xf32>
    %c0_91 = arith.constant 0 : index
    %c0_92 = arith.constant 0 : index
    %c0_93 = arith.constant 0 : index
    %76 = vector.load %arg14[%c0_91, %c0_92, %c0_93] : memref<10x10x128xf32, #tpu.memory_space<vmem>>, vector<10x10x128xf32>
    tpu.vector_store %arg14[%c0_91, %c0_92, %c0_93], %75 {strides = array<i32>} : memref<10x10x128xf32, #tpu.memory_space<vmem>>, vector<10x10x128xf32>,
    %c1_94 = arith.constant 1 : index
    %c1_95 = arith.constant 1 : index
    %c0_96 = arith.constant 0 : index
    %77 = vector.load %arg14[%c1_94, %c1_95, %c0_96] : memref<10x10x128xf32, #tpu.memory_space<vmem>>, vector<8x8x128xf32>
    tpu.vector_store %arg14[%c1_94, %c1_95, %c0_96], %65 {strides = array<i32>} : memref<10x10x128xf32, #tpu.memory_space<vmem>>, vector<8x8x128xf32>,
    %c0_97 = arith.constant 0 : index
    %c0_98 = arith.constant 0 : index
    %78 = vector.load %arg4[%c0_97, %c0_98] : memref<1x64xf32, #tpu.memory_space<vmem>>, vector<1x64xf32>
    %79 = vector.shape_cast %78 : vector<1x64xf32> to vector<1x1x64xf32>
    %c0_99 = arith.constant 0 : index
    %c0_100 = arith.constant 0 : index
    %c0_101 = arith.constant 0 : index
    %80 = vector.load %arg14[%c0_99, %c0_100, %c0_101] : memref<10x10x128xf32, #tpu.memory_space<vmem>>, vector<8x8x128xf32>
    %c0_102 = arith.constant 0 : index
    %c1_103 = arith.constant 1 : index
    %c0_104 = arith.constant 0 : index
    %81 = vector.load %arg13[%c0_102, %c1_103, %c0_104] : memref<10x10x128xf32, #tpu.memory_space<vmem>>, vector<8x8x128xf32>
    %c0_105 = arith.constant 0 : index
    %c1_106 = arith.constant 1 : index
    %c0_107 = arith.constant 0 : index
    %82 = vector.load %arg14[%c0_105, %c1_106, %c0_107] : memref<10x10x128xf32, #tpu.memory_space<vmem>>, vector<8x8x128xf32>
    %c1_108 = arith.constant 1 : index
    %c0_109 = arith.constant 0 : index
    %c0_110 = arith.constant 0 : index
    %83 = vector.load %arg12[%c1_108, %c0_109, %c0_110] : memref<10x10x128xf32, #tpu.memory_space<vmem>>, vector<8x8x128xf32>
    %c1_111 = arith.constant 1 : index
    %c1_112 = arith.constant 1 : index
    %c0_113 = arith.constant 0 : index
    %84 = vector.load %arg11[%c1_111, %c1_112, %c0_113] : memref<10x10x128xf32, #tpu.memory_space<vmem>>, vector<8x8x128xf32>
    %c1_114 = arith.constant 1 : index
    %c1_115 = arith.constant 1 : index
    %c0_116 = arith.constant 0 : index
    %85 = vector.load %arg12[%c1_114, %c1_115, %c0_116] : memref<10x10x128xf32, #tpu.memory_space<vmem>>, vector<8x8x128xf32>
    %c1_117 = arith.constant 1 : index
    %c0_118 = arith.constant 0 : index
    %c0_119 = arith.constant 0 : index
    %86 = vector.load %arg14[%c1_117, %c0_118, %c0_119] : memref<10x10x128xf32, #tpu.memory_space<vmem>>, vector<8x8x128xf32>
    %c1_120 = arith.constant 1 : index
    %c1_121 = arith.constant 1 : index
    %c0_122 = arith.constant 0 : index
    %87 = vector.load %arg13[%c1_120, %c1_121, %c0_122] : memref<10x10x128xf32, #tpu.memory_space<vmem>>, vector<8x8x128xf32>
    %c1_123 = arith.constant 1 : index
    %c1_124 = arith.constant 1 : index
    %c0_125 = arith.constant 0 : index
    %88 = vector.load %arg14[%c1_123, %c1_124, %c0_125] : memref<10x10x128xf32, #tpu.memory_space<vmem>>, vector<8x8x128xf32>
    %89 = tpu.concatenate %80, %81, %82, %83, %84, %85, %86, %87, %88 in 2 : vector<8x8x128xf32>, vector<8x8x128xf32>, vector<8x8x128xf32>, vector<8x8x128xf32>, vector<8x8x128xf32>, vector<8x8x128xf32>, vector<8x8x128xf32>, vector<8x8x128xf32>, vector<8x8x128xf32> -> vector<8x8x1152xf32>
    %90 = vector.shape_cast %89 : vector<8x8x1152xf32> to vector<64x1152xf32>
    %c0_126 = arith.constant 0 : index
    %c0_127 = arith.constant 0 : index
    %91 = vector.load %arg2[%c0_126, %c0_127] : memref<1152x64xf32, #tpu.memory_space<vmem>>, vector<1152x64xf32>
    %cst_128 = arith.constant dense<0.000000e+00> : vector<64x64xf32>
    %92 = tpu.matmul %90, %91, %cst_128 {dimension_numbers = #tpu.dot_dimension_numbers<[1], [0], [0], [1], [0, 0, 1, 1], [], []>} : vector<64x1152xf32>, vector<1152x64xf32>, vector<64x64xf32> -> vector<64x64xf32>
    %c0_129 = arith.constant 0 : index
    %c0_130 = arith.constant 0 : index
    %93 = vector.load %arg3[%c0_129, %c0_130] : memref<1x64xf32, #tpu.memory_space<vmem>>, vector<1x64xf32>
    %94 = vector.broadcast %93 : vector<1x64xf32> to vector<64x64xf32>
    %95 = arith.addf %92, %94 : vector<64x64xf32>
    %96 = vector.shape_cast %95 : vector<64x64xf32> to vector<8x8x64xf32>
    %97 = vector.broadcast %79 : vector<1x1x64xf32> to vector<8x8x64xf32>
    %98 = arith.mulf %96, %97 : vector<8x8x64xf32>
    %cst_131 = arith.constant dense<0.000000e+00> : vector<8x8xf32>
    %99 = vector.multi_reduction <add>, %98, %cst_131 [2] : vector<8x8x64xf32> to vector<8x8xf32>
    %100 = vector.shape_cast %99 : vector<8x8xf32> to vector<8x8x1xf32>
    %c0_132 = arith.constant 0 : index
    %c0_133 = arith.constant 0 : index
    %101 = vector.load %arg5[%c0_132, %c0_133] : memref<1x1xf32, #tpu.memory_space<vmem>>, vector<1x1xf32>
    %102 = vector.shape_cast %101 : vector<1x1xf32> to vector<1x1x1xf32>
    %103 = vector.broadcast %102 : vector<1x1x1xf32> to vector<8x8x1xf32>
    %104 = arith.addf %100, %103 : vector<8x8x1xf32>
    %105 = arith.negf %104 : vector<8x8x1xf32>
    %106 = math.exp %105 : vector<8x8x1xf32>
    %cst_134 = arith.constant 1.000000e+00 : f32
    %107 = vector.broadcast %cst_134 : f32 to vector<8x8x1xf32>
    %108 = arith.addf %107, %106 : vector<8x8x1xf32>
    %109 = arith.divf %107, %108 : vector<8x8x1xf32>
    %110 = vector.shape_cast %109 : vector<8x8x1xf32> to vector<1x8x8x1xf32>
    %c0_135 = arith.constant 0 : index
    %c0_136 = arith.constant 0 : index
    %c0_137 = arith.constant 0 : index
    %c0_138 = arith.constant 0 : index
    %111 = vector.load %arg6[%c0_135, %c0_136, %c0_137, %c0_138] : memref<1x8x8x1xf32, #tpu.memory_space<vmem>>, vector<1x8x8x1xf32>
    tpu.vector_store %arg6[%c0_135, %c0_136, %c0_137, %c0_138], %110 {strides = array<i32>} : memref<1x8x8x1xf32, #tpu.memory_space<vmem>>, vector<1x8x8x1xf32>,
    %c0_139 = arith.constant 0 : index
    %c1_140 = arith.constant 1 : index
    %c0_141 = arith.constant 0 : index
    %112 = vector.load %arg13[%c0_139, %c1_140, %c0_141] : memref<10x10x128xf32, #tpu.memory_space<vmem>>, vector<8x8x128xf32>
    %c0_142 = arith.constant 0 : index
    %c1_143 = arith.constant 1 : index
    %c0_144 = arith.constant 0 : index
    %113 = vector.load %arg14[%c0_142, %c1_143, %c0_144] : memref<10x10x128xf32, #tpu.memory_space<vmem>>, vector<8x8x128xf32>
    %c0_145 = arith.constant 0 : index
    %c2_146 = arith.constant 2 : index
    %c0_147 = arith.constant 0 : index
    %114 = vector.load %arg13[%c0_145, %c2_146, %c0_147] : memref<10x10x128xf32, #tpu.memory_space<vmem>>, vector<8x8x128xf32>
    %c1_148 = arith.constant 1 : index
    %c1_149 = arith.constant 1 : index
    %c0_150 = arith.constant 0 : index
    %115 = vector.load %arg11[%c1_148, %c1_149, %c0_150] : memref<10x10x128xf32, #tpu.memory_space<vmem>>, vector<8x8x128xf32>
    %c1_151 = arith.constant 1 : index
    %c1_152 = arith.constant 1 : index
    %c0_153 = arith.constant 0 : index
    %116 = vector.load %arg12[%c1_151, %c1_152, %c0_153] : memref<10x10x128xf32, #tpu.memory_space<vmem>>, vector<8x8x128xf32>
    %c1_154 = arith.constant 1 : index
    %c2_155 = arith.constant 2 : index
    %c0_156 = arith.constant 0 : index
    %117 = vector.load %arg11[%c1_154, %c2_155, %c0_156] : memref<10x10x128xf32, #tpu.memory_space<vmem>>, vector<8x8x128xf32>
    %c1_157 = arith.constant 1 : index
    %c1_158 = arith.constant 1 : index
    %c0_159 = arith.constant 0 : index
    %118 = vector.load %arg13[%c1_157, %c1_158, %c0_159] : memref<10x10x128xf32, #tpu.memory_space<vmem>>, vector<8x8x128xf32>
    %c1_160 = arith.constant 1 : index
    %c1_161 = arith.constant 1 : index
    %c0_162 = arith.constant 0 : index
    %119 = vector.load %arg14[%c1_160, %c1_161, %c0_162] : memref<10x10x128xf32, #tpu.memory_space<vmem>>, vector<8x8x128xf32>
    %c1_163 = arith.constant 1 : index
    %c2_164 = arith.constant 2 : index
    %c0_165 = arith.constant 0 : index
    %120 = vector.load %arg13[%c1_163, %c2_164, %c0_165] : memref<10x10x128xf32, #tpu.memory_space<vmem>>, vector<8x8x128xf32>
    %121 = tpu.concatenate %112, %113, %114, %115, %116, %117, %118, %119, %120 in 2 : vector<8x8x128xf32>, vector<8x8x128xf32>, vector<8x8x128xf32>, vector<8x8x128xf32>, vector<8x8x128xf32>, vector<8x8x128xf32>, vector<8x8x128xf32>, vector<8x8x128xf32>, vector<8x8x128xf32> -> vector<8x8x1152xf32>
    %122 = vector.shape_cast %121 : vector<8x8x1152xf32> to vector<64x1152xf32>
    %c0_166 = arith.constant 0 : index
    %c0_167 = arith.constant 0 : index
    %123 = vector.load %arg2[%c0_166, %c0_167] : memref<1152x64xf32, #tpu.memory_space<vmem>>, vector<1152x64xf32>
    %cst_168 = arith.constant dense<0.000000e+00> : vector<64x64xf32>
    %124 = tpu.matmul %122, %123, %cst_168 {dimension_numbers = #tpu.dot_dimension_numbers<[1], [0], [0], [1], [0, 0, 1, 1], [], []>} : vector<64x1152xf32>, vector<1152x64xf32>, vector<64x64xf32> -> vector<64x64xf32>
    %c0_169 = arith.constant 0 : index
    %c0_170 = arith.constant 0 : index
    %125 = vector.load %arg3[%c0_169, %c0_170] : memref<1x64xf32, #tpu.memory_space<vmem>>, vector<1x64xf32>
    %126 = vector.broadcast %125 : vector<1x64xf32> to vector<64x64xf32>
    %127 = arith.addf %124, %126 : vector<64x64xf32>
    %128 = vector.shape_cast %127 : vector<64x64xf32> to vector<8x8x64xf32>
    %129 = vector.broadcast %79 : vector<1x1x64xf32> to vector<8x8x64xf32>
    %130 = arith.mulf %128, %129 : vector<8x8x64xf32>
    %cst_171 = arith.constant dense<0.000000e+00> : vector<8x8xf32>
    %131 = vector.multi_reduction <add>, %130, %cst_171 [2] : vector<8x8x64xf32> to vector<8x8xf32>
    %132 = vector.shape_cast %131 : vector<8x8xf32> to vector<8x8x1xf32>
    %c0_172 = arith.constant 0 : index
    %c0_173 = arith.constant 0 : index
    %133 = vector.load %arg5[%c0_172, %c0_173] : memref<1x1xf32, #tpu.memory_space<vmem>>, vector<1x1xf32>
    %134 = vector.shape_cast %133 : vector<1x1xf32> to vector<1x1x1xf32>
    %135 = vector.broadcast %134 : vector<1x1x1xf32> to vector<8x8x1xf32>
    %136 = arith.addf %132, %135 : vector<8x8x1xf32>
    %137 = arith.negf %136 : vector<8x8x1xf32>
    %138 = math.exp %137 : vector<8x8x1xf32>
    %cst_174 = arith.constant 1.000000e+00 : f32
    %139 = vector.broadcast %cst_174 : f32 to vector<8x8x1xf32>
    %140 = arith.addf %139, %138 : vector<8x8x1xf32>
    %141 = arith.divf %139, %140 : vector<8x8x1xf32>
    %142 = vector.shape_cast %141 : vector<8x8x1xf32> to vector<1x8x8x1xf32>
    %c0_175 = arith.constant 0 : index
    %c0_176 = arith.constant 0 : index
    %c0_177 = arith.constant 0 : index
    %c0_178 = arith.constant 0 : index
    %143 = vector.load %arg7[%c0_175, %c0_176, %c0_177, %c0_178] : memref<1x8x8x1xf32, #tpu.memory_space<vmem>>, vector<1x8x8x1xf32>
    tpu.vector_store %arg7[%c0_175, %c0_176, %c0_177, %c0_178], %142 {strides = array<i32>} : memref<1x8x8x1xf32, #tpu.memory_space<vmem>>, vector<1x8x8x1xf32>,
    %c1_179 = arith.constant 1 : index
    %c0_180 = arith.constant 0 : index
    %c0_181 = arith.constant 0 : index
    %144 = vector.load %arg12[%c1_179, %c0_180, %c0_181] : memref<10x10x128xf32, #tpu.memory_space<vmem>>, vector<8x8x128xf32>
    %c1_182 = arith.constant 1 : index
    %c1_183 = arith.constant 1 : index
    %c0_184 = arith.constant 0 : index
    %145 = vector.load %arg11[%c1_182, %c1_183, %c0_184] : memref<10x10x128xf32, #tpu.memory_space<vmem>>, vector<8x8x128xf32>
    %c1_185 = arith.constant 1 : index
    %c1_186 = arith.constant 1 : index
    %c0_187 = arith.constant 0 : index
    %146 = vector.load %arg12[%c1_185, %c1_186, %c0_187] : memref<10x10x128xf32, #tpu.memory_space<vmem>>, vector<8x8x128xf32>
    %c1_188 = arith.constant 1 : index
    %c0_189 = arith.constant 0 : index
    %c0_190 = arith.constant 0 : index
    %147 = vector.load %arg14[%c1_188, %c0_189, %c0_190] : memref<10x10x128xf32, #tpu.memory_space<vmem>>, vector<8x8x128xf32>
    %c1_191 = arith.constant 1 : index
    %c1_192 = arith.constant 1 : index
    %c0_193 = arith.constant 0 : index
    %148 = vector.load %arg13[%c1_191, %c1_192, %c0_193] : memref<10x10x128xf32, #tpu.memory_space<vmem>>, vector<8x8x128xf32>
    %c1_194 = arith.constant 1 : index
    %c1_195 = arith.constant 1 : index
    %c0_196 = arith.constant 0 : index
    %149 = vector.load %arg14[%c1_194, %c1_195, %c0_196] : memref<10x10x128xf32, #tpu.memory_space<vmem>>, vector<8x8x128xf32>
    %c2_197 = arith.constant 2 : index
    %c0_198 = arith.constant 0 : index
    %c0_199 = arith.constant 0 : index
    %150 = vector.load %arg12[%c2_197, %c0_198, %c0_199] : memref<10x10x128xf32, #tpu.memory_space<vmem>>, vector<8x8x128xf32>
    %c2_200 = arith.constant 2 : index
    %c1_201 = arith.constant 1 : index
    %c0_202 = arith.constant 0 : index
    %151 = vector.load %arg11[%c2_200, %c1_201, %c0_202] : memref<10x10x128xf32, #tpu.memory_space<vmem>>, vector<8x8x128xf32>
    %c2_203 = arith.constant 2 : index
    %c1_204 = arith.constant 1 : index
    %c0_205 = arith.constant 0 : index
    %152 = vector.load %arg12[%c2_203, %c1_204, %c0_205] : memref<10x10x128xf32, #tpu.memory_space<vmem>>, vector<8x8x128xf32>
    %153 = tpu.concatenate %144, %145, %146, %147, %148, %149, %150, %151, %152 in 2 : vector<8x8x128xf32>, vector<8x8x128xf32>, vector<8x8x128xf32>, vector<8x8x128xf32>, vector<8x8x128xf32>, vector<8x8x128xf32>, vector<8x8x128xf32>, vector<8x8x128xf32>, vector<8x8x128xf32> -> vector<8x8x1152xf32>
    %154 = vector.shape_cast %153 : vector<8x8x1152xf32> to vector<64x1152xf32>
    %c0_206 = arith.constant 0 : index
    %c0_207 = arith.constant 0 : index
    %155 = vector.load %arg2[%c0_206, %c0_207] : memref<1152x64xf32, #tpu.memory_space<vmem>>, vector<1152x64xf32>
    %cst_208 = arith.constant dense<0.000000e+00> : vector<64x64xf32>
    %156 = tpu.matmul %154, %155, %cst_208 {dimension_numbers = #tpu.dot_dimension_numbers<[1], [0], [0], [1], [0, 0, 1, 1], [], []>} : vector<64x1152xf32>, vector<1152x64xf32>, vector<64x64xf32> -> vector<64x64xf32>
    %c0_209 = arith.constant 0 : index
    %c0_210 = arith.constant 0 : index
    %157 = vector.load %arg3[%c0_209, %c0_210] : memref<1x64xf32, #tpu.memory_space<vmem>>, vector<1x64xf32>
    %158 = vector.broadcast %157 : vector<1x64xf32> to vector<64x64xf32>
    %159 = arith.addf %156, %158 : vector<64x64xf32>
    %160 = vector.shape_cast %159 : vector<64x64xf32> to vector<8x8x64xf32>
    %161 = vector.broadcast %79 : vector<1x1x64xf32> to vector<8x8x64xf32>
    %162 = arith.mulf %160, %161 : vector<8x8x64xf32>
    %cst_211 = arith.constant dense<0.000000e+00> : vector<8x8xf32>
    %163 = vector.multi_reduction <add>, %162, %cst_211 [2] : vector<8x8x64xf32> to vector<8x8xf32>
    %164 = vector.shape_cast %163 : vector<8x8xf32> to vector<8x8x1xf32>
    %c0_212 = arith.constant 0 : index
    %c0_213 = arith.constant 0 : index
    %165 = vector.load %arg5[%c0_212, %c0_213] : memref<1x1xf32, #tpu.memory_space<vmem>>, vector<1x1xf32>
    %166 = vector.shape_cast %165 : vector<1x1xf32> to vector<1x1x1xf32>
    %167 = vector.broadcast %166 : vector<1x1x1xf32> to vector<8x8x1xf32>
    %168 = arith.addf %164, %167 : vector<8x8x1xf32>
    %169 = arith.negf %168 : vector<8x8x1xf32>
    %170 = math.exp %169 : vector<8x8x1xf32>
    %cst_214 = arith.constant 1.000000e+00 : f32
    %171 = vector.broadcast %cst_214 : f32 to vector<8x8x1xf32>
    %172 = arith.addf %171, %170 : vector<8x8x1xf32>
    %173 = arith.divf %171, %172 : vector<8x8x1xf32>
    %174 = vector.shape_cast %173 : vector<8x8x1xf32> to vector<1x8x8x1xf32>
    %c0_215 = arith.constant 0 : index
    %c0_216 = arith.constant 0 : index
    %c0_217 = arith.constant 0 : index
    %c0_218 = arith.constant 0 : index
    %175 = vector.load %arg8[%c0_215, %c0_216, %c0_217, %c0_218] : memref<1x8x8x1xf32, #tpu.memory_space<vmem>>, vector<1x8x8x1xf32>
    tpu.vector_store %arg8[%c0_215, %c0_216, %c0_217, %c0_218], %174 {strides = array<i32>} : memref<1x8x8x1xf32, #tpu.memory_space<vmem>>, vector<1x8x8x1xf32>,
    %c1_219 = arith.constant 1 : index
    %c1_220 = arith.constant 1 : index
    %c0_221 = arith.constant 0 : index
    %176 = vector.load %arg11[%c1_219, %c1_220, %c0_221] : memref<10x10x128xf32, #tpu.memory_space<vmem>>, vector<8x8x128xf32>
    %c1_222 = arith.constant 1 : index
    %c1_223 = arith.constant 1 : index
    %c0_224 = arith.constant 0 : index
    %177 = vector.load %arg12[%c1_222, %c1_223, %c0_224] : memref<10x10x128xf32, #tpu.memory_space<vmem>>, vector<8x8x128xf32>
    %c1_225 = arith.constant 1 : index
    %c2_226 = arith.constant 2 : index
    %c0_227 = arith.constant 0 : index
    %178 = vector.load %arg11[%c1_225, %c2_226, %c0_227] : memref<10x10x128xf32, #tpu.memory_space<vmem>>, vector<8x8x128xf32>
    %c1_228 = arith.constant 1 : index
    %c1_229 = arith.constant 1 : index
    %c0_230 = arith.constant 0 : index
    %179 = vector.load %arg13[%c1_228, %c1_229, %c0_230] : memref<10x10x128xf32, #tpu.memory_space<vmem>>, vector<8x8x128xf32>
    %c1_231 = arith.constant 1 : index
    %c1_232 = arith.constant 1 : index
    %c0_233 = arith.constant 0 : index
    %180 = vector.load %arg14[%c1_231, %c1_232, %c0_233] : memref<10x10x128xf32, #tpu.memory_space<vmem>>, vector<8x8x128xf32>
    %c1_234 = arith.constant 1 : index
    %c2_235 = arith.constant 2 : index
    %c0_236 = arith.constant 0 : index
    %181 = vector.load %arg13[%c1_234, %c2_235, %c0_236] : memref<10x10x128xf32, #tpu.memory_space<vmem>>, vector<8x8x128xf32>
    %c2_237 = arith.constant 2 : index
    %c1_238 = arith.constant 1 : index
    %c0_239 = arith.constant 0 : index
    %182 = vector.load %arg11[%c2_237, %c1_238, %c0_239] : memref<10x10x128xf32, #tpu.memory_space<vmem>>, vector<8x8x128xf32>
    %c2_240 = arith.constant 2 : index
    %c1_241 = arith.constant 1 : index
    %c0_242 = arith.constant 0 : index
    %183 = vector.load %arg12[%c2_240, %c1_241, %c0_242] : memref<10x10x128xf32, #tpu.memory_space<vmem>>, vector<8x8x128xf32>
    %c2_243 = arith.constant 2 : index
    %c2_244 = arith.constant 2 : index
    %c0_245 = arith.constant 0 : index
    %184 = vector.load %arg11[%c2_243, %c2_244, %c0_245] : memref<10x10x128xf32, #tpu.memory_space<vmem>>, vector<8x8x128xf32>
    %185 = tpu.concatenate %176, %177, %178, %179, %180, %181, %182, %183, %184 in 2 : vector<8x8x128xf32>, vector<8x8x128xf32>, vector<8x8x128xf32>, vector<8x8x128xf32>, vector<8x8x128xf32>, vector<8x8x128xf32>, vector<8x8x128xf32>, vector<8x8x128xf32>, vector<8x8x128xf32> -> vector<8x8x1152xf32>
    %186 = vector.shape_cast %185 : vector<8x8x1152xf32> to vector<64x1152xf32>
    %c0_246 = arith.constant 0 : index
    %c0_247 = arith.constant 0 : index
    %187 = vector.load %arg2[%c0_246, %c0_247] : memref<1152x64xf32, #tpu.memory_space<vmem>>, vector<1152x64xf32>
    %cst_248 = arith.constant dense<0.000000e+00> : vector<64x64xf32>
    %188 = tpu.matmul %186, %187, %cst_248 {dimension_numbers = #tpu.dot_dimension_numbers<[1], [0], [0], [1], [0, 0, 1, 1], [], []>} : vector<64x1152xf32>, vector<1152x64xf32>, vector<64x64xf32> -> vector<64x64xf32>
    %c0_249 = arith.constant 0 : index
    %c0_250 = arith.constant 0 : index
    %189 = vector.load %arg3[%c0_249, %c0_250] : memref<1x64xf32, #tpu.memory_space<vmem>>, vector<1x64xf32>
    %190 = vector.broadcast %189 : vector<1x64xf32> to vector<64x64xf32>
    %191 = arith.addf %188, %190 : vector<64x64xf32>
    %192 = vector.shape_cast %191 : vector<64x64xf32> to vector<8x8x64xf32>
    %193 = vector.broadcast %79 : vector<1x1x64xf32> to vector<8x8x64xf32>
    %194 = arith.mulf %192, %193 : vector<8x8x64xf32>
    %cst_251 = arith.constant dense<0.000000e+00> : vector<8x8xf32>
    %195 = vector.multi_reduction <add>, %194, %cst_251 [2] : vector<8x8x64xf32> to vector<8x8xf32>
    %196 = vector.shape_cast %195 : vector<8x8xf32> to vector<8x8x1xf32>
    %c0_252 = arith.constant 0 : index
    %c0_253 = arith.constant 0 : index
    %197 = vector.load %arg5[%c0_252, %c0_253] : memref<1x1xf32, #tpu.memory_space<vmem>>, vector<1x1xf32>
    %198 = vector.shape_cast %197 : vector<1x1xf32> to vector<1x1x1xf32>
    %199 = vector.broadcast %198 : vector<1x1x1xf32> to vector<8x8x1xf32>
    %200 = arith.addf %196, %199 : vector<8x8x1xf32>
    %201 = arith.negf %200 : vector<8x8x1xf32>
    %202 = math.exp %201 : vector<8x8x1xf32>
    %cst_254 = arith.constant 1.000000e+00 : f32
    %203 = vector.broadcast %cst_254 : f32 to vector<8x8x1xf32>
    %204 = arith.addf %203, %202 : vector<8x8x1xf32>
    %205 = arith.divf %203, %204 : vector<8x8x1xf32>
    %206 = vector.shape_cast %205 : vector<8x8x1xf32> to vector<1x8x8x1xf32>
    %c0_255 = arith.constant 0 : index
    %c0_256 = arith.constant 0 : index
    %c0_257 = arith.constant 0 : index
    %c0_258 = arith.constant 0 : index
    %207 = vector.load %arg9[%c0_255, %c0_256, %c0_257, %c0_258] : memref<1x8x8x1xf32, #tpu.memory_space<vmem>>, vector<1x8x8x1xf32>
    tpu.vector_store %arg9[%c0_255, %c0_256, %c0_257, %c0_258], %206 {strides = array<i32>} : memref<1x8x8x1xf32, #tpu.memory_space<vmem>>, vector<1x8x8x1xf32>,
    return
  }
  func.func @transform_0(%arg0: i32) -> (i32, i32, i32, i32) {
    %c0_i32 = arith.constant 0 : i32
    %c0_i32_0 = arith.constant 0 : i32
    %c0_i32_1 = arith.constant 0 : i32
    %c0_i32_2 = arith.constant 0 : i32
    return %arg0, %c0_i32, %c0_i32_0, %c0_i32_1 : i32, i32, i32, i32
  }
  func.func @transform_1(%arg0: i32) -> (i32, i32) {
    %c0_i32 = arith.constant 0 : i32
    %c0_i32_0 = arith.constant 0 : i32
    %c0_i32_1 = arith.constant 0 : i32
    return %c0_i32, %c0_i32_0 : i32, i32
  }
  func.func @transform_2(%arg0: i32) -> (i32, i32) {
    %c0_i32 = arith.constant 0 : i32
    %c0_i32_0 = arith.constant 0 : i32
    %c0_i32_1 = arith.constant 0 : i32
    return %c0_i32, %c0_i32_0 : i32, i32
  }
  func.func @transform_3(%arg0: i32) -> (i32, i32) {
    %c0_i32 = arith.constant 0 : i32
    %c0_i32_0 = arith.constant 0 : i32
    %c0_i32_1 = arith.constant 0 : i32
    return %c0_i32, %c0_i32_0 : i32, i32
  }
  func.func @transform_4(%arg0: i32) -> (i32, i32) {
    %c0_i32 = arith.constant 0 : i32
    %c0_i32_0 = arith.constant 0 : i32
    %c0_i32_1 = arith.constant 0 : i32
    return %c0_i32, %c0_i32_0 : i32, i32
  }
  func.func @transform_5(%arg0: i32) -> (i32, i32, i32, i32) {
    %c0_i32 = arith.constant 0 : i32
    %c0_i32_0 = arith.constant 0 : i32
    %c0_i32_1 = arith.constant 0 : i32
    %c0_i32_2 = arith.constant 0 : i32
    return %arg0, %c0_i32, %c0_i32_0, %c0_i32_1 : i32, i32, i32, i32
  }
  func.func @transform_6(%arg0: i32) -> (i32, i32, i32, i32) {
    %c0_i32 = arith.constant 0 : i32
    %c0_i32_0 = arith.constant 0 : i32
    %c0_i32_1 = arith.constant 0 : i32
    %c0_i32_2 = arith.constant 0 : i32
    return %arg0, %c0_i32, %c0_i32_0, %c0_i32_1 : i32, i32, i32, i32
  }
  func.func @transform_7(%arg0: i32) -> (i32, i32, i32, i32) {
    %c0_i32 = arith.constant 0 : i32
    %c0_i32_0 = arith.constant 0 : i32
    %c0_i32_1 = arith.constant 0 : i32
    %c0_i32_2 = arith.constant 0 : i32
    return %arg0, %c0_i32, %c0_i32_0, %c0_i32_1 : i32, i32, i32, i32
  }
  func.func @transform_8(%arg0: i32) -> (i32, i32, i32, i32) {
    %c0_i32 = arith.constant 0 : i32
    %c0_i32_0 = arith.constant 0 : i32
    %c0_i32_1 = arith.constant 0 : i32
    %c0_i32_2 = arith.constant 0 : i32
    return %arg0, %c0_i32, %c0_i32_0, %c0_i32_1 : i32, i32, i32, i32
  }
}

</mosaic_0001>

<bundles_post_ra>
// kernel: lanenet_forward.3
= control target key start
LH: loop header
LB: loop body
LE: loop exit
PB: predicated region body
PF: predicated region fallthrough
CT: control target
= control target key end

     0   :  { %s819_s12 = smov 0   ;;  %s1036_s0 = inlined_call_operand.vmem [shape: f32[2,16,16,27], index: 0, kind: input, shape index: {}]   ;;  %s1037_s1 = inlined_call_operand.vmem [shape: f32[27,64], index: 1, kind: input, shape index: {}]   ;;  %s1038_s2 = inlined_call_operand.vmem [shape: f32[1,64], index: 2, kind: input, shape index: {}]   ;;  %s1039_s3 = inlined_call_operand.vmem [shape: f32[2,16,16,64], index: 3, kind: output, shape index: {}]  }
   0x1 LB: > { %s628_s13 = sadd.s32 4294967295, %s796_s12   ;;  %p632_p0 = scmp.ge.s32.totalorder %s796_s12, 1  ;;  %s796_s12 = sphi %s819_s12, %s13_s12  }
   0x2   : > { %p137_p1 = scmp.lt.s32.totalorder %s796_s12, 3 }
   0x4   : > { %p138_p2 = pnand %p632_p0, %p137_p1 }
   0x5   : > { %v203_v0 = vld [vmem:[%s1037_s1] sm:$0xff] (!%p138_p2)  ;;  %v204_v1 = vld [vmem:[%s1037_s1 + $0x8] sm:$0xff] (!%p138_p2)  ;;  %v205_v2 = vld [vmem:[%s1037_s1 + $0x10] sm:$0xff] (!%p138_p2)  ;;  %vm311_vm0 = vcmask (!%p138_p2), 1042432   ;;  %p161_p3 = scmp.lt.s32.totalorder (!%p138_p2), %s628_s13, 1  ;;  %vm798_vm1 = vmmov (!%p138_p2), 1  }
   0x6   : > { %141 = sbr.rel (%p138_p2) target bundleno = 263 (0x107), region = 32  ;;  %v767_v3 = vpack.c.bf16 (!%p138_p2), %v204_v1, %v203_v0  ;;  %v206_v4 = vld [vmem:[%s1037_s1 + $0x18] sm:$0x7] (!%p138_p2)  ;;  %vm839_vm2 = vmpackc.low (!%p138_p2), %vm311_vm0, %vm798_vm1  ;;  %vm214_vm3 = vcmask (!%p138_p2), 220160   ;;  %v928_v39 = vld [vmem:[%s1038_s2] ss:$0 sm:$0xff] (!%p138_p2) }
   0x7   : > { %v771_v5 = vpack.c.bf16 (!%p138_p2), %v206_v4, %v205_v2  ;;  %vm540_vm4 = vcmask (!%p138_p2), 523264  }
   0x8   : > { %768 = vmatprep.subr.bf16.mxu0 (!%p138_p2), %v767_v3  ;;  %777 = vmatprep.subr.bf16.mxu1 (!%p138_p2), %v767_v3 }
   0x9   : > { %770 = vmatpush3.bf16.msra.mxu0 (!%p138_p2), %v767_v3  ;;  %779 = vmatpush3.bf16.msra.mxu1 (!%p138_p2), %v767_v3 }
   0xa   : > { %773 = vmatprep.subr.msk.bf16.mxu0 (!%p138_p2), %vm839_vm2, %v771_v5  ;;  %778 = vmatprep.subr.msk.bf16.mxu1 (!%p138_p2), %vm839_vm2, %v771_v5 }
   0xd   : > { %s1043_s13 = smov (!%p161_p3, %s628_s13), 1  ;;  %776 = vmatpush3.bf16.msk.msra.mxu0 %vm839_vm2, %v771_v5  ;;  %780 = vmatpush3.bf16.msk.msra.mxu1 %vm839_vm2, %v771_v5 }
   0xe   : > { %s673_s22 = sshll.u32 %s1043_s13, 8 }
   0xf   : > { %s855_s25 = scalar_lea.vmem %s1036_s0, %s673_s22  ;;  %s935_s30 = scalar_lea.vmem %s1039_s3, %s673_s22 }
  0x10   : > { %v171_v7 = vld [vmem:[%s855_s25] sm:$0xff]  ;;  %v172_v9 = vld [vmem:[%s855_s25 + $0x8] sm:$0xff]  ;;  %v173_v11 = vld [vmem:[%s855_s25 + $0x10] sm:$0xff] }
  0x11   : > { %v187_v8 = vld [vmem:[%s855_s25 + $0x80] sm:$0xff]  ;;  %719 = vmatprep.mubr.msk.f32.mxu0 %vm214_vm3, %v171_v7  ;;  %v188_v10 = vld [vmem:[%s855_s25 + $0x88] sm:$0xff]  ;;  %v189_v12 = vld [vmem:[%s855_s25 + $0x90] sm:$0xff] }
  0x12   : > { %743 = vmatprep.mubr.msk.f32.mxu1 %vm214_vm3, %v187_v8  ;;  %720 = vmatmul.mubr.msk.f32.vlgmr.msra.gmra.mrb[0].mxu0 %vm214_vm3, %v172_v9  ;;  %v174_v13 = vld [vmem:[%s855_s25 + $0x18] sm:$0xff]  ;;  %v175_v15 = vld [vmem:[%s855_s25 + $0x20] sm:$0xff]  ;;  %v176_v17 = vld [vmem:[%s855_s25 + $0x28] sm:$0xff] }
  0x13   : > { %744 = vmatmul.mubr.msk.f32.vlgmr.msra.gmra.mrb[0].mxu1 %vm214_vm3, %v188_v10  ;;  %722 = vmatprep.mubr.msk.f32.mxu0 %vm214_vm3, %v173_v11  ;;  %v190_v14 = vld [vmem:[%s855_s25 + $0x98] sm:$0xff]  ;;  %v191_v16 = vld [vmem:[%s855_s25 + $0xa0] sm:$0xff]  ;;  %v192_v18 = vld [vmem:[%s855_s25 + $0xa8] sm:$0xff] }
  0x14   : > { %746 = vmatprep.mubr.msk.f32.mxu1 %vm214_vm3, %v189_v12  ;;  %v177_v19 = vld [vmem:[%s855_s25 + $0x30] sm:$0xff]  ;;  %v178_v21 = vld [vmem:[%s855_s25 + $0x38] sm:$0xff]  ;;  %v179_v23 = vld [vmem:[%s855_s25 + $0x40] sm:$0xff] }
  0x15   : > { %v193_v20 = vld [vmem:[%s855_s25 + $0xb0] sm:$0xff]  ;;  %v194_v22 = vld [vmem:[%s855_s25 + $0xb8] sm:$0xff]  ;;  %v195_v24 = vld [vmem:[%s855_s25 + $0xc0] sm:$0xff] }
  0x16   : > { %723 = vmatmul.mubr.msk.f32.gmra.mrb[2].mxu0 %vm214_vm3, %v174_v13  ;;  %v180_v25 = vld [vmem:[%s855_s25 + $0x48] sm:$0xff]  ;;  %v181_v27 = vld [vmem:[%s855_s25 + $0x50] sm:$0xff]  ;;  %v182_v29 = vld [vmem:[%s855_s25 + $0x58] sm:$0xff] }
  0x17   : > { %747 = vmatmul.mubr.msk.f32.gmra.mrb[2].mxu1 %vm214_vm3, %v190_v14  ;;  %725 = vmatprep.mubr.msk.f32.mxu0 %vm214_vm3, %v175_v15  ;;  %v196_v26 = vld [vmem:[%s855_s25 + $0xc8] sm:$0xff]  ;;  %v197_v28 = vld [vmem:[%s855_s25 + $0xd0] sm:$0xff]  ;;  %v198_v30 = vld [vmem:[%s855_s25 + $0xd8] sm:$0xff] }
  0x18   : > { %749 = vmatprep.mubr.msk.f32.mxu1 %vm214_vm3, %v191_v16  ;;  %v183_v31 = vld [vmem:[%s855_s25 + $0x60] sm:$0xff]  ;;  %v184_v33 = vld [vmem:[%s855_s25 + $0x68] sm:$0xff]  ;;  %v185_v35 = vld [vmem:[%s855_s25 + $0x70] sm:$0xff] }
  0x19   : > { %v199_v32 = vld [vmem:[%s855_s25 + $0xe0] sm:$0xff]  ;;  %v200_v34 = vld [vmem:[%s855_s25 + $0xe8] sm:$0xff]  ;;  %v201_v36 = vld [vmem:[%s855_s25 + $0xf0] sm:$0xff] }
  0x1a   : > { %726 = vmatmul.mubr.msk.f32.gmra.mrb[4].mxu0 %vm214_vm3, %v176_v17  ;;  %v186_v37 = vld [vmem:[%s855_s25 + $0x78] sm:$0xff] }
  0x1b   : > { %750 = vmatmul.mubr.msk.f32.gmra.mrb[4].mxu1 %vm214_vm3, %v192_v18  ;;  %728 = vmatprep.mubr.msk.f32.mxu0 %vm214_vm3, %v177_v19  ;;  %v202_v38 = vld [vmem:[%s855_s25 + $0xf8] sm:$0xff] }
  0x1c   : > { %752 = vmatprep.mubr.msk.f32.mxu1 %vm214_vm3, %v193_v20 }
  0x1e   : > { %729 = vmatmul.mubr.msk.f32.gmra.mrb[6].mxu0 %vm214_vm3, %v178_v21 }
  0x1f   : > { %753 = vmatmul.mubr.msk.f32.gmra.mrb[6].mxu1 %vm214_vm3, %v194_v22  ;;  %731 = vmatprep.mubr.msk.f32.mxu0 %vm214_vm3, %v179_v23 }
  0x20   : > { %755 = vmatprep.mubr.msk.f32.mxu1 %vm214_vm3, %v195_v24 }
  0x22   : > { %732 = vmatmul.mubr.msk.f32.gmra.mrb[8].mxu0 %vm214_vm3, %v180_v25 }
  0x23   : > { %756 = vmatmul.mubr.msk.f32.gmra.mrb[8].mxu1 %vm214_vm3, %v196_v26  ;;  %734 = vmatprep.mubr.msk.f32.mxu0 %vm214_vm3, %v181_v27 }
  0x24   : > { %758 = vmatprep.mubr.msk.f32.mxu1 %vm214_vm3, %v197_v28 }
  0x26   : > { %735 = vmatmul.mubr.msk.f32.gmra.mrb[10].mxu0 %vm214_vm3, %v182_v29 }
  0x27   : > { %759 = vmatmul.mubr.msk.f32.gmra.mrb[10].mxu1 %vm214_vm3, %v198_v30  ;;  %737 = vmatprep.mubr.msk.f32.mxu0 %vm214_vm3, %v183_v31 }
  0x28   : > { %761 = vmatprep.mubr.msk.f32.mxu1 %vm214_vm3, %v199_v32 }
  0x2a   : > { %738 = vmatmul.mubr.msk.f32.gmra.mrb[12].mxu0 %vm214_vm3, %v184_v33 }
  0x2b   : > { %762 = vmatmul.mubr.msk.f32.gmra.mrb[12].mxu1 %vm214_vm3, %v200_v34  ;;  %740 = vmatprep.mubr.msk.f32.mxu0 %vm214_vm3, %v185_v35 }
  0x2c   : > { %764 = vmatprep.mubr.msk.f32.mxu1 %vm214_vm3, %v201_v36 }
  0x2e   : > { %741 = vmatmul.mubr.msk.f32.gmra.mrb[14].mxu0 %vm214_vm3, %v186_v37 }
  0x2f   : > { %765 = vmatmul.mubr.msk.f32.gmra.mrb[14].mxu1 %vm214_vm3, %v202_v38 }
  0xe5   : > { %v721_v40 = vpop.f32.mrb[0].mxu0 }
  0xe6   : > { %v745_v41 = vpop.f32.mrb[0].mxu1  ;;  %v387_v42 = vadd.f32 %v721_v40, %v928_v39  ;;  %v381_v44 = vpop.f32.mrb[1].mxu0 }
  0xe7   : > { %v467_v43 = vadd.f32 %v745_v41, %v928_v39  ;;  %v461_v45 = vpop.f32.mrb[1].mxu1  ;;  %v382_v46 = vadd.f32 %v928_v39, %v381_v44 }
  0xe8   : > { %v462_v47 = vadd.f32 %v928_v39, %v461_v45  ;;  %542 = vst.msk [vmem:[%s935_s30 + $0x8] sm:$0xff] %vm540_vm4, %v387_v42 }
  0xe9   : > { %558 = vst.msk [vmem:[%s935_s30 + $0x88] sm:$0xff] %vm540_vm4, %v467_v43  ;;  %541 = vst.msk [vmem:[%s935_s30] sm:$0xff] %vm540_vm4, %v382_v46  ;;  %v724_v48 = vpop.f32.mrb[2].mxu0 }
  0xea   : > { %557 = vst.msk [vmem:[%s935_s30 + $0x80] sm:$0xff] %vm540_vm4, %v462_v47  ;;  %v748_v49 = vpop.f32.mrb[2].mxu1  ;;  %v397_v50 = vadd.f32 %v724_v48, %v928_v39  ;;  %v391_v52 = vpop.f32.mrb[3].mxu0 }
  0xeb   : > { %v477_v51 = vadd.f32 %v748_v49, %v928_v39  ;;  %v471_v53 = vpop.f32.mrb[3].mxu1  ;;  %v392_v54 = vadd.f32 %v928_v39, %v391_v52 }
  0xec   : > { %v472_v55 = vadd.f32 %v928_v39, %v471_v53  ;;  %544 = vst.msk [vmem:[%s935_s30 + $0x18] sm:$0xff] %vm540_vm4, %v397_v50 }
  0xed   : > { %560 = vst.msk [vmem:[%s935_s30 + $0x98] sm:$0xff] %vm540_vm4, %v477_v51  ;;  %543 = vst.msk [vmem:[%s935_s30 + $0x10] sm:$0xff] %vm540_vm4, %v392_v54  ;;  %v727_v56 = vpop.f32.mrb[4].mxu0 }
  0xee   : > { %559 = vst.msk [vmem:[%s935_s30 + $0x90] sm:$0xff] %vm540_vm4, %v472_v55  ;;  %v751_v57 = vpop.f32.mrb[4].mxu1  ;;  %v407_v58 = vadd.f32 %v727_v56, %v928_v39  ;;  %v401_v60 = vpop.f32.mrb[5].mxu0 }
  0xef   : > { %v487_v59 = vadd.f32 %v751_v57, %v928_v39  ;;  %v481_v61 = vpop.f32.mrb[5].mxu1  ;;  %v402_v62 = vadd.f32 %v928_v39, %v401_v60 }
  0xf0   : > { %v482_v63 = vadd.f32 %v928_v39, %v481_v61  ;;  %546 = vst.msk [vmem:[%s935_s30 + $0x28] sm:$0xff] %vm540_vm4, %v407_v58 }
  0xf1   : > { %562 = vst.msk [vmem:[%s935_s30 + $0xa8] sm:$0xff] %vm540_vm4, %v487_v59  ;;  %545 = vst.msk [vmem:[%s935_s30 + $0x20] sm:$0xff] %vm540_vm4, %v402_v62  ;;  %v730_v0 = vpop.f32.mrb[6].mxu0 }
  0xf2   : > { %561 = vst.msk [vmem:[%s935_s30 + $0xa0] sm:$0xff] %vm540_vm4, %v482_v63  ;;  %v754_v1 = vpop.f32.mrb[6].mxu1  ;;  %v417_v2 = vadd.f32 %v730_v0, %v928_v39  ;;  %v411_v4 = vpop.f32.mrb[7].mxu0 }
  0xf3   : > { %v497_v3 = vadd.f32 %v754_v1, %v928_v39  ;;  %v491_v5 = vpop.f32.mrb[7].mxu1  ;;  %v412_v6 = vadd.f32 %v928_v39, %v411_v4 }
  0xf4   : > { %v492_v7 = vadd.f32 %v928_v39, %v491_v5  ;;  %548 = vst.msk [vmem:[%s935_s30 + $0x38] sm:$0xff] %vm540_vm4, %v417_v2 }
  0xf5   : > { %564 = vst.msk [vmem:[%s935_s30 + $0xb8] sm:$0xff] %vm540_vm4, %v497_v3  ;;  %547 = vst.msk [vmem:[%s935_s30 + $0x30] sm:$0xff] %vm540_vm4, %v412_v6  ;;  %v733_v8 = vpop.f32.mrb[8].mxu0 }
  0xf6   : > { %563 = vst.msk [vmem:[%s935_s30 + $0xb0] sm:$0xff] %vm540_vm4, %v492_v7  ;;  %v757_v9 = vpop.f32.mrb[8].mxu1  ;;  %v427_v10 = vadd.f32 %v733_v8, %v928_v39  ;;  %v421_v12 = vpop.f32.mrb[9].mxu0 }
  0xf7   : > { %v507_v11 = vadd.f32 %v757_v9, %v928_v39  ;;  %v501_v13 = vpop.f32.mrb[9].mxu1  ;;  %v422_v14 = vadd.f32 %v928_v39, %v421_v12 }
  0xf8   : > { %v502_v15 = vadd.f32 %v928_v39, %v501_v13  ;;  %550 = vst.msk [vmem:[%s935_s30 + $0x48] sm:$0xff] %vm540_vm4, %v427_v10 }
  0xf9   : > { %566 = vst.msk [vmem:[%s935_s30 + $0xc8] sm:$0xff] %vm540_vm4, %v507_v11  ;;  %549 = vst.msk [vmem:[%s935_s30 + $0x40] sm:$0xff] %vm540_vm4, %v422_v14  ;;  %v736_v16 = vpop.f32.mrb[10].mxu0 }
  0xfa   : > { %565 = vst.msk [vmem:[%s935_s30 + $0xc0] sm:$0xff] %vm540_vm4, %v502_v15  ;;  %v760_v17 = vpop.f32.mrb[10].mxu1  ;;  %v437_v18 = vadd.f32 %v736_v16, %v928_v39  ;;  %v431_v20 = vpop.f32.mrb[11].mxu0 }
  0xfb   : > { %v517_v19 = vadd.f32 %v760_v17, %v928_v39  ;;  %v511_v21 = vpop.f32.mrb[11].mxu1  ;;  %v432_v22 = vadd.f32 %v928_v39, %v431_v20 }
  0xfc   : > { %v512_v23 = vadd.f32 %v928_v39, %v511_v21  ;;  %552 = vst.msk [vmem:[%s935_s30 + $0x58] sm:$0xff] %vm540_vm4, %v437_v18 }
  0xfd   : > { %568 = vst.msk [vmem:[%s935_s30 + $0xd8] sm:$0xff] %vm540_vm4, %v517_v19  ;;  %551 = vst.msk [vmem:[%s935_s30 + $0x50] sm:$0xff] %vm540_vm4, %v432_v22  ;;  %v739_v24 = vpop.f32.mrb[12].mxu0 }
  0xfe   : > { %567 = vst.msk [vmem:[%s935_s30 + $0xd0] sm:$0xff] %vm540_vm4, %v512_v23  ;;  %v763_v25 = vpop.f32.mrb[12].mxu1  ;;  %v447_v26 = vadd.f32 %v739_v24, %v928_v39  ;;  %v441_v28 = vpop.f32.mrb[13].mxu0 }
  0xff   : > { %v527_v27 = vadd.f32 %v763_v25, %v928_v39  ;;  %v521_v29 = vpop.f32.mrb[13].mxu1  ;;  %v442_v30 = vadd.f32 %v928_v39, %v441_v28 }
 0x100   : > { %v522_v31 = vadd.f32 %v928_v39, %v521_v29  ;;  %554 = vst.msk [vmem:[%s935_s30 + $0x68] sm:$0xff] %vm540_vm4, %v447_v26 }
 0x101   : > { %570 = vst.msk [vmem:[%s935_s30 + $0xe8] sm:$0xff] %vm540_vm4, %v527_v27  ;;  %553 = vst.msk [vmem:[%s935_s30 + $0x60] sm:$0xff] %vm540_vm4, %v442_v30  ;;  %v742_v32 = vpop.f32.mrb[14].mxu0 }
 0x102   : > { %569 = vst.msk [vmem:[%s935_s30 + $0xe0] sm:$0xff] %vm540_vm4, %v522_v31  ;;  %v766_v33 = vpop.f32.mrb[14].mxu1  ;;  %v457_v34 = vadd.f32 %v742_v32, %v928_v39  ;;  %v451_v36 = vpop.f32.mrb[15].mxu0 }
 0x103   : > { %v537_v35 = vadd.f32 %v766_v33, %v928_v39  ;;  %v531_v37 = vpop.f32.mrb[15].mxu1  ;;  %v452_v38 = vadd.f32 %v928_v39, %v451_v36 }
 0x104   : > { %v532_v40 = vadd.f32 %v928_v39, %v531_v37  ;;  %556 = vst.msk [vmem:[%s935_s30 + $0x78] sm:$0xff] %vm540_vm4, %v457_v34 }
 0x105   : > { %572 = vst.msk [vmem:[%s935_s30 + $0xf8] sm:$0xff] %vm540_vm4, %v537_v35  ;;  %555 = vst.msk [vmem:[%s935_s30 + $0x70] sm:$0xff] %vm540_vm4, %v452_v38 }
 0x106   : > { %571 = vst.msk [vmem:[%s935_s30 + $0xf0] sm:$0xff] %vm540_vm4, %v532_v40 }
 0x107 PF: > { %s13_s12 = sadd.s32 1, %s796_s12  }
 0x108   : > { %p10_p4 = scmp.ge.s32.totalorder %s13_s12, 4  }
 0x10a   :  { %12 = sbr.rel (!%p10_p4) target bundleno = 1 (0x1), region = 62 }

// kernel: lanenet_forward.4
= control target key start
LH: loop header
LB: loop body
LE: loop exit
PB: predicated region body
PF: predicated region fallthrough
CT: control target
= control target key end

     0   :  { %s2653_s12 = smov 0   ;;  %s4094_s0 = inlined_call_operand.vmem [shape: f32[2,16,16,64], index: 0, kind: input, shape index: {}]   ;;  %s4095_s1 = inlined_call_operand.vmem [shape: f32[1152,128], index: 1, kind: input, shape index: {}]   ;;  %s4096_s2 = inlined_call_operand.vmem [shape: f32[1,128], index: 2, kind: input, shape index: {}]   ;;  %s4097_s3 = inlined_call_operand.vmem [shape: f32[2,8,8,128], index: 3, kind: output, shape index: {}]  }
   0x1 LB: > { %s2046_s13 = sadd.s32 4294967295, %s2629_s12   ;;  %p2050_p0 = scmp.ge.s32.totalorder %s2629_s12, 1  ;;  %s2629_s12 = sphi %s2653_s12, %s13_s12  }
   0x2   : > { %p137_p1 = scmp.lt.s32.totalorder %s2629_s12, 3 }
   0x4   : > { %p138_p2 = pnand %p2050_p0, %p137_p1 }
   0x6   : > { %141 = sbr.rel (%p138_p2) target bundleno = 595 (0x253), region = 32 }
   0xd   : > { %v2664_v0 = vld [vmem:[%s4095_s1] sm:$0xff]  ;;  %v2669_v1 = vld [vmem:[%s4095_s1 + $0x8] sm:$0xff]  ;;  %v4098_v3 = vmov 0.0|0.0   ;;  %v2688_v6 = vld [vmem:[%s4095_s1 + $0x10] sm:$0xff]  ;;  %v2632_v8 = vmov 0.0   ;;  %p161_p3 = scmp.lt.s32.totalorder %s2046_s13, 1 }
   0xe   : > { %v2674_v2 = vld [vmem:[%s4095_s1 + $0x100] sm:$0xff]  ;;  %2188 = vmatprep.subr.bf16.mxu1 %v4098_v3  ;;  %2236 = vmatprep.subr.bf16.mxu0 %v4098_v3  ;;  %v2189_v4 = vpack.c.bf16 %v2669_v1, %v2664_v0  ;;  %v2683_v5 = vld [vmem:[%s4095_s1 + $0x108] sm:$0xff]  ;;  %v2693_v7 = vld [vmem:[%s4095_s1 + $0x18] sm:$0xff]  ;;  %171 = vst [vmem:[#allocation2] sm:$0xff] %v2632_v8  ;;  %vm258_vm0 = vcmask 523264  }
   0xf   : > { %172 = vst [vmem:[#allocation2 + $0x8] sm:$0xff] %v2632_v8  ;;  %173 = vst [vmem:[#allocation2 + $0x10] sm:$0x3] %v2632_v8  ;;  %v2237_v9 = vpack.c.bf16 %v2683_v5, %v2674_v2  ;;  %v614_v10 = vld [vmem:[%s4095_s1 + $0x110] sm:$0xff]  ;;  %v615_v11 = vld [vmem:[%s4095_s1 + $0x118] sm:$0xff]  ;;  %v2192_v12 = vpack.c.bf16 %v2693_v7, %v2688_v6  ;;  %s4237_s13 = smov (!%p161_p3, %s2046_s13), 1 }
  0x10   : > { %174 = vst [vmem:[#allocation2 + $0x18] sm:$0xff] %v2632_v8  ;;  %175 = vst [vmem:[#allocation2 + $0x20] sm:$0xff] %v2632_v8  ;;  %2190 = vmatpush1.bf16.msra.mxu1 %v2189_v4  ;;  %v2240_v13 = vpack.c.bf16 %v615_v11, %v614_v10  ;;  %v584_v14 = vld [vmem:[%s4095_s1 + $0x20] sm:$0xff]  ;;  %v585_v15 = vld [vmem:[%s4095_s1 + $0x28] sm:$0xff]  ;;  %s2058_s29 = sshll.u32 %s4237_s13, 8  ;;  %s2059_s10 = sshll.u32 %s4237_s13, 6 }
  0x11   : > { %176 = vst [vmem:[#allocation2 + $0x28] sm:$0x3] %v2632_v8  ;;  %177 = vst [vmem:[#allocation2 + $0x30] sm:$0xff] %v2632_v8  ;;  %2238 = vmatpush1.bf16.msra.mxu0 %v2237_v9  ;;  %2191 = vmatprep.subr.bf16.mxu1 %v4098_v3  ;;  %v616_v16 = vld [vmem:[%s4095_s1 + $0x120] sm:$0xff]  ;;  %v617_v17 = vld [vmem:[%s4095_s1 + $0x128] sm:$0xff]  ;;  %v2195_v18 = vpack.c.bf16 %v585_v15, %v584_v14  ;;  %s2825_s15 = scalar_lea.vmem %s4094_s0, %s2058_s29  ;;  %s4045_s16 = scalar_lea.vmem %s4097_s3, %s2059_s10 }
  0x12   : > { %178 = vst [vmem:[#allocation2 + $0x38] sm:$0xff] %v2632_v8  ;;  %179 = vst [vmem:[#allocation2 + $0x40] sm:$0x3] %v2632_v8  ;;  %2239 = vmatprep.subr.bf16.mxu0 %v4098_v3  ;;  %v2243_v19 = vpack.c.bf16 %v617_v17, %v616_v16  ;;  %v586_v20 = vld [vmem:[%s4095_s1 + $0x30] sm:$0xff]  ;;  %v587_v21 = vld [vmem:[%s4095_s1 + $0x38] sm:$0xff] }
  0x13   : > { %180 = vst [vmem:[#allocation2 + $0x48] sm:$0xff] %v2632_v8  ;;  %181 = vst [vmem:[#allocation2 + $0x50] sm:$0xff] %v2632_v8  ;;  %v618_v22 = vld [vmem:[%s4095_s1 + $0x130] sm:$0xff]  ;;  %v619_v23 = vld [vmem:[%s4095_s1 + $0x138] sm:$0xff]  ;;  %v2198_v24 = vpack.c.bf16 %v587_v21, %v586_v20 }
  0x14   : > { %182 = vst [vmem:[#allocation2 + $0x58] sm:$0x3] %v2632_v8  ;;  %183 = vst [vmem:[#allocation2 + $0x60] sm:$0xff] %v2632_v8  ;;  %2193 = vmatpush1.bf16.msra.mxu1 %v2192_v12  ;;  %v2246_v25 = vpack.c.bf16 %v619_v23, %v618_v22  ;;  %v588_v26 = vld [vmem:[%s4095_s1 + $0x40] sm:$0xff]  ;;  %v589_v27 = vld [vmem:[%s4095_s1 + $0x48] sm:$0xff] }
  0x15   : > { %184 = vst [vmem:[#allocation2 + $0x68] sm:$0xff] %v2632_v8  ;;  %185 = vst [vmem:[#allocation2 + $0x70] sm:$0x3] %v2632_v8  ;;  %2241 = vmatpush1.bf16.msra.mxu0 %v2240_v13  ;;  %2194 = vmatprep.subr.bf16.mxu1 %v4098_v3  ;;  %v620_v28 = vld [vmem:[%s4095_s1 + $0x140] sm:$0xff]  ;;  %v621_v29 = vld [vmem:[%s4095_s1 + $0x148] sm:$0xff]  ;;  %v2201_v30 = vpack.c.bf16 %v589_v27, %v588_v26 }
  0x16   : > { %186 = vst [vmem:[#allocation2 + $0x78] sm:$0xff] %v2632_v8  ;;  %187 = vst [vmem:[#allocation2 + $0x80] sm:$0xff] %v2632_v8  ;;  %2242 = vmatprep.subr.bf16.mxu0 %v4098_v3  ;;  %v2249_v31 = vpack.c.bf16 %v621_v29, %v620_v28  ;;  %v590_v32 = vld [vmem:[%s4095_s1 + $0x50] sm:$0xff]  ;;  %v591_v33 = vld [vmem:[%s4095_s1 + $0x58] sm:$0xff] }
  0x17   : > { %188 = vst [vmem:[#allocation2 + $0x88] sm:$0x3] %v2632_v8  ;;  %189 = vst [vmem:[#allocation2 + $0x90] sm:$0xff] %v2632_v8  ;;  %v622_v34 = vld [vmem:[%s4095_s1 + $0x150] sm:$0xff]  ;;  %v623_v35 = vld [vmem:[%s4095_s1 + $0x158] sm:$0xff]  ;;  %v2204_v36 = vpack.c.bf16 %v591_v33, %v590_v32 }
  0x18   : > { %190 = vst [vmem:[#allocation2 + $0x98] sm:$0xff] %v2632_v8  ;;  %191 = vst [vmem:[#allocation2 + $0xa0] sm:$0x3] %v2632_v8  ;;  %2196 = vmatpush1.bf16.msra.mxu1 %v2195_v18  ;;  %v2252_v37 = vpack.c.bf16 %v623_v35, %v622_v34  ;;  %v592_v38 = vld [vmem:[%s4095_s1 + $0x60] sm:$0xff]  ;;  %v593_v39 = vld [vmem:[%s4095_s1 + $0x68] sm:$0xff] }
  0x19   : > { %192 = vst [vmem:[#allocation2 + $0xa8] sm:$0xff] %v2632_v8  ;;  %193 = vst [vmem:[#allocation2 + $0xb0] sm:$0xff] %v2632_v8  ;;  %2244 = vmatpush1.bf16.msra.mxu0 %v2243_v19  ;;  %2197 = vmatprep.subr.bf16.mxu1 %v4098_v3  ;;  %v624_v40 = vld [vmem:[%s4095_s1 + $0x160] sm:$0xff]  ;;  %v625_v41 = vld [vmem:[%s4095_s1 + $0x168] sm:$0xff]  ;;  %v2207_v44 = vpack.c.bf16 %v593_v39, %v592_v38 }
  0x1a   : > { %194 = vst [vmem:[#allocation2 + $0xb8] sm:$0x3] %v2632_v8  ;;  %195 = vst [vmem:[#allocation2 + $0xc0] sm:$0xff] %v2632_v8  ;;  %2245 = vmatprep.subr.bf16.mxu0 %v4098_v3  ;;  %v323_v42 = vld [vmem:[#allocation2 + $0x1] sm:$0xff]  ;;  %v594_v45 = vld [vmem:[%s4095_s1 + $0x70] sm:$0xff]  ;;  %v2255_v46 = vpack.c.bf16 %v625_v41, %v624_v40 }
  0x1b   : > { %196 = vst [vmem:[#allocation2 + $0xc8] sm:$0xff] %v2632_v8  ;;  %197 = vst [vmem:[#allocation2 + $0xd0] sm:$0x3] %v2632_v8  ;;  %v225_v43 = vld [vmem:[%s2825_s15] sm:$0xff]  ;;  %795 = vmatprep.mubr.f32.mxu1 %v323_v42  ;;  %v595_v47 = vld [vmem:[%s4095_s1 + $0x78] sm:$0xff] }
  0x1c   : > { %198 = vst [vmem:[#allocation2 + $0xd8] sm:$0xff] %v2632_v8  ;;  %199 = vst [vmem:[#allocation2 + $0xe0] sm:$0xff] %v2632_v8  ;;  %2199 = vmatpush1.bf16.msra.mxu1 %v2198_v24  ;;  %v226_v48 = vld [vmem:[%s2825_s15 + $0x8] sm:$0xff]  ;;  %v227_v49 = vld [vmem:[%s2825_s15 + $0x10] sm:$0xff]  ;;  %v2210_v54 = vpack.c.bf16 %v595_v47, %v594_v45 }
  0x1d   : > { %200 = vst [vmem:[#allocation2 + $0xe8] sm:$0x3] %v2632_v8  ;;  %201 = vst [vmem:[#allocation2 + $0xf0] sm:$0xff] %v2632_v8  ;;  %2247 = vmatpush1.bf16.msra.mxu0 %v2246_v25  ;;  %2200 = vmatprep.subr.bf16.mxu1 %v4098_v3  ;;  %v626_v50 = vld [vmem:[%s4095_s1 + $0x170] sm:$0xff]  ;;  %v627_v51 = vld [vmem:[%s4095_s1 + $0x178] sm:$0xff] }
  0x1e   : > { %202 = vst [vmem:[#allocation2 + $0xf8] sm:$0xff] %v2632_v8  ;;  %203 = vst [vmem:[#allocation2 + $0x100] sm:$0x3] %v2632_v8  ;;  %2248 = vmatprep.subr.bf16.mxu0 %v4098_v3  ;;  %v228_v52 = vld [vmem:[%s2825_s15 + $0x18] sm:$0xff]  ;;  %v229_v53 = vld [vmem:[%s2825_s15 + $0x20] sm:$0xff]  ;;  %v2258_v56 = vpack.c.bf16 %v627_v51, %v626_v50 }
  0x1f   : > { %204 = vst [vmem:[#allocation2 + $0x108] sm:$0xff] %v2632_v8  ;;  %205 = vst [vmem:[#allocation2 + $0x110] sm:$0xff] %v2632_v8  ;;  %v596_v55 = vld [vmem:[%s4095_s1 + $0x80] sm:$0xff]  ;;  %v597_v57 = vld [vmem:[%s4095_s1 + $0x88] sm:$0xff] }
  0x20   : > { %206 = vst [vmem:[#allocation2 + $0x118] sm:$0x3] %v2632_v8  ;;  %207 = vst [vmem:[#allocation2 + $0x120] sm:$0xff] %v2632_v8  ;;  %2202 = vmatpush1.bf16.msra.mxu1 %v2201_v30  ;;  %v230_v58 = vld [vmem:[%s2825_s15 + $0x28] sm:$0xff]  ;;  %v231_v59 = vld [vmem:[%s2825_s15 + $0x30] sm:$0xff]  ;;  %v2213_v63 = vpack.c.bf16 %v597_v57, %v596_v55 }
  0x21   : > { %208 = vst [vmem:[#allocation2 + $0x128] sm:$0xff] %v2632_v8  ;;  %209 = vst [vmem:[#allocation2 + $0x130] sm:$0x3] %v2632_v8  ;;  %2250 = vmatpush1.bf16.msra.mxu0 %v2249_v31  ;;  %2203 = vmatprep.subr.bf16.mxu1 %v4098_v3  ;;  %v628_v60 = vld [vmem:[%s4095_s1 + $0x180] sm:$0xff]  ;;  %v629_v61 = vld [vmem:[%s4095_s1 + $0x188] sm:$0xff] }
  0x22   : > { %210 = vst [vmem:[#allocation2 + $0x138] sm:$0xff] %v2632_v8  ;;  %211 = vst [vmem:[#allocation2 + $0x140] sm:$0xff] %v2632_v8  ;;  %2251 = vmatprep.subr.bf16.mxu0 %v4098_v3  ;;  %v232_v0 = vld [vmem:[%s2825_s15 + $0x38] sm:$0xff]  ;;  %v233_v1 = vld [vmem:[%s2825_s15 + $0x40] sm:$0xff]  ;;  %v2261_v2 = vpack.c.bf16 %v629_v61, %v628_v60 }
  0x23   : > { %212 = vst [vmem:[#allocation2 + $0x148] sm:$0x3] %v2632_v8  ;;  %213 = vst [vmem:[#allocation2 + $0x150] sm:$0xff] %v2632_v8  ;;  %v598_v4 = vld [vmem:[%s4095_s1 + $0x90] sm:$0xff]  ;;  %v599_v5 = vld [vmem:[%s4095_s1 + $0x98] sm:$0xff] }
  0x24   : > { %214 = vst [vmem:[#allocation2 + $0x158] sm:$0xff] %v2632_v8  ;;  %215 = vst [vmem:[#allocation2 + $0x160] sm:$0x3] %v2632_v8  ;;  %2205 = vmatpush1.bf16.msra.mxu1 %v2204_v36  ;;  %v630_v6 = vld [vmem:[%s4095_s1 + $0x190] sm:$0xff]  ;;  %v631_v7 = vld [vmem:[%s4095_s1 + $0x198] sm:$0xff]  ;;  %v2216_v9 = vpack.c.bf16 %v599_v5, %v598_v4 }
  0x25   : > { %216 = vst [vmem:[#allocation2 + $0x168] sm:$0xff] %v2632_v8  ;;  %217 = vst [vmem:[#allocation2 + $0x170] sm:$0xff] %v2632_v8  ;;  %2253 = vmatpush1.bf16.msra.mxu0 %v2252_v37  ;;  %2206 = vmatprep.subr.bf16.mxu1 %v4098_v3  ;;  %v2264_v10 = vpack.c.bf16 %v631_v7, %v630_v6  ;;  %v600_v11 = vld [vmem:[%s4095_s1 + $0xa0] sm:$0xff]  ;;  %v601_v12 = vld [vmem:[%s4095_s1 + $0xa8] sm:$0xff] }
  0x26   : > { %218 = vst [vmem:[#allocation2 + $0x178] sm:$0x3] %v2632_v8  ;;  %219 = vst [vmem:[#allocation2 + $0x180] sm:$0xff] %v2632_v8  ;;  %2254 = vmatprep.subr.bf16.mxu0 %v4098_v3  ;;  %v632_v13 = vld [vmem:[%s4095_s1 + $0x1a0] sm:$0xff]  ;;  %v633_v14 = vld [vmem:[%s4095_s1 + $0x1a8] sm:$0xff]  ;;  %v2219_v15 = vpack.c.bf16 %v601_v12, %v600_v11 }
  0x27   : > { %220 = vst [vmem:[#allocation2 + $0x188] sm:$0xff] %v2632_v8  ;;  %221 = vst [vmem:[#allocation2 + $0x190] sm:$0x3] %v2632_v8  ;;  %v2267_v16 = vpack.c.bf16 %v633_v14, %v632_v13  ;;  %v602_v17 = vld [vmem:[%s4095_s1 + $0xb0] sm:$0xff]  ;;  %v603_v18 = vld [vmem:[%s4095_s1 + $0xb8] sm:$0xff] }
  0x28   : > { %222 = vst [vmem:[#allocation2 + $0x198] sm:$0xff] %v2632_v8  ;;  %223 = vst [vmem:[#allocation2 + $0x1a0] sm:$0xff] %v2632_v8  ;;  %2208 = vmatpush1.bf16.msra.mxu1 %v2207_v44  ;;  %v234_v19 = vld [vmem:[%s2825_s15 + $0x48] sm:$0xff]  ;;  %v634_v20 = vld [vmem:[%s4095_s1 + $0x1b0] sm:$0xff]  ;;  %v2222_v23 = vpack.c.bf16 %v603_v18, %v602_v17 }
  0x29   : > { %224 = vst [vmem:[#allocation2 + $0x1a8] sm:$0x3] %v2632_v8  ;;  %259 = vst.msk [vmem:[#allocation2 + $0x19] sm:$0xff] %vm258_vm0, %v225_v43  ;;  %2256 = vmatpush1.bf16.msra.mxu0 %v2255_v46  ;;  %2209 = vmatprep.subr.bf16.mxu1 %v4098_v3  ;;  %v635_v21 = vld [vmem:[%s4095_s1 + $0x1b8] sm:$0xff]  ;;  %v235_v22 = vld [vmem:[%s2825_s15 + $0x50] sm:$0xff] }
  0x2a   : > { %260 = vst.msk [vmem:[#allocation2 + $0x21] sm:$0xff] %vm258_vm0, %v226_v48  ;;  %261 = vst.msk [vmem:[#allocation2 + $0x31] sm:$0xff] %vm258_vm0, %v227_v49  ;;  %2257 = vmatprep.subr.bf16.mxu0 %v4098_v3  ;;  %v236_v24 = vld [vmem:[%s2825_s15 + $0x58] sm:$0xff]  ;;  %v237_v25 = vld [vmem:[%s2825_s15 + $0x60] sm:$0xff]  ;;  %v2270_v26 = vpack.c.bf16 %v635_v21, %v634_v20 }
  0x2b   : > { %262 = vst.msk [vmem:[#allocation2 + $0x39] sm:$0xff] %vm258_vm0, %v228_v52  ;;  %263 = vst.msk [vmem:[#allocation2 + $0x49] sm:$0xff] %vm258_vm0, %v229_v53  ;;  %v604_v27 = vld [vmem:[%s4095_s1 + $0xc0] sm:$0xff]  ;;  %v605_v28 = vld [vmem:[%s4095_s1 + $0xc8] sm:$0xff] }
  0x2c   : > { %264 = vst.msk [vmem:[#allocation2 + $0x51] sm:$0xff] %vm258_vm0, %v230_v58  ;;  %265 = vst.msk [vmem:[#allocation2 + $0x61] sm:$0xff] %vm258_vm0, %v231_v59  ;;  %2211 = vmatpush1.bf16.msra.mxu1 %v2210_v54  ;;  %v636_v29 = vld [vmem:[%s4095_s1 + $0x1c0] sm:$0xff]  ;;  %v637_v30 = vld [vmem:[%s4095_s1 + $0x1c8] sm:$0xff]  ;;  %v2225_v33 = vpack.c.bf16 %v605_v28, %v604_v27 }
  0x2d   : > { %2259 = vmatpush1.bf16.msra.mxu0 %v2258_v56  ;;  %2212 = vmatprep.subr.bf16.mxu1 %v4098_v3  ;;  %266 = vst.msk [vmem:[#allocation2 + $0x69] sm:$0xff] %vm258_vm0, %v232_v0  ;;  %267 = vst.msk [vmem:[#allocation2 + $0x79] sm:$0xff] %vm258_vm0, %v233_v1  ;;  %v238_v31 = vld [vmem:[%s2825_s15 + $0x68] sm:$0xff]  ;;  %v239_v32 = vld [vmem:[%s2825_s15 + $0x70] sm:$0xff]  ;;  %v2273_v36 = vpack.c.bf16 %v637_v30, %v636_v29 }
  0x2e   : > { %2260 = vmatprep.subr.bf16.mxu0 %v4098_v3  ;;  %268 = vst.msk [vmem:[#allocation2 + $0x81] sm:$0xff] %vm258_vm0, %v234_v19  ;;  %269 = vst.msk [vmem:[#allocation2 + $0x91] sm:$0xff] %vm258_vm0, %v235_v22  ;;  %v240_v34 = vld [vmem:[%s2825_s15 + $0x78] sm:$0xff]  ;;  %v241_v35 = vld [vmem:[%s2825_s15 + $0x80] sm:$0xff] }
  0x2f   : > { %270 = vst.msk [vmem:[#allocation2 + $0x99] sm:$0xff] %vm258_vm0, %v236_v24  ;;  %271 = vst.msk [vmem:[#allocation2 + $0xa9] sm:$0xff] %vm258_vm0, %v237_v25  ;;  %v606_v37 = vld [vmem:[%s4095_s1 + $0xd0] sm:$0xff]  ;;  %v607_v38 = vld [vmem:[%s4095_s1 + $0xd8] sm:$0xff] }
  0x30   : > { %v2881_v62 = vld [vmem:[#allocation2 + $0x18] sm:$0xff]  ;;  %2214 = vmatpush1.bf16.msra.mxu1 %v2213_v63  ;;  %272 = vst.msk [vmem:[#allocation2 + $0xb1] sm:$0xff] %vm258_vm0, %v238_v31  ;;  %273 = vst.msk [vmem:[#allocation2 + $0xc1] sm:$0xff] %vm258_vm0, %v239_v32  ;;  %v638_v39 = vld [vmem:[%s4095_s1 + $0x1d0] sm:$0xff]  ;;  %v2228_v41 = vpack.c.bf16 %v607_v38, %v606_v37 }
  0x31   : > { %1020 = vmatprep.mubr.f32.mxu0 %v2881_v62  ;;  %2262 = vmatpush1.bf16.msra.mxu0 %v2261_v2  ;;  %274 = vst.msk [vmem:[#allocation2 + $0xc9] sm:$0xff] %vm258_vm0, %v240_v34  ;;  %275 = vst.msk [vmem:[#allocation2 + $0xd9] sm:$0xff] %vm258_vm0, %v241_v35  ;;  %v639_v40 = vld [vmem:[%s4095_s1 + $0x1d8] sm:$0xff]  ;;  %v608_v43 = vld [vmem:[%s4095_s1 + $0xe0] sm:$0xff] }
  0x32   : > { %2215 = vmatprep.subr.bf16.mxu1 %v4098_v3  ;;  %2263 = vmatprep.subr.bf16.mxu0 %v4098_v3  ;;  %v2276_v42 = vpack.c.bf16 %v639_v40, %v638_v39  ;;  %v609_v44 = vld [vmem:[%s4095_s1 + $0xe8] sm:$0xff]  ;;  %v640_v45 = vld [vmem:[%s4095_s1 + $0x1e0] sm:$0xff]  ;;  %v610_v49 = vld [vmem:[%s4095_s1 + $0xf0] sm:$0xff] }
  0x33   : > { %v641_v46 = vld [vmem:[%s4095_s1 + $0x1e8] sm:$0xff]  ;;  %v2231_v47 = vpack.c.bf16 %v609_v44, %v608_v43  ;;  %v611_v50 = vld [vmem:[%s4095_s1 + $0xf8] sm:$0xff]  ;;  %v642_v52 = vld [vmem:[%s4095_s1 + $0x1f0] sm:$0xff] }
  0x34   : > { %2217 = vmatpush1.bf16.msra.mxu1 %v2216_v9  ;;  %v2279_v48 = vpack.c.bf16 %v641_v46, %v640_v45  ;;  %v242_v51 = vld [vmem:[%s2825_s15 + $0x88] sm:$0xff]  ;;  %v643_v53 = vld [vmem:[%s4095_s1 + $0x1f8] sm:$0xff]  ;;  %v243_v54 = vld [vmem:[%s2825_s15 + $0x90] sm:$0xff]  ;;  %v2234_v55 = vpack.c.bf16 %v611_v50, %v610_v49 }
  0x35   : > { %2265 = vmatpush1.bf16.msra.mxu0 %v2264_v10  ;;  %2218 = vmatprep.subr.bf16.mxu1 %v4098_v3  ;;  %276 = vst.msk [vmem:[#allocation2 + $0xe1] sm:$0xff] %vm258_vm0, %v242_v51  ;;  %277 = vst.msk [vmem:[#allocation2 + $0xf1] sm:$0xff] %vm258_vm0, %v243_v54  ;;  %v244_v56 = vld [vmem:[%s2825_s15 + $0x98] sm:$0xff]  ;;  %v245_v57 = vld [vmem:[%s2825_s15 + $0xa0] sm:$0xff]  ;;  %v2282_v58 = vpack.c.bf16 %v643_v53, %v642_v52 }
  0x36   : > { %2266 = vmatprep.subr.bf16.mxu0 %v4098_v3  ;;  %v644_v59 = vld [vmem:[%s4095_s1 + $0x200] sm:$0xff]  ;;  %v677_v61 = vld [vmem:[%s4095_s1 + $0x308] sm:$0xff]  ;;  %278 = vst.msk [vmem:[#allocation2 + $0xf9] sm:$0xff] %vm258_vm0, %v244_v56  ;;  %279 = vst.msk [vmem:[#allocation2 + $0x109] sm:$0xff] %vm258_vm0, %v245_v57 }
  0x37   : > { %v676_v60 = vld [vmem:[%s4095_s1 + $0x300] sm:$0xff]  ;;  %v645_v63 = vld [vmem:[%s4095_s1 + $0x208] sm:$0xff]  ;;  %v247_v1 = vld [vmem:[%s2825_s15 + $0xb0] sm:$0xff] }
  0x38   : > { %2220 = vmatpush1.bf16.msra.mxu1 %v2219_v15  ;;  %v246_v0 = vld [vmem:[%s2825_s15 + $0xa8] sm:$0xff]  ;;  %281 = vst.msk [vmem:[#allocation2 + $0x121] sm:$0xff] %vm258_vm0, %v247_v1  ;;  %v3030_v2 = vpack.c.bf16 %v677_v61, %v676_v60  ;;  %v248_v4 = vld [vmem:[%s2825_s15 + $0xb8] sm:$0xff]  ;;  %v249_v5 = vld [vmem:[%s2825_s15 + $0xc0] sm:$0xff]  ;;  %v2285_v7 = vpack.c.bf16 %v645_v63, %v644_v59 }
  0x39   : > { %2268 = vmatpush1.bf16.msra.mxu0 %v2267_v16  ;;  %2221 = vmatprep.subr.bf16.mxu1 %v4098_v3  ;;  %280 = vst.msk [vmem:[#allocation2 + $0x111] sm:$0xff] %vm258_vm0, %v246_v0  ;;  %v355_v6 = vld [vmem:[#allocation2 + $0x2] sm:$0xff]  ;;  %282 = vst.msk [vmem:[#allocation2 + $0x129] sm:$0xff] %vm258_vm0, %v248_v4  ;;  %v646_v10 = vld [vmem:[%s4095_s1 + $0x210] sm:$0xff] }
  0x3a   : > { %2269 = vmatprep.subr.bf16.mxu0 %v4098_v3  ;;  %283 = vst.msk [vmem:[#allocation2 + $0x139] sm:$0xff] %vm258_vm0, %v249_v5  ;;  %v324_v9 = vld [vmem:[#allocation2 + $0x9] sm:$0xff]  ;;  %v647_v11 = vld [vmem:[%s4095_s1 + $0x218] sm:$0xff]  ;;  %v388_v12 = vld [vmem:[#allocation2 + $0x20] sm:$0xff] }
  0x3b   : > { %v678_v13 = vld [vmem:[%s4095_s1 + $0x310] sm:$0xff]  ;;  %v679_v14 = vld [vmem:[%s4095_s1 + $0x318] sm:$0xff]  ;;  %v2288_v17 = vpack.c.bf16 %v647_v11, %v646_v10  ;;  %v648_v20 = vld [vmem:[%s4095_s1 + $0x220] sm:$0xff] }
  0x3c   : > { %2223 = vmatpush1.bf16.msra.mxu1 %v2222_v23  ;;  %v356_v15 = vld [vmem:[#allocation2 + $0xa] sm:$0xff]  ;;  %v3052_v16 = vld [vmem:[#allocation2 + $0x19] sm:$0xff]  ;;  %v3057_v19 = vpack.c.bf16 %v679_v14, %v678_v13  ;;  %v3080_v25 = vld [vmem:[#allocation2 + $0x21] sm:$0xff] }
  0x3d   : > { %2271 = vmatpush1.bf16.msra.mxu0 %v2270_v26  ;;  %2224 = vmatprep.subr.bf16.mxu1 %v4098_v3  ;;  %v3054_v18 = vld [vmem:[#allocation2 + $0x30] sm:$0xff]  ;;  %v649_v21 = vld [vmem:[%s4095_s1 + $0x228] sm:$0xff]  ;;  %v680_v22 = vld [vmem:[%s4095_s1 + $0x320] sm:$0xff] }
  0x3e   : > { %2272 = vmatprep.subr.bf16.mxu0 %v4098_v3  ;;  %v681_v23 = vld [vmem:[%s4095_s1 + $0x328] sm:$0xff]  ;;  %v650_v24 = vld [vmem:[%s4095_s1 + $0x230] sm:$0xff]  ;;  %v2291_v26 = vpack.c.bf16 %v649_v21, %v648_v20  ;;  %v3084_v28 = vld [vmem:[#allocation2 + $0x38] sm:$0xff] }
  0x3f   : > { %v250_v27 = vld [vmem:[%s2825_s15 + $0xc8] sm:$0xff]  ;;  %v3087_v29 = vpack.c.bf16 %v681_v23, %v680_v22  ;;  %v651_v30 = vld [vmem:[%s4095_s1 + $0x238] sm:$0xff]  ;;  %v251_v31 = vld [vmem:[%s2825_s15 + $0xd0] sm:$0xff] }
  0x40   : > { %2226 = vmatpush1.bf16.msra.mxu1 %v2225_v33  ;;  %284 = vst.msk [vmem:[#allocation2 + $0x141] sm:$0xff] %vm258_vm0, %v250_v27  ;;  %v682_v32 = vld [vmem:[%s4095_s1 + $0x330] sm:$0xff]  ;;  %v683_v33 = vld [vmem:[%s4095_s1 + $0x338] sm:$0xff]  ;;  %285 = vst.msk [vmem:[#allocation2 + $0x151] sm:$0xff] %vm258_vm0, %v251_v31  ;;  %v2294_v39 = vpack.c.bf16 %v651_v30, %v650_v24 }
  0x41   : > { %2274 = vmatpush1.bf16.msra.mxu0 %v2273_v36  ;;  %2227 = vmatprep.subr.bf16.mxu1 %v4098_v3  ;;  %v252_v34 = vld [vmem:[%s2825_s15 + $0xd8] sm:$0xff]  ;;  %v253_v35 = vld [vmem:[%s2825_s15 + $0xe0] sm:$0xff]  ;;  %v3115_v38 = vld [vmem:[#allocation2 + $0x48] sm:$0xff]  ;;  %v3121_v40 = vpack.c.bf16 %v683_v33, %v682_v32 }
  0x42   : > { %2275 = vmatprep.subr.bf16.mxu0 %v4098_v3  ;;  %v3111_v36 = vld [vmem:[#allocation2 + $0x22] sm:$0xff]  ;;  %v3113_v37 = vld [vmem:[#allocation2 + $0x31] sm:$0xff]  ;;  %286 = vst.msk [vmem:[#allocation2 + $0x159] sm:$0xff] %vm258_vm0, %v252_v34  ;;  %287 = vst.msk [vmem:[#allocation2 + $0x169] sm:$0xff] %vm258_vm0, %v253_v35 }
  0x43   : > { %v255_v43 = vld [vmem:[%s2825_s15 + $0xf0] sm:$0xff]  ;;  %v684_v44 = vld [vmem:[%s4095_s1 + $0x340] sm:$0xff]  ;;  %v685_v45 = vld [vmem:[%s4095_s1 + $0x348] sm:$0xff] }
  0x44   : > { %2229 = vmatpush1.bf16.msra.mxu1 %v2228_v41  ;;  %v653_v41 = vld [vmem:[%s4095_s1 + $0x248] sm:$0xff]  ;;  %289 = vst.msk [vmem:[#allocation2 + $0x181] sm:$0xff] %vm258_vm0, %v255_v43  ;;  %v256_v46 = vld [vmem:[%s2825_s15 + $0xf8] sm:$0xff]  ;;  %v392_v50 = vld [vmem:[#allocation2 + $0x50] sm:$0xff]  ;;  %v3148_v51 = vpack.c.bf16 %v685_v45, %v684_v44 }
  0x45   : > { %2277 = vmatpush1.bf16.msra.mxu0 %v2276_v42  ;;  %2230 = vmatprep.subr.bf16.mxu1 %v4098_v3  ;;  %v254_v42 = vld [vmem:[%s2825_s15 + $0xe8] sm:$0xff]  ;;  %290 = vst.msk [vmem:[#allocation2 + $0x189] sm:$0xff] %vm258_vm0, %v256_v46  ;;  %v654_v52 = vld [vmem:[%s4095_s1 + $0x250] sm:$0xff]  ;;  %v655_v53 = vld [vmem:[%s4095_s1 + $0x258] sm:$0xff] }
  0x46   : > { %2278 = vmatprep.subr.bf16.mxu0 %v4098_v3  ;;  %288 = vst.msk [vmem:[#allocation2 + $0x171] sm:$0xff] %vm258_vm0, %v254_v42  ;;  %v686_v54 = vld [vmem:[%s4095_s1 + $0x350] sm:$0xff]  ;;  %v3166_v56 = vld [vmem:[#allocation2 + $0x3a] sm:$0xff]  ;;  %v657_v63 = vld [vmem:[%s4095_s1 + $0x268] sm:$0xff] }
  0x47   : > { %v3168_v57 = vld [vmem:[#allocation2 + $0x49] sm:$0xff]  ;;  %v393_v59 = vld [vmem:[#allocation2 + $0x60] sm:$0xff]  ;;  %v3192_v5 = vld [vmem:[#allocation2 + $0x51] sm:$0xff] }
  0x48   : > { %2232 = vmatpush1.bf16.msra.mxu1 %v2231_v47  ;;  %v3141_v47 = vld [vmem:[#allocation2 + $0x32] sm:$0xff]  ;;  %v656_v61 = vld [vmem:[%s4095_s1 + $0x260] sm:$0xff]  ;;  %v689_v1 = vld [vmem:[%s4095_s1 + $0x368] sm:$0xff] }
  0x49   : > { %2280 = vmatpush1.bf16.msra.mxu0 %v2279_v48  ;;  %2233 = vmatprep.subr.bf16.mxu1 %v4098_v3  ;;  %v3143_v48 = vld [vmem:[#allocation2 + $0x39] sm:$0xff]  ;;  %v3190_v4 = vld [vmem:[#allocation2 + $0x4a] sm:$0xff] }
  0x4a   : > { %2281 = vmatprep.subr.bf16.mxu0 %v4098_v3  ;;  %v688_v0 = vld [vmem:[%s4095_s1 + $0x360] sm:$0xff]  ;;  %v658_v10 = vld [vmem:[%s4095_s1 + $0x270] sm:$0xff]  ;;  %v659_v11 = vld [vmem:[%s4095_s1 + $0x278] sm:$0xff] }
  0x4b   : > { %v691_v13 = vld [vmem:[%s4095_s1 + $0x378] sm:$0xff]  ;;  %v660_v21 = vld [vmem:[%s4095_s1 + $0x280] sm:$0xff]  ;;  %v661_v22 = vld [vmem:[%s4095_s1 + $0x288] sm:$0xff] }
  0x4c   : > { %2235 = vmatpush1.bf16.msra.mxu1 %v2234_v55  ;;  %v687_v55 = vld [vmem:[%s4095_s1 + $0x358] sm:$0xff]  ;;  %v692_v23 = vld [vmem:[%s4095_s1 + $0x380] sm:$0xff]  ;;  %v693_v24 = vld [vmem:[%s4095_s1 + $0x388] sm:$0xff] }
  0x4d   : > { %2283 = vmatpush1.bf16.msra.mxu0 %v2282_v58  ;;  %2412 = vmatprep.subr.bf16.mxu1 %v4098_v3  ;;  %v2300_v58 = vpack.c.bf16 %v655_v53, %v654_v52  ;;  %v3172_v60 = vpack.c.bf16 %v687_v55, %v686_v54  ;;  %v3214_v14 = vld [vmem:[#allocation2 + $0x52] sm:$0xff]  ;;  %v3239_v27 = vld [vmem:[#allocation2 + $0x69] sm:$0xff]  ;;  %v396_v30 = vld [vmem:[#allocation2 + $0x80] sm:$0xff]  ;;  %v3243_v31 = vpack.c.bf16 %v693_v24, %v692_v23 }
  0x4e   : > { %2284 = vmatprep.subr.bf16.mxu0 %v4098_v3  ;;  %v662_v32 = vld [vmem:[%s4095_s1 + $0x290] sm:$0xff]  ;;  %v663_v33 = vld [vmem:[%s4095_s1 + $0x298] sm:$0xff]  ;;  %v664_v43 = vld [vmem:[%s4095_s1 + $0x2a0] sm:$0xff] }
  0x4f   : > { %796 = vmatmul.mubr.f32.vlgmr.msra.gmra.mrb[0].mxu1 %v2632_v8  ;;  %v695_v34 = vld [vmem:[%s4095_s1 + $0x398] sm:$0xff]  ;;  %v3260_v35 = vld [vmem:[#allocation2 + $0x6a] sm:$0xff]  ;;  %v696_v45 = vld [vmem:[%s4095_s1 + $0x3a0] sm:$0xff] }
  0x50   : > { %1021 = vmatmul.mubr.f32.vlgmr.msra.gmra.mrb[0].mxu0 %v355_v6  ;;  %2428 = vmatpush1.bf16.msra.mxu1 %v3030_v2  ;;  %v2303_v6 = vpack.c.bf16 %v657_v63, %v656_v61  ;;  %v665_v44 = vld [vmem:[%s4095_s1 + $0x2a8] sm:$0xff]  ;;  %v3290_v53 = vld [vmem:[#allocation2 + $0x98] sm:$0xff]  ;;  %v666_v55 = vld [vmem:[%s4095_s1 + $0x2b0] sm:$0xff] }
  0x51   : > { %2286 = vmatpush1.bf16.msra.mxu0 %v2285_v7  ;;  %800 = vmatprep.mubr.f32.mxu1 %v324_v9  ;;  %v394_v7 = vld [vmem:[#allocation2 + $0x68] sm:$0xff]  ;;  %v3196_v9 = vpack.c.bf16 %v689_v1, %v688_v0  ;;  %v2315_v52 = vpack.c.bf16 %v665_v44, %v664_v43  ;;  %v699_v61 = vld [vmem:[%s4095_s1 + $0x3b8] sm:$0xff]  ;;  %v670_v24 = vld [vmem:[%s4095_s1 + $0x2d0] sm:$0xff] }
  0x52   : > { %1025 = vmatprep.mubr.f32.mxu0 %v388_v12  ;;  %2287 = vmatprep.subr.bf16.mxu0 %v4098_v3  ;;  %v697_v46 = vld [vmem:[%s4095_s1 + $0x3a8] sm:$0xff]  ;;  %v3314_v0 = vld [vmem:[#allocation2 + $0x91] sm:$0xff]  ;;  %v672_v44 = vld [vmem:[%s4095_s1 + $0x2e0] sm:$0xff] }
  0x53   : > { %801 = vmatmul.mubr.f32.gmra.mrb[2].mxu1 %v2632_v8  ;;  %2413 = vmatprep.subr.bf16.mxu1 %v4098_v3  ;;  %v3078_v8 = vld [vmem:[#allocation2 + $0x1a] sm:$0xff]  ;;  %v3294_v54 = vpack.c.bf16 %v697_v46, %v696_v45  ;;  %v3312_v63 = vld [vmem:[#allocation2 + $0x82] sm:$0xff] }
  0x54   : > { %1026 = vmatmul.mubr.f32.gmra.mrb[2].mxu0 %v356_v15  ;;  %805 = vmatprep.mubr.f32.mxu1 %v3052_v16  ;;  %v3216_v15 = vld [vmem:[#allocation2 + $0x61] sm:$0xff] }
  0x55   : > { %1030 = vmatprep.mubr.f32.mxu0 %v3054_v18  ;;  %2289 = vmatpush1.bf16.msra.mxu0 %v2288_v17  ;;  %v2306_v17 = vpack.c.bf16 %v659_v11, %v658_v10  ;;  %4155 = vst [vmem:[#allocation4_spill] sm:$0xff] %v3294_v54  ;;  %v668_v10 = vld [vmem:[%s4095_s1 + $0x2c0] sm:$0xff]  ;;  %v669_v11 = vld [vmem:[%s4095_s1 + $0x2c8] sm:$0xff] }
  0x56   : > { %2429 = vmatpush1.bf16.msra.mxu1 %v3057_v19  ;;  %2290 = vmatprep.subr.bf16.mxu0 %v4098_v3  ;;  %v673_v45 = vld [vmem:[%s4095_s1 + $0x2e8] sm:$0xff]  ;;  %v704_v46 = vld [vmem:[%s4095_s1 + $0x3e0] sm:$0xff] }
  0x57   : > { %806 = vmatmul.mubr.f32.gmra.mrb[4].mxu1 %v2881_v62  ;;  %2414 = vmatprep.subr.bf16.mxu1 %v4098_v3  ;;  %v652_v62 = vld [vmem:[%s4095_s1 + $0x240] sm:$0xff] }
  0x58   : > { %1031 = vmatmul.mubr.f32.gmra.mrb[4].mxu0 %v3078_v8  ;;  %810 = vmatprep.mubr.f32.mxu1 %v3080_v25  ;;  %v2297_v49 = vpack.c.bf16 %v653_v41, %v652_v62  ;;  %v694_v62 = vld [vmem:[%s4095_s1 + $0x390] sm:$0xff] }
  0x59   : > { %1035 = vmatprep.mubr.f32.mxu0 %v3084_v28  ;;  %2292 = vmatpush1.bf16.msra.mxu0 %v2291_v26  ;;  %v3237_v26 = vld [vmem:[#allocation2 + $0x62] sm:$0xff]  ;;  %v3264_v41 = vld [vmem:[#allocation2 + $0x90] sm:$0xff]  ;;  %v3268_v42 = vpack.c.bf16 %v695_v34, %v694_v62 }
  0x5a   : > { %2430 = vmatpush1.bf16.msra.mxu1 %v3087_v29  ;;  %2293 = vmatprep.subr.bf16.mxu0 %v4098_v3  ;;  %v3367_v62 = vld [vmem:[#allocation2 + $0xa9] sm:$0xff] }
  0x5b   : > { %811 = vmatmul.mubr.f32.gmra.mrb[6].mxu1 %v388_v12  ;;  %2415 = vmatprep.subr.bf16.mxu1 %v4098_v3  ;;  %v690_v12 = vld [vmem:[%s4095_s1 + $0x370] sm:$0xff] }
  0x5c   : > { %1036 = vmatmul.mubr.f32.gmra.mrb[6].mxu0 %v3111_v36  ;;  %815 = vmatprep.mubr.f32.mxu1 %v3113_v37  ;;  %v3220_v20 = vpack.c.bf16 %v691_v13, %v690_v12  ;;  %v700_v12 = vld [vmem:[%s4095_s1 + $0x3c0] sm:$0xff]  ;;  %v701_v13 = vld [vmem:[%s4095_s1 + $0x3c8] sm:$0xff] }
  0x5d   : > { %1040 = vmatprep.mubr.f32.mxu0 %v3115_v38  ;;  %2295 = vmatpush1.bf16.msra.mxu0 %v2294_v39  ;;  %v2312_v39 = vpack.c.bf16 %v663_v33, %v662_v32  ;;  %v3346_v23 = vpack.c.bf16 %v701_v13, %v700_v12  ;;  %v703_v32 = vld [vmem:[%s4095_s1 + $0x3d8] sm:$0xff]  ;;  %v706_v12 = vld [vmem:[%s4095_s1 + $0x3f0] sm:$0xff] }
  0x5e   : > { %2431 = vmatpush1.bf16.msra.mxu1 %v3121_v40  ;;  %2296 = vmatprep.subr.bf16.mxu0 %v4098_v3  ;;  %v3365_v33 = vld [vmem:[#allocation2 + $0x9a] sm:$0xff] }
  0x5f   : > { %816 = vmatmul.mubr.f32.gmra.mrb[8].mxu1 %v3054_v18  ;;  %2416 = vmatprep.subr.bf16.mxu1 %v4098_v3  ;;  %v395_v18 = vld [vmem:[#allocation2 + $0x78] sm:$0xff]  ;;  %4157 = vst [vmem:[#allocation6_spill] sm:$0xff] %v3346_v23  ;;  %4158 = vst [vmem:[#allocation7_spill] sm:$0xff] %v3365_v33 }
  0x60   : > { %1041 = vmatmul.mubr.f32.gmra.mrb[8].mxu0 %v3141_v47  ;;  %820 = vmatprep.mubr.f32.mxu1 %v3143_v48  ;;  %v707_v13 = vld [vmem:[%s4095_s1 + $0x3f8] sm:$0xff] }
  0x61   : > { %1045 = vmatprep.mubr.f32.mxu0 %v392_v50  ;;  %2298 = vmatpush1.bf16.msra.mxu0 %v2297_v49  ;;  %v3286_v49 = vld [vmem:[#allocation2 + $0x7a] sm:$0xff] }
  0x62   : > { %2432 = vmatpush1.bf16.msra.mxu1 %v3148_v51  ;;  %2299 = vmatprep.subr.bf16.mxu0 %v4098_v3 }
  0x63   : > { %821 = vmatmul.mubr.f32.gmra.mrb[10].mxu1 %v3084_v28  ;;  %2417 = vmatprep.subr.bf16.mxu1 %v4098_v3  ;;  %v2309_v28 = vpack.c.bf16 %v661_v22, %v660_v21  ;;  %v2321_v21 = vpack.c.bf16 %v669_v11, %v668_v10  ;;  %v3342_v22 = vld [vmem:[#allocation2 + $0xb0] sm:$0xff]  ;;  %v675_v11 = vld [vmem:[%s4095_s1 + $0x2f8] sm:$0xff] }
  0x64   : > { %1046 = vmatmul.mubr.f32.gmra.mrb[10].mxu0 %v3166_v56  ;;  %825 = vmatprep.mubr.f32.mxu1 %v3168_v57  ;;  %v674_v10 = vld [vmem:[%s4095_s1 + $0x2f0] sm:$0xff] }
  0x65   : > { %1050 = vmatprep.mubr.f32.mxu0 %v393_v59  ;;  %2301 = vmatpush1.bf16.msra.mxu0 %v2300_v58  ;;  %v667_v58 = vld [vmem:[%s4095_s1 + $0x2b8] sm:$0xff] }
  0x66   : > { %2433 = vmatpush1.bf16.msra.mxu1 %v3172_v60  ;;  %2302 = vmatprep.subr.bf16.mxu0 %v4098_v3  ;;  %v2318_v1 = vpack.c.bf16 %v667_v58, %v666_v55  ;;  %v3392_v55 = vld [vmem:[#allocation2 + $0xaa] sm:$0xff] }
  0x67   : > { %826 = vmatmul.mubr.f32.gmra.mrb[12].mxu1 %v3115_v38  ;;  %2418 = vmatprep.subr.bf16.mxu1 %v4098_v3  ;;  %v3262_v38 = vld [vmem:[#allocation2 + $0x79] sm:$0xff]  ;;  %4160 = vst [vmem:[#allocation9_spill] sm:$0xff] %v3392_v55  ;;  %v3394_v58 = vld [vmem:[#allocation2 + $0xb1] sm:$0xff] }
  0x68   : > { %1051 = vmatmul.mubr.f32.gmra.mrb[12].mxu0 %v3190_v4  ;;  %830 = vmatprep.mubr.f32.mxu1 %v3192_v5 }
  0x69   : > { %1055 = vmatprep.mubr.f32.mxu0 %v394_v7  ;;  %2304 = vmatpush1.bf16.msra.mxu0 %v2303_v6  ;;  %v3316_v6 = vld [vmem:[#allocation2 + $0xa8] sm:$0xff] }
  0x6a   : > { %2434 = vmatpush1.bf16.msra.mxu1 %v3196_v9  ;;  %2305 = vmatprep.subr.bf16.mxu0 %v4098_v3 }
  0x6b   : > { %831 = vmatmul.mubr.f32.gmra.mrb[14].mxu1 %v392_v50  ;;  %2419 = vmatprep.subr.bf16.mxu1 %v4098_v3  ;;  %v3288_v50 = vld [vmem:[#allocation2 + $0x81] sm:$0xff] }
  0x6c   : > { %1056 = vmatmul.mubr.f32.gmra.mrb[14].mxu0 %v3214_v14  ;;  %835 = vmatprep.mubr.f32.mxu1 %v3216_v15 }
  0x6d   : > { %1060 = vmatprep.mubr.f32.mxu0 %v395_v18  ;;  %2307 = vmatpush1.bf16.msra.mxu0 %v2306_v17  ;;  %v3338_v17 = vld [vmem:[#allocation2 + $0x92] sm:$0xff] }
  0x6e   : > { %2435 = vmatpush1.bf16.msra.mxu1 %v3220_v20  ;;  %2308 = vmatprep.subr.bf16.mxu0 %v4098_v3 }
  0x6f   : > { %836 = vmatmul.mubr.f32.gmra.mrb[16].mxu1 %v393_v59  ;;  %2420 = vmatprep.subr.bf16.mxu1 %v4098_v3  ;;  %v698_v59 = vld [vmem:[%s4095_s1 + $0x3b0] sm:$0xff] }
  0x70   : > { %1061 = vmatmul.mubr.f32.gmra.mrb[16].mxu0 %v3237_v26  ;;  %840 = vmatprep.mubr.f32.mxu1 %v3239_v27 }
  0x71   : > { %1065 = vmatprep.mubr.f32.mxu0 %v396_v30  ;;  %2310 = vmatpush1.bf16.msra.mxu0 %v2309_v28  ;;  %v671_v28 = vld [vmem:[%s4095_s1 + $0x2d8] sm:$0xff] }
  0x72   : > { %2436 = vmatpush1.bf16.msra.mxu1 %v3243_v31  ;;  %2311 = vmatprep.subr.bf16.mxu0 %v4098_v3  ;;  %v2324_v34 = vpack.c.bf16 %v671_v28, %v670_v24  ;;  %v709_v24 = vld [vmem:[%s4095_s1 + $0x408] sm:$0xff]  ;;  %v3425_v28 = vld [vmem:[#allocation2 + $0xb2] sm:$0xff] }
  0x73   : > { %841 = vmatmul.mubr.f32.gmra.mrb[18].mxu1 %v394_v7  ;;  %2421 = vmatprep.subr.bf16.mxu1 %v4098_v3  ;;  %v3320_v7 = vpack.c.bf16 %v699_v61, %v698_v59  ;;  %v2327_v59 = vpack.c.bf16 %v673_v45, %v672_v44  ;;  %v3396_v61 = vld [vmem:[#allocation2 + $0xc8] sm:$0xff]  ;;  %4162 = vst [vmem:[#allocation11_spill] sm:$0xff] %v3425_v28 }
  0x74   : > { %1066 = vmatmul.mubr.f32.gmra.mrb[18].mxu0 %v3260_v35  ;;  %845 = vmatprep.mubr.f32.mxu1 %v3262_v38  ;;  %v3433_v44 = vpack.c.bf16 %v707_v13, %v706_v12  ;;  %v3459_v12 = vld [vmem:[#allocation2 + $0xf0] sm:$0xff]  ;;  %v3465_v13 = vld [vmem:[#allocation2 + $0xda] sm:$0xff] }
  0x75   : > { %1070 = vmatprep.mubr.f32.mxu0 %v3264_v41  ;;  %2313 = vmatpush1.bf16.msra.mxu0 %v2312_v39  ;;  %4156 = vst [vmem:[#allocation5_spill] sm:$0xff] %v3320_v7  ;;  %v3369_v39 = vld [vmem:[#allocation2 + $0xc0] sm:$0xff]  ;;  %4166 = vst [vmem:[#allocation15_spill] sm:$0xff] %v3465_v13 }
  0x76   : > { %2437 = vmatpush1.bf16.msra.mxu1 %v3268_v42  ;;  %2314 = vmatprep.subr.bf16.mxu0 %v4098_v3  ;;  %4163 = vst [vmem:[#allocation12_spill] sm:$0xff] %v3433_v44 }
  0x77   : > { %846 = vmatmul.mubr.f32.gmra.mrb[20].mxu1 %v395_v18  ;;  %2422 = vmatprep.subr.bf16.mxu1 %v4098_v3  ;;  %v3340_v18 = vld [vmem:[#allocation2 + $0x99] sm:$0xff] }
  0x78   : > { %1071 = vmatmul.mubr.f32.gmra.mrb[20].mxu0 %v3286_v49  ;;  %850 = vmatprep.mubr.f32.mxu1 %v3288_v50 }
  0x79   : > { %1075 = vmatprep.mubr.f32.mxu0 %v3290_v53  ;;  %2316 = vmatpush1.bf16.msra.mxu0 %v2315_v52  ;;  %v705_v52 = vld [vmem:[%s4095_s1 + $0x3e8] sm:$0xff] }
  0x7a   : > { %2438 = vmatpush1.bf16.msra.mxu1 %v3294_v54  ;;  %2317 = vmatprep.subr.bf16.mxu0 %v4098_v3  ;;  %v3525_v54 = vld [vmem:[#allocation2 + $0x122] sm:$0xff] }
  0x7b   : > { %851 = vmatmul.mubr.f32.gmra.mrb[22].mxu1 %v396_v30  ;;  %2423 = vmatprep.subr.bf16.mxu1 %v4098_v3  ;;  %v702_v30 = vld [vmem:[%s4095_s1 + $0x3d0] sm:$0xff]  ;;  %4177 = vst [vmem:[#allocation26_spill] sm:$0xff] %v3525_v54 }
  0x7c   : > { %1076 = vmatmul.mubr.f32.gmra.mrb[22].mxu0 %v3312_v63  ;;  %855 = vmatprep.mubr.f32.mxu1 %v3314_v0  ;;  %v3373_v43 = vpack.c.bf16 %v703_v32, %v702_v30  ;;  %v3427_v30 = vld [vmem:[#allocation2 + $0xc1] sm:$0xff]  ;;  %v2330_v32 = vpack.c.bf16 %v675_v11, %v674_v10  ;;  %v3455_v10 = vld [vmem:[#allocation2 + $0xca] sm:$0xff]  ;;  %v3457_v11 = vld [vmem:[#allocation2 + $0xd9] sm:$0xff] }
  0x7d   : > { %1080 = vmatprep.mubr.f32.mxu0 %v3316_v6  ;;  %2319 = vmatpush1.bf16.msra.mxu0 %v2318_v1  ;;  %v3400_v1 = vpack.c.bf16 %v705_v52, %v704_v46  ;;  %v3442_v46 = vld [vmem:[#allocation2 + $0xc2] sm:$0xff]  ;;  %4165 = vst [vmem:[#allocation14_spill] sm:$0xff] %v3455_v10 }
  0x7e   : > { %2439 = vmatpush1.bf16.msra.mxu1 %v3320_v7  ;;  %2320 = vmatprep.subr.bf16.mxu0 %v4098_v3  ;;  %4159 = vst [vmem:[#allocation8_spill] sm:$0xff] %v3373_v43  ;;  %4164 = vst [vmem:[#allocation13_spill] sm:$0xff] %v3442_v46  ;;  %v3444_v52 = vld [vmem:[#allocation2 + $0xc9] sm:$0xff]  ;;  %v3515_v7 = vld [vmem:[#allocation2 + $0x112] sm:$0xff] }
  0x7f   : > { %856 = vmatmul.mubr.f32.gmra.mrb[24].mxu1 %v3264_v41  ;;  %2424 = vmatprep.subr.bf16.mxu1 %v4098_v3  ;;  %4161 = vst [vmem:[#allocation10_spill] sm:$0xff] %v3400_v1  ;;  %4174 = vst [vmem:[#allocation23_spill] sm:$0xff] %v3515_v7 }
  0x80   : > { %1081 = vmatmul.mubr.f32.gmra.mrb[24].mxu0 %v3338_v17  ;;  %860 = vmatprep.mubr.f32.mxu1 %v3340_v18 }
  0x81   : > { %1085 = vmatprep.mubr.f32.mxu0 %v3342_v22  ;;  %2322 = vmatpush1.bf16.msra.mxu0 %v2321_v21  ;;  %v708_v21 = vld [vmem:[%s4095_s1 + $0x400] sm:$0xff] }
  0x82   : > { %2440 = vmatpush1.bf16.msra.mxu1 %v3346_v23  ;;  %2323 = vmatprep.subr.bf16.mxu0 %v4098_v3  ;;  %v3437_v45 = vpack.c.bf16 %v709_v24, %v708_v21  ;;  %v3467_v21 = vld [vmem:[#allocation2 + $0xe1] sm:$0xff]  ;;  %v3469_v24 = vld [vmem:[#allocation2 + $0xf8] sm:$0xff]  ;;  %v3505_v23 = vld [vmem:[#allocation2 + $0x10a] sm:$0xff] }
  0x83   : > { %861 = vmatmul.mubr.f32.gmra.mrb[26].mxu1 %v3290_v53  ;;  %2425 = vmatprep.subr.bf16.mxu1 %v4098_v3  ;;  %4172 = vst [vmem:[#allocation21_spill] sm:$0xff] %v3505_v23 }
  0x84   : > { %1086 = vmatmul.mubr.f32.gmra.mrb[26].mxu0 %v3365_v33  ;;  %865 = vmatprep.mubr.f32.mxu1 %v3367_v62  ;;  %v3529_v33 = vld [vmem:[#allocation2 + $0x140] sm:$0xff] }
  0x85   : > { %1090 = vmatprep.mubr.f32.mxu0 %v3369_v39  ;;  %2325 = vmatpush1.bf16.msra.mxu0 %v2324_v34  ;;  %v3429_v34 = vld [vmem:[#allocation2 + $0xd8] sm:$0xff]  ;;  %4179 = vst [vmem:[#allocation28_spill] sm:$0xff] %v3529_v33 }
  0x86   : > { %2441 = vmatpush1.bf16.msra.mxu1 %v3373_v43  ;;  %2326 = vmatprep.subr.bf16.mxu0 %v4098_v3  ;;  %v3495_v43 = vld [vmem:[#allocation2 + $0xfa] sm:$0xff] }
  0x87   : > { %866 = vmatmul.mubr.f32.gmra.mrb[28].mxu1 %v3316_v6  ;;  %2426 = vmatprep.subr.bf16.mxu1 %v4098_v3  ;;  %4170 = vst [vmem:[#allocation19_spill] sm:$0xff] %v3495_v43 }
  0x88   : > { %1091 = vmatmul.mubr.f32.gmra.mrb[28].mxu0 %v3392_v55  ;;  %870 = vmatprep.mubr.f32.mxu1 %v3394_v58  ;;  %v3519_v55 = vld [vmem:[#allocation2 + $0x138] sm:$0xff] }
  0x89   : > { %1095 = vmatprep.mubr.f32.mxu0 %v3396_v61  ;;  %2328 = vmatpush1.bf16.msra.mxu0 %v2327_v59  ;;  %v3446_v59 = vld [vmem:[#allocation2 + $0xe0] sm:$0xff]  ;;  %4176 = vst [vmem:[#allocation25_spill] sm:$0xff] %v3519_v55 }
  0x8a   : > { %2442 = vmatpush1.bf16.msra.mxu1 %v3400_v1  ;;  %2329 = vmatprep.subr.bf16.mxu0 %v4098_v3  ;;  %v3485_v1 = vld [vmem:[#allocation2 + $0xf2] sm:$0xff] }
  0x8b   : > { %871 = vmatmul.mubr.f32.gmra.mrb[30].mxu1 %v3342_v22  ;;  %2427 = vmatprep.subr.bf16.mxu1 %v4098_v3  ;;  %4168 = vst [vmem:[#allocation17_spill] sm:$0xff] %v3485_v1 }
  0x8c   : > { %1096 = vmatmul.mubr.f32.gmra.mrb[30].mxu0 %v3425_v28  ;;  %875 = vmatprep.mubr.f32.mxu1 %v3427_v30  ;;  %v3509_v28 = vld [vmem:[#allocation2 + $0x128] sm:$0xff] }
  0x8d   : > { %1100 = vmatprep.mubr.f32.mxu0 %v3429_v34  ;;  %2331 = vmatpush1.bf16.msra.mxu0 %v2330_v32  ;;  %v3475_v32 = vld [vmem:[#allocation2 + $0xe2] sm:$0xff]  ;;  %4173 = vst [vmem:[#allocation22_spill] sm:$0xff] %v3509_v28 }
  0x8e   : > { %2443 = vmatpush1.bf16.msra.mxu1 %v3433_v44  ;;  %2332 = vmatprep.subr.bf16.mxu0 %v4098_v3  ;;  %4167 = vst [vmem:[#allocation16_spill] sm:$0xff] %v3475_v32  ;;  %v3477_v3 = vld [vmem:[#allocation2 + $0xf1] sm:$0xff]  ;;  %v3479_v44 = vld [vmem:[#allocation2 + $0x108] sm:$0xff] }
  0x8f   : > { %876 = vmatmul.mubr.f32.gmra.mrb[32].mxu1 %v3369_v39  ;;  %2381 = vmatprep.subr.bf16.mxu1 %v3437_v45 }
  0x90   : > { %1101 = vmatmul.mubr.f32.gmra.mrb[32].mxu0 %v3442_v46  ;;  %880 = vmatprep.mubr.f32.mxu1 %v3444_v52  ;;  %v3499_v46 = vld [vmem:[#allocation2 + $0x120] sm:$0xff] }
  0x91   : > { %1105 = vmatprep.mubr.f32.mxu0 %v3446_v59  ;;  %4171 = vst [vmem:[#allocation20_spill] sm:$0xff] %v3499_v46 }
  0x93   : > { %881 = vmatmul.mubr.f32.gmra.mrb[34].mxu1 %v3396_v61 }
  0x94   : > { %1106 = vmatmul.mubr.f32.gmra.mrb[34].mxu0 %v3455_v10  ;;  %885 = vmatprep.mubr.f32.mxu1 %v3457_v11  ;;  %v3489_v10 = vld [vmem:[#allocation2 + $0x110] sm:$0xff] }
  0x95   : > { %1110 = vmatprep.mubr.f32.mxu0 %v3459_v12  ;;  %4169 = vst [vmem:[#allocation18_spill] sm:$0xff] %v3489_v10 }
  0x97   : > { %886 = vmatmul.mubr.f32.gmra.mrb[36].mxu1 %v3429_v34 }
  0x98   : > { %1111 = vmatmul.mubr.f32.gmra.mrb[36].mxu0 %v3465_v13  ;;  %890 = vmatprep.mubr.f32.mxu1 %v3467_v21  ;;  %v3487_v13 = vld [vmem:[#allocation2 + $0xf9] sm:$0xff] }
  0x99   : > { %1115 = vmatprep.mubr.f32.mxu0 %v3469_v24 }
  0x9b   : > { %891 = vmatmul.mubr.f32.gmra.mrb[38].mxu1 %v3446_v59 }
  0x9c   : > { %1116 = vmatmul.mubr.f32.gmra.mrb[38].mxu0 %v3475_v32  ;;  %895 = vmatprep.mubr.f32.mxu1 %v3477_v3  ;;  %v3497_v32 = vld [vmem:[#allocation2 + $0x109] sm:$0xff] }
  0x9d   : > { %1120 = vmatprep.mubr.f32.mxu0 %v3479_v44 }
  0x9f   : > { %896 = vmatmul.mubr.f32.gmra.mrb[40].mxu1 %v3459_v12 }
  0xa0   : > { %1121 = vmatmul.mubr.f32.gmra.mrb[40].mxu0 %v3485_v1  ;;  %900 = vmatprep.mubr.f32.mxu1 %v3487_v13  ;;  %v3507_v1 = vld [vmem:[#allocation2 + $0x111] sm:$0xff] }
  0xa1   : > { %1125 = vmatprep.mubr.f32.mxu0 %v3489_v10 }
  0xa3   : > { %901 = vmatmul.mubr.f32.gmra.mrb[42].mxu1 %v3469_v24 }
  0xa4   : > { %1126 = vmatmul.mubr.f32.gmra.mrb[42].mxu0 %v3495_v43  ;;  %905 = vmatprep.mubr.f32.mxu1 %v3497_v32  ;;  %v3517_v43 = vld [vmem:[#allocation2 + $0x121] sm:$0xff] }
  0xa5   : > { %1130 = vmatprep.mubr.f32.mxu0 %v3499_v46  ;;  %4175 = vst [vmem:[#allocation24_spill] sm:$0xff] %v3517_v43 }
  0xa7   : > { %906 = vmatmul.mubr.f32.gmra.mrb[44].mxu1 %v3479_v44 }
  0xa8   : > { %1131 = vmatmul.mubr.f32.gmra.mrb[44].mxu0 %v3505_v23  ;;  %910 = vmatprep.mubr.f32.mxu1 %v3507_v1  ;;  %v3527_v23 = vld [vmem:[#allocation2 + $0x129] sm:$0xff] }
  0xa9   : > { %1135 = vmatprep.mubr.f32.mxu0 %v3509_v28  ;;  %4178 = vst [vmem:[#allocation27_spill] sm:$0xff] %v3527_v23 }
  0xab   : > { %911 = vmatmul.mubr.f32.gmra.mrb[46].mxu1 %v3489_v10  ;;  %v3535_v10 = vld [vmem:[#allocation2 + $0x12a] sm:$0xff] }
  0xac   : > { %1136 = vmatmul.mubr.f32.gmra.mrb[46].mxu0 %v3515_v7  ;;  %915 = vmatprep.mubr.f32.mxu1 %v3517_v43  ;;  %4180 = vst [vmem:[#allocation29_spill] sm:$0xff] %v3535_v10  ;;  %v3537_v7 = vld [vmem:[#allocation2 + $0x139] sm:$0xff]  ;;  %v3539_v43 = vld [vmem:[#allocation2 + $0x150] sm:$0xff] }
  0xad   : > { %1140 = vmatprep.mubr.f32.mxu0 %v3519_v55  ;;  %4181 = vst [vmem:[#allocation30_spill] sm:$0xff] %v3537_v7  ;;  %4182 = vst [vmem:[#allocation31_spill] sm:$0xff] %v3539_v43 }
  0xaf   : > { %916 = vmatmul.mubr.f32.gmra.mrb[48].mxu1 %v3499_v46  ;;  %v3545_v46 = vld [vmem:[#allocation2 + $0x13a] sm:$0xff] }
  0xb0   : > { %1141 = vmatmul.mubr.f32.gmra.mrb[48].mxu0 %v3525_v54  ;;  %920 = vmatprep.mubr.f32.mxu1 %v3527_v23  ;;  %4183 = vst [vmem:[#allocation32_spill] sm:$0xff] %v3545_v46  ;;  %v3547_v54 = vld [vmem:[#allocation2 + $0x141] sm:$0xff]  ;;  %v3549_v23 = vld [vmem:[#allocation2 + $0x158] sm:$0xff] }
  0xb1   : > { %1145 = vmatprep.mubr.f32.mxu0 %v3529_v33  ;;  %4184 = vst [vmem:[#allocation33_spill] sm:$0xff] %v3547_v54  ;;  %4185 = vst [vmem:[#allocation34_spill] sm:$0xff] %v3549_v23 }
  0xb3   : > { %921 = vmatmul.mubr.f32.gmra.mrb[50].mxu1 %v3509_v28  ;;  %v3555_v28 = vld [vmem:[#allocation2 + $0x142] sm:$0xff] }
  0xb4   : > { %1146 = vmatmul.mubr.f32.gmra.mrb[50].mxu0 %v3535_v10  ;;  %925 = vmatprep.mubr.f32.mxu1 %v3537_v7  ;;  %4186 = vst [vmem:[#allocation35_spill] sm:$0xff] %v3555_v28  ;;  %v3557_v10 = vld [vmem:[#allocation2 + $0x151] sm:$0xff]  ;;  %v3559_v7 = vld [vmem:[#allocation2 + $0x168] sm:$0xff] }
  0xb5   : > { %1150 = vmatprep.mubr.f32.mxu0 %v3539_v43  ;;  %4187 = vst [vmem:[#allocation36_spill] sm:$0xff] %v3557_v10 }
  0xb7   : > { %926 = vmatmul.mubr.f32.gmra.mrb[52].mxu1 %v3519_v55  ;;  %v3565_v55 = vld [vmem:[#allocation2 + $0x152] sm:$0xff] }
  0xb8   : > { %1151 = vmatmul.mubr.f32.gmra.mrb[52].mxu0 %v3545_v46  ;;  %930 = vmatprep.mubr.f32.mxu1 %v3547_v54  ;;  %4188 = vst [vmem:[#allocation37_spill] sm:$0xff] %v3565_v55  ;;  %v3567_v46 = vld [vmem:[#allocation2 + $0x159] sm:$0xff]  ;;  %v3569_v54 = vld [vmem:[#allocation2 + $0x170] sm:$0xff] }
  0xb9   : > { %1155 = vmatprep.mubr.f32.mxu0 %v3549_v23  ;;  %4189 = vst [vmem:[#allocation38_spill] sm:$0xff] %v3567_v46 }
  0xbb   : > { %931 = vmatmul.mubr.f32.gmra.mrb[54].mxu1 %v3529_v33  ;;  %v3575_v33 = vld [vmem:[#allocation2 + $0x15a] sm:$0xff] }
  0xbc   : > { %1156 = vmatmul.mubr.f32.gmra.mrb[54].mxu0 %v3555_v28  ;;  %935 = vmatprep.mubr.f32.mxu1 %v3557_v10  ;;  %4190 = vst [vmem:[#allocation39_spill] sm:$0xff] %v3575_v33  ;;  %v3577_v28 = vld [vmem:[#allocation2 + $0x169] sm:$0xff]  ;;  %v3579_v10 = vld [vmem:[#allocation2 + $0x180] sm:$0xff] }
  0xbd   : > { %1160 = vmatprep.mubr.f32.mxu0 %v3559_v7  ;;  %4191 = vst [vmem:[#allocation40_spill] sm:$0xff] %v3579_v10 }
  0xbf   : > { %936 = vmatmul.mubr.f32.gmra.mrb[56].mxu1 %v3539_v43  ;;  %v3585_v43 = vld [vmem:[#allocation2 + $0x16a] sm:$0xff] }
  0xc0   : > { %1161 = vmatmul.mubr.f32.gmra.mrb[56].mxu0 %v3565_v55  ;;  %940 = vmatprep.mubr.f32.mxu1 %v3567_v46  ;;  %4192 = vst [vmem:[#allocation41_spill] sm:$0xff] %v3585_v43  ;;  %v3587_v55 = vld [vmem:[#allocation2 + $0x171] sm:$0xff]  ;;  %v3589_v46 = vld [vmem:[#allocation2 + $0x188] sm:$0xff] }
  0xc1   : > { %1165 = vmatprep.mubr.f32.mxu0 %v3569_v54  ;;  %4193 = vst [vmem:[#allocation42_spill] sm:$0xff] %v3589_v46 }
  0xc3   : > { %941 = vmatmul.mubr.f32.gmra.mrb[58].mxu1 %v3549_v23  ;;  %v3595_v23 = vld [vmem:[#allocation2 + $0x172] sm:$0xff] }
  0xc4   : > { %1166 = vmatmul.mubr.f32.gmra.mrb[58].mxu0 %v3575_v33  ;;  %945 = vmatprep.mubr.f32.mxu1 %v3577_v28  ;;  %4194 = vst [vmem:[#allocation43_spill] sm:$0xff] %v3595_v23  ;;  %v710_v33 = vld [vmem:[%s4095_s1 + $0x410] sm:$0xff] }
  0xc5   : > { %1170 = vmatprep.mubr.f32.mxu0 %v3579_v10  ;;  %v713_v10 = vld [vmem:[%s4095_s1 + $0x428] sm:$0xff] }
  0xc7   : > { %946 = vmatmul.mubr.f32.gmra.mrb[60].mxu1 %v3559_v7 }
  0xc8   : > { %1171 = vmatmul.mubr.f32.gmra.mrb[60].mxu0 %v3585_v43  ;;  %950 = vmatprep.mubr.f32.mxu1 %v3587_v55  ;;  %v711_v43 = vld [vmem:[%s4095_s1 + $0x418] sm:$0xff] }
  0xc9   : > { %1175 = vmatprep.mubr.f32.mxu0 %v3589_v46  ;;  %v2384_v46 = vpack.c.bf16 %v711_v43, %v710_v33  ;;  %v4217_v33 = vld [vmem:[#allocation12_spill] sm:$0xff] }
  0xca   : > { %v4220_v43 = vld [vmem:[#allocation16_spill] sm:$0xff] }
  0xcb   : > { %951 = vmatmul.mubr.f32.gmra.mrb[62].mxu1 %v3569_v54 }
  0xcc   : > { %1176 = vmatmul.mubr.f32.gmra.mrb[62].mxu0 %v3595_v23  ;;  %1510 = vmatprep.mubr.f32.mxu1 %v3314_v0  ;;  %v712_v23 = vld [vmem:[%s4095_s1 + $0x420] sm:$0xff] }
  0xcd   : > { %1245 = vmatprep.mubr.f32.mxu0 %v3078_v8  ;;  %v4195_v8 = vmov 0.0|0.0  }
  0xcf   : > { %1511 = vmatmul.mubr.f32.vlgmr.msra.gmra.mrb[64].mxu1 %v3264_v41  ;;  %v714_v41 = vld [vmem:[%s4095_s1 + $0x430] sm:$0xff] }
  0xd0   : > { %1246 = vmatmul.mubr.f32.vlgmr.msra.gmra.mrb[0].mxu0 %v3052_v16  ;;  %2383 = vmatpush3.bf16.msra.mxu1 %v3437_v45  ;;  %v2388_v16 = vpack.c.bf16 %v713_v10, %v712_v23  ;;  %v4216_v23 = vld [vmem:[#allocation15_spill] sm:$0xff]  ;;  %v4228_v10 = vld [vmem:[#allocation26_spill] sm:$0xff] }
  0xd1   : > { %2334 = vmatpush1.bf16.msra.mxu0 %v3030_v2  ;;  %1250 = vmatprep.mubr.f32.mxu0 %v3111_v36  ;;  %v715_v2 = vld [vmem:[%s4095_s1 + $0x438] sm:$0xff]  ;;  %v716_v36 = vld [vmem:[%s4095_s1 + $0x440] sm:$0xff]  ;;  %v3757_v45 = vld [vmem:[#allocation2 + $0x189] sm:$0xff] }
  0xd2   : > { %1515 = vmatprep.mubr.f32.mxu1 %v3340_v18  ;;  %2335 = vmatprep.subr.bf16.mxu0 %v4195_v8 }
  0xd3   : > { %1516 = vmatmul.mubr.f32.gmra.mrb[66].mxu1 %v3290_v53  ;;  %2385 = vmatprep.subr.bf16.mxu1 %v2384_v46  ;;  %v4209_v53 = vld [vmem:[#allocation8_spill] sm:$0xff] }
  0xd4   : > { %1251 = vmatmul.mubr.f32.gmra.mrb[2].mxu0 %v3080_v25  ;;  %1520 = vmatprep.mubr.f32.mxu1 %v3367_v62  ;;  %v2392_v25 = vpack.c.bf16 %v715_v2, %v714_v41  ;;  %v4230_v41 = vld [vmem:[#allocation32_spill] sm:$0xff] }
  0xd5   : > { %1255 = vmatprep.mubr.f32.mxu0 %v3141_v47  ;;  %2337 = vmatpush1.bf16.msra.mxu0 %v3057_v19  ;;  %v717_v47 = vld [vmem:[%s4095_s1 + $0x448] sm:$0xff] }
  0xd6   : > { %2387 = vmatpush3.bf16.msra.mxu1 %v2384_v46  ;;  %2338 = vmatprep.subr.bf16.mxu0 %v4195_v8  ;;  %v2396_v19 = vpack.c.bf16 %v717_v47, %v716_v36  ;;  %v4225_v46 = vld [vmem:[#allocation40_spill] sm:$0xff] }
  0xd7   : > { %1521 = vmatmul.mubr.f32.gmra.mrb[68].mxu1 %v3316_v6  ;;  %2389 = vmatprep.subr.bf16.mxu1 %v2388_v16  ;;  %v4212_v6 = vld [vmem:[#allocation14_spill] sm:$0xff]  ;;  %v550_v2 = vld [vmem:[#allocation2 + $0x4a] sm:$0xff]  ;;  %v551_v47 = vld [vmem:[#allocation2 + $0x52] sm:$0xff] }
  0xd8   : > { %1256 = vmatmul.mubr.f32.gmra.mrb[4].mxu0 %v3113_v37  ;;  %1525 = vmatprep.mubr.f32.mxu1 %v3394_v58  ;;  %v718_v37 = vld [vmem:[%s4095_s1 + $0x450] sm:$0xff] }
  0xd9   : > { %1260 = vmatprep.mubr.f32.mxu0 %v3166_v56  ;;  %2340 = vmatpush1.bf16.msra.mxu0 %v3087_v29  ;;  %v719_v56 = vld [vmem:[%s4095_s1 + $0x458] sm:$0xff] }
  0xda   : > { %2341 = vmatprep.subr.bf16.mxu0 %v4195_v8  ;;  %2391 = vmatpush3.bf16.msra.mxu1 %v2388_v16  ;;  %v2400_v29 = vpack.c.bf16 %v719_v56, %v718_v37  ;;  %v552_v37 = vld [vmem:[#allocation2 + $0x62] sm:$0xff] }
  0xdb   : > { %1526 = vmatmul.mubr.f32.gmra.mrb[70].mxu1 %v3342_v22  ;;  %2393 = vmatprep.subr.bf16.mxu1 %v2392_v25  ;;  %v4215_v22 = vld [vmem:[#allocation36_spill] sm:$0xff] }
  0xdc   : > { %1261 = vmatmul.mubr.f32.gmra.mrb[6].mxu0 %v3143_v48  ;;  %1530 = vmatprep.mubr.f32.mxu1 %v3427_v30  ;;  %v720_v48 = vld [vmem:[%s4095_s1 + $0x460] sm:$0xff] }
  0xdd   : > { %1265 = vmatprep.mubr.f32.mxu0 %v3190_v4  ;;  %2343 = vmatpush1.bf16.msra.mxu0 %v3121_v40  ;;  %v721_v4 = vld [vmem:[%s4095_s1 + $0x468] sm:$0xff] }
  0xde   : > { %2344 = vmatprep.subr.bf16.mxu0 %v4195_v8  ;;  %2395 = vmatpush3.bf16.msra.mxu1 %v2392_v25  ;;  %v2404_v40 = vpack.c.bf16 %v721_v4, %v720_v48  ;;  %v553_v48 = vld [vmem:[#allocation2 + $0x6a] sm:$0xff]  ;;  %v4232_v4 = vld [vmem:[#allocation37_spill] sm:$0xff] }
  0xdf   : > { %1531 = vmatmul.mubr.f32.gmra.mrb[72].mxu1 %v3369_v39  ;;  %2397 = vmatprep.subr.bf16.mxu1 %v2396_v19  ;;  %v4219_v39 = vld [vmem:[#allocation38_spill] sm:$0xff] }
  0xe0   : > { %1266 = vmatmul.mubr.f32.gmra.mrb[8].mxu0 %v3168_v57  ;;  %1535 = vmatprep.mubr.f32.mxu1 %v3444_v52  ;;  %v722_v57 = vld [vmem:[%s4095_s1 + $0x470] sm:$0xff] }
  0xe1   : > { %1270 = vmatprep.mubr.f32.mxu0 %v3214_v14  ;;  %2346 = vmatpush1.bf16.msra.mxu0 %v3148_v51  ;;  %v723_v14 = vld [vmem:[%s4095_s1 + $0x478] sm:$0xff] }
  0xe2   : > { %2347 = vmatprep.subr.bf16.mxu0 %v4195_v8  ;;  %2399 = vmatpush3.bf16.msra.mxu1 %v2396_v19  ;;  %v2408_v51 = vpack.c.bf16 %v723_v14, %v722_v57  ;;  %v4231_v19 = vld [vmem:[#allocation35_spill] sm:$0xff] }
  0xe3   : > { %1536 = vmatmul.mubr.f32.gmra.mrb[74].mxu1 %v3396_v61  ;;  %2401 = vmatprep.subr.bf16.mxu1 %v2400_v29  ;;  %v4222_v61 = vld [vmem:[#allocation17_spill] sm:$0xff] }
  0xe4   : > { %1271 = vmatmul.mubr.f32.gmra.mrb[10].mxu0 %v3192_v5  ;;  %1540 = vmatprep.mubr.f32.mxu1 %v3457_v11  ;;  %v4197_v5 = vld [vmem:[#allocation4_spill] sm:$0xff] }
  0xe5   : > { %1275 = vmatprep.mubr.f32.mxu0 %v3237_v26  ;;  %2349 = vmatpush1.bf16.msra.mxu0 %v3172_v60  ;;  %v4196_v60 = vld [vmem:[#allocation7_spill] sm:$0xff]  ;;  %v4201_v26 = vld [vmem:[#allocation5_spill] sm:$0xff] }
  0xe6   : > { %2350 = vmatprep.subr.bf16.mxu0 %v4195_v8  ;;  %2403 = vmatpush3.bf16.msra.mxu1 %v2400_v29 }
  0xe7   : > { %1541 = vmatmul.mubr.f32.gmra.mrb[76].mxu1 %v3429_v34  ;;  %2405 = vmatprep.subr.bf16.mxu1 %v2404_v40  ;;  %v3751_v34 = vld [vmem:[#allocation2 + $0x181] sm:$0xff] }
  0xe8   : > { %1276 = vmatmul.mubr.f32.gmra.mrb[12].mxu0 %v3216_v15  ;;  %1545 = vmatprep.mubr.f32.mxu1 %v3467_v21  ;;  %v4199_v15 = vld [vmem:[#allocation24_spill] sm:$0xff] }
  0xe9   : > { %1280 = vmatprep.mubr.f32.mxu0 %v3260_v35  ;;  %2352 = vmatpush1.bf16.msra.mxu0 %v3196_v9  ;;  %v4198_v9 = vld [vmem:[#allocation18_spill] sm:$0xff]  ;;  %v4204_v35 = vld [vmem:[#allocation11_spill] sm:$0xff] }
  0xea   : > { %2353 = vmatprep.subr.bf16.mxu0 %v4195_v8  ;;  %2407 = vmatpush3.bf16.msra.mxu1 %v2404_v40  ;;  %v554_v40 = vld [vmem:[#allocation2 + $0x7a] sm:$0xff] }
  0xeb   : > { %1546 = vmatmul.mubr.f32.gmra.mrb[78].mxu1 %v3446_v59  ;;  %2409 = vmatprep.subr.bf16.mxu1 %v2408_v51 }
  0xec   : > { %1281 = vmatmul.mubr.f32.gmra.mrb[14].mxu0 %v3239_v27  ;;  %1550 = vmatprep.mubr.f32.mxu1 %v3477_v3  ;;  %v4202_v27 = vld [vmem:[#allocation20_spill] sm:$0xff] }
  0xed   : > { %1285 = vmatprep.mubr.f32.mxu0 %v3286_v49  ;;  %2355 = vmatpush1.bf16.msra.mxu0 %v3220_v20  ;;  %v4200_v20 = vld [vmem:[#allocation9_spill] sm:$0xff]  ;;  %v4207_v49 = vld [vmem:[#allocation30_spill] sm:$0xff] }
  0xee   : > { %2356 = vmatprep.subr.bf16.mxu0 %v4195_v8  ;;  %2411 = vmatpush3.bf16.msra.mxu1 %v2408_v51  ;;  %v555_v51 = vld [vmem:[#allocation2 + $0x82] sm:$0xff] }
  0xef   : > { %1551 = vmatmul.mubr.f32.gmra.mrb[80].mxu1 %v3459_v12 }
  0xf0   : > { %1286 = vmatmul.mubr.f32.gmra.mrb[16].mxu0 %v3262_v38  ;;  %1555 = vmatprep.mubr.f32.mxu1 %v3487_v13  ;;  %v4205_v38 = vld [vmem:[#allocation6_spill] sm:$0xff] }
  0xf1   : > { %1290 = vmatprep.mubr.f32.mxu0 %v3312_v63  ;;  %2358 = vmatpush1.bf16.msra.mxu0 %v3243_v31  ;;  %v4203_v31 = vld [vmem:[#allocation27_spill] sm:$0xff]  ;;  %v4210_v63 = vld [vmem:[#allocation25_spill] sm:$0xff] }
  0xf2   : > { %2359 = vmatprep.subr.bf16.mxu0 %v4195_v8 }
  0xf3   : > { %1556 = vmatmul.mubr.f32.gmra.mrb[82].mxu1 %v3469_v24  ;;  %v4229_v24 = vld [vmem:[#allocation29_spill] sm:$0xff] }
  0xf4   : > { %1291 = vmatmul.mubr.f32.gmra.mrb[18].mxu0 %v3288_v50  ;;  %1560 = vmatprep.mubr.f32.mxu1 %v3497_v32  ;;  %v4208_v50 = vld [vmem:[#allocation13_spill] sm:$0xff] }
  0xf5   : > { %1295 = vmatprep.mubr.f32.mxu0 %v3338_v17  ;;  %2361 = vmatpush1.bf16.msra.mxu0 %v3268_v42  ;;  %v4206_v42 = vld [vmem:[#allocation22_spill] sm:$0xff] }
  0xf6   : > { %2362 = vmatprep.subr.bf16.mxu0 %v4195_v8  ;;  %v4213_v17 = vld [vmem:[#allocation10_spill] sm:$0xff] }
  0xf7   : > { %1561 = vmatmul.mubr.f32.gmra.mrb[84].mxu1 %v3479_v44  ;;  %v4224_v44 = vld [vmem:[#allocation21_spill] sm:$0xff] }
  0xf8   : > { %1296 = vmatmul.mubr.f32.gmra.mrb[20].mxu0 %v3314_v0  ;;  %1565 = vmatprep.mubr.f32.mxu1 %v3507_v1  ;;  %v4211_v0 = vld [vmem:[#allocation33_spill] sm:$0xff] }
  0xf9   : > { %1300 = vmatprep.mubr.f32.mxu0 %v4196_v60  ;;  %2364 = vmatpush1.bf16.msra.mxu0 %v4197_v5  ;;  %v4233_v60 = vld [vmem:[#allocation39_spill] sm:$0xff]  ;;  %v556_v5 = vld [vmem:[#allocation2 + $0x92] sm:$0xff] }
  0xfa   : > { %2365 = vmatprep.subr.bf16.mxu0 %v4195_v8 }
  0xfb   : > { %1566 = vmatmul.mubr.f32.gmra.mrb[86].mxu1 %v4198_v9 }
  0xfc   : > { %1301 = vmatmul.mubr.f32.gmra.mrb[22].mxu0 %v3340_v18  ;;  %1570 = vmatprep.mubr.f32.mxu1 %v4199_v15  ;;  %v4214_v18 = vld [vmem:[#allocation28_spill] sm:$0xff] }
  0xfd   : > { %1305 = vmatprep.mubr.f32.mxu0 %v4200_v20  ;;  %2367 = vmatpush1.bf16.msra.mxu0 %v4201_v26  ;;  %v557_v20 = vld [vmem:[#allocation2 + $0x9a] sm:$0xff] }
  0xfe   : > { %2368 = vmatprep.subr.bf16.mxu0 %v4195_v8  ;;  %v4234_v26 = vld [vmem:[#allocation41_spill] sm:$0xff] }
  0xff   : > { %1571 = vmatmul.mubr.f32.gmra.mrb[88].mxu1 %v4202_v27  ;;  %v558_v27 = vld [vmem:[#allocation2 + $0xaa] sm:$0xff] }
 0x100   : > { %1306 = vmatmul.mubr.f32.gmra.mrb[24].mxu0 %v3367_v62  ;;  %1575 = vmatprep.mubr.f32.mxu1 %v4203_v31  ;;  %v4218_v62 = vld [vmem:[#allocation31_spill] sm:$0xff] }
 0x101   : > { %1310 = vmatprep.mubr.f32.mxu0 %v4204_v35  ;;  %2370 = vmatpush1.bf16.msra.mxu0 %v4205_v38  ;;  %v559_v38 = vld [vmem:[#allocation2 + $0xb2] sm:$0xff] }
 0x102   : > { %2371 = vmatprep.subr.bf16.mxu0 %v4195_v8 }
 0x103   : > { %1576 = vmatmul.mubr.f32.gmra.mrb[90].mxu1 %v4206_v42  ;;  %v4235_v42 = vld [vmem:[#allocation43_spill] sm:$0xff] }
 0x104   : > { %1311 = vmatmul.mubr.f32.gmra.mrb[26].mxu0 %v3394_v58  ;;  %1580 = vmatprep.mubr.f32.mxu1 %v4207_v49  ;;  %v4221_v58 = vld [vmem:[#allocation34_spill] sm:$0xff] }
 0x105   : > { %1315 = vmatprep.mubr.f32.mxu0 %v4208_v50  ;;  %2373 = vmatpush1.bf16.msra.mxu0 %v4209_v53  ;;  %v3798_v53 = vld [vmem:[#allocation2 + $0x182] sm:$0xff] }
 0x106   : > { %2374 = vmatprep.subr.bf16.mxu0 %v4195_v8 }
 0x107   : > { %1581 = vmatmul.mubr.f32.gmra.mrb[92].mxu1 %v4210_v63 }
 0x108   : > { %1316 = vmatmul.mubr.f32.gmra.mrb[28].mxu0 %v3427_v30  ;;  %1585 = vmatprep.mubr.f32.mxu1 %v4211_v0  ;;  %v4223_v30 = vld [vmem:[#allocation19_spill] sm:$0xff] }
 0x109   : > { %1320 = vmatprep.mubr.f32.mxu0 %v4212_v6  ;;  %2376 = vmatpush1.bf16.msra.mxu0 %v4213_v17  ;;  %v562_v6 = vld [vmem:[#allocation2 + $0xda] sm:$0xff] }
 0x10a   : > { %2377 = vmatprep.subr.bf16.mxu0 %v4195_v8 }
 0x10b   : > { %1586 = vmatmul.mubr.f32.gmra.mrb[94].mxu1 %v4214_v18 }
 0x10c   : > { %1321 = vmatmul.mubr.f32.gmra.mrb[30].mxu0 %v3444_v52  ;;  %1590 = vmatprep.mubr.f32.mxu1 %v4215_v22 }
 0x10d   : > { %1325 = vmatprep.mubr.f32.mxu0 %v4216_v23  ;;  %2379 = vmatpush1.bf16.msra.mxu0 %v4217_v33  ;;  %v564_v23 = vld [vmem:[#allocation2 + $0xf2] sm:$0xff] }
 0x10f   : > { %1591 = vmatmul.mubr.f32.gmra.mrb[96].mxu1 %v4218_v62 }
 0x110   : > { %1326 = vmatmul.mubr.f32.gmra.mrb[32].mxu0 %v3457_v11  ;;  %1595 = vmatprep.mubr.f32.mxu1 %v4219_v39  ;;  %v547_v11 = vld [vmem:[#allocation2 + $0x1a1] sm:$0xff] }
 0x111   : > { %1330 = vmatprep.mubr.f32.mxu0 %v4220_v43  ;;  %v484_v43 = vld [vmem:[#allocation2 + $0x30] sm:$0xff] }
 0x113   : > { %1596 = vmatmul.mubr.f32.gmra.mrb[98].mxu1 %v4221_v58  ;;  %v566_v58 = vld [vmem:[#allocation2 + $0x10a] sm:$0xff] }
 0x114   : > { %1331 = vmatmul.mubr.f32.gmra.mrb[34].mxu0 %v3467_v21  ;;  %1600 = vmatprep.mubr.f32.mxu1 %v3577_v28 }
 0x115   : > { %1335 = vmatprep.mubr.f32.mxu0 %v4222_v61 }
 0x117   : > { %1601 = vmatmul.mubr.f32.gmra.mrb[100].mxu1 %v3559_v7  ;;  %v546_v7 = vld [vmem:[#allocation2 + $0x199] sm:$0xff] }
 0x118   : > { %1336 = vmatmul.mubr.f32.gmra.mrb[36].mxu0 %v3477_v3  ;;  %1605 = vmatprep.mubr.f32.mxu1 %v3587_v55  ;;  %v4226_v3 = vld [vmem:[#allocation23_spill] sm:$0xff] }
 0x119   : > { %1340 = vmatprep.mubr.f32.mxu0 %v4223_v30  ;;  %v517_v30 = vld [vmem:[#allocation2 + $0x39] sm:$0xff] }
 0x11b   : > { %1606 = vmatmul.mubr.f32.gmra.mrb[102].mxu1 %v3569_v54  ;;  %v4227_v54 = vld [vmem:[#allocation42_spill] sm:$0xff] }
 0x11c   : > { %1341 = vmatmul.mubr.f32.gmra.mrb[38].mxu0 %v3487_v13  ;;  %1610 = vmatprep.mubr.f32.mxu1 %v3751_v34  ;;  %v2622_v13 = vld [vmem:[#allocation2] sm:$0xff] }
 0x11d   : > { %1345 = vmatprep.mubr.f32.mxu0 %v4224_v44  ;;  %v485_v44 = vld [vmem:[#allocation2 + $0x38] sm:$0xff] }
 0x11f   : > { %1611 = vmatmul.mubr.f32.gmra.mrb[104].mxu1 %v4225_v46 }
 0x120   : > { %1346 = vmatmul.mubr.f32.gmra.mrb[40].mxu0 %v3497_v32  ;;  %1615 = vmatprep.mubr.f32.mxu1 %v3757_v45  ;;  %v548_v32 = vld [vmem:[#allocation2 + $0x32] sm:$0xff] }
 0x121   : > { %1350 = vmatprep.mubr.f32.mxu0 %v4226_v3 }
 0x122   : > { %v3763_v52 = vpop.f32.mrb[0].mxu1 }
 0x123   : > { %1616 = vmatmul.mubr.f32.gmra.mrb[106].mxu1 %v4227_v54  ;;  %v799_v59 = vpop.f32.mrb[1].mxu1  ;;  %v486_v54 = vld [vmem:[#allocation2 + $0x48] sm:$0xff] }
 0x124   : > { %1351 = vmatmul.mubr.f32.gmra.mrb[42].mxu0 %v3507_v1  ;;  %1620 = vmatprep.mubr.f32.mxu1 %v546_v7  ;;  %v549_v1 = vld [vmem:[#allocation2 + $0x3a] sm:$0xff]  ;;  %v518_v7 = vld [vmem:[#allocation2 + $0x49] sm:$0xff] }
 0x125   : > { %1355 = vmatprep.mubr.f32.mxu0 %v4228_v10 }
 0x126   : > { %v3768_v12 = vpop.f32.mrb[2].mxu1 }
 0x127   : > { %1621 = vmatmul.mubr.f32.gmra.mrb[108].mxu1 %v2622_v13  ;;  %v804_v21 = vpop.f32.mrb[3].mxu1 }
 0x128   : > { %1356 = vmatmul.mubr.f32.gmra.mrb[44].mxu0 %v4199_v15  ;;  %1625 = vmatprep.mubr.f32.mxu1 %v547_v11  ;;  %v519_v11 = vld [vmem:[#allocation2 + $0x51] sm:$0xff] }
 0x129   : > { %1360 = vmatprep.mubr.f32.mxu0 %v4229_v24  ;;  %v487_v21 = vld [vmem:[#allocation2 + $0x50] sm:$0xff] }
 0x12a   : > { %v3772_v8 = vpop.f32.mrb[4].mxu1 }
 0x12b   : > { %1626 = vmatmul.mubr.f32.gmra.mrb[110].mxu1 %v2622_v13  ;;  %v809_v16 = vpop.f32.mrb[5].mxu1 }
 0x12c   : > { %1361 = vmatmul.mubr.f32.gmra.mrb[46].mxu0 %v4203_v31  ;;  %2140 = vmatprep.mubr.f32.mxu1 %v548_v32 }
 0x12d   : > { %1365 = vmatprep.mubr.f32.mxu0 %v4230_v41 }
 0x12e   : > { %v3776_v25 = vpop.f32.mrb[6].mxu1 }
 0x12f   : > { %2141 = vmatmul.mubr.f32.vlgmr.msra.gmra.mrb[112].mxu1 %v549_v1  ;;  %v814_v36 = vpop.f32.mrb[7].mxu1 }
 0x130   : > { %1366 = vmatmul.mubr.f32.gmra.mrb[48].mxu0 %v4207_v49  ;;  %2143 = vmatprep.mubr.f32.mxu1 %v550_v2  ;;  %v560_v49 = vld [vmem:[#allocation2 + $0xc2] sm:$0xff] }
 0x131   : > { %1370 = vmatprep.mubr.f32.mxu0 %v4231_v19 }
 0x132   : > { %v3780_v56 = vpop.f32.mrb[8].mxu1 }
 0x133   : > { %2144 = vmatmul.mubr.f32.gmra.mrb[114].mxu1 %v551_v47  ;;  %v819_v29 = vpop.f32.mrb[9].mxu1  ;;  %v522_v47 = vld [vmem:[#allocation2 + $0x79] sm:$0xff] }
 0x134   : > { %1371 = vmatmul.mubr.f32.gmra.mrb[50].mxu0 %v4211_v0  ;;  %2146 = vmatprep.mubr.f32.mxu1 %v552_v37  ;;  %v561_v0 = vld [vmem:[#allocation2 + $0xca] sm:$0xff]  ;;  %v490_v37 = vld [vmem:[#allocation2 + $0x78] sm:$0xff] }
 0x135   : > { %1375 = vmatprep.mubr.f32.mxu0 %v4232_v4  ;;  %v578_v29 = vld [vmem:[#allocation2 + $0x19a] sm:$0xff] }
 0x136   : > { %v3784_v57 = vpop.f32.mrb[10].mxu1 }
 0x137   : > { %2147 = vmatmul.mubr.f32.gmra.mrb[116].mxu1 %v553_v48  ;;  %v824_v14 = vpop.f32.mrb[11].mxu1 }
 0x138   : > { %1376 = vmatmul.mubr.f32.gmra.mrb[52].mxu0 %v4215_v22  ;;  %2149 = vmatprep.mubr.f32.mxu1 %v554_v40  ;;  %v563_v22 = vld [vmem:[#allocation2 + $0xe2] sm:$0xff] }
 0x139   : > { %1380 = vmatprep.mubr.f32.mxu0 %v4233_v60  ;;  %v579_v14 = vld [vmem:[#allocation2 + $0x1a2] sm:$0xff] }
 0x13a   : > { %v3788_v9 = vpop.f32.mrb[12].mxu1 }
 0x13b   : > { %2150 = vmatmul.mubr.f32.gmra.mrb[118].mxu1 %v555_v51  ;;  %v829_v15 = vpop.f32.mrb[13].mxu1  ;;  %v491_v51 = vld [vmem:[#allocation2 + $0x80] sm:$0xff] }
 0x13c   : > { %1381 = vmatmul.mubr.f32.gmra.mrb[54].mxu0 %v4219_v39  ;;  %2152 = vmatprep.mubr.f32.mxu1 %v556_v5  ;;  %v565_v39 = vld [vmem:[#allocation2 + $0xfa] sm:$0xff] }
 0x13d   : > { %1385 = vmatprep.mubr.f32.mxu0 %v4234_v26 }
 0x13e   : > { %v3792_v31 = vpop.f32.mrb[14].mxu1 }
 0x13f   : > { %2153 = vmatmul.mubr.f32.gmra.mrb[120].mxu1 %v557_v20  ;;  %v834_v35 = vpop.f32.mrb[15].mxu1 }
 0x140   : > { %1386 = vmatmul.mubr.f32.gmra.mrb[56].mxu0 %v3577_v28  ;;  %2155 = vmatprep.mubr.f32.mxu1 %v558_v27  ;;  %v3804_v28 = vld [vmem:[#allocation2 + $0x18a] sm:$0xff] }
 0x141   : > { %1390 = vmatprep.mubr.f32.mxu0 %v4235_v42 }
 0x142   : > { %v3796_v50 = vpop.f32.mrb[16].mxu1 }
 0x143   : > { %2156 = vmatmul.mubr.f32.gmra.mrb[122].mxu1 %v559_v38  ;;  %v839_v63 = vpop.f32.mrb[17].mxu1 }
 0x144   : > { %1391 = vmatmul.mubr.f32.gmra.mrb[58].mxu0 %v3587_v55  ;;  %2158 = vmatprep.mubr.f32.mxu1 %v560_v49  ;;  %v516_v55 = vld [vmem:[#allocation2 + $0x31] sm:$0xff] }
 0x145   : > { %1395 = vmatprep.mubr.f32.mxu0 %v3798_v53 }
 0x146   : > { %v3802_v17 = vpop.f32.mrb[18].mxu1 }
 0x147   : > { %2159 = vmatmul.mubr.f32.gmra.mrb[124].mxu1 %v561_v0  ;;  %v844_v18 = vpop.f32.mrb[19].mxu1 }
 0x148   : > { %1396 = vmatmul.mubr.f32.gmra.mrb[60].mxu0 %v3751_v34  ;;  %2161 = vmatprep.mubr.f32.mxu1 %v562_v6 }
 0x149   : > { %1400 = vmatprep.mubr.f32.mxu0 %v3804_v28 }
 0x14a   : > { %v3808_v33 = vpop.f32.mrb[20].mxu1 }
 0x14b   : > { %2162 = vmatmul.mubr.f32.gmra.mrb[126].mxu1 %v563_v22  ;;  %v849_v62 = vpop.f32.mrb[21].mxu1 }
 0x14c   : > { %1401 = vmatmul.mubr.f32.gmra.mrb[62].mxu0 %v3757_v45  ;;  %2164 = vmatprep.mubr.f32.mxu1 %v564_v23 }
 0x14d   : > { %1470 = vmatprep.mubr.f32.mxu0 %v516_v55 }
 0x14e   : > { %v3811_v61 = vpop.f32.mrb[22].mxu1 }
 0x14f   : > { %2165 = vmatmul.mubr.f32.gmra.mrb[128].mxu1 %v565_v39  ;;  %v854_v34 = vpop.f32.mrb[23].mxu1 }
 0x150   : > { %1471 = vmatmul.mubr.f32.vlgmr.msra.gmra.mrb[0].mxu0 %v484_v43  ;;  %2167 = vmatprep.mubr.f32.mxu1 %v566_v58 }
 0x151   : > { %1475 = vmatprep.mubr.f32.mxu0 %v517_v30 }
 0x152   : > { %v3813_v46 = vpop.f32.mrb[24].mxu1 }
 0x153   : > { %2168 = vmatmul.mubr.f32.gmra.mrb[130].mxu1 %v4226_v3  ;;  %v859_v45 = vpop.f32.mrb[25].mxu1  ;;  %v520_v3 = vld [vmem:[#allocation2 + $0x61] sm:$0xff] }
 0x154   : > { %1476 = vmatmul.mubr.f32.gmra.mrb[2].mxu0 %v485_v44  ;;  %2170 = vmatprep.mubr.f32.mxu1 %v4228_v10  ;;  %v488_v10 = vld [vmem:[#allocation2 + $0x60] sm:$0xff] }
 0x155   : > { %1480 = vmatprep.mubr.f32.mxu0 %v518_v7 }
 0x156   : > { %v3817_v59 = vpop.f32.mrb[26].mxu1 }
 0x157   : > { %2171 = vmatmul.mubr.f32.gmra.mrb[132].mxu1 %v4229_v24  ;;  %v864_v13 = vpop.f32.mrb[27].mxu1  ;;  %v521_v24 = vld [vmem:[#allocation2 + $0x69] sm:$0xff] }
 0x158   : > { %1481 = vmatmul.mubr.f32.gmra.mrb[4].mxu0 %v486_v54  ;;  %2173 = vmatprep.mubr.f32.mxu1 %v4230_v41  ;;  %v489_v41 = vld [vmem:[#allocation2 + $0x68] sm:$0xff] }
 0x159   : > { %1485 = vmatprep.mubr.f32.mxu0 %v519_v11 }
 0x15a   : > { %v3821_v32 = vpop.f32.mrb[28].mxu1 }
 0x15b   : > { %2174 = vmatmul.mubr.f32.gmra.mrb[134].mxu1 %v4231_v19  ;;  %v869_v16 = vpop.f32.mrb[29].mxu1 }
 0x15c   : > { %1486 = vmatmul.mubr.f32.gmra.mrb[6].mxu0 %v487_v21  ;;  %2176 = vmatprep.mubr.f32.mxu1 %v4232_v4  ;;  %v523_v4 = vld [vmem:[#allocation2 + $0x81] sm:$0xff] }
 0x15d   : > { %1490 = vmatprep.mubr.f32.mxu0 %v520_v3 }
 0x15e   : > { %v3825_v1 = vpop.f32.mrb[30].mxu1 }
 0x15f   : > { %2177 = vmatmul.mubr.f32.gmra.mrb[136].mxu1 %v4233_v60  ;;  %v874_v2 = vpop.f32.mrb[31].mxu1 }
 0x160   : > { %1491 = vmatmul.mubr.f32.gmra.mrb[8].mxu0 %v488_v10  ;;  %2179 = vmatprep.mubr.f32.mxu1 %v4234_v26 }
 0x161   : > { %1495 = vmatprep.mubr.f32.mxu0 %v521_v24 }
 0x162   : > { %v3829_v36 = vpop.f32.mrb[32].mxu1 }
 0x163   : > { %2180 = vmatmul.mubr.f32.gmra.mrb[138].mxu1 %v4235_v42  ;;  %v879_v19 = vpop.f32.mrb[33].mxu1 }
 0x164   : > { %1496 = vmatmul.mubr.f32.gmra.mrb[10].mxu0 %v489_v41  ;;  %2182 = vmatprep.mubr.f32.mxu1 %v3798_v53 }
 0x165   : > { %1500 = vmatprep.mubr.f32.mxu0 %v522_v47 }
 0x166   : > { %v3833_v48 = vpop.f32.mrb[34].mxu1 }
 0x167   : > { %2183 = vmatmul.mubr.f32.gmra.mrb[140].mxu1 %v3804_v28  ;;  %v884_v40 = vpop.f32.mrb[35].mxu1 }
 0x168   : > { %1501 = vmatmul.mubr.f32.gmra.mrb[12].mxu0 %v490_v37  ;;  %2185 = vmatprep.mubr.f32.mxu1 %v578_v29 }
 0x169   : > { %1505 = vmatprep.mubr.f32.mxu0 %v523_v4 }
 0x16a   : > { %v3836_v60 = vpop.f32.mrb[36].mxu1 }
 0x16b   : > { %2186 = vmatmul.mubr.f32.gmra.mrb[142].mxu1 %v579_v14  ;;  %v889_v5 = vpop.f32.mrb[37].mxu1  ;;  %v3867_v14 = vld [vmem:[%s4096_s2] ss:$0 sm:$0xff] }
 0x16c   : > { %1506 = vmatmul.mubr.f32.gmra.mrb[14].mxu0 %v491_v51  ;;  %v838_v51 = vadd.f32 %v3867_v14, %v3796_v50  ;;  %v848_v50 = vadd.f32 %v3867_v14, %v3808_v33  ;;  %v858_v33 = vadd.f32 %v3867_v14, %v3813_v46  ;;  %v868_v46 = vadd.f32 %v3867_v14, %v3821_v32 }
 0x16d   : > { %v878_v32 = vadd.f32 %v3867_v14, %v3829_v36 }
 0x16e   : > { %v3838_v15 = vpop.f32.mrb[38].mxu1 }
 0x16f   : > { %v894_v20 = vpop.f32.mrb[39].mxu1 }
 0x172   : > { %v3840_v26 = vpop.f32.mrb[40].mxu1 }
 0x173   : > { %v899_v27 = vpop.f32.mrb[41].mxu1 }
 0x176   : > { %v3842_v35 = vpop.f32.mrb[42].mxu1 }
 0x177   : > { %v904_v38 = vpop.f32.mrb[43].mxu1 }
 0x17a   : > { %v3844_v42 = vpop.f32.mrb[44].mxu1 }
 0x17b   : > { %v909_v49 = vpop.f32.mrb[45].mxu1 }
 0x17e   : > { %v3846_v53 = vpop.f32.mrb[46].mxu1 }
 0x17f   : > { %v914_v63 = vpop.f32.mrb[47].mxu1 }
 0x180   : > { %v843_v63 = vadd.f32 %v3867_v14, %v3802_v17  ;;  %v853_v17 = vadd.f32 %v3867_v14, %v3811_v61  ;;  %v863_v61 = vadd.f32 %v3867_v14, %v3817_v59  ;;  %v873_v59 = vadd.f32 %v3867_v14, %v3825_v1 }
 0x181   : > { %v883_v1 = vadd.f32 %v3867_v14, %v3833_v48 }
 0x182   : > { %v3848_v0 = vpop.f32.mrb[48].mxu1 }
 0x183   : > { %v919_v6 = vpop.f32.mrb[49].mxu1 }
 0x186   : > { %v3850_v28 = vpop.f32.mrb[50].mxu1 }
 0x187   : > { %v924_v18 = vpop.f32.mrb[51].mxu1 }
 0x18a   : > { %v3852_v22 = vpop.f32.mrb[52].mxu1 }
 0x18b   : > { %v929_v23 = vpop.f32.mrb[53].mxu1 }
 0x18e   : > { %v3854_v55 = vpop.f32.mrb[54].mxu1 }
 0x18f   : > { %v934_v62 = vpop.f32.mrb[55].mxu1 }
 0x192   : > { %v3856_v39 = vpop.f32.mrb[56].mxu1 }
 0x193   : > { %v939_v43 = vpop.f32.mrb[57].mxu1 }
 0x196   : > { %v3858_v58 = vpop.f32.mrb[58].mxu1 }
 0x197   : > { %v944_v30 = vpop.f32.mrb[59].mxu1 }
 0x19a   : > { %v3860_v34 = vpop.f32.mrb[60].mxu1 }
 0x19b   : > { %v949_v44 = vpop.f32.mrb[61].mxu1 }
 0x19e   : > { %v3862_v7 = vpop.f32.mrb[62].mxu1 }
 0x19f   : > { %v954_v45 = vpop.f32.mrb[63].mxu1 }
 0x1a2   : > { %v1512_v54 = vpop.f32.mrb[64].mxu1 }
 0x1a3   : > { %v1514_v11 = vpop.f32.mrb[65].mxu1 }
 0x1a6   : > { %v1517_v13 = vpop.f32.mrb[66].mxu1 }
 0x1a7   : > { %v1519_v21 = vpop.f32.mrb[67].mxu1 }
 0x1aa   : > { %v1522_v3 = vpop.f32.mrb[68].mxu1 }
 0x1ab   : > { %v1524_v16 = vpop.f32.mrb[69].mxu1 }
 0x1ae   : > { %v1527_v10 = vpop.f32.mrb[70].mxu1 }
 0x1af   : > { %v1529_v24 = vpop.f32.mrb[71].mxu1 }
 0x1b2   : > { %v1532_v2 = vpop.f32.mrb[72].mxu1 }
 0x1b3   : > { %v1534_v41 = vpop.f32.mrb[73].mxu1 }
 0x1b6   : > { %v1537_v47 = vpop.f32.mrb[74].mxu1 }
 0x1b7   : > { %v1539_v19 = vpop.f32.mrb[75].mxu1 }
 0x1ba   : > { %v1542_v37 = vpop.f32.mrb[76].mxu1 }
 0x1bb   : > { %v1544_v29 = vpop.f32.mrb[77].mxu1 }
 0x1be   : > { %v1547_v4 = vpop.f32.mrb[78].mxu1 }
 0x1bf   : > { %v1549_v40 = vpop.f32.mrb[79].mxu1 }
 0x1c2   : > { %v3871_v5 = vpop.f32.mrb[80].mxu1 }
 0x1c3   : > { %v1287_v20 = vpop.f32.mrb[16].mxu0  ;;  %v1554_v27 = vpop.f32.mrb[81].mxu1 }
 0x1c4   : > { %v2461_v38 = vadd.f32 %v1287_v20, %v838_v51  ;;  %v1289_v49 = vpop.f32.mrb[17].mxu0 }
 0x1c6   : > { %v3875_v6 = vpop.f32.mrb[82].mxu1  ;;  %v3877_v18 = vadd.f32 %v2461_v38, %v1512_v54 }
 0x1c7   : > { %v1292_v23 = vpop.f32.mrb[18].mxu0  ;;  %v1559_v62 = vpop.f32.mrb[83].mxu1 }
 0x1c8   : > { %v2464_v43 = vadd.f32 %v1292_v23, %v843_v63  ;;  %v1294_v30 = vpop.f32.mrb[19].mxu0 }
 0x1ca   : > { %v3881_v44 = vpop.f32.mrb[84].mxu1  ;;  %v3883_v45 = vadd.f32 %v2464_v43, %v1517_v13 }
 0x1cb   : > { %v1297_v11 = vpop.f32.mrb[20].mxu0  ;;  %v1564_v21 = vpop.f32.mrb[85].mxu1 }
 0x1cc   : > { %v2467_v16 = vadd.f32 %v1297_v11, %v848_v50  ;;  %v1299_v24 = vpop.f32.mrb[21].mxu0 }
 0x1ce   : > { %v3887_v54 = vpop.f32.mrb[86].mxu1  ;;  %v3889_v41 = vadd.f32 %v2467_v16, %v1522_v3 }
 0x1cf   : > { %v1302_v19 = vpop.f32.mrb[22].mxu0  ;;  %v1569_v29 = vpop.f32.mrb[87].mxu1 }
 0x1d0   : > { %v2470_v40 = vadd.f32 %v1302_v19, %v853_v17  ;;  %v1304_v51 = vpop.f32.mrb[23].mxu0 }
 0x1d2   : > { %v3893_v13 = vpop.f32.mrb[88].mxu1  ;;  %v3895_v20 = vadd.f32 %v2470_v40, %v1527_v10 }
 0x1d3   : > { %v1307_v27 = vpop.f32.mrb[24].mxu0  ;;  %v1574_v38 = vpop.f32.mrb[89].mxu1 }
 0x1d4   : > { %v2473_v49 = vadd.f32 %v1307_v27, %v858_v33  ;;  %v1309_v63 = vpop.f32.mrb[25].mxu0 }
 0x1d6   : > { %v3899_v3 = vpop.f32.mrb[90].mxu1  ;;  %v3901_v23 = vadd.f32 %v2473_v49, %v1532_v2 }
 0x1d7   : > { %v1312_v62 = vpop.f32.mrb[26].mxu0  ;;  %v1579_v43 = vpop.f32.mrb[91].mxu1 }
 0x1d8   : > { %v2476_v30 = vadd.f32 %v1312_v62, %v863_v61  ;;  %v1314_v50 = vpop.f32.mrb[27].mxu0 }
 0x1da   : > { %v3905_v10 = vpop.f32.mrb[92].mxu1  ;;  %v3907_v11 = vadd.f32 %v2476_v30, %v1537_v47 }
 0x1db   : > { %v1317_v21 = vpop.f32.mrb[28].mxu0  ;;  %v1584_v16 = vpop.f32.mrb[93].mxu1 }
 0x1dc   : > { %v2479_v24 = vadd.f32 %v1317_v21, %v868_v46  ;;  %v1319_v17 = vpop.f32.mrb[29].mxu0 }
 0x1de   : > { %v3911_v2 = vpop.f32.mrb[94].mxu1  ;;  %v3913_v19 = vadd.f32 %v2479_v24, %v1542_v37 }
 0x1df   : > { %v1322_v29 = vpop.f32.mrb[30].mxu0  ;;  %v1589_v40 = vpop.f32.mrb[95].mxu1 }
 0x1e0   : > { %v2482_v51 = vadd.f32 %v1322_v29, %v873_v59  ;;  %v1324_v33 = vpop.f32.mrb[31].mxu0 }
 0x1e2   : > { %v3917_v47 = vpop.f32.mrb[96].mxu1  ;;  %v3919_v27 = vadd.f32 %v2482_v51, %v1547_v4  ;;  %v888_v4 = vadd.f32 %v3867_v14, %v3836_v60 }
 0x1e3   : > { %v1327_v38 = vpop.f32.mrb[32].mxu0  ;;  %v1594_v49 = vpop.f32.mrb[97].mxu1 }
 0x1e4   : > { %v2485_v63 = vadd.f32 %v1327_v38, %v878_v32  ;;  %v1329_v61 = vpop.f32.mrb[33].mxu0 }
 0x1e6   : > { %v3923_v37 = vpop.f32.mrb[98].mxu1  ;;  %v3926_v62 = vadd.f32 %v2485_v63, %v3871_v5  ;;  %v893_v5 = vadd.f32 %v3867_v14, %v3838_v15 }
 0x1e7   : > { %v1332_v43 = vpop.f32.mrb[34].mxu0  ;;  %v1599_v30 = vpop.f32.mrb[99].mxu1 }
 0x1e8   : > { %v2488_v50 = vadd.f32 %v1332_v43, %v883_v1  ;;  %v1334_v36 = vpop.f32.mrb[35].mxu0 }
 0x1ea   : > { %v3930_v46 = vpop.f32.mrb[100].mxu1  ;;  %v3933_v21 = vadd.f32 %v2488_v50, %v3875_v6  ;;  %v898_v6 = vadd.f32 %v3867_v14, %v3840_v26 }
 0x1eb   : > { %v1337_v16 = vpop.f32.mrb[36].mxu0  ;;  %v1604_v24 = vpop.f32.mrb[101].mxu1 }
 0x1ec   : > { %v2491_v48 = vadd.f32 %v1337_v16, %v888_v4  ;;  %v1339_v17 = vpop.f32.mrb[37].mxu0 }
 0x1ee   : > { %v3937_v59 = vpop.f32.mrb[102].mxu1  ;;  %v3940_v29 = vadd.f32 %v2491_v48, %v3881_v44  ;;  %v903_v44 = vadd.f32 %v3867_v14, %v3842_v35 }
 0x1ef   : > { %v1342_v40 = vpop.f32.mrb[38].mxu0  ;;  %v1609_v51 = vpop.f32.mrb[103].mxu1 }
 0x1f0   : > { %v2494_v60 = vadd.f32 %v1342_v40, %v893_v5  ;;  %v1344_v33 = vpop.f32.mrb[39].mxu0 }
 0x1f2   : > { %v3944_v32 = vpop.f32.mrb[104].mxu1  ;;  %v3947_v38 = vadd.f32 %v2494_v60, %v3887_v54  ;;  %v908_v54 = vadd.f32 %v3867_v14, %v3844_v42 }
 0x1f3   : > { %v1347_v49 = vpop.f32.mrb[40].mxu0  ;;  %v1614_v63 = vpop.f32.mrb[105].mxu1 }
 0x1f4   : > { %v2497_v15 = vadd.f32 %v1347_v49, %v898_v6  ;;  %v1349_v61 = vpop.f32.mrb[41].mxu0 }
 0x1f6   : > { %v3951_v1 = vpop.f32.mrb[106].mxu1  ;;  %v3954_v43 = vadd.f32 %v2497_v15, %v3893_v13  ;;  %v913_v13 = vadd.f32 %v3867_v14, %v3846_v53 }
 0x1f7   : > { %v1352_v30 = vpop.f32.mrb[42].mxu0  ;;  %v1619_v50 = vpop.f32.mrb[107].mxu1 }
 0x1f8   : > { %v2500_v26 = vadd.f32 %v1352_v30, %v903_v44  ;;  %v1354_v36 = vpop.f32.mrb[43].mxu0 }
 0x1fa   : > { %v3958_v4 = vpop.f32.mrb[108].mxu1  ;;  %v3961_v16 = vadd.f32 %v2500_v26, %v3899_v3  ;;  %v918_v3 = vadd.f32 %v3867_v14, %v3848_v0 }
 0x1fb   : > { %v1357_v24 = vpop.f32.mrb[44].mxu0  ;;  %v1624_v48 = vpop.f32.mrb[109].mxu1 }
 0x1fc   : > { %v2503_v35 = vadd.f32 %v1357_v24, %v908_v54  ;;  %v1359_v17 = vpop.f32.mrb[45].mxu0 }
 0x1fe   : > { %v3965_v5 = vpop.f32.mrb[110].mxu1  ;;  %v3968_v40 = vadd.f32 %v2503_v35, %v3905_v10  ;;  %v923_v10 = vadd.f32 %v3867_v14, %v3850_v28 }
 0x1ff   : > { %v1362_v51 = vpop.f32.mrb[46].mxu0  ;;  %v1629_v60 = vpop.f32.mrb[111].mxu1 }
 0x200   : > { %v2506_v42 = vadd.f32 %v1362_v51, %v913_v13  ;;  %v1364_v33 = vpop.f32.mrb[47].mxu0 }
 0x202   : > { %v3972_v6 = vpop.f32.mrb[112].mxu1  ;;  %v3975_v49 = vadd.f32 %v2506_v42, %v3911_v2  ;;  %v928_v2 = vadd.f32 %v3867_v14, %v3852_v22 }
 0x203   : > { %v1367_v63 = vpop.f32.mrb[48].mxu0  ;;  %v3977_v15 = vpop.f32.mrb[113].mxu1 }
 0x204   : > { %v2509_v53 = vadd.f32 %v1367_v63, %v918_v3  ;;  %v1369_v61 = vpop.f32.mrb[49].mxu0 }
 0x206   : > { %v3981_v44 = vpop.f32.mrb[114].mxu1  ;;  %v3984_v30 = vadd.f32 %v2509_v53, %v3917_v47  ;;  %v933_v47 = vadd.f32 %v3867_v14, %v3854_v55 }
 0x207   : > { %v1372_v50 = vpop.f32.mrb[50].mxu0  ;;  %v3986_v0 = vpop.f32.mrb[115].mxu1 }
 0x208   : > { %v2512_v26 = vadd.f32 %v1372_v50, %v923_v10  ;;  %v1374_v36 = vpop.f32.mrb[51].mxu0 }
 0x20a   : > { %v3990_v54 = vpop.f32.mrb[116].mxu1  ;;  %v3993_v24 = vadd.f32 %v2512_v26, %v3923_v37  ;;  %v938_v37 = vadd.f32 %v3867_v14, %v3856_v39  ;;  %v943_v26 = vadd.f32 %v3867_v14, %v3858_v58 }
 0x20b   : > { %v1377_v48 = vpop.f32.mrb[52].mxu0  ;;  %v3995_v28 = vpop.f32.mrb[117].mxu1 }
 0x20c   : > { %v2515_v35 = vadd.f32 %v1377_v48, %v928_v2  ;;  %v1379_v17 = vpop.f32.mrb[53].mxu0 }
 0x20e   : > { %v3999_v13 = vpop.f32.mrb[118].mxu1  ;;  %v4002_v51 = vadd.f32 %v2515_v35, %v3930_v46 }
 0x20f   : > { %v1382_v60 = vpop.f32.mrb[54].mxu0  ;;  %v4004_v22 = vpop.f32.mrb[119].mxu1 }
 0x210   : > { %v2518_v42 = vadd.f32 %v1382_v60, %v933_v47  ;;  %v1384_v33 = vpop.f32.mrb[55].mxu0 }
 0x212   : > { %v2154_v3 = vpop.f32.mrb[120].mxu1  ;;  %v4009_v63 = vadd.f32 %v2518_v42, %v3937_v59 }
 0x213   : > { %v1387_v53 = vpop.f32.mrb[56].mxu0  ;;  %v1743_v55 = vadd.f32 %v3883_v45, %v2154_v3  ;;  %v1737_v61 = vpop.f32.mrb[121].mxu1 }
 0x214   : > { %v2521_v10 = vadd.f32 %v1387_v53, %v938_v37  ;;  %v1389_v50 = vpop.f32.mrb[57].mxu0  ;;  %v1738_v46 = vadd.f32 %v3877_v18, %v1737_v61  ;;  %v948_v18 = vadd.f32 %v3867_v14, %v3860_v34 }
 0x215   : > { %1865 = vst [vmem:[#allocation3 + $0x48] sm:$0xff] %v1743_v55 }
 0x216   : > { %1864 = vst [vmem:[#allocation3 + $0x40] sm:$0xff] %v1738_v46  ;;  %v2157_v36 = vpop.f32.mrb[122].mxu1  ;;  %v4016_v39 = vadd.f32 %v2521_v10, %v3944_v32 }
 0x217   : > { %v1392_v2 = vpop.f32.mrb[58].mxu0  ;;  %v1753_v59 = vadd.f32 %v3895_v20, %v2157_v36  ;;  %v1747_v48 = vpop.f32.mrb[123].mxu1 }
 0x218   : > { %v2524_v35 = vadd.f32 %v1392_v2, %v943_v26  ;;  %v1394_v45 = vpop.f32.mrb[59].mxu0  ;;  %v1748_v17 = vadd.f32 %v3889_v41, %v1747_v48  ;;  %v953_v41 = vadd.f32 %v3867_v14, %v3862_v7  ;;  %v798_v7 = vadd.f32 %v3867_v14, %v3763_v52 }
 0x219   : > { %1867 = vst [vmem:[#allocation3 + $0x58] sm:$0xff] %v1753_v59  ;;  %v803_v52 = vadd.f32 %v3867_v14, %v3768_v12  ;;  %v808_v12 = vadd.f32 %v3867_v14, %v3772_v8  ;;  %v813_v8 = vadd.f32 %v3867_v14, %v3776_v25  ;;  %v818_v25 = vadd.f32 %v3867_v14, %v3780_v56 }
 0x21a   : > { %1866 = vst [vmem:[#allocation3 + $0x50] sm:$0xff] %v1748_v17  ;;  %v2160_v47 = vpop.f32.mrb[124].mxu1  ;;  %v4023_v58 = vadd.f32 %v2524_v35, %v3951_v1  ;;  %v823_v56 = vadd.f32 %v3867_v14, %v3784_v57 }
 0x21b   : > { %v1397_v60 = vpop.f32.mrb[60].mxu0  ;;  %v1763_v32 = vadd.f32 %v3907_v11, %v2160_v47  ;;  %v1757_v42 = vpop.f32.mrb[125].mxu1 }
 0x21c   : > { %v2527_v33 = vadd.f32 %v1397_v60, %v948_v18  ;;  %v1399_v20 = vpop.f32.mrb[61].mxu0  ;;  %v1758_v37 = vadd.f32 %v3901_v23, %v1757_v42 }
 0x21d   : > { %1869 = vst [vmem:[#allocation3 + $0x68] sm:$0xff] %v1763_v32  ;;  %v1896_v1 = vld [vmem:[#allocation3 + $0x40] ss:$2 sm:$0xff]  ;;  %v1928_v53 = vld [vmem:[#allocation3 + $0x41] ss:$2 sm:$0xff] }
 0x21e   : > { %1868 = vst [vmem:[#allocation3 + $0x60] sm:$0xff] %v1758_v37  ;;  %v2163_v34 = vpop.f32.mrb[126].mxu1  ;;  %v4030_v3 = vadd.f32 %v2527_v33, %v3958_v4  ;;  %v1955_v36 = vmax.f32 %v1896_v1, %v1928_v53 }
 0x21f   : > { %v1402_v55 = vpop.f32.mrb[62].mxu0  ;;  %v1773_v11 = vadd.f32 %v3919_v27, %v2163_v34  ;;  %v1767_v61 = vpop.f32.mrb[127].mxu1 }
 0x220   : > { %v2530_v10 = vadd.f32 %v1402_v55, %v953_v41  ;;  %v1404_v50 = vpop.f32.mrb[63].mxu0  ;;  %v1768_v23 = vadd.f32 %v3913_v19, %v1767_v61 }
 0x221   : > { %v1898_v46 = vld [vmem:[#allocation3 + $0x50] ss:$2 sm:$0xff]  ;;  %v1930_v26 = vld [vmem:[#allocation3 + $0x51] ss:$2 sm:$0xff]  ;;  %1871 = vst [vmem:[#allocation3 + $0x78] sm:$0xff] %v1773_v11 }
 0x222   : > { %v1956_v4 = vmax.f32 %v1898_v46, %v1930_v26  ;;  %1870 = vst [vmem:[#allocation3 + $0x70] sm:$0xff] %v1768_v23  ;;  %v2166_v2 = vpop.f32.mrb[128].mxu1  ;;  %v4038_v59 = vadd.f32 %v2530_v10, %v3965_v5 }
 0x223   : > { %v1472_v27 = vpop.f32.mrb[0].mxu0  ;;  %v1783_v48 = vadd.f32 %v3933_v21, %v2166_v2  ;;  %v1777_v35 = vpop.f32.mrb[129].mxu1 }
 0x224   : > { %v1969_v45 = vmax.f32 %v1955_v36, %v1956_v4  ;;  %v2445_v19 = vadd.f32 %v1472_v27, %v798_v7  ;;  %v1474_v17 = vpop.f32.mrb[1].mxu0  ;;  %v1778_v18 = vadd.f32 %v3926_v62, %v1777_v35 }
 0x225   : > { %1873 = vst [vmem:[#allocation3 + $0x88] sm:$0xff] %v1783_v48  ;;  %v1900_v60 = vld [vmem:[#allocation3 + $0x60] ss:$2 sm:$0xff]  ;;  %v1932_v32 = vld [vmem:[#allocation3 + $0x61] ss:$2 sm:$0xff] }
 0x226   : > { %v1977_v5 = vmax.f32 %v1969_v45, 0.0  ;;  %v1698_v47 = vadd.f32 %v2445_v19, %v3977_v15  ;;  %1872 = vst [vmem:[#allocation3 + $0x80] sm:$0xff] %v1778_v18  ;;  %v2169_v21 = vpop.f32.mrb[130].mxu1  ;;  %v1957_v15 = vmax.f32 %v1900_v60, %v1932_v32 }
 0x227   : > { %v1477_v42 = vpop.f32.mrb[2].mxu0  ;;  %v1793_v62 = vadd.f32 %v3947_v38, %v2169_v21  ;;  %v1787_v33 = vpop.f32.mrb[131].mxu1 }
 0x228   : > { %1985 = vst [vmem:[%s4045_s16 + $0x10] sm:$0xff] %v1977_v5  ;;  %1856 = vst [vmem:[#allocation3] sm:$0xff] %v1698_v47  ;;  %v2447_v20 = vadd.f32 %v1477_v42, %v803_v52  ;;  %v1479_v37 = vpop.f32.mrb[3].mxu0  ;;  %v1788_v41 = vadd.f32 %v3940_v29, %v1787_v33 }
 0x229   : > { %v1902_v34 = vld [vmem:[#allocation3 + $0x70] ss:$2 sm:$0xff]  ;;  %v1934_v1 = vld [vmem:[#allocation3 + $0x71] ss:$2 sm:$0xff]  ;;  %1875 = vst [vmem:[#allocation3 + $0x98] sm:$0xff] %v1793_v62 }
 0x22a   : > { %v1958_v53 = vmax.f32 %v1902_v34, %v1934_v1  ;;  %v1703_v55 = vadd.f32 %v2447_v20, %v3972_v6  ;;  %1874 = vst [vmem:[#allocation3 + $0x90] sm:$0xff] %v1788_v41  ;;  %v2172_v11 = vpop.f32.mrb[132].mxu1 }
 0x22b   : > { %v1482_v38 = vpop.f32.mrb[4].mxu0  ;;  %v1803_v61 = vadd.f32 %v3961_v16, %v2172_v11  ;;  %v1797_v10 = vpop.f32.mrb[133].mxu1 }
 0x22c   : > { %v1970_v50 = vmax.f32 %v1957_v15, %v1958_v53  ;;  %1857 = vst [vmem:[#allocation3 + $0x8] sm:$0xff] %v1703_v55  ;;  %v2449_v29 = vadd.f32 %v1482_v38, %v808_v12  ;;  %v1484_v23 = vpop.f32.mrb[5].mxu0  ;;  %v1798_v46 = vadd.f32 %v3954_v43, %v1797_v10 }
 0x22d   : > { %1877 = vst [vmem:[#allocation3 + $0xa8] sm:$0xff] %v1803_v61  ;;  %v1904_v36 = vld [vmem:[#allocation3 + $0x80] ss:$2 sm:$0xff]  ;;  %v1936_v4 = vld [vmem:[#allocation3 + $0x81] ss:$2 sm:$0xff] }
 0x22e   : > { %v1978_v26 = vmax.f32 %v1970_v50, 0.0  ;;  %v1708_v6 = vadd.f32 %v2449_v29, %v3986_v0  ;;  %1876 = vst [vmem:[#allocation3 + $0xa0] sm:$0xff] %v1798_v46  ;;  %v2175_v7 = vpop.f32.mrb[134].mxu1  ;;  %v1959_v0 = vmax.f32 %v1904_v36, %v1936_v4 }
 0x22f   : > { %v1487_v16 = vpop.f32.mrb[6].mxu0  ;;  %v1813_v2 = vadd.f32 %v3975_v49, %v2175_v7  ;;  %v1807_v27 = vpop.f32.mrb[135].mxu1 }
 0x230   : > { %1986 = vst [vmem:[%s4045_s16 + $0x18] sm:$0xff] %v1978_v26  ;;  %1858 = vst [vmem:[#allocation3 + $0x10] sm:$0xff] %v1708_v6  ;;  %v2451_v48 = vadd.f32 %v1487_v16, %v813_v8  ;;  %v1489_v35 = vpop.f32.mrb[7].mxu0  ;;  %v1808_v43 = vadd.f32 %v3968_v40, %v1807_v27 }
 0x231   : > { %v1906_v45 = vld [vmem:[#allocation3 + $0x90] ss:$2 sm:$0xff]  ;;  %v1938_v19 = vld [vmem:[#allocation3 + $0x91] ss:$2 sm:$0xff]  ;;  %1879 = vst [vmem:[#allocation3 + $0xb8] sm:$0xff] %v1813_v2 }
 0x232   : > { %v1960_v17 = vmax.f32 %v1906_v45, %v1938_v19  ;;  %v1713_v18 = vadd.f32 %v2451_v48, %v3981_v44  ;;  %1878 = vst [vmem:[#allocation3 + $0xb0] sm:$0xff] %v1808_v43  ;;  %v2178_v52 = vpop.f32.mrb[136].mxu1 }
 0x233   : > { %v1492_v49 = vpop.f32.mrb[8].mxu0  ;;  %v1823_v5 = vadd.f32 %v3993_v24, %v2178_v52  ;;  %v1817_v47 = vpop.f32.mrb[137].mxu1  ;;  %v1888_v34 = vld [vmem:[#allocation3] ss:$2 sm:$0xff]  ;;  %v1920_v1 = vld [vmem:[#allocation3 + $0x1] ss:$2 sm:$0xff] }
 0x234   : > { %v1971_v21 = vmax.f32 %v1959_v0, %v1960_v17  ;;  %1859 = vst [vmem:[#allocation3 + $0x18] sm:$0xff] %v1713_v18  ;;  %v2453_v60 = vadd.f32 %v1492_v49, %v818_v25  ;;  %v1494_v40 = vpop.f32.mrb[9].mxu0  ;;  %v1818_v32 = vadd.f32 %v3984_v30, %v1817_v47  ;;  %v1951_v61 = vmax.f32 %v1888_v34, %v1920_v1 }
 0x235   : > { %1881 = vst [vmem:[#allocation3 + $0xc8] sm:$0xff] %v1823_v5  ;;  %v1908_v33 = vld [vmem:[#allocation3 + $0xa0] ss:$2 sm:$0xff]  ;;  %v1940_v20 = vld [vmem:[#allocation3 + $0xa1] ss:$2 sm:$0xff] }
 0x236   : > { %v1979_v42 = vmax.f32 %v1971_v21, 0.0  ;;  %v1718_v44 = vadd.f32 %v2453_v60, %v3995_v28  ;;  %1880 = vst [vmem:[#allocation3 + $0xc0] sm:$0xff] %v1818_v32  ;;  %v2181_v62 = vpop.f32.mrb[138].mxu1  ;;  %v828_v28 = vadd.f32 %v3867_v14, %v3788_v9  ;;  %v1961_v55 = vmax.f32 %v1908_v33, %v1940_v20 }
 0x237   : > { %v1497_v24 = vpop.f32.mrb[10].mxu0  ;;  %v1833_v37 = vadd.f32 %v4009_v63, %v2181_v62  ;;  %v1827_v41 = vpop.f32.mrb[139].mxu1 }
 0x238   : > { %1987 = vst [vmem:[%s4045_s16 + $0x20] sm:$0xff] %v1979_v42  ;;  %1860 = vst [vmem:[#allocation3 + $0x20] sm:$0xff] %v1718_v44  ;;  %v2455_v30 = vadd.f32 %v1497_v24, %v823_v56  ;;  %v1499_v12 = vpop.f32.mrb[11].mxu0  ;;  %v1828_v15 = vadd.f32 %v4002_v51, %v1827_v41 }
 0x239   : > { %v1910_v57 = vld [vmem:[#allocation3 + $0xb0] ss:$2 sm:$0xff]  ;;  %v1942_v53 = vld [vmem:[#allocation3 + $0xb1] ss:$2 sm:$0xff]  ;;  %1883 = vst [vmem:[#allocation3 + $0xd8] sm:$0xff] %v1833_v37 }
 0x23a   : > { %v1962_v11 = vmax.f32 %v1910_v57, %v1942_v53  ;;  %v1723_v38 = vadd.f32 %v2455_v30, %v3990_v54  ;;  %1882 = vst [vmem:[#allocation3 + $0xd0] sm:$0xff] %v1828_v15  ;;  %v2184_v63 = vpop.f32.mrb[140].mxu1  ;;  %v833_v54 = vadd.f32 %v3867_v14, %v3792_v31 }
 0x23b   : > { %v1890_v10 = vld [vmem:[#allocation3 + $0x10] ss:$2 sm:$0xff]  ;;  %v1922_v50 = vld [vmem:[#allocation3 + $0x11] ss:$2 sm:$0xff]  ;;  %v1502_v29 = vpop.f32.mrb[12].mxu0  ;;  %v1843_v23 = vadd.f32 %v4023_v58, %v2184_v63  ;;  %v1837_v46 = vpop.f32.mrb[141].mxu1 }
 0x23c   : > { %v1952_v51 = vmax.f32 %v1890_v10, %v1922_v50  ;;  %v1972_v8 = vmax.f32 %v1961_v55, %v1962_v11  ;;  %1861 = vst [vmem:[#allocation3 + $0x28] sm:$0xff] %v1723_v38  ;;  %v2457_v26 = vadd.f32 %v1502_v29, %v828_v28  ;;  %v1504_v6 = vpop.f32.mrb[13].mxu0  ;;  %v1838_v9 = vadd.f32 %v4016_v39, %v1837_v46 }
 0x23d   : > { %1885 = vst [vmem:[#allocation3 + $0xe8] sm:$0xff] %v1843_v23  ;;  %v1912_v16 = vld [vmem:[#allocation3 + $0xc0] ss:$2 sm:$0xff]  ;;  %v1944_v2 = vld [vmem:[#allocation3 + $0xc1] ss:$2 sm:$0xff] }
 0x23e   : > { %v1967_v7 = vmax.f32 %v1951_v61, %v1952_v51  ;;  %v1980_v36 = vmax.f32 %v1972_v8, 0.0  ;;  %v1728_v4 = vadd.f32 %v2457_v26, %v4004_v22  ;;  %1884 = vst [vmem:[#allocation3 + $0xe0] sm:$0xff] %v1838_v9  ;;  %v2187_v58 = vpop.f32.mrb[142].mxu1  ;;  %v1963_v22 = vmax.f32 %v1912_v16, %v1944_v2 }
 0x23f   : > { %v1507_v27 = vpop.f32.mrb[14].mxu0  ;;  %v1853_v48 = vadd.f32 %v4038_v59, %v2187_v58  ;;  %v1847_v35 = vpop.f32.mrb[143].mxu1 }
 0x240   : > { %v1975_v43 = vmax.f32 %v1967_v7, 0.0  ;;  %1988 = vst [vmem:[%s4045_s16 + $0x28] sm:$0xff] %v1980_v36  ;;  %1862 = vst [vmem:[#allocation3 + $0x30] sm:$0xff] %v1728_v4  ;;  %v2459_v39 = vadd.f32 %v1507_v27, %v833_v54  ;;  %v1509_v45 = vpop.f32.mrb[15].mxu0  ;;  %v1848_v31 = vadd.f32 %v4030_v3, %v1847_v35 }
 0x241   : > { %v1914_v14 = vld [vmem:[#allocation3 + $0xd0] ss:$2 sm:$0xff]  ;;  %v1946_v19 = vld [vmem:[#allocation3 + $0xd1] ss:$2 sm:$0xff]  ;;  %1887 = vst [vmem:[#allocation3 + $0xf8] sm:$0xff] %v1853_v48 }
 0x242   : > { %1983 = vst [vmem:[%s4045_s16] sm:$0xff] %v1975_v43  ;;  %v1964_v25 = vmax.f32 %v1914_v14, %v1946_v19  ;;  %v1733_v0 = vadd.f32 %v2459_v39, %v3999_v13  ;;  %1886 = vst [vmem:[#allocation3 + $0xf0] sm:$0xff] %v1848_v31 }
 0x243   : > { %v1892_v49 = vld [vmem:[#allocation3 + $0x20] ss:$2 sm:$0xff]  ;;  %v1924_v5 = vld [vmem:[#allocation3 + $0x21] ss:$2 sm:$0xff] }
 0x244   : > { %v1973_v17 = vmax.f32 %v1963_v22, %v1964_v25  ;;  %1863 = vst [vmem:[#allocation3 + $0x38] sm:$0xff] %v1733_v0  ;;  %v1953_v56 = vmax.f32 %v1892_v49, %v1924_v5 }
 0x245   : > { %v1916_v18 = vld [vmem:[#allocation3 + $0xe0] ss:$2 sm:$0xff]  ;;  %v1948_v52 = vld [vmem:[#allocation3 + $0xe1] ss:$2 sm:$0xff] }
 0x246   : > { %v1981_v59 = vmax.f32 %v1973_v17, 0.0  ;;  %v1965_v21 = vmax.f32 %v1916_v18, %v1948_v52 }
 0x248   : > { %1989 = vst [vmem:[%s4045_s16 + $0x30] sm:$0xff] %v1981_v59 }
 0x249   : > { %v1918_v3 = vld [vmem:[#allocation3 + $0xf0] ss:$2 sm:$0xff]  ;;  %v1950_v47 = vld [vmem:[#allocation3 + $0xf1] ss:$2 sm:$0xff] }
 0x24a   : > { %v1966_v60 = vmax.f32 %v1918_v3, %v1950_v47 }
 0x24b   : > { %v1894_v40 = vld [vmem:[#allocation3 + $0x30] ss:$2 sm:$0xff]  ;;  %v1926_v32 = vld [vmem:[#allocation3 + $0x31] ss:$2 sm:$0xff] }
 0x24c   : > { %v1954_v42 = vmax.f32 %v1894_v40, %v1926_v32  ;;  %v1974_v13 = vmax.f32 %v1965_v21, %v1966_v60 }
 0x24e   : > { %v1968_v44 = vmax.f32 %v1953_v56, %v1954_v42  ;;  %v1982_v62 = vmax.f32 %v1974_v13, 0.0 }
 0x250   : > { %v1976_v33 = vmax.f32 %v1968_v44, 0.0  ;;  %1990 = vst [vmem:[%s4045_s16 + $0x38] sm:$0xff] %v1982_v62 }
 0x252   : > { %1984 = vst [vmem:[%s4045_s16 + $0x8] sm:$0xff] %v1976_v33 }
 0x253 PF: > { %s13_s12 = sadd.s32 1, %s2629_s12  }
 0x254   : > { %p10_p4 = scmp.ge.s32.totalorder %s13_s12, 4  }
 0x256   :  { %12 = sbr.rel (!%p10_p4) target bundleno = 1 (0x1), region = 95 }

// kernel: lanenet_forward.5
= control target key start
LH: loop header
LB: loop body
LE: loop exit
PB: predicated region body
PF: predicated region fallthrough
CT: control target
= control target key end

     0   :  { %s6386_s29 = smov 0   ;;  %s9251_s0 = inlined_call_operand.vmem [shape: f32[2,8,8,128], index: 0, kind: input, shape index: {}]   ;;  %s9252_s1 = inlined_call_operand.vmem [shape: f32[1152,64], index: 1, kind: input, shape index: {}]   ;;  %s9253_s2 = inlined_call_operand.vmem [shape: f32[1,64], index: 2, kind: input, shape index: {}]   ;;  %s9254_s3 = inlined_call_operand.vmem [shape: f32[1,64], index: 3, kind: input, shape index: {}]   ;;  %s9255_s4 = inlined_call_operand.<no memory space> [shape: f32[1,1], index: 4, kind: input, shape index: {}]   ;;  %s9256_s5 = inlined_call_operand.vmem [shape: f32[2,8,8,1], index: 5, kind: output, shape index: {0}]   ;;  %s9257_s6 = inlined_call_operand.vmem [shape: f32[2,8,8,1], index: 6, kind: output, shape index: {1}]   ;;  %s9258_s7 = inlined_call_operand.vmem [shape: f32[2,8,8,1], index: 7, kind: output, shape index: {2}]   ;;  %s9259_s8 = inlined_call_operand.vmem [shape: f32[2,8,8,1], index: 8, kind: output, shape index: {3}]  }
   0x1   :  { %v14_v0 = vstv %s9255_s4 }
   0x2   :  { %15 = vst [vmem:[#allocation7] sm:$0x1] %v14_v0 }
   0x3 LB: > { %s4318_s30 = sadd.s32 4294967295, %s6335_s29   ;;  %p4322_p0 = scmp.ge.s32.totalorder %s6335_s29, 1  ;;  %s6335_s29 = sphi %s6386_s29, %s21_s29  }
   0x4   : > { %p271_p1 = scmp.lt.s32.totalorder %s6335_s29, 3 }
   0x6   : > { %p272_p2 = pnand %p4322_p0, %p271_p1 }
   0x8   : > { %275 = sbr.rel (%p272_p2) target bundleno = 794 (0x31a), region = 40 }
   0xf   : > { %v6397_v1 = vld [vmem:[%s9252_s1 + $0x80] sm:$0xff]  ;;  %v6402_v2 = vld [vmem:[%s9252_s1 + $0x88] sm:$0xff]  ;;  %v6337_v8 = vmov 0.0   ;;  %v840_v13 = vld [vmem:[%s9252_s1 + $0x90] sm:$0xff]  ;;  %p6580_p3 = scmp.lt.s32.totalorder %s4318_s30, 1  ;;  %vm1512_vm0 = vcmask 523264  }
  0x10   : > { %v6407_v3 = vld [vmem:[%s9252_s1] sm:$0xff]  ;;  %v5550_v4 = vpack.c.bf16 %v6402_v2, %v6397_v1  ;;  %v6414_v5 = vld [vmem:[%s9252_s1 + $0x8] sm:$0xff]  ;;  %633 = vst [vmem:[#allocation3] sm:$0xff] %v6337_v8  ;;  %691 = vst [vmem:[#allocation5] sm:$0xff] %v6337_v8  ;;  %vm1600_vm1 = vcmask 7168  }
  0x11   : > { %v6419_v6 = vld [vmem:[%s9252_s1 + $0x180] sm:$0xff]  ;;  %v6424_v7 = vld [vmem:[%s9252_s1 + $0x188] sm:$0xff]  ;;  %692 = vst [vmem:[#allocation5 + $0x8] sm:$0x3] %v6337_v8  ;;  %635 = vst [vmem:[#allocation3 + $0x10] sm:$0xff] %v6337_v8  ;;  %v5552_v9 = vpack.c.bf16 %v6414_v5, %v6407_v3  ;;  %s9342_s30 = smov (!%p6580_p3, %s4318_s30), 1 }
  0x12   : > { %636 = vst [vmem:[#allocation3 + $0x18] sm:$0x3] %v6337_v8  ;;  %637 = vst [vmem:[#allocation3 + $0x20] sm:$0xff] %v6337_v8  ;;  %v5582_v10 = vpack.c.bf16 %v6424_v7, %v6419_v6  ;;  %v854_v11 = vld [vmem:[%s9252_s1 + $0x100] sm:$0xff]  ;;  %v855_v12 = vld [vmem:[%s9252_s1 + $0x108] sm:$0xff]  ;;  %5551 = vmatprep.subr.bf16.mxu0 %v5550_v4  ;;  %s6639_s19 = sshll.u32 %s9342_s30, 6 }
  0x13   : > { %638 = vst [vmem:[#allocation3 + $0x28] sm:$0x3] %v6337_v8  ;;  %639 = vst [vmem:[#allocation3 + $0x30] sm:$0xff] %v6337_v8  ;;  %v5584_v14 = vpack.c.bf16 %v855_v12, %v854_v11  ;;  %v841_v15 = vld [vmem:[%s9252_s1 + $0x98] sm:$0xff]  ;;  %v824_v16 = vld [vmem:[%s9252_s1 + $0x10] sm:$0xff]  ;;  %5553 = vmatpush3.bf16.msra.mxu0 %v5552_v9  ;;  %s6660_s11 = scalar_lea.vmem %s9251_s0, %s6639_s19  ;;  %s9076_s13 = scalar_lea.vmem %s9256_s5, %s6639_s19 }
  0x14   : > { %640 = vst [vmem:[#allocation3 + $0x38] sm:$0x3] %v6337_v8  ;;  %641 = vst [vmem:[#allocation3 + $0x40] sm:$0xff] %v6337_v8  ;;  %v825_v17 = vld [vmem:[%s9252_s1 + $0x18] sm:$0xff]  ;;  %5583 = vmatprep.subr.bf16.mxu1 %v5582_v10  ;;  %v5554_v18 = vpack.c.bf16 %v841_v15, %v840_v13  ;;  %v872_v20 = vld [vmem:[%s9252_s1 + $0x190] sm:$0xff]  ;;  %s9163_s18 = scalar_lea.vmem %s9257_s6, %s6639_s19  ;;  %s339_s22 = scalar_lea.vmem %s9258_s7, %s6639_s19 }
  0x15   : > { %642 = vst [vmem:[#allocation3 + $0x48] sm:$0x3] %v6337_v8  ;;  %643 = vst [vmem:[#allocation3 + $0x50] sm:$0xff] %v6337_v8  ;;  %v5556_v19 = vpack.c.bf16 %v825_v17, %v824_v16  ;;  %v873_v21 = vld [vmem:[%s9252_s1 + $0x198] sm:$0xff]  ;;  %v856_v22 = vld [vmem:[%s9252_s1 + $0x110] sm:$0xff]  ;;  %5585 = vmatpush3.bf16.msra.mxu1 %v5584_v14  ;;  %s9229_s25 = scalar_lea.vmem %s9259_s8, %s6639_s19 }
  0x16   : > { %644 = vst [vmem:[#allocation3 + $0x58] sm:$0x3] %v6337_v8  ;;  %645 = vst [vmem:[#allocation3 + $0x60] sm:$0xff] %v6337_v8  ;;  %v5586_v23 = vpack.c.bf16 %v873_v21, %v872_v20  ;;  %v857_v24 = vld [vmem:[%s9252_s1 + $0x118] sm:$0xff]  ;;  %v842_v25 = vld [vmem:[%s9252_s1 + $0xa0] sm:$0xff]  ;;  %5555 = vmatprep.subr.bf16.mxu0 %v5554_v18 }
  0x17   : > { %646 = vst [vmem:[#allocation3 + $0x68] sm:$0x3] %v6337_v8  ;;  %647 = vst [vmem:[#allocation3 + $0x70] sm:$0xff] %v6337_v8  ;;  %v843_v26 = vld [vmem:[%s9252_s1 + $0xa8] sm:$0xff]  ;;  %v5588_v27 = vpack.c.bf16 %v857_v24, %v856_v22  ;;  %v826_v29 = vld [vmem:[%s9252_s1 + $0x20] sm:$0xff]  ;;  %5557 = vmatpush3.bf16.msra.mxu0 %v5556_v19 }
  0x18   : > { %648 = vst [vmem:[#allocation3 + $0x78] sm:$0x3] %v6337_v8  ;;  %649 = vst [vmem:[#allocation3 + $0x80] sm:$0xff] %v6337_v8  ;;  %v5558_v28 = vpack.c.bf16 %v843_v26, %v842_v25  ;;  %v827_v30 = vld [vmem:[%s9252_s1 + $0x28] sm:$0xff]  ;;  %v874_v31 = vld [vmem:[%s9252_s1 + $0x1a0] sm:$0xff]  ;;  %5587 = vmatprep.subr.bf16.mxu1 %v5586_v23 }
  0x19   : > { %650 = vst [vmem:[#allocation3 + $0x88] sm:$0x3] %v6337_v8  ;;  %651 = vst [vmem:[#allocation3 + $0x90] sm:$0xff] %v6337_v8  ;;  %v875_v32 = vld [vmem:[%s9252_s1 + $0x1a8] sm:$0xff]  ;;  %v858_v33 = vld [vmem:[%s9252_s1 + $0x120] sm:$0xff]  ;;  %v5560_v35 = vpack.c.bf16 %v827_v30, %v826_v29  ;;  %5589 = vmatpush3.bf16.msra.mxu1 %v5588_v27 }
  0x1a   : > { %652 = vst [vmem:[#allocation3 + $0x98] sm:$0x3] %v6337_v8  ;;  %664 = vst [vmem:[#allocation4 + $0x10] sm:$0xff] %v6337_v8  ;;  %v859_v34 = vld [vmem:[%s9252_s1 + $0x128] sm:$0xff]  ;;  %v5590_v36 = vpack.c.bf16 %v875_v32, %v874_v31  ;;  %v844_v37 = vld [vmem:[%s9252_s1 + $0xb0] sm:$0xff]  ;;  %5559 = vmatprep.subr.bf16.mxu0 %v5558_v28 }
  0x1b   : > { %665 = vst [vmem:[#allocation4 + $0x18] sm:$0x3] %v6337_v8  ;;  %666 = vst [vmem:[#allocation4 + $0x20] sm:$0xff] %v6337_v8  ;;  %v845_v38 = vld [vmem:[%s9252_s1 + $0xb8] sm:$0xff]  ;;  %v828_v39 = vld [vmem:[%s9252_s1 + $0x30] sm:$0xff]  ;;  %v5592_v40 = vpack.c.bf16 %v859_v34, %v858_v33  ;;  %5561 = vmatpush3.bf16.msra.mxu0 %v5560_v35 }
  0x1c   : > { %667 = vst [vmem:[#allocation4 + $0x28] sm:$0x3] %v6337_v8  ;;  %668 = vst [vmem:[#allocation4 + $0x30] sm:$0xff] %v6337_v8  ;;  %v5562_v41 = vpack.c.bf16 %v845_v38, %v844_v37  ;;  %v829_v42 = vld [vmem:[%s9252_s1 + $0x38] sm:$0xff]  ;;  %v876_v43 = vld [vmem:[%s9252_s1 + $0x1b0] sm:$0xff]  ;;  %5591 = vmatprep.subr.bf16.mxu1 %v5590_v36 }
  0x1d   : > { %669 = vst [vmem:[#allocation4 + $0x38] sm:$0x3] %v6337_v8  ;;  %670 = vst [vmem:[#allocation4 + $0x40] sm:$0xff] %v6337_v8  ;;  %v877_v44 = vld [vmem:[%s9252_s1 + $0x1b8] sm:$0xff]  ;;  %v860_v46 = vld [vmem:[%s9252_s1 + $0x130] sm:$0xff]  ;;  %v5564_v50 = vpack.c.bf16 %v829_v42, %v828_v39  ;;  %5593 = vmatpush3.bf16.msra.mxu1 %v5592_v40 }
  0x1e   : > { %671 = vst [vmem:[#allocation4 + $0x48] sm:$0x3] %v6337_v8  ;;  %672 = vst [vmem:[#allocation4 + $0x50] sm:$0xff] %v6337_v8  ;;  %v5594_v45 = vpack.c.bf16 %v877_v44, %v876_v43  ;;  %v861_v47 = vld [vmem:[%s9252_s1 + $0x138] sm:$0xff]  ;;  %v846_v48 = vld [vmem:[%s9252_s1 + $0xc0] sm:$0xff]  ;;  %5563 = vmatprep.subr.bf16.mxu0 %v5562_v41 }
  0x1f   : > { %673 = vst [vmem:[#allocation4 + $0x58] sm:$0x3] %v6337_v8  ;;  %674 = vst [vmem:[#allocation4 + $0x60] sm:$0xff] %v6337_v8  ;;  %v847_v49 = vld [vmem:[%s9252_s1 + $0xc8] sm:$0xff]  ;;  %v878_v51 = vld [vmem:[%s9252_s1 + $0x1c0] sm:$0xff]  ;;  %v5596_v53 = vpack.c.bf16 %v861_v47, %v860_v46  ;;  %5565 = vmatpush3.bf16.msra.mxu0 %v5564_v50 }
  0x20   : > { %675 = vst [vmem:[#allocation4 + $0x68] sm:$0x3] %v6337_v8  ;;  %676 = vst [vmem:[#allocation4 + $0x70] sm:$0xff] %v6337_v8  ;;  %v879_v52 = vld [vmem:[%s9252_s1 + $0x1c8] sm:$0xff]  ;;  %v5566_v54 = vpack.c.bf16 %v847_v49, %v846_v48  ;;  %v830_v55 = vld [vmem:[%s9252_s1 + $0x40] sm:$0xff]  ;;  %5595 = vmatprep.subr.bf16.mxu1 %v5594_v45 }
  0x21   : > { %677 = vst [vmem:[#allocation4 + $0x78] sm:$0x3] %v6337_v8  ;;  %678 = vst [vmem:[#allocation4 + $0x80] sm:$0xff] %v6337_v8  ;;  %v831_v56 = vld [vmem:[%s9252_s1 + $0x48] sm:$0xff]  ;;  %v862_v57 = vld [vmem:[%s9252_s1 + $0x140] sm:$0xff]  ;;  %v5598_v58 = vpack.c.bf16 %v879_v52, %v878_v51  ;;  %5597 = vmatpush3.bf16.msra.mxu1 %v5596_v53 }
  0x22   : > { %679 = vst [vmem:[#allocation4 + $0x88] sm:$0x3] %v6337_v8  ;;  %680 = vst [vmem:[#allocation4 + $0x90] sm:$0xff] %v6337_v8  ;;  %v863_v59 = vld [vmem:[%s9252_s1 + $0x148] sm:$0xff]  ;;  %v848_v60 = vld [vmem:[%s9252_s1 + $0xd0] sm:$0xff]  ;;  %v5568_v0 = vpack.c.bf16 %v831_v56, %v830_v55  ;;  %5567 = vmatprep.subr.bf16.mxu0 %v5566_v54 }
  0x23   : > { %681 = vst [vmem:[#allocation4 + $0x98] sm:$0x3] %v6337_v8  ;;  %693 = vst [vmem:[#allocation5 + $0x10] sm:$0xff] %v6337_v8  ;;  %v849_v61 = vld [vmem:[%s9252_s1 + $0xd8] sm:$0xff]  ;;  %v880_v62 = vld [vmem:[%s9252_s1 + $0x1d0] sm:$0xff]  ;;  %v5600_v1 = vpack.c.bf16 %v863_v59, %v862_v57  ;;  %5599 = vmatprep.subr.bf16.mxu1 %v5598_v58 }
  0x24   : > { %694 = vst [vmem:[#allocation5 + $0x18] sm:$0x3] %v6337_v8  ;;  %695 = vst [vmem:[#allocation5 + $0x20] sm:$0xff] %v6337_v8  ;;  %v881_v63 = vld [vmem:[%s9252_s1 + $0x1d8] sm:$0xff]  ;;  %v5570_v2 = vpack.c.bf16 %v849_v61, %v848_v60  ;;  %v832_v3 = vld [vmem:[%s9252_s1 + $0x50] sm:$0xff]  ;;  %5569 = vmatpush3.bf16.msra.mxu0 %v5568_v0 }
  0x25   : > { %696 = vst [vmem:[#allocation5 + $0x28] sm:$0x3] %v6337_v8  ;;  %697 = vst [vmem:[#allocation5 + $0x30] sm:$0xff] %v6337_v8  ;;  %v833_v4 = vld [vmem:[%s9252_s1 + $0x58] sm:$0xff]  ;;  %v864_v5 = vld [vmem:[%s9252_s1 + $0x150] sm:$0xff]  ;;  %v5602_v6 = vpack.c.bf16 %v881_v63, %v880_v62  ;;  %5601 = vmatpush3.bf16.msra.mxu1 %v5600_v1 }
  0x26   : > { %698 = vst [vmem:[#allocation5 + $0x38] sm:$0x3] %v6337_v8  ;;  %699 = vst [vmem:[#allocation5 + $0x40] sm:$0xff] %v6337_v8  ;;  %v865_v7 = vld [vmem:[%s9252_s1 + $0x158] sm:$0xff]  ;;  %v850_v9 = vld [vmem:[%s9252_s1 + $0xe0] sm:$0xff]  ;;  %v5572_v13 = vpack.c.bf16 %v833_v4, %v832_v3  ;;  %5571 = vmatprep.subr.bf16.mxu0 %v5570_v2 }
  0x27   : > { %700 = vst [vmem:[#allocation5 + $0x48] sm:$0x3] %v6337_v8  ;;  %701 = vst [vmem:[#allocation5 + $0x50] sm:$0xff] %v6337_v8  ;;  %v851_v10 = vld [vmem:[%s9252_s1 + $0xe8] sm:$0xff]  ;;  %v882_v11 = vld [vmem:[%s9252_s1 + $0x1e0] sm:$0xff]  ;;  %v5604_v15 = vpack.c.bf16 %v865_v7, %v864_v5  ;;  %5603 = vmatprep.subr.bf16.mxu1 %v5602_v6 }
  0x28   : > { %702 = vst [vmem:[#allocation5 + $0x58] sm:$0x3] %v6337_v8  ;;  %703 = vst [vmem:[#allocation5 + $0x60] sm:$0xff] %v6337_v8  ;;  %v883_v12 = vld [vmem:[%s9252_s1 + $0x1e8] sm:$0xff]  ;;  %v5574_v16 = vpack.c.bf16 %v851_v10, %v850_v9  ;;  %v834_v17 = vld [vmem:[%s9252_s1 + $0x60] sm:$0xff]  ;;  %5573 = vmatpush3.bf16.msra.mxu0 %v5572_v13 }
  0x29   : > { %704 = vst [vmem:[#allocation5 + $0x68] sm:$0x3] %v6337_v8  ;;  %705 = vst [vmem:[#allocation5 + $0x70] sm:$0xff] %v6337_v8  ;;  %v758_v14 = vld [vmem:[#allocation5 + $0x1] sm:$0xff]  ;;  %v5606_v20 = vpack.c.bf16 %v883_v12, %v882_v11  ;;  %v852_v22 = vld [vmem:[%s9252_s1 + $0xf0] sm:$0xff]  ;;  %5605 = vmatpush3.bf16.msra.mxu1 %v5604_v15 }
  0x2a   : > { %706 = vst [vmem:[#allocation5 + $0x78] sm:$0x3] %v6337_v8  ;;  %707 = vst [vmem:[#allocation5 + $0x80] sm:$0xff] %v6337_v8  ;;  %v835_v18 = vld [vmem:[%s9252_s1 + $0x68] sm:$0xff]  ;;  %v866_v19 = vld [vmem:[%s9252_s1 + $0x160] sm:$0xff]  ;;  %1037 = vmatprep.mubr.f32.mxu0 %v758_v14  ;;  %5575 = vmatprep.subr.bf16.mxu0 %v5574_v16 }
  0x2b   : > { %708 = vst [vmem:[#allocation5 + $0x88] sm:$0x3] %v6337_v8  ;;  %720 = vst [vmem:[#allocation6] sm:$0xff] %v6337_v8  ;;  %v867_v21 = vld [vmem:[%s9252_s1 + $0x168] sm:$0xff]  ;;  %v853_v23 = vld [vmem:[%s9252_s1 + $0xf8] sm:$0xff]  ;;  %v5576_v27 = vpack.c.bf16 %v835_v18, %v834_v17  ;;  %5607 = vmatprep.subr.bf16.mxu1 %v5606_v20 }
  0x2c   : > { %721 = vst [vmem:[#allocation6 + $0x8] sm:$0x3] %v6337_v8  ;;  %722 = vst [vmem:[#allocation6 + $0x10] sm:$0xff] %v6337_v8  ;;  %v884_v24 = vld [vmem:[%s9252_s1 + $0x1f0] sm:$0xff]  ;;  %v885_v25 = vld [vmem:[%s9252_s1 + $0x1f8] sm:$0xff]  ;;  %v5608_v29 = vpack.c.bf16 %v867_v21, %v866_v19  ;;  %v5578_v30 = vpack.c.bf16 %v853_v23, %v852_v22 }
  0x2d   : > { %723 = vst [vmem:[#allocation6 + $0x18] sm:$0x3] %v6337_v8  ;;  %724 = vst [vmem:[#allocation6 + $0x20] sm:$0xff] %v6337_v8  ;;  %v345_v26 = vld [vmem:[%s6660_s11] sm:$0xff]  ;;  %v346_v28 = vld [vmem:[%s6660_s11 + $0x8] sm:$0xff]  ;;  %v5610_v34 = vpack.c.bf16 %v885_v25, %v884_v24  ;;  %5577 = vmatpush3.bf16.msra.mxu0 %v5576_v27 }
  0x2e   : > { %725 = vst [vmem:[#allocation6 + $0x28] sm:$0x3] %v6337_v8  ;;  %726 = vst [vmem:[#allocation6 + $0x30] sm:$0xff] %v6337_v8  ;;  %v836_v31 = vld [vmem:[%s9252_s1 + $0x70] sm:$0xff]  ;;  %v837_v32 = vld [vmem:[%s9252_s1 + $0x78] sm:$0xff]  ;;  %5609 = vmatpush3.bf16.msra.mxu1 %v5608_v29  ;;  %5579 = vmatprep.subr.bf16.mxu0 %v5578_v30  ;;  %v481_v46 = vmul.f32 0.5625, %v345_v26 }
  0x2f   : > { %727 = vst [vmem:[#allocation6 + $0x38] sm:$0x3] %v6337_v8  ;;  %728 = vst [vmem:[#allocation6 + $0x40] sm:$0xff] %v6337_v8  ;;  %v868_v33 = vld [vmem:[%s9252_s1 + $0x170] sm:$0xff]  ;;  %v869_v35 = vld [vmem:[%s9252_s1 + $0x178] sm:$0xff]  ;;  %v5580_v41 = vpack.c.bf16 %v837_v32, %v836_v31  ;;  %5611 = vmatprep.subr.bf16.mxu1 %v5610_v34  ;;  %v489_v59 = vmul.f32 0.1875, %v345_v26 }
  0x30   : > { %729 = vst [vmem:[#allocation6 + $0x48] sm:$0x3] %v6337_v8  ;;  %730 = vst [vmem:[#allocation6 + $0x50] sm:$0xff] %v6337_v8  ;;  %v902_v36 = vld [vmem:[%s9252_s1 + $0x280] sm:$0xff]  ;;  %v903_v37 = vld [vmem:[%s9252_s1 + $0x288] sm:$0xff]  ;;  %v5612_v42 = vpack.c.bf16 %v869_v35, %v868_v33  ;;  %v569_v63 = vmul.f32 0.1875, %v346_v28 }
  0x31   : > { %731 = vst [vmem:[#allocation6 + $0x58] sm:$0x3] %v6337_v8  ;;  %732 = vst [vmem:[#allocation6 + $0x60] sm:$0xff] %v6337_v8  ;;  %v934_v38 = vld [vmem:[%s9252_s1 + $0x380] sm:$0xff]  ;;  %v935_v39 = vld [vmem:[%s9252_s1 + $0x388] sm:$0xff]  ;;  %v5614_v43 = vpack.c.bf16 %v903_v37, %v902_v36  ;;  %5581 = vmatpush3.bf16.msra.mxu0 %v5580_v41  ;;  %v482_v1 = vmul.f32 0.5625, %v346_v28  ;;  %v6783_v16 = vadd.f32 %v489_v59, %v481_v46 }
  0x32   : > { %733 = vst [vmem:[#allocation6 + $0x68] sm:$0x3] %v6337_v8  ;;  %734 = vst [vmem:[#allocation6 + $0x70] sm:$0xff] %v6337_v8  ;;  %v347_v40 = vld [vmem:[%s6660_s11 + $0x10] sm:$0xff]  ;;  %v886_v44 = vld [vmem:[%s9252_s1 + $0x200] sm:$0xff]  ;;  %v5646_v47 = vpack.c.bf16 %v935_v39, %v934_v38  ;;  %5613 = vmatpush3.bf16.msra.mxu1 %v5612_v42  ;;  %v577_v21 = vadd.f32 %v569_v63, %v481_v46 }
  0x33   : > { %735 = vst [vmem:[#allocation6 + $0x78] sm:$0x3] %v6337_v8  ;;  %736 = vst [vmem:[#allocation6 + $0x80] sm:$0xff] %v6337_v8  ;;  %v887_v45 = vld [vmem:[%s9252_s1 + $0x208] sm:$0xff]  ;;  %v904_v48 = vld [vmem:[%s9252_s1 + $0x290] sm:$0xff]  ;;  %5615 = vmatprep.subr.bf16.mxu0 %v5614_v43  ;;  %v570_v5 = vmul.f32 0.1875, %v347_v40  ;;  %v6804_v22 = vadd.f32 %v489_v59, %v482_v1 }
  0x34   : > { %737 = vst [vmem:[#allocation6 + $0x88] sm:$0x3] %v6337_v8  ;;  %354 = vst [vmem:[#allocation2 + $0x11] sm:$0xff] %v345_v26  ;;  %v905_v49 = vld [vmem:[%s9252_s1 + $0x298] sm:$0xff]  ;;  %v6729_v54 = vld [vmem:[%s9252_s1 + $0x300] sm:$0xff]  ;;  %v5616_v58 = vpack.c.bf16 %v887_v45, %v886_v44  ;;  %5647 = vmatprep.subr.bf16.mxu1 %v5646_v47  ;;  %v483_v9 = vmul.f32 0.5625, %v347_v40  ;;  %1038 = vmatmul.mubr.f32.vlgmr.msra.gmra.mrb[0].mxu0 %v6337_v8 }
  0x35   : > { %363 = vst [vmem:[#allocation2 + $0x1] sm:$0xff] %v345_v26  ;;  %355 = vst [vmem:[#allocation2 + $0x21] sm:$0xff] %v346_v28  ;;  %v348_v50 = vld [vmem:[%s6660_s11 + $0x18] sm:$0xff]  ;;  %v6734_v55 = vld [vmem:[%s9252_s1 + $0x308] sm:$0xff]  ;;  %v5618_v0 = vpack.c.bf16 %v905_v49, %v904_v48  ;;  %v578_v25 = vadd.f32 %v570_v5, %v482_v1 }
  0x36   : > { %356 = vst [vmem:[#allocation2 + $0x31] sm:$0xff] %v347_v40  ;;  %v6739_v56 = vld [vmem:[%s9252_s1 + $0x210] sm:$0xff]  ;;  %v6744_v57 = vld [vmem:[%s9252_s1 + $0x218] sm:$0xff]  ;;  %357 = vst [vmem:[#allocation2 + $0x41] sm:$0xff] %v348_v50  ;;  %v6772_v10 = vmul.f32 0.1875, %v348_v50  ;;  %v6780_v14 = vmul.f32 0.5625, %v348_v50  ;;  %5617 = vmatpush3.bf16.msra.mxu0 %v5616_v58  ;;  %v6810_v27 = vadd.f32 %v569_v63, %v483_v9 }
  0x37   : > { %v6749_v62 = vld [vmem:[%s9252_s1 + $0x390] sm:$0xff]  ;;  %v6754_v2 = vld [vmem:[%s9252_s1 + $0x398] sm:$0xff]  ;;  %v906_v3 = vld [vmem:[%s9252_s1 + $0x2a0] sm:$0xff]  ;;  %v5620_v18 = vpack.c.bf16 %v6744_v57, %v6739_v56  ;;  %5619 = vmatprep.subr.bf16.mxu0 %v5618_v0 }
  0x38   : > { %v907_v4 = vld [vmem:[%s9252_s1 + $0x2a8] sm:$0xff]  ;;  %v6765_v6 = vld [vmem:[%s9252_s1 + $0x220] sm:$0xff]  ;;  %v6777_v11 = vld [vmem:[%s9252_s1 + $0x2b0] sm:$0xff]  ;;  %v6813_v29 = vadd.f32 %v6772_v10, %v483_v9  ;;  %v6832_v38 = vadd.f32 %v570_v5, %v6780_v14 }
  0x39   : > { %v6770_v7 = vld [vmem:[%s9252_s1 + $0x228] sm:$0xff]  ;;  %v349_v15 = vld [vmem:[%s6660_s11 + $0x20] sm:$0xff]  ;;  %v6792_v8 = vld [vmem:[%s9252_s1 + $0x2b8] sm:$0xff]  ;;  %v5622_v24 = vpack.c.bf16 %v907_v4, %v906_v3 }
  0x3a   : > { %v6797_v19 = vld [vmem:[%s9252_s1 + $0x230] sm:$0xff]  ;;  %v6802_v20 = vld [vmem:[%s9252_s1 + $0x238] sm:$0xff]  ;;  %358 = vst [vmem:[#allocation2 + $0x51] sm:$0xff] %v349_v15  ;;  %v5624_v26 = vpack.c.bf16 %v6770_v7, %v6765_v6  ;;  %v6818_v31 = vld [vmem:[%s9252_s1 + $0x2c0] sm:$0xff]  ;;  %v5626_v36 = vpack.c.bf16 %v6792_v8, %v6777_v11  ;;  %v6834_v39 = vmul.f32 0.1875, %v349_v15  ;;  %5621 = vmatpush3.bf16.msra.mxu0 %v5620_v18  ;;  %v6860_v58 = vmul.f32 0.5625, %v349_v15 }
  0x3b   : > { %v369_v51 = vld [vmem:[#allocation2 + $0x11] sm:$0x1]  ;;  %v389_v53 = vld [vmem:[#allocation2 + $0x18] sm:$0x1]  ;;  %v6823_v32 = vld [vmem:[%s9252_s1 + $0x2c8] sm:$0xff]  ;;  %v5628_v37 = vpack.c.bf16 %v6802_v20, %v6797_v19  ;;  %5623 = vmatprep.subr.bf16.mxu0 %v5622_v24 }
  0x3c   : > { %v388_v52 = vld [vmem:[#allocation2 + $0x8] sm:$0x1]  ;;  %379 = vst [vmem:[#allocation2 + $0x10] sm:$0x1] %v369_v51  ;;  %399 = vst [vmem:[#allocation2 + $0x19] sm:$0x1] %v389_v53  ;;  %v5630_v3 = vpack.c.bf16 %v6823_v32, %v6818_v31 }
  0x3d   : > { %398 = vst [vmem:[#allocation2 + $0x9] sm:$0x1] %v388_v52  ;;  %v370_v60 = vld [vmem:[#allocation2 + $0x21] sm:$0x1]  ;;  %v390_v61 = vld [vmem:[#allocation2 + $0x28] sm:$0x1] }
  0x3e   : > { %380 = vst [vmem:[#allocation2 + $0x20] sm:$0x1] %v370_v60  ;;  %400 = vst [vmem:[#allocation2 + $0x29] sm:$0x1] %v390_v61  ;;  %v371_v12 = vld [vmem:[#allocation2 + $0x31] sm:$0x1]  ;;  %5625 = vmatpush3.bf16.msra.mxu0 %v5624_v26 }
  0x3f   : > { %v391_v13 = vld [vmem:[#allocation2 + $0x38] sm:$0x1]  ;;  %381 = vst [vmem:[#allocation2 + $0x30] sm:$0x1] %v371_v12  ;;  %v372_v28 = vld [vmem:[#allocation2 + $0x41] sm:$0x1]  ;;  %5627 = vmatprep.subr.bf16.mxu0 %v5626_v36 }
  0x40   : > { %401 = vst [vmem:[#allocation2 + $0x39] sm:$0x1] %v391_v13  ;;  %v392_v30 = vld [vmem:[#allocation2 + $0x48] sm:$0x1]  ;;  %382 = vst [vmem:[#allocation2 + $0x40] sm:$0x1] %v372_v28 }
  0x41   : > { %402 = vst [vmem:[#allocation2 + $0x49] sm:$0x1] %v392_v30  ;;  %v6846_v50 = vld [vmem:[%s6660_s11 + $0x28] sm:$0xff]  ;;  %v6853_v56 = vld [vmem:[%s9252_s1 + $0x240] sm:$0xff]  ;;  %v373_v1 = vld [vmem:[#allocation2 + $0x51] sm:$0x1]  ;;  %v580_v30 = vadd.f32 %v6834_v39, %v6780_v14 }
  0x42   : > { %v6858_v57 = vld [vmem:[%s9252_s1 + $0x248] sm:$0xff]  ;;  %359 = vst [vmem:[#allocation2 + $0x61] sm:$0xff] %v6846_v50  ;;  %v6880_v9 = vld [vmem:[%s9252_s1 + $0x310] sm:$0xff]  ;;  %383 = vst [vmem:[#allocation2 + $0x50] sm:$0x1] %v373_v1  ;;  %v6911_v32 = vmul.f32 0.1875, %v6846_v50  ;;  %5629 = vmatpush3.bf16.msra.mxu0 %v5628_v37 }
  0x43   : > { %v6825_v33 = vld [vmem:[#allocation2 + $0x10] sm:$0xff]  ;;  %v393_v11 = vld [vmem:[#allocation2 + $0x58] sm:$0x1]  ;;  %v5632_v31 = vpack.c.bf16 %v6858_v57, %v6853_v56  ;;  %v6929_v14 = vld [vmem:[%s9252_s1 + $0x3a8] sm:$0xff]  ;;  %5631 = vmatprep.subr.bf16.mxu0 %v5630_v3 }
  0x44   : > { %v441_v34 = vld [vmem:[#allocation2 + $0x12] sm:$0xff]  ;;  %v457_v35 = vld [vmem:[#allocation2 + $0x2] sm:$0xff]  ;;  %v6837_v40 = vmul.f32 0.1875, %v6825_v33  ;;  %403 = vst [vmem:[#allocation2 + $0x59] sm:$0x1] %v393_v11 }
  0x45   : > { %v537_v41 = vmul.f32 0.1875, %v441_v34  ;;  %v553_v42 = vmul.f32 0.0625, %v457_v35  ;;  %v465_v43 = vld [vmem:[#allocation2 + $0x20] sm:$0xff]  ;;  %v554_v45 = vmul.f32 0.0625, %v441_v34  ;;  %v6887_v13 = vld [vmem:[%s9252_s1 + $0x318] sm:$0xff]  ;;  %v6914_v34 = vld [vmem:[%s6660_s11 + $0x30] sm:$0xff] }
  0x46   : > { %v473_v44 = vld [vmem:[#allocation2 + $0x22] sm:$0xff]  ;;  %v6839_v46 = vmul.f32 0.0625, %v465_v43  ;;  %v6843_v49 = vmul.f32 0.1875, %v465_v43  ;;  %v585_v52 = vadd.f32 %v577_v21, %v6837_v40  ;;  %v466_v60 = vld [vmem:[#allocation2 + $0x30] sm:$0xff]  ;;  %v913_v24 = vld [vmem:[%s9252_s1 + $0x2d8] sm:$0xff]  ;;  %360 = vst [vmem:[#allocation2 + $0x71] sm:$0xff] %v6914_v34  ;;  %5633 = vmatpush3.bf16.msra.mxu0 %v5632_v31 }
  0x47   : > { %v6841_v47 = vmul.f32 0.0625, %v473_v44  ;;  %v538_v48 = vmul.f32 0.1875, %v473_v44  ;;  %v545_v51 = vadd.f32 %v537_v41, %v6783_v16  ;;  %v609_v53 = vadd.f32 %v577_v21, %v537_v41  ;;  %v474_v63 = vld [vmem:[#allocation2 + $0x32] sm:$0xff]  ;;  %v467_v26 = vld [vmem:[#allocation2 + $0x40] sm:$0xff] }
  0x48   : > { %v586_v61 = vadd.f32 %v578_v25, %v6843_v49  ;;  %v6870_v5 = vadd.f32 %v6839_v46, %v585_v52  ;;  %v6875_v7 = vmul.f32 0.0625, %v466_v60  ;;  %v6889_v15 = vmul.f32 0.0625, %v474_v63  ;;  %v912_v21 = vld [vmem:[%s9252_s1 + $0x2d0] sm:$0xff]  ;;  %v475_v28 = vld [vmem:[#allocation2 + $0x42] sm:$0xff]  ;;  %v897_v1 = vld [vmem:[%s9252_s1 + $0x258] sm:$0xff] }
  0x49   : > { %v546_v59 = vadd.f32 %v538_v48, %v6804_v22  ;;  %v610_v0 = vadd.f32 %v578_v25, %v538_v48  ;;  %v6867_v4 = vadd.f32 %v553_v42, %v545_v51  ;;  %v6873_v6 = vadd.f32 %v6841_v47, %v609_v53  ;;  %v6924_v41 = vld [vmem:[%s9252_s1 + $0x3a0] sm:$0xff]  ;;  %v896_v20 = vld [vmem:[%s9252_s1 + $0x250] sm:$0xff]  ;;  %v6983_v11 = vld [vmem:[%s6660_s11 + $0x38] sm:$0xff] }
  0x4a   : > { %v539_v18 = vmul.f32 0.1875, %v474_v63  ;;  %v6891_v8 = vmul.f32 0.1875, %v466_v60  ;;  %712 = vst [vmem:[#allocation5 + $0x11] sm:$0xff] %v6870_v5  ;;  %1042 = vmatprep.mubr.f32.mxu0 %v6870_v5  ;;  %v6904_v25 = vadd.f32 %v6875_v7, %v586_v61  ;;  %v6933_v43 = vmul.f32 0.0625, %v467_v26  ;;  %v6940_v44 = vld [vmem:[%s9252_s1 + $0x320] sm:$0xff]  ;;  %361 = vst [vmem:[#allocation2 + $0x81] sm:$0xff] %v6983_v11 }
  0x4b   : > { %v6882_v12 = vadd.f32 %v554_v45, %v546_v59  ;;  %683 = vst [vmem:[#allocation4 + $0x11] sm:$0xff] %v6867_v4  ;;  %741 = vst [vmem:[#allocation6 + $0x11] sm:$0xff] %v6873_v6  ;;  %v6918_v35 = vadd.f32 %v6889_v15, %v610_v0  ;;  %v6945_v45 = vld [vmem:[%s9252_s1 + $0x328] sm:$0xff]  ;;  %v6948_v51 = vmul.f32 0.0625, %v475_v28  ;;  %v540_v52 = vmul.f32 0.1875, %v475_v28  ;;  %v914_v3 = vld [vmem:[%s9252_s1 + $0x2e0] sm:$0xff] }
  0x4c   : > { %9287 = vst [vmem:[#allocation8_spill] sm:$0xff] %v6904_v25  ;;  %v547_v36 = vadd.f32 %v539_v18, %v6810_v27  ;;  %v587_v42 = vadd.f32 %v6813_v29, %v6891_v8  ;;  %713 = vst [vmem:[#allocation5 + $0x21] sm:$0xff] %v6904_v25  ;;  %v611_v48 = vadd.f32 %v6813_v29, %v539_v18  ;;  %v6953_v53 = vmul.f32 0.1875, %v467_v26  ;;  %v374_v59 = vld [vmem:[#allocation2 + $0x61] sm:$0x1]  ;;  %v468_v18 = vld [vmem:[#allocation2 + $0x50] sm:$0xff] }
  0x4d   : > { %684 = vst [vmem:[#allocation4 + $0x21] sm:$0xff] %v6882_v12  ;;  %742 = vst [vmem:[#allocation6 + $0x21] sm:$0xff] %v6918_v35  ;;  %v394_v60 = vld [vmem:[#allocation2 + $0x68] sm:$0x1]  ;;  %v6964_v19 = vpack.c.bf16 %v913_v24, %v912_v21  ;;  %v548_v63 = vadd.f32 %v540_v52, %v6832_v38  ;;  %v612_v21 = vadd.f32 %v580_v30, %v540_v52  ;;  %v486_v26 = vmul.f32 0.5625, %v6846_v50  ;;  %v917_v56 = vld [vmem:[%s9252_s1 + $0x2f8] sm:$0xff] }
  0x4e   : > { %v6959_v57 = vadd.f32 %v6841_v47, %v547_v36  ;;  %v6962_v29 = vadd.f32 %v6933_v43, %v587_v42  ;;  %v766_v37 = vld [vmem:[#allocation6 + $0x1] sm:$0xff]  ;;  %v6972_v47 = vadd.f32 %v6948_v51, %v611_v48  ;;  %v588_v0 = vadd.f32 %v580_v30, %v6953_v53  ;;  %384 = vst [vmem:[#allocation2 + $0x60] sm:$0x1] %v374_v59  ;;  %v476_v30 = vld [vmem:[#allocation2 + $0x52] sm:$0xff] }
  0x4f   : > { %9289 = vst [vmem:[#allocation10_spill] sm:$0xff] %v6964_v19  ;;  %404 = vst [vmem:[#allocation2 + $0x69] sm:$0x1] %v394_v60  ;;  %v6989_v24 = vadd.f32 %v6772_v10, %v6860_v58  ;;  %v6993_v28 = vmul.f32 0.1875, %v6914_v34  ;;  %v915_v36 = vld [vmem:[%s9252_s1 + $0x2e8] sm:$0xff]  ;;  %v898_v42 = vld [vmem:[%s9252_s1 + $0x260] sm:$0xff]  ;;  %v7005_v10 = vadd.f32 %v6889_v15, %v548_v63  ;;  %v581_v52 = vadd.f32 %v6911_v32, %v6860_v58 }
  0x50   : > { %9288 = vst [vmem:[#allocation9_spill] sm:$0xff] %v6959_v57  ;;  %685 = vst [vmem:[#allocation4 + $0x31] sm:$0xff] %v6959_v57  ;;  %v7007_v50 = vmul.f32 0.0625, %v468_v18  ;;  %v7009_v48 = vmul.f32 0.1875, %v468_v18  ;;  %v899_v59 = vld [vmem:[%s9252_s1 + $0x268] sm:$0xff]  ;;  %v916_v60 = vld [vmem:[%s9252_s1 + $0x2f0] sm:$0xff]  ;;  %5635 = vmatprep.subr.bf16.mxu0 %v6964_v19  ;;  %v7026_v58 = vpack.c.bf16 %v897_v1, %v896_v20  ;;  %v7037_v63 = vadd.f32 %v6834_v39, %v486_v26 }
  0x51   : > { %714 = vst [vmem:[#allocation5 + $0x31] sm:$0xff] %v6962_v29  ;;  %367 = vst [vmem:[#allocation2 + $0x91] sm:$0xff] %v6983_v11  ;;  %v7023_v31 = vmul.f32 0.0625, %v476_v30  ;;  %v541_v18 = vmul.f32 0.1875, %v476_v30  ;;  %v375_v30 = vld [vmem:[#allocation2 + $0x71] sm:$0x1]  ;;  %v7039_v20 = vpack.c.bf16 %v915_v36, %v914_v3  ;;  %v582_v3 = vadd.f32 %v6993_v28, %v486_v26 }
  0x52   : > { %743 = vst [vmem:[#allocation6 + $0x31] sm:$0xff] %v6972_v47  ;;  %9290 = vst [vmem:[#allocation11_spill] sm:$0xff] %v7005_v10  ;;  %v774_v61 = vld [vmem:[#allocation4 + $0x10] sm:$0xff]  ;;  %v7034_v17 = vadd.f32 %v7007_v50, %v588_v0  ;;  %v395_v19 = vld [vmem:[#allocation2 + $0x78] sm:$0x1]  ;;  %v9292_v36 = vpack.c.bf16 %v6734_v55, %v6729_v54  ;;  %v589_v57 = vadd.f32 %v581_v52, %v7009_v48  ;;  %5637 = vmatpush3.bf16.msra.mxu0 %v7026_v58 }
  0x53   : > { %v7019_v15 = vld [vmem:[#allocation6 + $0x10] sm:$0xff]  ;;  %1142 = vmatprep.mubr.f32.mxu1 %v774_v61  ;;  %686 = vst [vmem:[#allocation4 + $0x41] sm:$0xff] %v7005_v10  ;;  %9291 = vst [vmem:[#allocation12_spill] sm:$0xff] %v7039_v20  ;;  %v7050_v0 = vld [vmem:[%s9252_s1 + $0x3b8] sm:$0xff]  ;;  %v7058_v1 = vadd.f32 %v7023_v31, %v612_v21  ;;  %v9294_v54 = vpack.c.bf16 %v6754_v2, %v6749_v62  ;;  %v7093_v62 = vpack.c.bf16 %v917_v56, %v916_v60 }
  0x54   : > { %1043 = vmatmul.mubr.f32.gmra.mrb[2].mxu0 %v7019_v15  ;;  %v775_v23 = vld [vmem:[#allocation4 + $0x20] sm:$0xff]  ;;  %1143 = vmatmul.mubr.f32.vlgmr.msra.gmra.mrb[0].mxu1 %v766_v37  ;;  %v7045_v61 = vld [vmem:[%s9252_s1 + $0x3b0] sm:$0xff]  ;;  %v549_v37 = vadd.f32 %v541_v18, %v6989_v24  ;;  %385 = vst [vmem:[#allocation2 + $0x70] sm:$0x1] %v375_v30  ;;  %405 = vst [vmem:[#allocation2 + $0x79] sm:$0x1] %v395_v19  ;;  %v613_v30 = vadd.f32 %v581_v52, %v541_v18 }
  0x55   : > { %1047 = vmatprep.mubr.f32.mxu0 %v6904_v25  ;;  %v7055_v39 = vld [vmem:[%s9252_s1 + $0x330] sm:$0xff]  ;;  %5649 = vmatpush3.bf16.msra.mxu1 %v9292_v36  ;;  %v7065_v10 = vld [vmem:[#allocation6 + $0x20] sm:$0xff]  ;;  %715 = vst [vmem:[#allocation5 + $0x41] sm:$0xff] %v7034_v17  ;;  %v7071_v21 = vld [vmem:[%s9252_s1 + $0x338] sm:$0xff]  ;;  %v7074_v25 = vpack.c.bf16 %v899_v59, %v898_v42  ;;  %v487_v42 = vmul.f32 0.5625, %v6914_v34  ;;  %v7091_v52 = vmul.f32 0.1875, %v6983_v11  ;;  %v7110_v56 = vadd.f32 %v6837_v40, %v6783_v16 }
  0x56   : > { %1147 = vmatprep.mubr.f32.mxu1 %v775_v23  ;;  %v368_v19 = vld [vmem:[#allocation2 + $0x1] sm:$0x1]  ;;  %5651 = vmatprep.subr.bf16.mxu1 %v9294_v54  ;;  %744 = vst [vmem:[#allocation6 + $0x41] sm:$0xff] %v7058_v1  ;;  %v7081_v55 = vadd.f32 %v6948_v51, %v549_v37  ;;  %v477_v36 = vld [vmem:[#allocation2 + $0x62] sm:$0xff]  ;;  %9295 = vst [vmem:[#allocation14_spill] sm:$0xff] %v7093_v62  ;;  %v9296_v16 = vpack.c.bf16 %v6887_v13, %v6880_v9  ;;  %v7135_v54 = vmul.f32 0.5625, %v6983_v11 }
  0x57   : > { %9293 = vst [vmem:[#allocation13_spill] sm:$0xff] %v7074_v25  ;;  %v7086_v23 = vld [vmem:[%s9252_s1 + $0x3c0] sm:$0xff]  ;;  %378 = vst [vmem:[#allocation2] sm:$0x1] %v368_v19  ;;  %v776_v2 = vld [vmem:[#allocation4 + $0x30] sm:$0xff]  ;;  %v7103_v18 = vmul.f32 0.0625, %v477_v36  ;;  %5639 = vmatprep.subr.bf16.mxu0 %v7039_v20  ;;  %v5658_v19 = vpack.c.bf16 %v7050_v0, %v7045_v61  ;;  %v9297_v9 = vpack.c.bf16 %v6929_v14, %v6924_v41 }
  0x58   : > { %v469_v26 = vld [vmem:[#allocation2 + $0x60] sm:$0xff]  ;;  %1048 = vmatmul.mubr.f32.gmra.mrb[4].mxu0 %v7065_v10  ;;  %v7099_v51 = vld [vmem:[%s9252_s1 + $0x3c8] sm:$0xff]  ;;  %v542_v37 = vmul.f32 0.1875, %v477_v36  ;;  %1148 = vmatmul.mubr.f32.gmra.mrb[2].mxu1 %v6873_v6  ;;  %687 = vst [vmem:[#allocation4 + $0x51] sm:$0xff] %v7081_v55  ;;  %v900_v0 = vld [vmem:[%s9252_s1 + $0x270] sm:$0xff] }
  0x59   : > { %v7101_v59 = vmul.f32 0.0625, %v469_v26  ;;  %v7105_v34 = vmul.f32 0.1875, %v469_v26  ;;  %1052 = vmatprep.mubr.f32.mxu0 %v6962_v29  ;;  %v7114_v60 = vld [vmem:[#allocation6 + $0x30] sm:$0xff]  ;;  %v376_v26 = vld [vmem:[#allocation2 + $0x81] sm:$0x1]  ;;  %5653 = vmatpush3.bf16.msra.mxu1 %v9296_v16  ;;  %v7128_v6 = vadd.f32 %v7103_v18, %v613_v30  ;;  %v5662_v41 = vpack.c.bf16 %v7099_v51, %v7086_v23 }
  0x5a   : > { %v396_v36 = vld [vmem:[#allocation2 + $0x88] sm:$0x1]  ;;  %1152 = vmatprep.mubr.f32.mxu1 %v776_v2  ;;  %v550_v61 = vadd.f32 %v542_v37, %v7037_v63  ;;  %386 = vst [vmem:[#allocation2 + $0x80] sm:$0x1] %v376_v26  ;;  %5655 = vmatprep.subr.bf16.mxu1 %v9297_v9  ;;  %v777_v13 = vld [vmem:[#allocation4 + $0x40] sm:$0xff]  ;;  %v614_v30 = vadd.f32 %v582_v3, %v542_v37  ;;  %v901_v26 = vld [vmem:[%s9252_s1 + $0x278] sm:$0xff] }
  0x5b   : > { %v7125_v40 = vadd.f32 %v7101_v59, %v589_v57  ;;  %406 = vst [vmem:[#allocation2 + $0x89] sm:$0x1] %v396_v36  ;;  %v590_v57 = vadd.f32 %v582_v3, %v7105_v34  ;;  %5641 = vmatpush3.bf16.msra.mxu0 %v7074_v25  ;;  %v7143_v2 = vadd.f32 %v6911_v32, %v487_v42  ;;  %v950_v11 = vld [vmem:[%s9252_s1 + $0x400] sm:$0xff]  ;;  %745 = vst [vmem:[#allocation6 + $0x51] sm:$0xff] %v7128_v6  ;;  %v470_v14 = vld [vmem:[#allocation2 + $0x70] sm:$0xff] }
  0x5c   : > { %1053 = vmatmul.mubr.f32.gmra.mrb[6].mxu0 %v7114_v60  ;;  %v7157_v32 = vadd.f32 %v7023_v31, %v550_v61  ;;  %v478_v3 = vld [vmem:[#allocation2 + $0x72] sm:$0xff]  ;;  %v583_v37 = vadd.f32 %v7091_v52, %v487_v42  ;;  %5643 = vmatprep.subr.bf16.mxu0 %v7093_v62  ;;  %v951_v36 = vld [vmem:[%s9252_s1 + $0x408] sm:$0xff]  ;;  %v522_v16 = vmul.f32 0.0625, %v6825_v33  ;;  %v7170_v31 = vld [vmem:[%s9252_s1 + $0x340] sm:$0xff]  ;;  %v7172_v23 = vmul.f32 0.0625, %v470_v14 }
  0x5d   : > { %716 = vst [vmem:[#allocation5 + $0x51] sm:$0xff] %v7125_v40  ;;  %1153 = vmatmul.mubr.f32.gmra.mrb[4].mxu1 %v6918_v35  ;;  %1057 = vmatprep.mubr.f32.mxu0 %v7034_v17  ;;  %v7174_v42 = vmul.f32 0.0625, %v478_v3  ;;  %v543_v51 = vmul.f32 0.1875, %v478_v3  ;;  %v7176_v61 = vmul.f32 0.1875, %v470_v14  ;;  %v9298_v9 = vpack.c.bf16 %v6945_v45, %v6940_v44  ;;  %v7181_v33 = vld [vmem:[#allocation6 + $0x40] sm:$0xff]  ;;  %v927_v35 = vld [vmem:[%s9252_s1 + $0x348] sm:$0xff] }
  0x5e   : > { %1157 = vmatprep.mubr.f32.mxu1 %v777_v13  ;;  %688 = vst [vmem:[#allocation4 + $0x61] sm:$0xff] %v7157_v32  ;;  %v7187_v62 = vpack.c.bf16 %v901_v26, %v900_v0  ;;  %v7191_v3 = vadd.f32 %v6993_v28, %v7135_v54  ;;  %v449_v14 = vld [vmem:[#allocation2] sm:$0xff]  ;;  %v514_v44 = vadd.f32 %v6843_v49, %v6804_v22  ;;  %v944_v28 = vld [vmem:[%s9252_s1 + $0x3d0] sm:$0xff]  ;;  %v945_v22 = vld [vmem:[%s9252_s1 + $0x3d8] sm:$0xff] }
  0x5f   : > { %5657 = vmatpush3.bf16.msra.mxu1 %v9298_v9  ;;  %v7196_v45 = vadd.f32 %v7172_v23, %v590_v57  ;;  %v7199_v13 = vadd.f32 %v7174_v42, %v614_v30  ;;  %v551_v9 = vadd.f32 %v543_v51, %v7143_v2  ;;  %v7202_v25 = vpack.c.bf16 %v951_v36, %v950_v11  ;;  %v778_v0 = vld [vmem:[#allocation4 + $0x50] sm:$0xff] }
  0x60   : > { %5659 = vmatprep.subr.bf16.mxu1 %v5658_v19  ;;  %1058 = vmatmul.mubr.f32.gmra.mrb[8].mxu0 %v7181_v33  ;;  %v591_v49 = vadd.f32 %v583_v37, %v7176_v61  ;;  %v615_v19 = vadd.f32 %v583_v37, %v543_v51  ;;  %v521_v57 = vmul.f32 0.0625, %v449_v14  ;;  %v7212_v30 = vadd.f32 %v522_v16, %v514_v44 }
  0x61   : > { %1158 = vmatmul.mubr.f32.gmra.mrb[6].mxu1 %v6972_v47  ;;  %1062 = vmatprep.mubr.f32.mxu0 %v7125_v40  ;;  %v5664_v26 = vpack.c.bf16 %v927_v35, %v7170_v31  ;;  %717 = vst [vmem:[#allocation5 + $0x61] sm:$0xff] %v7196_v45  ;;  %746 = vst [vmem:[#allocation6 + $0x61] sm:$0xff] %v7199_v13  ;;  %v7220_v11 = vadd.f32 %v7103_v18, %v551_v9  ;;  %v471_v36 = vld [vmem:[#allocation2 + $0x80] sm:$0xff] }
  0x62   : > { %v479_v20 = vld [vmem:[#allocation2 + $0x82] sm:$0xff]  ;;  %v515_v37 = vadd.f32 %v6891_v8, %v6810_v27  ;;  %v9299_v16 = vpack.c.bf16 %v7071_v21, %v7055_v39  ;;  %1162 = vmatprep.mubr.f32.mxu1 %v778_v0  ;;  %v599_v51 = vmul.f32 0.0625, %v471_v36  ;;  %v7230_v35 = vadd.f32 %v521_v57, %v7110_v56  ;;  %655 = vst [vmem:[#allocation3 + $0x21] sm:$0xff] %v7212_v30  ;;  %v7233_v18 = vld [vmem:[#allocation6 + $0x50] sm:$0xff]  ;;  %v929_v8 = vld [vmem:[%s9252_s1 + $0x358] sm:$0xff] }
  0x63   : > { %v623_v14 = vmul.f32 0.0625, %v479_v20  ;;  %v7227_v31 = vmul.f32 0.1875, %v479_v20  ;;  %v5666_v44 = vpack.c.bf16 %v945_v22, %v944_v28  ;;  %v928_v27 = vld [vmem:[%s9252_s1 + $0x350] sm:$0xff]  ;;  %689 = vst [vmem:[#allocation4 + $0x71] sm:$0xff] %v7220_v11  ;;  %5645 = vmatpush3.bf16.msra.mxu0 %v7187_v62  ;;  %v946_v39 = vld [vmem:[%s9252_s1 + $0x3e0] sm:$0xff]  ;;  %v947_v21 = vld [vmem:[%s9252_s1 + $0x3e8] sm:$0xff]  ;;  %v516_v0 = vadd.f32 %v6953_v53, %v6832_v38 }
  0x64   : > { %5661 = vmatpush3.bf16.msra.mxu1 %v9299_v16  ;;  %v7244_v20 = vadd.f32 %v6839_v46, %v515_v37  ;;  %1063 = vmatmul.mubr.f32.gmra.mrb[10].mxu0 %v7233_v18  ;;  %v7253_v56 = vadd.f32 %v599_v51, %v591_v49  ;;  %654 = vst [vmem:[#allocation3 + $0x11] sm:$0xff] %v7230_v35  ;;  %v7266_v28 = vmul.f32 0.1875, %v471_v36  ;;  %v930_v57 = vld [vmem:[%s9252_s1 + $0x360] sm:$0xff]  ;;  %v931_v38 = vld [vmem:[%s9252_s1 + $0x368] sm:$0xff]  ;;  %v949_v37 = vld [vmem:[%s9252_s1 + $0x3f8] sm:$0xff] }
  0x65   : > { %5663 = vmatprep.subr.bf16.mxu1 %v5662_v41  ;;  %v7255_v41 = vadd.f32 %v623_v14, %v615_v19  ;;  %v552_v9 = vadd.f32 %v7227_v31, %v7191_v3  ;;  %5679 = vmatprep.subr.bf16.mxu0 %v7202_v25  ;;  %v779_v46 = vld [vmem:[#allocation4 + $0x60] sm:$0xff]  ;;  %v5668_v22 = vpack.c.bf16 %v929_v8, %v928_v27  ;;  %v1698_v27 = vld [vmem:[%s9252_s1 + $0x88] sm:$0xff] }
  0x66   : > { %1163 = vmatmul.mubr.f32.gmra.mrb[8].mxu1 %v7058_v1  ;;  %1067 = vmatprep.mubr.f32.mxu0 %v7196_v45  ;;  %656 = vst [vmem:[#allocation3 + $0x31] sm:$0xff] %v7244_v20  ;;  %718 = vst [vmem:[#allocation5 + $0x71] sm:$0xff] %v7253_v56  ;;  %v5670_v19 = vpack.c.bf16 %v947_v21, %v946_v39  ;;  %v7280_v53 = vadd.f32 %v6875_v7, %v516_v0  ;;  %v952_v39 = vld [vmem:[%s9252_s1 + $0x410] sm:$0xff]  ;;  %v953_v21 = vld [vmem:[%s9252_s1 + $0x418] sm:$0xff] }
  0x67   : > { %1167 = vmatprep.mubr.f32.mxu1 %v779_v46  ;;  %747 = vst [vmem:[#allocation6 + $0x71] sm:$0xff] %v7255_v41  ;;  %v7271_v49 = vadd.f32 %v7174_v42, %v552_v9  ;;  %v948_v42 = vld [vmem:[%s9252_s1 + $0x3f0] sm:$0xff]  ;;  %v518_v16 = vadd.f32 %v7105_v34, %v7037_v63  ;;  %v519_v7 = vadd.f32 %v7176_v61, %v7143_v2  ;;  %v1681_v46 = vld [vmem:[%s9252_s1] sm:$0xff]  ;;  %v1682_v0 = vld [vmem:[%s9252_s1 + $0x8] sm:$0xff] }
  0x68   : > { %5665 = vmatpush3.bf16.msra.mxu1 %v5664_v26  ;;  %v517_v26 = vadd.f32 %v7009_v48, %v6989_v24  ;;  %v7284_v36 = vld [vmem:[#allocation6 + $0x60] sm:$0xff]  ;;  %657 = vst [vmem:[#allocation3 + $0x41] sm:$0xff] %v7280_v53  ;;  %v520_v48 = vadd.f32 %v7266_v28, %v7191_v3  ;;  %v5672_v63 = vpack.c.bf16 %v931_v38, %v930_v57  ;;  %v933_v3 = vld [vmem:[%s9252_s1 + $0x378] sm:$0xff] }
  0x69   : > { %5667 = vmatprep.subr.bf16.mxu1 %v5666_v44  ;;  %690 = vst [vmem:[#allocation4 + $0x81] sm:$0xff] %v7271_v49  ;;  %1068 = vmatmul.mubr.f32.gmra.mrb[12].mxu0 %v7284_v36  ;;  %v7307_v34 = vadd.f32 %v7007_v50, %v518_v16  ;;  %v7310_v2 = vadd.f32 %v7101_v59, %v519_v7  ;;  %v1697_v50 = vld [vmem:[%s9252_s1 + $0x80] sm:$0xff]  ;;  %v377_v59 = vld [vmem:[#allocation2 + $0x91] sm:$0x1]  ;;  %v1700_v38 = vld [vmem:[%s9252_s1 + $0x98] sm:$0xff] }
  0x6a   : > { %1168 = vmatmul.mubr.f32.gmra.mrb[10].mxu1 %v7128_v6  ;;  %v7301_v24 = vadd.f32 %v6933_v43, %v517_v26  ;;  %v780_v51 = vld [vmem:[#allocation4 + $0x70] sm:$0xff]  ;;  %1072 = vmatprep.mubr.f32.mxu0 %v7253_v56  ;;  %v5674_v61 = vpack.c.bf16 %v949_v37, %v948_v42  ;;  %v7320_v14 = vadd.f32 %v7172_v23, %v520_v48  ;;  %v397_v23 = vld [vmem:[#allocation2 + $0x98] sm:$0x1] }
  0x6b   : > { %1172 = vmatprep.mubr.f32.mxu1 %v780_v51  ;;  %v932_v43 = vld [vmem:[%s9252_s1 + $0x370] sm:$0xff]  ;;  %659 = vst [vmem:[#allocation3 + $0x61] sm:$0xff] %v7307_v34  ;;  %660 = vst [vmem:[#allocation3 + $0x71] sm:$0xff] %v7310_v2  ;;  %v7351_v57 = vpack.c.bf16 %v953_v21, %v952_v39  ;;  %v5712_v26 = vpack.c.bf16 %v1682_v0, %v1681_v46  ;;  %v1684_v37 = vld [vmem:[%s9252_s1 + $0x18] sm:$0xff] }
  0x6c   : > { %5669 = vmatpush3.bf16.msra.mxu1 %v5668_v22  ;;  %658 = vst [vmem:[#allocation3 + $0x51] sm:$0xff] %v7301_v24  ;;  %661 = vst [vmem:[#allocation3 + $0x81] sm:$0xff] %v7320_v14  ;;  %v5676_v8 = vpack.c.bf16 %v933_v3, %v932_v43  ;;  %v5710_v22 = vpack.c.bf16 %v1698_v27, %v1697_v50  ;;  %v1683_v42 = vld [vmem:[%s9252_s1 + $0x10] sm:$0xff]  ;;  %v957_v43 = vld [vmem:[%s9252_s1 + $0x438] sm:$0xff] }
  0x6d   : > { %5671 = vmatprep.subr.bf16.mxu1 %v5670_v19  ;;  %387 = vst [vmem:[#allocation2 + $0x90] sm:$0x1] %v377_v59  ;;  %407 = vst [vmem:[#allocation2 + $0x99] sm:$0x1] %v397_v23  ;;  %v584_v19 = vadd.f32 %v7091_v52, %v7135_v54  ;;  %v954_v52 = vld [vmem:[%s9252_s1 + $0x420] sm:$0xff]  ;;  %v955_v54 = vld [vmem:[%s9252_s1 + $0x428] sm:$0xff] }
  0x6e   : > { %1173 = vmatmul.mubr.f32.gmra.mrb[12].mxu1 %v7199_v13  ;;  %v7328_v44 = vld [vmem:[#allocation6 + $0x70] sm:$0xff]  ;;  %v9300_v50 = vld [vmem:[#allocation8_spill] sm:$0xff]  ;;  %v1704_v0 = vld [vmem:[%s9252_s1 + $0xb8] sm:$0xff] }
  0x6f   : > { %1073 = vmatmul.mubr.f32.gmra.mrb[14].mxu0 %v7328_v44  ;;  %v592_v16 = vadd.f32 %v584_v19, %v7266_v28  ;;  %v616_v51 = vadd.f32 %v584_v19, %v7227_v31  ;;  %v1702_v28 = vld [vmem:[%s9252_s1 + $0xa8] sm:$0xff]  ;;  %v5716_v31 = vpack.c.bf16 %v1684_v37, %v1683_v42  ;;  %v1685_v59 = vld [vmem:[%s9252_s1 + $0x20] sm:$0xff]  ;;  %v1703_v46 = vld [vmem:[%s9252_s1 + $0xb0] sm:$0xff] }
  0x70   : > { %5673 = vmatpush3.bf16.msra.mxu1 %v5672_v63  ;;  %v781_v9 = vld [vmem:[#allocation4 + $0x80] sm:$0xff]  ;;  %1247 = vmatprep.mubr.f32.mxu0 %v6867_v4  ;;  %v1699_v4 = vld [vmem:[%s9252_s1 + $0x90] sm:$0xff]  ;;  %v1686_v27 = vld [vmem:[%s9252_s1 + $0x28] sm:$0xff] }
  0x71   : > { %5675 = vmatprep.subr.bf16.mxu1 %v5674_v61  ;;  %1177 = vmatprep.mubr.f32.mxu1 %v781_v9  ;;  %v5714_v7 = vpack.c.bf16 %v1700_v38, %v1699_v4  ;;  %v1701_v63 = vld [vmem:[%s9252_s1 + $0xa0] sm:$0xff]  ;;  %v959_v19 = vld [vmem:[%s9252_s1 + $0x448] sm:$0xff]  ;;  %v1687_v4 = vld [vmem:[%s9252_s1 + $0x30] sm:$0xff] }
  0x72   : > { %1178 = vmatmul.mubr.f32.gmra.mrb[14].mxu1 %v7255_v41  ;;  %v5718_v39 = vpack.c.bf16 %v1702_v28, %v1701_v63  ;;  %v1688_v38 = vld [vmem:[%s9252_s1 + $0x38] sm:$0xff]  ;;  %v1706_v42 = vld [vmem:[%s9252_s1 + $0xc8] sm:$0xff] }
  0x73   : > { %1248 = vmatmul.mubr.f32.vlgmr.msra.gmra.mrb[16].mxu0 %v7230_v35  ;;  %1352 = vmatprep.mubr.f32.mxu1 %v6870_v5  ;;  %v7379_v5 = vpack.c.bf16 %v955_v54, %v954_v52  ;;  %v5722_v52 = vpack.c.bf16 %v1704_v0, %v1703_v46  ;;  %v5724_v37 = vpack.c.bf16 %v1688_v38, %v1687_v4  ;;  %v1708_v28 = vld [vmem:[%s9252_s1 + $0xd8] sm:$0xff]  ;;  %v1711_v46 = vld [vmem:[%s9252_s1 + $0xf0] sm:$0xff]  ;;  %v1713_v38 = vld [vmem:[%s9252_s1 + $0x100] sm:$0xff] }
  0x74   : > { %5677 = vmatpush3.bf16.msra.mxu1 %v5676_v8  ;;  %5681 = vmatpush3.bf16.msra.mxu0 %v7202_v25  ;;  %v472_v48 = vld [vmem:[#allocation2 + $0x90] sm:$0xff]  ;;  %v1712_v0 = vld [vmem:[%s9252_s1 + $0xf8] sm:$0xff] }
  0x75   : > { %5711 = vmatprep.subr.bf16.mxu1 %v5710_v22  ;;  %1252 = vmatprep.mubr.f32.mxu0 %v6882_v12  ;;  %v600_v61 = vmul.f32 0.0625, %v472_v48  ;;  %v480_v12 = vld [vmem:[#allocation2 + $0x92] sm:$0xff]  ;;  %v9301_v8 = vld [vmem:[#allocation9_spill] sm:$0xff]  ;;  %v5720_v22 = vpack.c.bf16 %v1686_v27, %v1685_v59  ;;  %v1693_v59 = vld [vmem:[%s9252_s1 + $0x60] sm:$0xff]  ;;  %v5738_v4 = vpack.c.bf16 %v1712_v0, %v1711_v46 }
  0x76   : > { %5683 = vmatprep.subr.bf16.mxu0 %v7351_v57  ;;  %v624_v3 = vmul.f32 0.0625, %v480_v12  ;;  %v1690_v48 = vld [vmem:[%s9252_s1 + $0x48] sm:$0xff]  ;;  %v1691_v12 = vld [vmem:[%s9252_s1 + $0x50] sm:$0xff] }
  0x77   : > { %1353 = vmatmul.mubr.f32.vlgmr.msra.gmra.mrb[16].mxu1 %v7019_v15  ;;  %1253 = vmatmul.mubr.f32.gmra.mrb[18].mxu0 %v7212_v30  ;;  %v956_v15 = vld [vmem:[%s9252_s1 + $0x430] sm:$0xff]  ;;  %v7402_v23 = vadd.f32 %v600_v61, %v592_v16  ;;  %v961_v16 = vld [vmem:[%s9252_s1 + $0x458] sm:$0xff]  ;;  %v1694_v27 = vld [vmem:[%s9252_s1 + $0x68] sm:$0xff] }
  0x78   : > { %5713 = vmatpush3.bf16.msra.mxu1 %v5712_v26  ;;  %5685 = vmatpush3.bf16.msra.mxu0 %v7351_v57  ;;  %v7405_v21 = vadd.f32 %v624_v3, %v616_v51  ;;  %v7409_v9 = vpack.c.bf16 %v957_v43, %v956_v15  ;;  %v9302_v26 = vld [vmem:[#allocation11_spill] sm:$0xff]  ;;  %v1710_v3 = vld [vmem:[%s9252_s1 + $0xe8] sm:$0xff] }
  0x79   : > { %1357 = vmatprep.mubr.f32.mxu1 %v9300_v50  ;;  %5715 = vmatprep.subr.bf16.mxu1 %v5714_v7  ;;  %719 = vst [vmem:[#allocation5 + $0x81] sm:$0xff] %v7402_v23  ;;  %v1689_v7 = vld [vmem:[%s9252_s1 + $0x40] sm:$0xff]  ;;  %v1718_v46 = vld [vmem:[%s9252_s1 + $0x128] sm:$0xff] }
  0x7a   : > { %1257 = vmatprep.mubr.f32.mxu0 %v9301_v8  ;;  %5687 = vmatprep.subr.bf16.mxu0 %v7379_v5  ;;  %748 = vst [vmem:[#allocation6 + $0x81] sm:$0xff] %v7405_v21  ;;  %v5728_v61 = vpack.c.bf16 %v1690_v48, %v1689_v7  ;;  %v7568_v7 = vld [vmem:[#allocation6 + $0x21] sm:$0xff] }
  0x7b   : > { %1358 = vmatmul.mubr.f32.gmra.mrb[18].mxu1 %v7065_v10  ;;  %1258 = vmatmul.mubr.f32.gmra.mrb[20].mxu0 %v7244_v20  ;;  %v958_v10 = vld [vmem:[%s9252_s1 + $0x440] sm:$0xff] }
  0x7c   : > { %5717 = vmatpush3.bf16.msra.mxu1 %v5716_v31  ;;  %5689 = vmatpush3.bf16.msra.mxu0 %v7379_v5  ;;  %v7437_v54 = vpack.c.bf16 %v959_v19, %v958_v10  ;;  %v1692_v31 = vld [vmem:[%s9252_s1 + $0x58] sm:$0xff]  ;;  %v1695_v10 = vld [vmem:[%s9252_s1 + $0x70] sm:$0xff] }
  0x7d   : > { %1362 = vmatprep.mubr.f32.mxu1 %v6962_v29  ;;  %5719 = vmatprep.subr.bf16.mxu1 %v5718_v39  ;;  %v1705_v29 = vld [vmem:[%s9252_s1 + $0xc0] sm:$0xff]  ;;  %v5732_v50 = vpack.c.bf16 %v1692_v31, %v1691_v12  ;;  %v1696_v19 = vld [vmem:[%s9252_s1 + $0x78] sm:$0xff]  ;;  %v1763_v12 = vld [vmem:[%s9252_s1 + $0x290] sm:$0xff] }
  0x7e   : > { %1262 = vmatprep.mubr.f32.mxu0 %v9302_v26  ;;  %5691 = vmatprep.subr.bf16.mxu0 %v7409_v9  ;;  %v5726_v51 = vpack.c.bf16 %v1706_v42, %v1705_v29  ;;  %v1714_v26 = vld [vmem:[%s9252_s1 + $0x108] sm:$0xff]  ;;  %v1764_v31 = vld [vmem:[%s9252_s1 + $0x298] sm:$0xff] }
  0x7f   : > { %1363 = vmatmul.mubr.f32.gmra.mrb[20].mxu1 %v7114_v60  ;;  %1263 = vmatmul.mubr.f32.gmra.mrb[22].mxu0 %v7280_v53  ;;  %v960_v60 = vld [vmem:[%s9252_s1 + $0x450] sm:$0xff]  ;;  %v1762_v42 = vld [vmem:[%s9252_s1 + $0x288] sm:$0xff]  ;;  %v7570_v48 = vpack.c.bf16 %v1714_v26, %v1713_v38 }
  0x80   : > { %5721 = vmatpush3.bf16.msra.mxu1 %v5720_v22  ;;  %5693 = vmatpush3.bf16.msra.mxu0 %v7409_v9  ;;  %v7463_v63 = vpack.c.bf16 %v961_v16, %v960_v60  ;;  %v5736_v22 = vpack.c.bf16 %v1694_v27, %v1693_v59  ;;  %v7558_v60 = vpack.c.bf16 %v1696_v19, %v1695_v10  ;;  %v1732_v16 = vld [vmem:[%s9252_s1 + $0x198] sm:$0xff]  ;;  %v1735_v10 = vld [vmem:[%s9252_s1 + $0x1b0] sm:$0xff]  ;;  %v1750_v38 = vld [vmem:[%s9252_s1 + $0x228] sm:$0xff] }
  0x81   : > { %1367 = vmatprep.mubr.f32.mxu1 %v7034_v17  ;;  %5723 = vmatprep.subr.bf16.mxu1 %v5722_v52  ;;  %v1707_v17 = vld [vmem:[%s9252_s1 + $0xd0] sm:$0xff]  ;;  %v1748_v59 = vld [vmem:[%s9252_s1 + $0x218] sm:$0xff]  ;;  %v7617_v27 = vpack.c.bf16 %v1764_v31, %v1763_v12 }
  0x82   : > { %1267 = vmatprep.mubr.f32.mxu0 %v7081_v55  ;;  %5695 = vmatprep.subr.bf16.mxu0 %v7437_v54  ;;  %v962_v55 = vld [vmem:[%s9252_s1 + $0x460] sm:$0xff]  ;;  %v5730_v15 = vpack.c.bf16 %v1708_v28, %v1707_v17  ;;  %v7547_v52 = vld [vmem:[#allocation6 + $0x11] sm:$0xff]  ;;  %v1746_v17 = vld [vmem:[%s9252_s1 + $0x208] sm:$0xff] }
  0x83   : > { %1368 = vmatmul.mubr.f32.gmra.mrb[22].mxu1 %v7181_v33  ;;  %1268 = vmatmul.mubr.f32.gmra.mrb[24].mxu0 %v7301_v24  ;;  %v963_v33 = vld [vmem:[%s9252_s1 + $0x468] sm:$0xff]  ;;  %v1736_v19 = vld [vmem:[%s9252_s1 + $0x1b8] sm:$0xff]  ;;  %v1751_v31 = vld [vmem:[%s9252_s1 + $0x230] sm:$0xff] }
  0x84   : > { %5725 = vmatpush3.bf16.msra.mxu1 %v5724_v37  ;;  %5697 = vmatpush3.bf16.msra.mxu0 %v7437_v54  ;;  %v7489_v43 = vpack.c.bf16 %v963_v33, %v962_v55  ;;  %v805_v37 = vld [vmem:[#allocation6 + $0x80] sm:$0xff]  ;;  %v1716_v55 = vld [vmem:[%s9252_s1 + $0x118] sm:$0xff] }
  0x85   : > { %1372 = vmatprep.mubr.f32.mxu1 %v7125_v40  ;;  %5727 = vmatprep.subr.bf16.mxu1 %v5726_v51  ;;  %v1709_v40 = vld [vmem:[%s9252_s1 + $0xe0] sm:$0xff] }
  0x86   : > { %1272 = vmatprep.mubr.f32.mxu0 %v7157_v32  ;;  %5699 = vmatprep.subr.bf16.mxu0 %v7463_v63  ;;  %v964_v32 = vld [vmem:[%s9252_s1 + $0x470] sm:$0xff]  ;;  %v5734_v8 = vpack.c.bf16 %v1710_v3, %v1709_v40  ;;  %v1745_v51 = vld [vmem:[%s9252_s1 + $0x200] sm:$0xff] }
  0x87   : > { %1373 = vmatmul.mubr.f32.gmra.mrb[24].mxu1 %v7233_v18  ;;  %1273 = vmatmul.mubr.f32.gmra.mrb[26].mxu0 %v7307_v34  ;;  %v965_v18 = vld [vmem:[%s9252_s1 + $0x478] sm:$0xff]  ;;  %v1617_v28 = vld [vmem:[#allocation6 + $0x1] sm:$0xff]  ;;  %v7598_v40 = vpack.c.bf16 %v1746_v17, %v1745_v51 }
  0x88   : > { %5729 = vmatpush3.bf16.msra.mxu1 %v5728_v61  ;;  %5701 = vmatpush3.bf16.msra.mxu0 %v7463_v63  ;;  %v7515_v39 = vpack.c.bf16 %v965_v18, %v964_v32  ;;  %v1733_v3 = vld [vmem:[%s9252_s1 + $0x1a0] sm:$0xff]  ;;  %v1747_v18 = vld [vmem:[%s9252_s1 + $0x210] sm:$0xff]  ;;  %v1738_v17 = vld [vmem:[%s9252_s1 + $0x1c8] sm:$0xff] }
  0x89   : > { %1377 = vmatprep.mubr.f32.mxu1 %v7196_v45  ;;  %5731 = vmatprep.subr.bf16.mxu1 %v5730_v15  ;;  %v1609_v15 = vld [vmem:[#allocation5 + $0x1] sm:$0xff] }
  0x8a   : > { %1277 = vmatprep.mubr.f32.mxu0 %v7220_v11  ;;  %5703 = vmatprep.subr.bf16.mxu0 %v7489_v43  ;;  %v1729_v11 = vld [vmem:[%s9252_s1 + $0x180] sm:$0xff] }
  0x8b   : > { %1378 = vmatmul.mubr.f32.gmra.mrb[26].mxu1 %v7284_v36  ;;  %1278 = vmatmul.mubr.f32.gmra.mrb[28].mxu0 %v7310_v2  ;;  %v1730_v36 = vld [vmem:[%s9252_s1 + $0x188] sm:$0xff]  ;;  %v1737_v51 = vld [vmem:[%s9252_s1 + $0x1c0] sm:$0xff] }
  0x8c   : > { %5733 = vmatpush3.bf16.msra.mxu1 %v5732_v50  ;;  %5705 = vmatpush3.bf16.msra.mxu0 %v7489_v43  ;;  %v7549_v29 = vpack.c.bf16 %v1730_v36, %v1729_v11  ;;  %v1734_v50 = vld [vmem:[%s9252_s1 + $0x1a8] sm:$0xff]  ;;  %v7636_v11 = vld [vmem:[#allocation5 + $0x11] sm:$0xff]  ;;  %v7638_v36 = vpack.c.bf16 %v1748_v59, %v1747_v18  ;;  %v7707_v18 = vpack.c.bf16 %v1738_v17, %v1737_v51 }
  0x8d   : > { %1382 = vmatprep.mubr.f32.mxu1 %v7253_v56  ;;  %5735 = vmatprep.subr.bf16.mxu1 %v5734_v8  ;;  %v1717_v8 = vld [vmem:[%s9252_s1 + $0x120] sm:$0xff]  ;;  %v7626_v0 = vpack.c.bf16 %v1734_v50, %v1733_v3  ;;  %v1722_v59 = vld [vmem:[%s9252_s1 + $0x148] sm:$0xff]  ;;  %v1723_v51 = vld [vmem:[%s9252_s1 + $0x150] sm:$0xff] }
  0x8e   : > { %1282 = vmatprep.mubr.f32.mxu0 %v7271_v49  ;;  %5707 = vmatprep.subr.bf16.mxu0 %v7515_v39  ;;  %v1761_v49 = vld [vmem:[%s9252_s1 + $0x280] sm:$0xff]  ;;  %v1724_v17 = vld [vmem:[%s9252_s1 + $0x158] sm:$0xff] }
  0x8f   : > { %1383 = vmatmul.mubr.f32.gmra.mrb[28].mxu1 %v7328_v44  ;;  %1283 = vmatmul.mubr.f32.gmra.mrb[30].mxu0 %v7320_v14  ;;  %v1731_v44 = vld [vmem:[%s9252_s1 + $0x190] sm:$0xff]  ;;  %v7579_v61 = vpack.c.bf16 %v1762_v42, %v1761_v49  ;;  %v1720_v42 = vld [vmem:[%s9252_s1 + $0x138] sm:$0xff]  ;;  %v1721_v3 = vld [vmem:[%s9252_s1 + $0x140] sm:$0xff] }
  0x90   : > { %5737 = vmatpush3.bf16.msra.mxu1 %v5736_v22  ;;  %5709 = vmatpush3.bf16.msra.mxu0 %v7515_v39  ;;  %v7588_v33 = vpack.c.bf16 %v1732_v16, %v1731_v44  ;;  %v1765_v22 = vld [vmem:[%s9252_s1 + $0x2a0] sm:$0xff]  ;;  %v1719_v49 = vld [vmem:[%s9252_s1 + $0x130] sm:$0xff]  ;;  %v7671_v44 = vpack.c.bf16 %v1736_v19, %v1735_v10  ;;  %v1768_v16 = vld [vmem:[%s9252_s1 + $0x2b8] sm:$0xff] }
  0x91   : > { %1387 = vmatprep.mubr.f32.mxu1 %v7402_v23  ;;  %5739 = vmatprep.subr.bf16.mxu1 %v5738_v4  ;;  %v1715_v23 = vld [vmem:[%s9252_s1 + $0x110] sm:$0xff]  ;;  %v7648_v4 = vpack.c.bf16 %v1718_v46, %v1717_v8  ;;  %v7692_v12 = vpack.c.bf16 %v1720_v42, %v1719_v49  ;;  %v1769_v8 = vld [vmem:[%s9252_s1 + $0x2c0] sm:$0xff]  ;;  %v1770_v46 = vld [vmem:[%s9252_s1 + $0x2c8] sm:$0xff] }
  0x92   : > { %5406 = vmatprep.mubr.f32.mxu0 %v7547_v52  ;;  %5743 = vmatprep.subr.bf16.mxu0 %v7549_v29  ;;  %v7607_v32 = vpack.c.bf16 %v1716_v55, %v1715_v23  ;;  %v7688_v55 = vld [vmem:[#allocation6 + $0x31] sm:$0xff]  ;;  %v5790_v49 = vpack.c.bf16 %v1770_v46, %v1769_v8  ;;  %v1753_v42 = vld [vmem:[%s9252_s1 + $0x240] sm:$0xff]  ;;  %v7767_v8 = vpack.c.bf16 %v1724_v17, %v1723_v51 }
  0x93   : > { %1388 = vmatmul.mubr.f32.gmra.mrb[30].mxu1 %v805_v37  ;;  %5407 = vmatmul.mubr.f32.vlgmr.msra.gmra.mrb[32].mxu0 %v7568_v7  ;;  %v1767_v37 = vld [vmem:[%s9252_s1 + $0x2b0] sm:$0xff] }
  0x94   : > { %5741 = vmatpush3.bf16.msra.mxu1 %v7558_v60  ;;  %5745 = vmatpush3.bf16.msra.mxu0 %v7570_v48  ;;  %v7705_v50 = vpack.c.bf16 %v1768_v16, %v1767_v37  ;;  %v7728_v10 = vld [vmem:[#allocation5 + $0x31] sm:$0xff]  ;;  %v1754_v37 = vld [vmem:[%s9252_s1 + $0x248] sm:$0xff] }
  0x95   : > { %1896 = vmatprep.mubr.f32.mxu1 %v1617_v28  ;;  %5775 = vmatprep.subr.bf16.mxu1 %v7579_v61  ;;  %v7684_v28 = vld [vmem:[#allocation5 + $0x21] sm:$0xff] }
  0x96   : > { %5409 = vmatprep.mubr.f32.mxu0 %v6972_v47  ;;  %5747 = vmatprep.subr.bf16.mxu0 %v7588_v33  ;;  %v1766_v47 = vld [vmem:[%s9252_s1 + $0x2a8] sm:$0xff]  ;;  %9304 = vst [vmem:[#allocation9_spill] sm:$0xff] %v7705_v50 }
  0x97   : > { %1897 = vmatmul.mubr.f32.vlgmr.msra.gmra.mrb[32].mxu1 %v1609_v15  ;;  %5410 = vmatmul.mubr.f32.gmra.mrb[34].mxu0 %v7058_v1  ;;  %v1749_v1 = vld [vmem:[%s9252_s1 + $0x220] sm:$0xff]  ;;  %v7658_v26 = vpack.c.bf16 %v1766_v47, %v1765_v22  ;;  %v1752_v15 = vld [vmem:[%s9252_s1 + $0x238] sm:$0xff]  ;;  %v1739_v22 = vld [vmem:[%s9252_s1 + $0x1d0] sm:$0xff] }
  0x98   : > { %5777 = vmatpush3.bf16.msra.mxu1 %v7598_v40  ;;  %5749 = vmatpush3.bf16.msra.mxu0 %v7607_v32  ;;  %v7686_v23 = vpack.c.bf16 %v1750_v38, %v1749_v1  ;;  %v1740_v47 = vld [vmem:[%s9252_s1 + $0x1d8] sm:$0xff]  ;;  %v7730_v19 = vpack.c.bf16 %v1752_v15, %v1751_v31  ;;  %v7734_v1 = vpack.c.bf16 %v1722_v59, %v1721_v3  ;;  %v7736_v38 = vld [vmem:[#allocation6 + $0x41] sm:$0xff] }
  0x99   : > { %1901 = vmatprep.mubr.f32.mxu1 %v7547_v52  ;;  %5779 = vmatprep.subr.bf16.mxu1 %v7617_v27  ;;  %v7746_v16 = vpack.c.bf16 %v1740_v47, %v1739_v22  ;;  %v1741_v31 = vld [vmem:[%s9252_s1 + $0x1e0] sm:$0xff]  ;;  %v1742_v15 = vld [vmem:[%s9252_s1 + $0x1e8] sm:$0xff]  ;;  %v5792_v59 = vpack.c.bf16 %v1754_v37, %v1753_v42  ;;  %v1743_v47 = vld [vmem:[%s9252_s1 + $0x1f0] sm:$0xff] }
  0x9a   : > { %5412 = vmatprep.mubr.f32.mxu0 %v7128_v6  ;;  %5751 = vmatprep.subr.bf16.mxu0 %v7626_v0  ;;  %9303 = vst [vmem:[#allocation8_spill] sm:$0xff] %v7686_v23  ;;  %9305 = vst [vmem:[#allocation11_spill] sm:$0xff] %v7730_v19  ;;  %v7764_v3 = vld [vmem:[#allocation5 + $0x41] sm:$0xff]  ;;  %v7770_v46 = vpack.c.bf16 %v1742_v15, %v1741_v31  ;;  %v7786_v42 = vld [vmem:[#allocation5 + $0x51] sm:$0xff] }
  0x9b   : > { %1902 = vmatmul.mubr.f32.gmra.mrb[34].mxu1 %v7636_v11  ;;  %5413 = vmatmul.mubr.f32.gmra.mrb[36].mxu0 %v7199_v13  ;;  %v1726_v22 = vld [vmem:[%s9252_s1 + $0x168] sm:$0xff]  ;;  %v9306_v37 = vld [vmem:[#allocation10_spill] sm:$0xff]  ;;  %v1793_v15 = vld [vmem:[%s9252_s1 + $0x380] sm:$0xff] }
  0x9c   : > { %5781 = vmatpush3.bf16.msra.mxu1 %v7638_v36  ;;  %5753 = vmatpush3.bf16.msra.mxu0 %v7648_v4  ;;  %v1727_v31 = vld [vmem:[%s9252_s1 + $0x170] sm:$0xff] }
  0x9d   : > { %1906 = vmatprep.mubr.f32.mxu1 %v7568_v7  ;;  %5783 = vmatprep.subr.bf16.mxu1 %v7658_v26 }
  0x9e   : > { %5415 = vmatprep.mubr.f32.mxu0 %v7255_v41  ;;  %5755 = vmatprep.subr.bf16.mxu0 %v7671_v44 }
  0x9f   : > { %1907 = vmatmul.mubr.f32.gmra.mrb[36].mxu1 %v7684_v28  ;;  %5416 = vmatmul.mubr.f32.gmra.mrb[38].mxu0 %v7405_v21 }
  0xa0   : > { %5785 = vmatpush3.bf16.msra.mxu1 %v7686_v23  ;;  %5757 = vmatpush3.bf16.msra.mxu0 %v7692_v12  ;;  %v1786_v23 = vld [vmem:[%s9252_s1 + $0x348] sm:$0xff] }
  0xa1   : > { %1911 = vmatprep.mubr.f32.mxu1 %v7688_v55  ;;  %5787 = vmatprep.subr.bf16.mxu1 %v7705_v50  ;;  %v1784_v50 = vld [vmem:[%s9252_s1 + $0x338] sm:$0xff] }
  0xa2   : > { %5759 = vmatprep.subr.bf16.mxu0 %v7707_v18  ;;  %2001 = vmatprep.mubr.f32.mxu0 %v7230_v35  ;;  %v1725_v35 = vld [vmem:[%s9252_s1 + $0x160] sm:$0xff] }
  0xa3   : > { %1912 = vmatmul.mubr.f32.gmra.mrb[38].mxu1 %v7728_v10  ;;  %v7790_v51 = vpack.c.bf16 %v1726_v22, %v1725_v35  ;;  %v9307_v35 = vld [vmem:[#allocation12_spill] sm:$0xff] }
  0xa4   : > { %5789 = vmatpush3.bf16.msra.mxu1 %v7730_v19  ;;  %1916 = vmatprep.mubr.f32.mxu1 %v7736_v38  ;;  %v7856_v19 = vld [vmem:[#allocation5 + $0x12] sm:$0xff] }
  0xa5   : > { %5761 = vmatpush3.bf16.msra.mxu0 %v7734_v1  ;;  %5791 = vmatprep.subr.bf16.mxu1 %v5790_v49  ;;  %v1744_v49 = vld [vmem:[%s9252_s1 + $0x1f8] sm:$0xff] }
  0xa6   : > { %5763 = vmatprep.subr.bf16.mxu0 %v7746_v16  ;;  %v7793_v17 = vpack.c.bf16 %v1744_v49, %v1743_v47  ;;  %v1777_v49 = vld [vmem:[%s9252_s1 + $0x300] sm:$0xff] }
  0xa7   : > { %1917 = vmatmul.mubr.f32.gmra.mrb[40].mxu1 %v7764_v3 }
  0xa8   : > { %5793 = vmatpush3.bf16.msra.mxu1 %v5792_v59  ;;  %1921 = vmatprep.mubr.f32.mxu1 %v7128_v6  ;;  %v1728_v6 = vld [vmem:[%s9252_s1 + $0x178] sm:$0xff]  ;;  %v1794_v59 = vld [vmem:[%s9252_s1 + $0x388] sm:$0xff] }
  0xa9   : > { %5765 = vmatpush3.bf16.msra.mxu0 %v7767_v8  ;;  %5795 = vmatprep.subr.bf16.mxu1 %v9306_v37  ;;  %v7812_v22 = vpack.c.bf16 %v1728_v6, %v1727_v31  ;;  %v7815_v47 = vpack.c.bf16 %v1794_v59, %v1793_v15  ;;  %v1795_v37 = vld [vmem:[%s9252_s1 + $0x390] sm:$0xff]  ;;  %v1796_v31 = vld [vmem:[%s9252_s1 + $0x398] sm:$0xff]  ;;  %v1625_v15 = vld [vmem:[#allocation5 + $0x2] sm:$0xff] }
  0xaa   : > { %5767 = vmatprep.subr.bf16.mxu0 %v7770_v46  ;;  %v9309_v6 = vld [vmem:[#allocation14_spill] sm:$0xff] }
  0xab   : > { %1922 = vmatmul.mubr.f32.gmra.mrb[42].mxu1 %v7786_v42 }
  0xac   : > { %5797 = vmatpush3.bf16.msra.mxu1 %v7026_v58  ;;  %1926 = vmatprep.mubr.f32.mxu1 %v7199_v13  ;;  %v1778_v58 = vld [vmem:[%s9252_s1 + $0x308] sm:$0xff] }
  0xad   : > { %5769 = vmatpush3.bf16.msra.mxu0 %v7790_v51  ;;  %5799 = vmatprep.subr.bf16.mxu1 %v9307_v35  ;;  %v9308_v13 = vld [vmem:[#allocation13_spill] sm:$0xff]  ;;  %v7834_v59 = vpack.c.bf16 %v1778_v58, %v1777_v49  ;;  %v1780_v35 = vld [vmem:[%s9252_s1 + $0x318] sm:$0xff]  ;;  %v1797_v58 = vld [vmem:[%s9252_s1 + $0x3a0] sm:$0xff] }
  0xae   : > { %5771 = vmatprep.subr.bf16.mxu0 %v7793_v17  ;;  %v7847_v49 = vld [vmem:[#allocation4 + $0x11] sm:$0xff] }
  0xaf   : > { %1927 = vmatmul.mubr.f32.gmra.mrb[44].mxu1 %v7196_v45  ;;  %v1649_v45 = vld [vmem:[#allocation3 + $0x12] sm:$0xff] }
  0xb0   : > { %5801 = vmatpush3.bf16.msra.mxu1 %v9308_v13  ;;  %1931 = vmatprep.mubr.f32.mxu1 %v7255_v41  ;;  %v1779_v41 = vld [vmem:[%s9252_s1 + $0x310] sm:$0xff]  ;;  %v7844_v13 = vpack.c.bf16 %v1796_v31, %v1795_v37  ;;  %v1781_v37 = vld [vmem:[%s9252_s1 + $0x320] sm:$0xff]  ;;  %v1782_v31 = vld [vmem:[%s9252_s1 + $0x328] sm:$0xff] }
  0xb1   : > { %5773 = vmatpush3.bf16.msra.mxu0 %v7812_v22  ;;  %5803 = vmatprep.subr.bf16.mxu1 %v9309_v6  ;;  %v1798_v6 = vld [vmem:[%s9252_s1 + $0x3a8] sm:$0xff] }
  0xb2   : > { %5807 = vmatprep.subr.bf16.mxu0 %v7815_v47 }
  0xb3   : > { %1932 = vmatmul.mubr.f32.gmra.mrb[46].mxu1 %v7253_v56  ;;  %v7858_v56 = vpack.c.bf16 %v1780_v35, %v1779_v41  ;;  %v1800_v41 = vld [vmem:[%s9252_s1 + $0x3b8] sm:$0xff]  ;;  %v7883_v35 = vld [vmem:[#allocation5 + $0x22] sm:$0xff] }
  0xb4   : > { %5805 = vmatpush3.bf16.msra.mxu1 %v7187_v62  ;;  %2002 = vmatmul.mubr.f32.vlgmr.msra.gmra.mrb[40].mxu0 %v1625_v15  ;;  %v1650_v62 = vld [vmem:[#allocation3 + $0x22] sm:$0xff]  ;;  %v7870_v15 = vpack.c.bf16 %v1798_v6, %v1797_v58  ;;  %v7885_v58 = vpack.c.bf16 %v1782_v31, %v1781_v37  ;;  %v1783_v6 = vld [vmem:[%s9252_s1 + $0x330] sm:$0xff] }
  0xb5   : > { %5809 = vmatpush3.bf16.msra.mxu0 %v7834_v59  ;;  %2106 = vmatprep.mubr.f32.mxu1 %v1649_v45  ;;  %v1799_v45 = vld [vmem:[%s9252_s1 + $0x3b0] sm:$0xff]  ;;  %v1801_v37 = vld [vmem:[%s9252_s1 + $0x3c0] sm:$0xff]  ;;  %v1802_v31 = vld [vmem:[%s9252_s1 + $0x3c8] sm:$0xff] }
  0xb6   : > { %5839 = vmatprep.subr.bf16.mxu1 %v7202_v25  ;;  %2006 = vmatprep.mubr.f32.mxu0 %v7212_v30  ;;  %9310 = vst [vmem:[#allocation10_spill] sm:$0xff] %v7870_v15  ;;  %v7874_v30 = vld [vmem:[#allocation4 + $0x21] sm:$0xff]  ;;  %9311 = vst [vmem:[#allocation12_spill] sm:$0xff] %v7885_v58 }
  0xb7   : > { %2107 = vmatmul.mubr.f32.vlgmr.msra.gmra.mrb[48].mxu1 %v7847_v49  ;;  %5811 = vmatprep.subr.bf16.mxu0 %v7844_v13 }
  0xb8   : > { %5841 = vmatpush3.bf16.msra.mxu1 %v7202_v25  ;;  %2007 = vmatmul.mubr.f32.gmra.mrb[42].mxu0 %v7856_v19  ;;  %v1651_v25 = vld [vmem:[#allocation3 + $0x32] sm:$0xff] }
  0xb9   : > { %5813 = vmatpush3.bf16.msra.mxu0 %v7858_v56  ;;  %2111 = vmatprep.mubr.f32.mxu1 %v1650_v62  ;;  %v7897_v62 = vpack.c.bf16 %v1800_v41, %v1799_v45  ;;  %v7912_v45 = vpack.c.bf16 %v1784_v50, %v1783_v6  ;;  %v1785_v41 = vld [vmem:[%s9252_s1 + $0x340] sm:$0xff]  ;;  %v1803_v50 = vld [vmem:[%s9252_s1 + $0x3d0] sm:$0xff]  ;;  %v1804_v6 = vld [vmem:[%s9252_s1 + $0x3d8] sm:$0xff] }
  0xba   : > { %5843 = vmatprep.subr.bf16.mxu1 %v7351_v57  ;;  %2011 = vmatprep.mubr.f32.mxu0 %v7244_v20  ;;  %v7901_v20 = vld [vmem:[#allocation4 + $0x31] sm:$0xff] }
  0xbb   : > { %2112 = vmatmul.mubr.f32.gmra.mrb[50].mxu1 %v7874_v30  ;;  %5815 = vmatprep.subr.bf16.mxu0 %v7870_v15  ;;  %9312 = vst [vmem:[#allocation13_spill] sm:$0xff] %v7897_v62  ;;  %v7910_v15 = vld [vmem:[#allocation5 + $0x32] sm:$0xff]  ;;  %9313 = vst [vmem:[#allocation14_spill] sm:$0xff] %v7912_v45 }
  0xbc   : > { %5845 = vmatpush3.bf16.msra.mxu1 %v7351_v57  ;;  %2012 = vmatmul.mubr.f32.gmra.mrb[44].mxu0 %v7883_v35  ;;  %v1652_v57 = vld [vmem:[#allocation3 + $0x42] sm:$0xff] }
  0xbd   : > { %5817 = vmatpush3.bf16.msra.mxu0 %v7885_v58  ;;  %2116 = vmatprep.mubr.f32.mxu1 %v1651_v25  ;;  %v7924_v25 = vpack.c.bf16 %v1802_v31, %v1801_v37  ;;  %v7939_v37 = vpack.c.bf16 %v1786_v23, %v1785_v41  ;;  %v1787_v31 = vld [vmem:[%s9252_s1 + $0x350] sm:$0xff]  ;;  %v1788_v58 = vld [vmem:[%s9252_s1 + $0x358] sm:$0xff]  ;;  %v1805_v23 = vld [vmem:[%s9252_s1 + $0x3e0] sm:$0xff] }
  0xbe   : > { %5847 = vmatprep.subr.bf16.mxu1 %v7379_v5  ;;  %2016 = vmatprep.mubr.f32.mxu0 %v7280_v53  ;;  %v7928_v53 = vld [vmem:[#allocation4 + $0x41] sm:$0xff] }
  0xbf   : > { %2117 = vmatmul.mubr.f32.gmra.mrb[52].mxu1 %v7901_v20  ;;  %5819 = vmatprep.subr.bf16.mxu0 %v7897_v62  ;;  %9314 = vst [vmem:[#allocation15_spill] sm:$0xff] %v7924_v25  ;;  %v7937_v62 = vld [vmem:[#allocation5 + $0x42] sm:$0xff]  ;;  %9315 = vst [vmem:[#allocation16_spill] sm:$0xff] %v7939_v37 }
  0xc0   : > { %5849 = vmatpush3.bf16.msra.mxu1 %v7379_v5  ;;  %2017 = vmatmul.mubr.f32.gmra.mrb[46].mxu0 %v7910_v15  ;;  %v1653_v5 = vld [vmem:[#allocation3 + $0x52] sm:$0xff]  ;;  %v1806_v41 = vld [vmem:[%s9252_s1 + $0x3e8] sm:$0xff] }
  0xc1   : > { %5821 = vmatpush3.bf16.msra.mxu0 %v7912_v45  ;;  %2121 = vmatprep.mubr.f32.mxu1 %v1652_v57  ;;  %v7951_v57 = vpack.c.bf16 %v1804_v6, %v1803_v50  ;;  %v7966_v50 = vpack.c.bf16 %v1788_v58, %v1787_v31  ;;  %v1789_v6 = vld [vmem:[%s9252_s1 + $0x360] sm:$0xff]  ;;  %v1790_v45 = vld [vmem:[%s9252_s1 + $0x368] sm:$0xff]  ;;  %v1807_v58 = vld [vmem:[%s9252_s1 + $0x3f0] sm:$0xff] }
  0xc2   : > { %5851 = vmatprep.subr.bf16.mxu1 %v7409_v9  ;;  %2021 = vmatprep.mubr.f32.mxu0 %v7301_v24  ;;  %v7955_v24 = vld [vmem:[#allocation4 + $0x51] sm:$0xff] }
  0xc3   : > { %2122 = vmatmul.mubr.f32.gmra.mrb[54].mxu1 %v7928_v53  ;;  %5823 = vmatprep.subr.bf16.mxu0 %v7924_v25  ;;  %9316 = vst [vmem:[#allocation17_spill] sm:$0xff] %v7951_v57  ;;  %v7964_v25 = vld [vmem:[#allocation5 + $0x52] sm:$0xff]  ;;  %9317 = vst [vmem:[#allocation18_spill] sm:$0xff] %v7966_v50 }
  0xc4   : > { %5853 = vmatpush3.bf16.msra.mxu1 %v7409_v9  ;;  %2022 = vmatmul.mubr.f32.gmra.mrb[48].mxu0 %v7937_v62  ;;  %v1654_v9 = vld [vmem:[#allocation3 + $0x62] sm:$0xff]  ;;  %v1808_v31 = vld [vmem:[%s9252_s1 + $0x3f8] sm:$0xff] }
  0xc5   : > { %5825 = vmatpush3.bf16.msra.mxu0 %v7939_v37  ;;  %2126 = vmatprep.mubr.f32.mxu1 %v1653_v5  ;;  %v7978_v5 = vpack.c.bf16 %v1806_v41, %v1805_v23  ;;  %v7993_v23 = vpack.c.bf16 %v1790_v45, %v1789_v6  ;;  %v1791_v41 = vld [vmem:[%s9252_s1 + $0x370] sm:$0xff]  ;;  %v1792_v37 = vld [vmem:[%s9252_s1 + $0x378] sm:$0xff]  ;;  %v2550_v45 = vld [vmem:[%s9252_s1 + $0x80] sm:$0xff] }
  0xc6   : > { %5855 = vmatprep.subr.bf16.mxu1 %v7437_v54  ;;  %2026 = vmatprep.mubr.f32.mxu0 %v7307_v34  ;;  %v7982_v34 = vld [vmem:[#allocation4 + $0x61] sm:$0xff] }
  0xc7   : > { %2127 = vmatmul.mubr.f32.gmra.mrb[56].mxu1 %v7955_v24  ;;  %5827 = vmatprep.subr.bf16.mxu0 %v7951_v57  ;;  %9318 = vst [vmem:[#allocation19_spill] sm:$0xff] %v7978_v5  ;;  %v7991_v57 = vld [vmem:[#allocation5 + $0x62] sm:$0xff] }
  0xc8   : > { %5857 = vmatpush3.bf16.msra.mxu1 %v7437_v54  ;;  %2027 = vmatmul.mubr.f32.gmra.mrb[50].mxu0 %v7964_v25  ;;  %v1655_v54 = vld [vmem:[#allocation3 + $0x72] sm:$0xff]  ;;  %v2551_v6 = vld [vmem:[%s9252_s1 + $0x88] sm:$0xff] }
  0xc9   : > { %5829 = vmatpush3.bf16.msra.mxu0 %v7966_v50  ;;  %2131 = vmatprep.mubr.f32.mxu1 %v1654_v9  ;;  %v8005_v9 = vpack.c.bf16 %v1808_v31, %v1807_v58  ;;  %v8020_v58 = vpack.c.bf16 %v1792_v37, %v1791_v41  ;;  %v2534_v31 = vld [vmem:[%s9252_s1] sm:$0xff]  ;;  %v2535_v50 = vld [vmem:[%s9252_s1 + $0x8] sm:$0xff]  ;;  %v2552_v37 = vld [vmem:[%s9252_s1 + $0x90] sm:$0xff] }
  0xca   : > { %5859 = vmatprep.subr.bf16.mxu1 %v7463_v63  ;;  %2031 = vmatprep.mubr.f32.mxu0 %v7310_v2  ;;  %v8009_v2 = vld [vmem:[#allocation4 + $0x71] sm:$0xff] }
  0xcb   : > { %2132 = vmatmul.mubr.f32.gmra.mrb[58].mxu1 %v7982_v34  ;;  %5831 = vmatprep.subr.bf16.mxu0 %v7978_v5  ;;  %9319 = vst [vmem:[#allocation20_spill] sm:$0xff] %v8005_v9  ;;  %v8018_v5 = vld [vmem:[#allocation5 + $0x72] sm:$0xff] }
  0xcc   : > { %5861 = vmatpush3.bf16.msra.mxu1 %v7463_v63  ;;  %2032 = vmatmul.mubr.f32.gmra.mrb[52].mxu0 %v7991_v57  ;;  %v1656_v63 = vld [vmem:[#allocation3 + $0x82] sm:$0xff]  ;;  %v2553_v41 = vld [vmem:[%s9252_s1 + $0x98] sm:$0xff] }
  0xcd   : > { %5833 = vmatpush3.bf16.msra.mxu0 %v7993_v23  ;;  %2136 = vmatprep.mubr.f32.mxu1 %v1655_v54  ;;  %v8032_v54 = vpack.c.bf16 %v2551_v6, %v2550_v45  ;;  %v2537_v45 = vld [vmem:[%s9252_s1 + $0x18] sm:$0xff]  ;;  %v8057_v6 = vpack.c.bf16 %v2553_v41, %v2552_v37  ;;  %v2538_v37 = vld [vmem:[%s9252_s1 + $0x20] sm:$0xff] }
  0xce   : > { %5863 = vmatprep.subr.bf16.mxu1 %v7489_v43  ;;  %2036 = vmatprep.mubr.f32.mxu0 %v7320_v14  ;;  %v8036_v14 = vld [vmem:[#allocation4 + $0x81] sm:$0xff] }
  0xcf   : > { %2137 = vmatmul.mubr.f32.gmra.mrb[60].mxu1 %v8009_v2  ;;  %5835 = vmatprep.subr.bf16.mxu0 %v8005_v9  ;;  %v8045_v9 = vpack.c.bf16 %v2535_v50, %v2534_v31  ;;  %v2554_v50 = vld [vmem:[%s9252_s1 + $0xa0] sm:$0xff] }
  0xd0   : > { %5865 = vmatpush3.bf16.msra.mxu1 %v7489_v43  ;;  %2037 = vmatmul.mubr.f32.gmra.mrb[54].mxu0 %v8018_v5  ;;  %v2536_v43 = vld [vmem:[%s9252_s1 + $0x10] sm:$0xff]  ;;  %v2542_v41 = vld [vmem:[%s9252_s1 + $0x40] sm:$0xff] }
  0xd1   : > { %5837 = vmatpush3.bf16.msra.mxu0 %v8020_v58  ;;  %2141 = vmatprep.mubr.f32.mxu1 %v1656_v63  ;;  %v8069_v63 = vpack.c.bf16 %v2537_v45, %v2536_v43  ;;  %v2544_v43 = vld [vmem:[%s9252_s1 + $0x50] sm:$0xff]  ;;  %v2563_v45 = vld [vmem:[%s9252_s1 + $0xe8] sm:$0xff] }
  0xd2   : > { %5867 = vmatprep.subr.bf16.mxu1 %v7515_v39  ;;  %2211 = vmatprep.mubr.f32.mxu0 %v7547_v52  ;;  %v2555_v52 = vld [vmem:[%s9252_s1 + $0xa8] sm:$0xff] }
  0xd3   : > { %2142 = vmatmul.mubr.f32.gmra.mrb[62].mxu1 %v8036_v14  ;;  %5871 = vmatprep.subr.bf16.mxu0 %v8032_v54  ;;  %v8073_v31 = vpack.c.bf16 %v2555_v52, %v2554_v50  ;;  %v8167_v50 = vld [vmem:[#allocation5 + $0x61] sm:$0xff] }
  0xd4   : > { %5869 = vmatpush3.bf16.msra.mxu1 %v7515_v39  ;;  %2212 = vmatmul.mubr.f32.vlgmr.msra.gmra.mrb[56].mxu0 %v7636_v11  ;;  %v2539_v39 = vld [vmem:[%s9252_s1 + $0x28] sm:$0xff] }
  0xd5   : > { %5873 = vmatpush3.bf16.msra.mxu0 %v8045_v9  ;;  %5450 = vmatprep.mubr.f32.mxu1 %v7856_v19  ;;  %v8093_v11 = vpack.c.bf16 %v2539_v39, %v2538_v37  ;;  %v8181_v37 = vld [vmem:[#allocation6 + $0x71] sm:$0xff] }
  0xd6   : > { %5903 = vmatprep.subr.bf16.mxu1 %v7549_v29  ;;  %2216 = vmatprep.mubr.f32.mxu0 %v7568_v7  ;;  %v2556_v29 = vld [vmem:[%s9252_s1 + $0xb0] sm:$0xff]  ;;  %v2557_v7 = vld [vmem:[%s9252_s1 + $0xb8] sm:$0xff] }
  0xd7   : > { %5451 = vmatmul.mubr.f32.vlgmr.msra.gmra.mrb[64].mxu1 %v7883_v35  ;;  %5875 = vmatprep.subr.bf16.mxu0 %v8057_v6  ;;  %v8104_v19 = vpack.c.bf16 %v2557_v7, %v2556_v29  ;;  %v2565_v39 = vld [vmem:[%s9252_s1 + $0xf8] sm:$0xff]  ;;  %v1680_v29 = vld [vmem:[#allocation5 + $0x82] sm:$0xff] }
  0xd8   : > { %5905 = vmatpush3.bf16.msra.mxu1 %v7570_v48  ;;  %2217 = vmatmul.mubr.f32.gmra.mrb[58].mxu0 %v7684_v28  ;;  %v2540_v48 = vld [vmem:[%s9252_s1 + $0x30] sm:$0xff]  ;;  %v2541_v28 = vld [vmem:[%s9252_s1 + $0x38] sm:$0xff] }
  0xd9   : > { %5877 = vmatpush3.bf16.msra.mxu0 %v8069_v63  ;;  %5907 = vmatprep.subr.bf16.mxu1 %v7588_v33  ;;  %v2558_v33 = vld [vmem:[%s9252_s1 + $0xc0] sm:$0xff]  ;;  %v8116_v35 = vpack.c.bf16 %v2541_v28, %v2540_v48  ;;  %v8194_v7 = vld [vmem:[#allocation5 + $0x71] sm:$0xff] }
  0xda   : > { %2221 = vmatprep.mubr.f32.mxu0 %v7688_v55  ;;  %5879 = vmatprep.subr.bf16.mxu0 %v8073_v31  ;;  %v2559_v55 = vld [vmem:[%s9252_s1 + $0xc8] sm:$0xff]  ;;  %v8210_v28 = vld [vmem:[#allocation3 + $0x11] sm:$0xff] }
  0xdb   : > { %5453 = vmatprep.mubr.f32.mxu1 %v7910_v15  ;;  %v8120_v15 = vpack.c.bf16 %v2559_v55, %v2558_v33  ;;  %v9323_v55 = vld [vmem:[#allocation12_spill] sm:$0xff] }
  0xdc   : > { %5909 = vmatpush3.bf16.msra.mxu1 %v7607_v32  ;;  %2222 = vmatmul.mubr.f32.gmra.mrb[60].mxu0 %v7728_v10  ;;  %v2543_v32 = vld [vmem:[%s9252_s1 + $0x48] sm:$0xff]  ;;  %v8129_v10 = vld [vmem:[#allocation6 + $0x51] sm:$0xff] }
  0xdd   : > { %5881 = vmatpush3.bf16.msra.mxu0 %v8093_v11  ;;  %5911 = vmatprep.subr.bf16.mxu1 %v7626_v0  ;;  %v2560_v0 = vld [vmem:[%s9252_s1 + $0xd0] sm:$0xff] }
  0xde   : > { %2226 = vmatprep.mubr.f32.mxu0 %v7736_v38  ;;  %5454 = vmatmul.mubr.f32.gmra.mrb[66].mxu1 %v7937_v62  ;;  %v2561_v38 = vld [vmem:[%s9252_s1 + $0xd8] sm:$0xff]  ;;  %v8142_v62 = vpack.c.bf16 %v2543_v32, %v2542_v41  ;;  %v2624_v41 = vld [vmem:[%s9252_s1 + $0x2d0] sm:$0xff] }
  0xdf   : > { %5883 = vmatprep.subr.bf16.mxu0 %v8104_v19  ;;  %5456 = vmatprep.mubr.f32.mxu1 %v7964_v25  ;;  %v8146_v25 = vpack.c.bf16 %v2561_v38, %v2560_v0  ;;  %v2625_v32 = vld [vmem:[%s9252_s1 + $0x2d8] sm:$0xff]  ;;  %v8275_v0 = vld [vmem:[#allocation4 + $0x50] sm:$0xff] }
  0xe0   : > { %5913 = vmatpush3.bf16.msra.mxu1 %v7648_v4  ;;  %2227 = vmatmul.mubr.f32.gmra.mrb[62].mxu0 %v7764_v3  ;;  %v2545_v4 = vld [vmem:[%s9252_s1 + $0x58] sm:$0xff]  ;;  %v8154_v3 = vld [vmem:[#allocation6 + $0x61] sm:$0xff] }
  0xe1   : > { %5885 = vmatpush3.bf16.msra.mxu0 %v8116_v35  ;;  %5915 = vmatprep.subr.bf16.mxu1 %v7671_v44  ;;  %v2562_v44 = vld [vmem:[%s9252_s1 + $0xe0] sm:$0xff]  ;;  %v8169_v52 = vpack.c.bf16 %v2545_v4, %v2544_v43  ;;  %v9325_v43 = vld [vmem:[#allocation13_spill] sm:$0xff] }
  0xe2   : > { %2231 = vmatprep.mubr.f32.mxu0 %v8129_v10  ;;  %5887 = vmatprep.subr.bf16.mxu0 %v8120_v15  ;;  %v2488_v4 = vld [vmem:[#allocation6 + $0x50] sm:$0xff] }
  0xe3   : > { %5457 = vmatmul.mubr.f32.gmra.mrb[68].mxu1 %v7991_v57  ;;  %v8173_v57 = vpack.c.bf16 %v2563_v45, %v2562_v44  ;;  %v2608_v44 = vld [vmem:[%s9252_s1 + $0x250] sm:$0xff]  ;;  %v2609_v45 = vld [vmem:[%s9252_s1 + $0x258] sm:$0xff] }
  0xe4   : > { %5917 = vmatpush3.bf16.msra.mxu1 %v7692_v12  ;;  %2232 = vmatmul.mubr.f32.gmra.mrb[64].mxu0 %v7786_v42  ;;  %v2546_v12 = vld [vmem:[%s9252_s1 + $0x60] sm:$0xff]  ;;  %v2547_v42 = vld [vmem:[%s9252_s1 + $0x68] sm:$0xff] }
  0xe5   : > { %5889 = vmatpush3.bf16.msra.mxu0 %v8142_v62  ;;  %5919 = vmatprep.subr.bf16.mxu1 %v7707_v18  ;;  %v2564_v18 = vld [vmem:[%s9252_s1 + $0xf0] sm:$0xff] }
  0xe6   : > { %2236 = vmatprep.mubr.f32.mxu0 %v8154_v3  ;;  %5891 = vmatprep.subr.bf16.mxu0 %v8146_v25  ;;  %v8200_v48 = vpack.c.bf16 %v2565_v39, %v2564_v18  ;;  %v9326_v18 = vld [vmem:[#allocation14_spill] sm:$0xff]  ;;  %v2626_v39 = vld [vmem:[%s9252_s1 + $0x2e0] sm:$0xff] }
  0xe7   : > { %5459 = vmatprep.mubr.f32.mxu1 %v8018_v5  ;;  %v8196_v5 = vpack.c.bf16 %v2547_v42, %v2546_v12  ;;  %v8289_v12 = vld [vmem:[#allocation3 + $0x61] sm:$0xff]  ;;  %v8291_v42 = vpack.c.bf16 %v2625_v32, %v2624_v41  ;;  %v2612_v41 = vld [vmem:[%s9252_s1 + $0x270] sm:$0xff]  ;;  %v2613_v32 = vld [vmem:[%s9252_s1 + $0x278] sm:$0xff] }
  0xe8   : > { %5921 = vmatpush3.bf16.msra.mxu1 %v7734_v1  ;;  %2237 = vmatmul.mubr.f32.gmra.mrb[66].mxu0 %v8167_v50  ;;  %v2484_v1 = vld [vmem:[#allocation6 + $0x10] sm:$0xff] }
  0xe9   : > { %5893 = vmatpush3.bf16.msra.mxu0 %v8169_v52  ;;  %5923 = vmatprep.subr.bf16.mxu1 %v7746_v16  ;;  %v8206_v16 = vld [vmem:[#allocation5 + $0x81] sm:$0xff] }
  0xea   : > { %2241 = vmatprep.mubr.f32.mxu0 %v8181_v37  ;;  %5895 = vmatprep.subr.bf16.mxu0 %v8173_v57 }
  0xeb   : > { %5460 = vmatmul.mubr.f32.gmra.mrb[70].mxu1 %v1680_v29  ;;  %v2627_v29 = vld [vmem:[%s9252_s1 + $0x2e8] sm:$0xff] }
  0xec   : > { %5925 = vmatpush3.bf16.msra.mxu1 %v7767_v8  ;;  %2242 = vmatmul.mubr.f32.gmra.mrb[68].mxu0 %v8194_v7  ;;  %v2460_v8 = vld [vmem:[#allocation4 + $0x10] sm:$0xff] }
  0xed   : > { %5897 = vmatpush3.bf16.msra.mxu0 %v8196_v5  ;;  %5927 = vmatprep.subr.bf16.mxu1 %v7770_v46  ;;  %v8218_v46 = vld [vmem:[#allocation3 + $0x21] sm:$0xff] }
  0xee   : > { %2246 = vmatprep.mubr.f32.mxu0 %v7405_v21  ;;  %5899 = vmatprep.subr.bf16.mxu0 %v8200_v48  ;;  %v8223_v21 = vld [vmem:[#allocation4 + $0x20] sm:$0xff] }
  0xef   : > { %2854 = vmatprep.mubr.f32.mxu1 %v2484_v1  ;;  %v8304_v1 = vpack.c.bf16 %v2609_v45, %v2608_v44  ;;  %v2662_v44 = vld [vmem:[%s9252_s1 + $0x400] sm:$0xff]  ;;  %v2663_v45 = vld [vmem:[%s9252_s1 + $0x408] sm:$0xff] }
  0xf0   : > { %5929 = vmatpush3.bf16.msra.mxu1 %v7790_v51  ;;  %2247 = vmatmul.mubr.f32.gmra.mrb[70].mxu0 %v8206_v16  ;;  %v8228_v51 = vld [vmem:[#allocation3 + $0x31] sm:$0xff] }
  0xf1   : > { %5901 = vmatpush3.bf16.msra.mxu0 %v7558_v60  ;;  %5931 = vmatprep.subr.bf16.mxu1 %v7793_v17  ;;  %v2485_v60 = vld [vmem:[#allocation6 + $0x20] sm:$0xff]  ;;  %v2623_v17 = vld [vmem:[%s9252_s1 + $0x2c8] sm:$0xff] }
  0xf2   : > { %2749 = vmatprep.mubr.f32.mxu0 %v8210_v28  ;;  %5935 = vmatprep.subr.bf16.mxu0 %v7579_v61  ;;  %v8233_v61 = vld [vmem:[#allocation4 + $0x30] sm:$0xff] }
  0xf4   : > { %5933 = vmatpush3.bf16.msra.mxu1 %v7812_v22  ;;  %2750 = vmatmul.mubr.f32.vlgmr.msra.gmra.mrb[72].mxu0 %v2460_v8  ;;  %v9320_v22 = vld [vmem:[#allocation8_spill] sm:$0xff]  ;;  %v9327_v8 = vld [vmem:[#allocation15_spill] sm:$0xff] }
  0xf5   : > { %5937 = vmatpush3.bf16.msra.mxu0 %v7598_v40  ;;  %5967 = vmatprep.subr.bf16.mxu1 %v7815_v47  ;;  %v2486_v40 = vld [vmem:[#allocation6 + $0x30] sm:$0xff]  ;;  %v8250_v47 = vld [vmem:[#allocation4 + $0x40] sm:$0xff] }
  0xf6   : > { %2754 = vmatprep.mubr.f32.mxu0 %v8218_v46  ;;  %5939 = vmatprep.subr.bf16.mxu0 %v7617_v27  ;;  %v8239_v27 = vld [vmem:[#allocation3 + $0x41] sm:$0xff] }
  0xf7   : > { %2855 = vmatmul.mubr.f32.vlgmr.msra.gmra.mrb[72].mxu1 %v7847_v49  ;;  %v2607_v49 = vld [vmem:[%s9252_s1 + $0x248] sm:$0xff] }
  0xf8   : > { %5969 = vmatpush3.bf16.msra.mxu1 %v7834_v59  ;;  %2755 = vmatmul.mubr.f32.gmra.mrb[74].mxu0 %v8223_v21  ;;  %v2487_v59 = vld [vmem:[#allocation6 + $0x40] sm:$0xff] }
  0xf9   : > { %2859 = vmatprep.mubr.f32.mxu1 %v2485_v60  ;;  %5941 = vmatpush3.bf16.msra.mxu0 %v7638_v36  ;;  %v2622_v36 = vld [vmem:[%s9252_s1 + $0x2c0] sm:$0xff] }
  0xfa   : > { %5971 = vmatprep.subr.bf16.mxu1 %v7844_v13  ;;  %2759 = vmatprep.mubr.f32.mxu0 %v8228_v51  ;;  %v2606_v13 = vld [vmem:[%s9252_s1 + $0x240] sm:$0xff]  ;;  %v8264_v33 = vpack.c.bf16 %v2623_v17, %v2622_v36  ;;  %v2611_v36 = vld [vmem:[%s9252_s1 + $0x268] sm:$0xff]  ;;  %v8316_v17 = vld [vmem:[#allocation3 + $0x71] sm:$0xff] }
  0xfb   : > { %2860 = vmatmul.mubr.f32.gmra.mrb[74].mxu1 %v7874_v30  ;;  %5943 = vmatprep.subr.bf16.mxu0 %v7658_v26  ;;  %v9321_v26 = vld [vmem:[#allocation10_spill] sm:$0xff]  ;;  %v8277_v38 = vpack.c.bf16 %v2607_v49, %v2606_v13  ;;  %v2489_v60 = vld [vmem:[#allocation6 + $0x60] sm:$0xff] }
  0xfc   : > { %5973 = vmatpush3.bf16.msra.mxu1 %v7858_v56  ;;  %2760 = vmatmul.mubr.f32.gmra.mrb[76].mxu0 %v8233_v61  ;;  %v9322_v56 = vld [vmem:[#allocation9_spill] sm:$0xff]  ;;  %v8262_v30 = vld [vmem:[#allocation3 + $0x51] sm:$0xff] }
  0xfd   : > { %2864 = vmatprep.mubr.f32.mxu1 %v2486_v40  ;;  %5945 = vmatpush3.bf16.msra.mxu0 %v9320_v22  ;;  %v2610_v40 = vld [vmem:[%s9252_s1 + $0x260] sm:$0xff]  ;;  %v8318_v22 = vpack.c.bf16 %v2627_v29, %v2626_v39  ;;  %v2629_v13 = vld [vmem:[%s9252_s1 + $0x2f8] sm:$0xff] }
  0xfe   : > { %5975 = vmatprep.subr.bf16.mxu1 %v9321_v26  ;;  %2764 = vmatprep.mubr.f32.mxu0 %v8239_v27  ;;  %v9328_v26 = vld [vmem:[#allocation16_spill] sm:$0xff]  ;;  %v8331_v49 = vpack.c.bf16 %v2611_v36, %v2610_v40  ;;  %v9331_v39 = vld [vmem:[#allocation19_spill] sm:$0xff]  ;;  %v2664_v40 = vld [vmem:[%s9252_s1 + $0x410] sm:$0xff] }
  0xff   : > { %2865 = vmatmul.mubr.f32.gmra.mrb[76].mxu1 %v7901_v20  ;;  %5947 = vmatprep.subr.bf16.mxu0 %v9322_v56  ;;  %v9324_v20 = vld [vmem:[#allocation11_spill] sm:$0xff]  ;;  %v9329_v56 = vld [vmem:[#allocation17_spill] sm:$0xff] }
 0x100   : > { %5977 = vmatpush3.bf16.msra.mxu1 %v9323_v55  ;;  %2765 = vmatmul.mubr.f32.gmra.mrb[78].mxu0 %v8250_v47  ;;  %v2490_v55 = vld [vmem:[#allocation6 + $0x70] sm:$0xff]  ;;  %v2491_v29 = vld [vmem:[#allocation6 + $0x80] sm:$0xff]  ;;  %v2665_v36 = vld [vmem:[%s9252_s1 + $0x418] sm:$0xff] }
 0x101   : > { %2869 = vmatprep.mubr.f32.mxu1 %v2487_v59  ;;  %5949 = vmatpush3.bf16.msra.mxu0 %v9324_v20  ;;  %v2628_v59 = vld [vmem:[%s9252_s1 + $0x2f0] sm:$0xff]  ;;  %v8343_v20 = vld [vmem:[#allocation3 + $0x81] sm:$0xff] }
 0x102   : > { %5979 = vmatprep.subr.bf16.mxu1 %v9325_v43  ;;  %2769 = vmatprep.mubr.f32.mxu0 %v8262_v30  ;;  %v8345_v43 = vpack.c.bf16 %v2629_v13, %v2628_v59  ;;  %v8385_v59 = vpack.c.bf16 %v2665_v36, %v2664_v40  ;;  %v2666_v13 = vld [vmem:[%s9252_s1 + $0x420] sm:$0xff] }
 0x103   : > { %2870 = vmatmul.mubr.f32.gmra.mrb[78].mxu1 %v7928_v53  ;;  %5951 = vmatprep.subr.bf16.mxu0 %v8264_v33  ;;  %v8302_v53 = vld [vmem:[#allocation4 + $0x60] sm:$0xff] }
 0x104   : > { %5981 = vmatpush3.bf16.msra.mxu1 %v9326_v18  ;;  %2770 = vmatmul.mubr.f32.gmra.mrb[80].mxu0 %v8275_v0  ;;  %v8358_v18 = vpack.c.bf16 %v2613_v32, %v2612_v41  ;;  %v2674_v40 = vld [vmem:[%s9252_s1 + $0x460] sm:$0xff] }
 0x105   : > { %2874 = vmatprep.mubr.f32.mxu1 %v2488_v4  ;;  %5953 = vmatpush3.bf16.msra.mxu0 %v8277_v38  ;;  %v9330_v4 = vld [vmem:[#allocation18_spill] sm:$0xff] }
 0x106   : > { %5983 = vmatprep.subr.bf16.mxu1 %v9327_v8  ;;  %2774 = vmatprep.mubr.f32.mxu0 %v8289_v12  ;;  %v8364_v8 = vld [vmem:[#allocation6 + $0x11] sm:$0xff] }
 0x107   : > { %2875 = vmatmul.mubr.f32.gmra.mrb[80].mxu1 %v7955_v24  ;;  %5955 = vmatprep.subr.bf16.mxu0 %v8291_v42  ;;  %v8329_v24 = vld [vmem:[#allocation4 + $0x70] sm:$0xff] }
 0x108   : > { %5985 = vmatpush3.bf16.msra.mxu1 %v9328_v26  ;;  %2775 = vmatmul.mubr.f32.gmra.mrb[82].mxu0 %v8302_v53  ;;  %v9332_v26 = vld [vmem:[#allocation20_spill] sm:$0xff] }
 0x109   : > { %2879 = vmatprep.mubr.f32.mxu1 %v2489_v60  ;;  %5957 = vmatpush3.bf16.msra.mxu0 %v8304_v1  ;;  %v8366_v60 = vpack.c.bf16 %v2663_v45, %v2662_v44  ;;  %v8417_v44 = vld [vmem:[#allocation5 + $0x31] sm:$0xff] }
 0x10a   : > { %5987 = vmatprep.subr.bf16.mxu1 %v9329_v56  ;;  %2779 = vmatprep.mubr.f32.mxu0 %v8316_v17  ;;  %v2667_v56 = vld [vmem:[%s9252_s1 + $0x428] sm:$0xff] }
 0x10b   : > { %2880 = vmatmul.mubr.f32.gmra.mrb[82].mxu1 %v7982_v34  ;;  %5959 = vmatprep.subr.bf16.mxu0 %v8318_v22  ;;  %v8356_v34 = vld [vmem:[#allocation4 + $0x80] sm:$0xff]  ;;  %v8405_v41 = vpack.c.bf16 %v2667_v56, %v2666_v13 }
 0x10c   : > { %5989 = vmatpush3.bf16.msra.mxu1 %v9330_v4  ;;  %2780 = vmatmul.mubr.f32.gmra.mrb[84].mxu0 %v8329_v24  ;;  %v2669_v4 = vld [vmem:[%s9252_s1 + $0x438] sm:$0xff]  ;;  %v8499_v13 = vld [vmem:[#allocation6 + $0x81] sm:$0xff] }
 0x10d   : > { %2884 = vmatprep.mubr.f32.mxu1 %v2490_v55  ;;  %5961 = vmatpush3.bf16.msra.mxu0 %v8331_v49  ;;  %v8403_v55 = vld [vmem:[#allocation6 + $0x31] sm:$0xff]  ;;  %9334 = vst [vmem:[#allocation10_spill] sm:$0xff] %v8499_v13 }
 0x10e   : > { %5991 = vmatprep.subr.bf16.mxu1 %v9331_v39  ;;  %2784 = vmatprep.mubr.f32.mxu0 %v8343_v20  ;;  %v2670_v39 = vld [vmem:[%s9252_s1 + $0x440] sm:$0xff] }
 0x10f   : > { %2885 = vmatmul.mubr.f32.gmra.mrb[84].mxu1 %v8009_v2  ;;  %5963 = vmatprep.subr.bf16.mxu0 %v8345_v43  ;;  %v8377_v2 = vld [vmem:[#allocation5 + $0x11] sm:$0xff] }
 0x110   : > { %5993 = vmatpush3.bf16.msra.mxu1 %v7993_v23  ;;  %2785 = vmatmul.mubr.f32.gmra.mrb[86].mxu0 %v8356_v34  ;;  %v8383_v23 = vld [vmem:[#allocation6 + $0x21] sm:$0xff] }
 0x111   : > { %2889 = vmatprep.mubr.f32.mxu1 %v2491_v29  ;;  %5965 = vmatpush3.bf16.msra.mxu0 %v8358_v18  ;;  %v2672_v29 = vld [vmem:[%s9252_s1 + $0x450] sm:$0xff] }
 0x112   : > { %5995 = vmatprep.subr.bf16.mxu1 %v9332_v26  ;;  %2959 = vmatprep.mubr.f32.mxu0 %v8364_v8 }
 0x113   : > { %2890 = vmatmul.mubr.f32.gmra.mrb[86].mxu1 %v8036_v14  ;;  %5999 = vmatprep.subr.bf16.mxu0 %v8366_v60  ;;  %v8397_v14 = vld [vmem:[#allocation5 + $0x21] sm:$0xff] }
 0x114   : > { %5997 = vmatpush3.bf16.msra.mxu1 %v8020_v58  ;;  %2960 = vmatmul.mubr.f32.vlgmr.msra.gmra.mrb[88].mxu0 %v8377_v2  ;;  %v4414_v58 = vpop.f32.mrb[0].mxu0 }
 0x115   : > { %3064 = vmatprep.mubr.f32.mxu1 %v8218_v46  ;;  %6001 = vmatpush3.bf16.msra.mxu0 %v8366_v60  ;;  %v4415_v32 = vpop.f32.mrb[1].mxu0 }
 0x116   : > { %6031 = vmatprep.subr.bf16.mxu1 %v8032_v54  ;;  %2964 = vmatprep.mubr.f32.mxu0 %v8383_v23  ;;  %v2668_v54 = vld [vmem:[%s9252_s1 + $0x430] sm:$0xff] }
 0x117   : > { %3065 = vmatmul.mubr.f32.vlgmr.msra.gmra.mrb[88].mxu1 %v8223_v21  ;;  %6003 = vmatprep.subr.bf16.mxu0 %v8385_v59  ;;  %v4416_v21 = vadd.f32 %v4415_v32, %v4414_v58  ;;  %v8425_v45 = vpack.c.bf16 %v2669_v4, %v2668_v54  ;;  %v3399_v32 = vld [vmem:[%s9252_s1 + $0x70] sm:$0xff] }
 0x118   : > { %6033 = vmatpush3.bf16.msra.mxu1 %v8045_v9  ;;  %2965 = vmatmul.mubr.f32.gmra.mrb[90].mxu0 %v8397_v14  ;;  %v8423_v9 = vld [vmem:[#allocation6 + $0x41] sm:$0xff] }
 0x119   : > { %3069 = vmatprep.mubr.f32.mxu1 %v8228_v51  ;;  %6005 = vmatpush3.bf16.msra.mxu0 %v8385_v59 }
 0x11a   : > { %6035 = vmatprep.subr.bf16.mxu1 %v8057_v6  ;;  %2969 = vmatprep.mubr.f32.mxu0 %v8403_v55  ;;  %v2671_v6 = vld [vmem:[%s9252_s1 + $0x448] sm:$0xff] }
 0x11b   : > { %3070 = vmatmul.mubr.f32.gmra.mrb[90].mxu1 %v8233_v61  ;;  %6007 = vmatprep.subr.bf16.mxu0 %v8405_v41  ;;  %v8437_v61 = vld [vmem:[#allocation5 + $0x41] sm:$0xff] }
 0x11c   : > { %6037 = vmatpush3.bf16.msra.mxu1 %v8069_v63  ;;  %2970 = vmatmul.mubr.f32.gmra.mrb[92].mxu0 %v8417_v44  ;;  %v8443_v63 = vpack.c.bf16 %v2671_v6, %v2670_v39  ;;  %v2525_v39 = vld [vmem:[#allocation3 + $0x91] sm:$0xff]  ;;  %v3417_v6 = vld [vmem:[%s9252_s1 + $0x100] sm:$0xff] }
 0x11d   : > { %3074 = vmatprep.mubr.f32.mxu1 %v8239_v27  ;;  %6009 = vmatpush3.bf16.msra.mxu0 %v8405_v41 }
 0x11e   : > { %6039 = vmatprep.subr.bf16.mxu1 %v8073_v31  ;;  %2974 = vmatprep.mubr.f32.mxu0 %v8423_v9  ;;  %v2673_v31 = vld [vmem:[%s9252_s1 + $0x458] sm:$0xff] }
 0x11f   : > { %3075 = vmatmul.mubr.f32.gmra.mrb[92].mxu1 %v8250_v47  ;;  %6011 = vmatprep.subr.bf16.mxu0 %v8425_v45  ;;  %v8455_v47 = vld [vmem:[#allocation5 + $0x51] sm:$0xff] }
 0x120   : > { %6041 = vmatpush3.bf16.msra.mxu1 %v8093_v11  ;;  %2975 = vmatmul.mubr.f32.gmra.mrb[94].mxu0 %v8437_v61  ;;  %v8461_v11 = vpack.c.bf16 %v2673_v31, %v2672_v29  ;;  %v3418_v29 = vld [vmem:[%s9252_s1 + $0x108] sm:$0xff] }
 0x121   : > { %3079 = vmatprep.mubr.f32.mxu1 %v8262_v30  ;;  %6013 = vmatpush3.bf16.msra.mxu0 %v8425_v45 }
 0x122   : > { %6043 = vmatprep.subr.bf16.mxu1 %v8104_v19  ;;  %2979 = vmatprep.mubr.f32.mxu0 %v8129_v10  ;;  %v2675_v19 = vld [vmem:[%s9252_s1 + $0x468] sm:$0xff] }
 0x123   : > { %3080 = vmatmul.mubr.f32.gmra.mrb[94].mxu1 %v8275_v0  ;;  %6015 = vmatprep.subr.bf16.mxu0 %v8443_v63  ;;  %v8482_v10 = vpack.c.bf16 %v2675_v19, %v2674_v40  ;;  %v8532_v19 = vld [vmem:[#allocation4 + $0x21] sm:$0xff] }
 0x124   : > { %6045 = vmatpush3.bf16.msra.mxu1 %v8116_v35  ;;  %2980 = vmatmul.mubr.f32.gmra.mrb[96].mxu0 %v8455_v47  ;;  %v8479_v35 = vld [vmem:[%s9253_s2] ss:$0 sm:$0xff]  ;;  %9336 = vst [vmem:[#allocation12_spill] sm:$0xff] %v8532_v19 }
 0x125   : > { %3084 = vmatprep.mubr.f32.mxu1 %v8289_v12  ;;  %6017 = vmatpush3.bf16.msra.mxu0 %v8443_v63  ;;  %9333 = vst [vmem:[#allocation8_spill] sm:$0xff] %v8482_v10 }
 0x126   : > { %6047 = vmatprep.subr.bf16.mxu1 %v8120_v15  ;;  %2984 = vmatprep.mubr.f32.mxu0 %v8154_v3  ;;  %v2676_v15 = vld [vmem:[%s9252_s1 + $0x470] sm:$0xff]  ;;  %v2677_v3 = vld [vmem:[%s9252_s1 + $0x478] sm:$0xff] }
 0x127   : > { %3085 = vmatmul.mubr.f32.gmra.mrb[96].mxu1 %v8302_v53  ;;  %6019 = vmatprep.subr.bf16.mxu0 %v8461_v11  ;;  %v4417_v0 = vpop.f32.mrb[2].mxu0  ;;  %v1040_v53 = vadd.f32 %v4416_v21, %v8479_v35  ;;  %v4470_v36 = vpop.f32.mrb[0].mxu1  ;;  %v8501_v56 = vpack.c.bf16 %v2677_v3, %v2676_v15  ;;  %v3465_v15 = vld [vmem:[%s9252_s1 + $0x280] sm:$0xff]  ;;  %v3466_v3 = vld [vmem:[%s9252_s1 + $0x288] sm:$0xff] }
 0x128   : > { %6049 = vmatpush3.bf16.msra.mxu1 %v8142_v62  ;;  %2985 = vmatmul.mubr.f32.gmra.mrb[98].mxu0 %v8167_v50  ;;  %v4418_v62 = vpop.f32.mrb[3].mxu0  ;;  %v4471_v50 = vpop.f32.mrb[1].mxu1 }
 0x129   : > { %3089 = vmatprep.mubr.f32.mxu1 %v8316_v17  ;;  %6021 = vmatpush3.bf16.msra.mxu0 %v8461_v11  ;;  %v4419_v26 = vadd.f32 %v4418_v62, %v4417_v0  ;;  %9335 = vst [vmem:[#allocation9_spill] sm:$0xff] %v8501_v56  ;;  %v4472_v58 = vadd.f32 %v4471_v50, %v4470_v36  ;;  %v3436_v36 = vld [vmem:[%s9252_s1 + $0x198] sm:$0xff] }
 0x12a   : > { %6051 = vmatprep.subr.bf16.mxu1 %v8146_v25  ;;  %2989 = vmatprep.mubr.f32.mxu0 %v8181_v37  ;;  %v3433_v25 = vld [vmem:[%s9252_s1 + $0x180] sm:$0xff]  ;;  %v3434_v37 = vld [vmem:[%s9252_s1 + $0x188] sm:$0xff]  ;;  %v8549_v50 = vld [vmem:[#allocation4 + $0x31] sm:$0xff] }
 0x12b   : > { %3090 = vmatmul.mubr.f32.gmra.mrb[98].mxu1 %v8329_v24  ;;  %6023 = vmatprep.subr.bf16.mxu0 %v8482_v10  ;;  %v4420_v24 = vpop.f32.mrb[4].mxu0  ;;  %v1045_v54 = vadd.f32 %v4419_v26, %v8479_v35  ;;  %v4473_v4 = vpop.f32.mrb[2].mxu1  ;;  %v6064_v26 = vpack.c.bf16 %v3418_v29, %v3417_v6  ;;  %v8568_v29 = vld [vmem:[#allocation4 + $0x41] sm:$0xff] }
 0x12c   : > { %6053 = vmatpush3.bf16.msra.mxu1 %v8169_v52  ;;  %2990 = vmatmul.mubr.f32.gmra.mrb[100].mxu0 %v8194_v7  ;;  %v3400_v52 = vld [vmem:[%s9252_s1 + $0x78] sm:$0xff]  ;;  %v8519_v7 = vadd.f32 %v4472_v58, %v1040_v53  ;;  %v4421_v21 = vpop.f32.mrb[5].mxu0  ;;  %v4474_v31 = vpop.f32.mrb[3].mxu1  ;;  %v3435_v53 = vld [vmem:[%s9252_s1 + $0x190] sm:$0xff] }
 0x12d   : > { %3094 = vmatprep.mubr.f32.mxu1 %v8343_v20  ;;  %6025 = vmatpush3.bf16.msra.mxu0 %v8482_v10  ;;  %v4422_v40 = vadd.f32 %v4421_v21, %v4420_v24  ;;  %v4475_v0 = vadd.f32 %v4474_v31, %v4473_v4  ;;  %v3419_v4 = vld [vmem:[%s9252_s1 + $0x110] sm:$0xff]  ;;  %v3420_v21 = vld [vmem:[%s9252_s1 + $0x118] sm:$0xff] }
 0x12e   : > { %6055 = vmatprep.subr.bf16.mxu1 %v8173_v57  ;;  %2994 = vmatprep.mubr.f32.mxu0 %v8499_v13  ;;  %v6062_v57 = vpack.c.bf16 %v3434_v37, %v3433_v25  ;;  %v3467_v31 = vld [vmem:[%s9252_s1 + $0x290] sm:$0xff] }
 0x12f   : > { %3095 = vmatmul.mubr.f32.gmra.mrb[100].mxu1 %v8356_v34  ;;  %6027 = vmatprep.subr.bf16.mxu0 %v8501_v56  ;;  %v6060_v34 = vpack.c.bf16 %v3400_v52, %v3399_v32  ;;  %v4423_v62 = vpop.f32.mrb[6].mxu0  ;;  %v8557_v58 = vadd.f32 %v4475_v0, %v1045_v54  ;;  %v1050_v25 = vadd.f32 %v4422_v40, %v8479_v35  ;;  %v3321_v32 = vld [vmem:[#allocation4 + $0x11] sm:$0xff]  ;;  %v6327_v54 = vld [vmem:[#allocation3] sm:$0xff]  ;;  %v3438_v0 = vld [vmem:[%s9252_s1 + $0x1a8] sm:$0xff] }
 0x130   : > { %6057 = vmatpush3.bf16.msra.mxu1 %v8196_v5  ;;  %2995 = vmatmul.mubr.f32.gmra.mrb[102].mxu0 %v8206_v16  ;;  %v3449_v5 = vld [vmem:[%s9252_s1 + $0x200] sm:$0xff]  ;;  %v3450_v16 = vld [vmem:[%s9252_s1 + $0x208] sm:$0xff]  ;;  %v4476_v37 = vpop.f32.mrb[4].mxu1  ;;  %v4424_v24 = vpop.f32.mrb[7].mxu0  ;;  %v6094_v52 = vpack.c.bf16 %v3466_v3, %v3465_v15  ;;  %v3468_v40 = vld [vmem:[%s9252_s1 + $0x298] sm:$0xff] }
 0x131   : > { %3099 = vmatprep.mubr.f32.mxu1 %v2525_v39  ;;  %6029 = vmatpush3.bf16.msra.mxu0 %v8501_v56  ;;  %v4477_v39 = vpop.f32.mrb[5].mxu1  ;;  %v4425_v6 = vadd.f32 %v4424_v24, %v4423_v62  ;;  %v6096_v3 = vpack.c.bf16 %v3450_v16, %v3449_v5  ;;  %v6068_v62 = vpack.c.bf16 %v3420_v21, %v3419_v4  ;;  %v3452_v5 = vld [vmem:[%s9252_s1 + $0x218] sm:$0xff]  ;;  %v3421_v4 = vld [vmem:[%s9252_s1 + $0x120] sm:$0xff]  ;;  %v3422_v21 = vld [vmem:[%s9252_s1 + $0x128] sm:$0xff] }
 0x132   : > { %6059 = vmatprep.subr.bf16.mxu1 %v8200_v48  ;;  %5494 = vmatprep.mubr.f32.mxu0 %v8532_v19  ;;  %v6066_v48 = vpack.c.bf16 %v3436_v36, %v3435_v53  ;;  %v4478_v15 = vadd.f32 %v4477_v39, %v4476_v37  ;;  %v8583_v36 = vld [vmem:[#allocation4 + $0x51] sm:$0xff]  ;;  %v8602_v39 = vld [vmem:[#allocation4 + $0x61] sm:$0xff] }
 0x133   : > { %3100 = vmatmul.mubr.f32.gmra.mrb[102].mxu1 %v6327_v54  ;;  %6063 = vmatprep.subr.bf16.mxu0 %v6062_v57  ;;  %v3437_v57 = vld [vmem:[%s9252_s1 + $0x1a0] sm:$0xff]  ;;  %v4426_v53 = vpop.f32.mrb[8].mxu0  ;;  %v1055_v37 = vadd.f32 %v4425_v6, %v8479_v35  ;;  %v3471_v56 = vld [vmem:[%s9252_s1 + $0x2b0] sm:$0xff] }
 0x134   : > { %6061 = vmatpush3.bf16.msra.mxu1 %v6060_v34  ;;  %5495 = vmatmul.mubr.f32.vlgmr.msra.gmra.mrb[104].mxu0 %v8549_v50  ;;  %v3451_v34 = vld [vmem:[%s9252_s1 + $0x210] sm:$0xff]  ;;  %v8591_v16 = vadd.f32 %v4478_v15, %v1050_v25  ;;  %v4479_v24 = vpop.f32.mrb[6].mxu1  ;;  %v3469_v6 = vld [vmem:[%s9252_s1 + $0x2a0] sm:$0xff] }
 0x135   : > { %3600 = vmatprep.mubr.f32.mxu1 %v3321_v32  ;;  %6065 = vmatpush3.bf16.msra.mxu0 %v6064_v26  ;;  %v4427_v26 = vpop.f32.mrb[9].mxu0  ;;  %v6098_v32 = vpack.c.bf16 %v3468_v40, %v3467_v31  ;;  %v4480_v25 = vpop.f32.mrb[7].mxu1  ;;  %v3470_v31 = vld [vmem:[%s9252_s1 + $0x2a8] sm:$0xff]  ;;  %v6100_v15 = vpack.c.bf16 %v3452_v5, %v3451_v34  ;;  %v3423_v5 = vld [vmem:[%s9252_s1 + $0x130] sm:$0xff] }
 0x136   : > { %6095 = vmatprep.subr.bf16.mxu1 %v6094_v52  ;;  %5497 = vmatprep.mubr.f32.mxu0 %v8568_v29  ;;  %v4428_v54 = vadd.f32 %v4427_v26, %v4426_v53  ;;  %v6070_v52 = vpack.c.bf16 %v3438_v0, %v3437_v57  ;;  %v4481_v40 = vadd.f32 %v4480_v25, %v4479_v24  ;;  %v3440_v57 = vld [vmem:[%s9252_s1 + $0x1b8] sm:$0xff]  ;;  %v3454_v34 = vld [vmem:[%s9252_s1 + $0x228] sm:$0xff] }
 0x137   : > { %3601 = vmatmul.mubr.f32.vlgmr.msra.gmra.mrb[104].mxu1 %v8210_v28  ;;  %6067 = vmatprep.subr.bf16.mxu0 %v6066_v48  ;;  %v8611_v28 = vld [vmem:[#allocation4 + $0x71] sm:$0xff]  ;;  %v4429_v0 = vpop.f32.mrb[10].mxu0  ;;  %v6072_v53 = vpack.c.bf16 %v3422_v21, %v3421_v4  ;;  %v6102_v4 = vpack.c.bf16 %v3470_v31, %v3469_v6  ;;  %v3441_v31 = vld [vmem:[%s9252_s1 + $0x1c0] sm:$0xff] }
 0x138   : > { %6097 = vmatpush3.bf16.msra.mxu1 %v6096_v3  ;;  %5498 = vmatmul.mubr.f32.gmra.mrb[106].mxu0 %v8583_v36  ;;  %v3439_v48 = vld [vmem:[%s9252_s1 + $0x1b0] sm:$0xff]  ;;  %v3453_v3 = vld [vmem:[%s9252_s1 + $0x220] sm:$0xff]  ;;  %v8629_v24 = vadd.f32 %v4481_v40, %v1055_v37  ;;  %v1060_v26 = vadd.f32 %v4428_v54, %v8479_v35  ;;  %v3424_v21 = vld [vmem:[%s9252_s1 + $0x138] sm:$0xff] }
 0x139   : > { %3605 = vmatprep.mubr.f32.mxu1 %v8532_v19  ;;  %6069 = vmatpush3.bf16.msra.mxu0 %v6068_v62  ;;  %v4482_v25 = vpop.f32.mrb[8].mxu1  ;;  %v4430_v62 = vpop.f32.mrb[11].mxu0  ;;  %v3472_v37 = vld [vmem:[%s9252_s1 + $0x2b8] sm:$0xff]  ;;  %v8643_v40 = vld [vmem:[#allocation4 + $0x81] sm:$0xff]  ;;  %v6074_v6 = vpack.c.bf16 %v3440_v57, %v3439_v48  ;;  %v6104_v10 = vpack.c.bf16 %v3454_v34, %v3453_v3  ;;  %v3455_v57 = vld [vmem:[%s9252_s1 + $0x230] sm:$0xff] }
 0x13a   : > { %6099 = vmatprep.subr.bf16.mxu1 %v6098_v32  ;;  %5500 = vmatprep.mubr.f32.mxu0 %v8602_v39  ;;  %v4483_v54 = vpop.f32.mrb[9].mxu1  ;;  %v4431_v32 = vadd.f32 %v4430_v62, %v4429_v0  ;;  %v3442_v19 = vld [vmem:[%s9252_s1 + $0x1c8] sm:$0xff]  ;;  %v6106_v48 = vpack.c.bf16 %v3472_v37, %v3471_v56  ;;  %v3456_v0 = vld [vmem:[%s9252_s1 + $0x238] sm:$0xff]  ;;  %v3425_v56 = vld [vmem:[%s9252_s1 + $0x140] sm:$0xff] }
 0x13b   : > { %3606 = vmatmul.mubr.f32.gmra.mrb[106].mxu1 %v8218_v46  ;;  %6071 = vmatprep.subr.bf16.mxu0 %v6070_v52  ;;  %v4484_v13 = vadd.f32 %v4483_v54, %v4482_v25  ;;  %v8653_v46 = vld [vmem:[#allocation4 + $0x91] sm:$0xff]  ;;  %v6076_v52 = vpack.c.bf16 %v3424_v21, %v3423_v5  ;;  %v3426_v5 = vld [vmem:[%s9252_s1 + $0x148] sm:$0xff]  ;;  %v6108_v37 = vpack.c.bf16 %v3456_v0, %v3455_v57 }
 0x13c   : > { %6101 = vmatpush3.bf16.msra.mxu1 %v6100_v15  ;;  %5501 = vmatmul.mubr.f32.gmra.mrb[108].mxu0 %v8611_v28  ;;  %v1065_v15 = vadd.f32 %v4431_v32, %v8479_v35  ;;  %v4432_v34 = vpop.f32.mrb[12].mxu0  ;;  %v3443_v62 = vld [vmem:[%s9252_s1 + $0x1d0] sm:$0xff]  ;;  %v3428_v57 = vld [vmem:[%s9252_s1 + $0x158] sm:$0xff] }
 0x13d   : > { %3610 = vmatprep.mubr.f32.mxu1 %v8549_v50  ;;  %6073 = vmatpush3.bf16.msra.mxu0 %v6072_v53  ;;  %v8661_v25 = vadd.f32 %v4484_v13, %v1060_v26  ;;  %v4485_v3 = vpop.f32.mrb[10].mxu1  ;;  %v6078_v53 = vpack.c.bf16 %v3442_v19, %v3441_v31  ;;  %v4433_v26 = vpop.f32.mrb[13].mxu0  ;;  %v3444_v19 = vld [vmem:[%s9252_s1 + $0x1d8] sm:$0xff] }
 0x13e   : > { %6103 = vmatprep.subr.bf16.mxu1 %v6102_v4  ;;  %5503 = vmatprep.mubr.f32.mxu0 %v8643_v40  ;;  %v4486_v13 = vpop.f32.mrb[11].mxu1  ;;  %v4434_v21 = vadd.f32 %v4433_v26, %v4432_v34  ;;  %v6082_v31 = vpack.c.bf16 %v3444_v19, %v3443_v62  ;;  %v3429_v26 = vld [vmem:[%s9252_s1 + $0x160] sm:$0xff] }
 0x13f   : > { %3611 = vmatmul.mubr.f32.gmra.mrb[108].mxu1 %v8228_v51  ;;  %6075 = vmatprep.subr.bf16.mxu0 %v6074_v6  ;;  %v4487_v4 = vadd.f32 %v4486_v13, %v4485_v3  ;;  %v6080_v51 = vpack.c.bf16 %v3426_v5, %v3425_v56 }
 0x140   : > { %6105 = vmatpush3.bf16.msra.mxu1 %v6104_v10  ;;  %5504 = vmatmul.mubr.f32.gmra.mrb[110].mxu0 %v8653_v46  ;;  %v1070_v32 = vadd.f32 %v4434_v21, %v8479_v35  ;;  %v3427_v10 = vld [vmem:[%s9252_s1 + $0x150] sm:$0xff]  ;;  %v3448_v21 = vld [vmem:[%s9252_s1 + $0x1f8] sm:$0xff] }
 0x141   : > { %3615 = vmatprep.mubr.f32.mxu1 %v8568_v29  ;;  %6077 = vmatpush3.bf16.msra.mxu0 %v6076_v52  ;;  %v8680_v54 = vadd.f32 %v4487_v4, %v1065_v15  ;;  %v4488_v6 = vpop.f32.mrb[12].mxu1  ;;  %v3445_v15 = vld [vmem:[%s9252_s1 + $0x1e0] sm:$0xff]  ;;  %v3447_v4 = vld [vmem:[%s9252_s1 + $0x1f0] sm:$0xff] }
 0x142   : > { %6107 = vmatprep.subr.bf16.mxu1 %v6106_v48  ;;  %6079 = vmatprep.subr.bf16.mxu0 %v6078_v53  ;;  %v4435_v52 = vpop.f32.mrb[14].mxu0  ;;  %v4489_v0 = vpop.f32.mrb[13].mxu1  ;;  %v3446_v48 = vld [vmem:[%s9252_s1 + $0x1e8] sm:$0xff] }
 0x143   : > { %3616 = vmatmul.mubr.f32.gmra.mrb[110].mxu1 %v8239_v27  ;;  %3705 = vmatprep.mubr.f32.mxu0 %v8377_v2  ;;  %v4490_v3 = vadd.f32 %v4489_v0, %v4488_v6  ;;  %v4436_v34 = vpop.f32.mrb[15].mxu0  ;;  %v6084_v27 = vpack.c.bf16 %v3428_v57, %v3427_v10  ;;  %v6086_v13 = vpack.c.bf16 %v3446_v48, %v3445_v15  ;;  %v3430_v2 = vld [vmem:[%s9252_s1 + $0x168] sm:$0xff]  ;;  %v3431_v10 = vld [vmem:[%s9252_s1 + $0x170] sm:$0xff]  ;;  %v3497_v0 = vld [vmem:[%s9252_s1 + $0x380] sm:$0xff] }
 0x144   : > { %6109 = vmatpush3.bf16.msra.mxu1 %v6108_v37  ;;  %3620 = vmatprep.mubr.f32.mxu1 %v8583_v36  ;;  %v4437_v53 = vadd.f32 %v4436_v34, %v4435_v52  ;;  %v3498_v15 = vld [vmem:[%s9252_s1 + $0x388] sm:$0xff] }
 0x145   : > { %6081 = vmatpush3.bf16.msra.mxu0 %v6080_v51  ;;  %6111 = vmatprep.subr.bf16.mxu1 %v8264_v33  ;;  %v8699_v56 = vadd.f32 %v4490_v3, %v1070_v32  ;;  %v4491_v5 = vpop.f32.mrb[14].mxu1 }
 0x146   : > { %6083 = vmatprep.subr.bf16.mxu0 %v6082_v31  ;;  %v1075_v62 = vadd.f32 %v4437_v53, %v8479_v35  ;;  %v4492_v19 = vpop.f32.mrb[15].mxu1  ;;  %v4526_v33 = vpop.f32.mrb[16].mxu0  ;;  %v6090_v31 = vpack.c.bf16 %v3448_v21, %v3447_v4  ;;  %v6126_v53 = vpack.c.bf16 %v3498_v15, %v3497_v0 }
 0x147   : > { %3621 = vmatmul.mubr.f32.gmra.mrb[112].mxu1 %v8262_v30  ;;  %v4493_v37 = vadd.f32 %v4492_v19, %v4491_v5  ;;  %v4527_v51 = vpop.f32.mrb[17].mxu0  ;;  %v6088_v30 = vpack.c.bf16 %v3430_v2, %v3429_v26  ;;  %v3482_v5 = vld [vmem:[%s9252_s1 + $0x308] sm:$0xff]  ;;  %v3499_v2 = vld [vmem:[%s9252_s1 + $0x390] sm:$0xff] }
 0x148   : > { %6113 = vmatpush3.bf16.msra.mxu1 %v8277_v38  ;;  %3625 = vmatprep.mubr.f32.mxu1 %v8602_v39  ;;  %v4528_v32 = vadd.f32 %v4527_v51, %v4526_v33  ;;  %v3432_v38 = vld [vmem:[%s9252_s1 + $0x178] sm:$0xff] }
 0x149   : > { %6085 = vmatpush3.bf16.msra.mxu0 %v6084_v27  ;;  %6115 = vmatprep.subr.bf16.mxu1 %v8291_v42  ;;  %v8718_v35 = vadd.f32 %v4493_v37, %v1075_v62  ;;  %v3481_v27 = vld [vmem:[%s9252_s1 + $0x300] sm:$0xff]  ;;  %v3500_v62 = vld [vmem:[%s9252_s1 + $0x398] sm:$0xff] }
 0x14a   : > { %v4582_v6 = vpop.f32.mrb[16].mxu1  ;;  %6087 = vmatprep.subr.bf16.mxu0 %v6086_v13  ;;  %v1250_v57 = vadd.f32 %v4528_v32, %v8519_v7  ;;  %v4529_v52 = vpop.f32.mrb[18].mxu0  ;;  %v3353_v37 = vld [vmem:[#allocation5 + $0x12] sm:$0xff]  ;;  %v6130_v51 = vpack.c.bf16 %v3500_v62, %v3499_v2 }
 0x14b   : > { %3626 = vmatmul.mubr.f32.gmra.mrb[114].mxu1 %v8289_v12  ;;  %v4583_v42 = vpop.f32.mrb[17].mxu1  ;;  %v4530_v3 = vpop.f32.mrb[19].mxu0  ;;  %v6092_v12 = vpack.c.bf16 %v3432_v38, %v3431_v10  ;;  %v3483_v32 = vld [vmem:[%s9252_s1 + $0x310] sm:$0xff]  ;;  %v3501_v10 = vld [vmem:[%s9252_s1 + $0x3a0] sm:$0xff]  ;;  %v3502_v38 = vld [vmem:[%s9252_s1 + $0x3a8] sm:$0xff] }
 0x14c   : > { %v4584_v48 = vadd.f32 %v4583_v42, %v4582_v6  ;;  %6117 = vmatpush3.bf16.msra.mxu1 %v8304_v1  ;;  %3630 = vmatprep.mubr.f32.mxu1 %v8611_v28  ;;  %v4531_v34 = vadd.f32 %v4530_v3, %v4529_v52  ;;  %v3485_v3 = vld [vmem:[%s9252_s1 + $0x320] sm:$0xff] }
 0x14d   : > { %6089 = vmatpush3.bf16.msra.mxu0 %v6088_v30  ;;  %6119 = vmatprep.subr.bf16.mxu1 %v8318_v22 }
 0x14e   : > { %v4585_v7 = vpop.f32.mrb[18].mxu1  ;;  %6091 = vmatprep.subr.bf16.mxu0 %v6090_v31  ;;  %v8743_v1 = vadd.f32 %v4584_v48, %v1250_v57  ;;  %v1255_v13 = vadd.f32 %v4531_v34, %v8557_v58  ;;  %v4532_v26 = vpop.f32.mrb[20].mxu0  ;;  %v6128_v58 = vpack.c.bf16 %v3482_v5, %v3481_v27  ;;  %v6134_v48 = vpack.c.bf16 %v3502_v38, %v3501_v10  ;;  %v3504_v27 = vld [vmem:[%s9252_s1 + $0x3b8] sm:$0xff]  ;;  %v3490_v10 = vld [vmem:[%s9252_s1 + $0x348] sm:$0xff] }
 0x14f   : > { %3631 = vmatmul.mubr.f32.gmra.mrb[116].mxu1 %v8316_v17  ;;  %v4586_v22 = vpop.f32.mrb[19].mxu1  ;;  %v4533_v33 = vpop.f32.mrb[21].mxu0  ;;  %v3329_v17 = vld [vmem:[#allocation3 + $0x12] sm:$0xff] }
 0x150   : > { %v4587_v19 = vadd.f32 %v4586_v22, %v4585_v7  ;;  %6121 = vmatpush3.bf16.msra.mxu1 %v8331_v49  ;;  %3635 = vmatprep.mubr.f32.mxu1 %v8643_v40  ;;  %v4534_v4 = vadd.f32 %v4533_v33, %v4532_v26  ;;  %v3484_v49 = vld [vmem:[%s9252_s1 + $0x318] sm:$0xff] }
 0x151   : > { %6093 = vmatpush3.bf16.msra.mxu0 %v6092_v12  ;;  %6123 = vmatprep.subr.bf16.mxu1 %v8345_v43  ;;  %v6132_v0 = vpack.c.bf16 %v3484_v49, %v3483_v32  ;;  %v3355_v26 = vld [vmem:[#allocation5 + $0x32] sm:$0xff]  ;;  %v3356_v32 = vld [vmem:[#allocation5 + $0x42] sm:$0xff] }
 0x152   : > { %v4588_v21 = vpop.f32.mrb[20].mxu1  ;;  %6127 = vmatprep.subr.bf16.mxu0 %v6126_v53  ;;  %v8762_v30 = vadd.f32 %v4587_v19, %v1255_v13  ;;  %v1260_v6 = vadd.f32 %v4534_v4, %v8591_v16  ;;  %v4535_v43 = vpop.f32.mrb[22].mxu0  ;;  %v8773_v16 = vld [vmem:[#allocation3 + $0x22] sm:$0xff]  ;;  %v3487_v19 = vld [vmem:[%s9252_s1 + $0x330] sm:$0xff]  ;;  %v3488_v33 = vld [vmem:[%s9252_s1 + $0x338] sm:$0xff] }
 0x153   : > { %3636 = vmatmul.mubr.f32.gmra.mrb[118].mxu1 %v8343_v20  ;;  %v4589_v31 = vpop.f32.mrb[21].mxu1  ;;  %v4536_v52 = vpop.f32.mrb[23].mxu0  ;;  %v3354_v20 = vld [vmem:[#allocation5 + $0x22] sm:$0xff]  ;;  %v6140_v49 = vpack.c.bf16 %v3488_v33, %v3487_v19 }
 0x154   : > { %v4590_v57 = vadd.f32 %v4589_v31, %v4588_v21  ;;  %6125 = vmatpush3.bf16.msra.mxu1 %v8358_v18  ;;  %3706 = vmatmul.mubr.f32.vlgmr.msra.gmra.mrb[112].mxu0 %v3329_v17  ;;  %v4537_v42 = vadd.f32 %v4536_v52, %v4535_v43  ;;  %v3486_v18 = vld [vmem:[%s9252_s1 + $0x328] sm:$0xff]  ;;  %v3489_v31 = vld [vmem:[%s9252_s1 + $0x340] sm:$0xff] }
 0x155   : > { %3810 = vmatprep.mubr.f32.mxu1 %v3353_v37  ;;  %6129 = vmatpush3.bf16.msra.mxu0 %v6128_v58  ;;  %v6136_v22 = vpack.c.bf16 %v3486_v18, %v3485_v3  ;;  %v3506_v21 = vld [vmem:[%s9252_s1 + $0x3c8] sm:$0xff] }
 0x156   : > { %v4591_v15 = vpop.f32.mrb[22].mxu1  ;;  %3710 = vmatprep.mubr.f32.mxu0 %v8397_v14  ;;  %6131 = vmatprep.subr.bf16.mxu0 %v6130_v51  ;;  %v8782_v34 = vadd.f32 %v4590_v57, %v1260_v6  ;;  %v1265_v12 = vadd.f32 %v4537_v42, %v8629_v24  ;;  %v4538_v7 = vpop.f32.mrb[24].mxu0  ;;  %v3503_v14 = vld [vmem:[%s9252_s1 + $0x3b0] sm:$0xff]  ;;  %v3508_v42 = vld [vmem:[%s9252_s1 + $0x3d8] sm:$0xff] }
 0x157   : > { %3811 = vmatmul.mubr.f32.vlgmr.msra.gmra.mrb[120].mxu1 %v8364_v8  ;;  %v4592_v53 = vpop.f32.mrb[23].mxu1  ;;  %6159 = vmatprep.subr.bf16.mxu1 %v8366_v60  ;;  %v4539_v13 = vpop.f32.mrb[25].mxu0  ;;  %v8795_v8 = vld [vmem:[#allocation3 + $0x32] sm:$0xff]  ;;  %v6138_v62 = vpack.c.bf16 %v3504_v27, %v3503_v14 }
 0x158   : > { %v4593_v5 = vadd.f32 %v4592_v53, %v4591_v15  ;;  %3711 = vmatmul.mubr.f32.gmra.mrb[114].mxu0 %v8773_v16  ;;  %3815 = vmatprep.mubr.f32.mxu1 %v3354_v20  ;;  %v4540_v24 = vadd.f32 %v4539_v13, %v4538_v7  ;;  %v3357_v15 = vld [vmem:[#allocation5 + $0x52] sm:$0xff]  ;;  %v3510_v13 = vld [vmem:[%s9252_s1 + $0x3e8] sm:$0xff] }
 0x159   : > { %6133 = vmatpush3.bf16.msra.mxu0 %v6132_v0  ;;  %6161 = vmatpush3.bf16.msra.mxu1 %v8366_v60  ;;  %v3492_v7 = vld [vmem:[%s9252_s1 + $0x358] sm:$0xff] }
 0x15a   : > { %v4594_v2 = vpop.f32.mrb[24].mxu1  ;;  %3715 = vmatprep.mubr.f32.mxu0 %v8417_v44  ;;  %6135 = vmatprep.subr.bf16.mxu0 %v6134_v48  ;;  %v8804_v4 = vadd.f32 %v4593_v5, %v1265_v12  ;;  %v1270_v60 = vadd.f32 %v4540_v24, %v8661_v25  ;;  %v4541_v17 = vpop.f32.mrb[26].mxu0  ;;  %v3505_v44 = vld [vmem:[%s9252_s1 + $0x3c0] sm:$0xff]  ;;  %v6144_v48 = vpack.c.bf16 %v3490_v10, %v3489_v31  ;;  %v3491_v12 = vld [vmem:[%s9252_s1 + $0x350] sm:$0xff] }
 0x15b   : > { %3816 = vmatmul.mubr.f32.gmra.mrb[122].mxu1 %v8383_v23  ;;  %v4595_v58 = vpop.f32.mrb[25].mxu1  ;;  %6163 = vmatprep.subr.bf16.mxu1 %v8385_v59  ;;  %v4542_v51 = vpop.f32.mrb[27].mxu0  ;;  %v8817_v23 = vld [vmem:[#allocation3 + $0x42] sm:$0xff]  ;;  %v6142_v43 = vpack.c.bf16 %v3506_v21, %v3505_v44  ;;  %v8888_v10 = vld [vmem:[#allocation3 + $0x72] sm:$0xff] }
 0x15c   : > { %v4596_v37 = vadd.f32 %v4595_v58, %v4594_v2  ;;  %3716 = vmatmul.mubr.f32.gmra.mrb[116].mxu0 %v8795_v8  ;;  %3820 = vmatprep.mubr.f32.mxu1 %v3355_v26  ;;  %v4543_v25 = vadd.f32 %v4542_v51, %v4541_v17  ;;  %v3509_v5 = vld [vmem:[%s9252_s1 + $0x3e0] sm:$0xff]  ;;  %v3494_v17 = vld [vmem:[%s9252_s1 + $0x368] sm:$0xff] }
 0x15d   : > { %6137 = vmatpush3.bf16.msra.mxu0 %v6136_v22  ;;  %6165 = vmatpush3.bf16.msra.mxu1 %v8385_v59  ;;  %v8861_v22 = vld [vmem:[#allocation3 + $0x62] sm:$0xff]  ;;  %v6150_v33 = vpack.c.bf16 %v3510_v13, %v3509_v5  ;;  %v8876_v51 = vld [vmem:[%s9254_s3] ss:$0 sm:$0xff] }
 0x15e   : > { %v4597_v6 = vpop.f32.mrb[26].mxu1  ;;  %3720 = vmatprep.mubr.f32.mxu0 %v8437_v61  ;;  %6139 = vmatprep.subr.bf16.mxu0 %v6138_v62  ;;  %v8826_v38 = vadd.f32 %v4596_v37, %v1270_v60  ;;  %v1275_v59 = vadd.f32 %v4543_v25, %v8680_v54  ;;  %v4544_v57 = vpop.f32.mrb[28].mxu0  ;;  %v3507_v61 = vld [vmem:[%s9252_s1 + $0x3d0] sm:$0xff]  ;;  %v3358_v2 = vld [vmem:[#allocation5 + $0x62] sm:$0xff]  ;;  %v6148_v62 = vpack.c.bf16 %v3492_v7, %v3491_v12 }
 0x15f   : > { %3821 = vmatmul.mubr.f32.gmra.mrb[124].mxu1 %v8403_v55  ;;  %v4598_v52 = vpop.f32.mrb[27].mxu1  ;;  %6167 = vmatprep.subr.bf16.mxu1 %v8405_v41  ;;  %v4545_v0 = vpop.f32.mrb[29].mxu0  ;;  %v8839_v55 = vld [vmem:[#allocation3 + $0x52] sm:$0xff]  ;;  %v6146_v18 = vpack.c.bf16 %v3508_v42, %v3507_v61  ;;  %v3493_v60 = vld [vmem:[%s9252_s1 + $0x360] sm:$0xff] }
 0x160   : > { %v4599_v20 = vadd.f32 %v4598_v52, %v4597_v6  ;;  %3721 = vmatmul.mubr.f32.gmra.mrb[118].mxu0 %v8817_v23  ;;  %3825 = vmatprep.mubr.f32.mxu1 %v3356_v32  ;;  %v4546_v54 = vadd.f32 %v4545_v0, %v4544_v57  ;;  %v3343_v37 = vld [vmem:[#allocation5 + $0x71] sm:$0xff]  ;;  %v3350_v6 = vld [vmem:[#allocation6 + $0x61] sm:$0xff] }
 0x161   : > { %6141 = vmatpush3.bf16.msra.mxu0 %v6140_v49  ;;  %6169 = vmatpush3.bf16.msra.mxu1 %v8405_v41  ;;  %v3495_v52 = vld [vmem:[%s9252_s1 + $0x370] sm:$0xff] }
 0x162   : > { %v4600_v3 = vpop.f32.mrb[28].mxu1  ;;  %3725 = vmatprep.mubr.f32.mxu0 %v8455_v47  ;;  %6143 = vmatprep.subr.bf16.mxu0 %v6142_v43  ;;  %v8848_v53 = vadd.f32 %v4599_v20, %v1275_v59  ;;  %v1280_v41 = vadd.f32 %v4546_v54, %v8699_v56  ;;  %v4547_v14 = vpop.f32.mrb[30].mxu0  ;;  %v3342_v47 = vld [vmem:[#allocation5 + $0x61] sm:$0xff]  ;;  %v3349_v56 = vld [vmem:[#allocation6 + $0x51] sm:$0xff]  ;;  %v6152_v59 = vpack.c.bf16 %v3494_v17, %v3493_v60 }
 0x163   : > { %3826 = vmatmul.mubr.f32.gmra.mrb[126].mxu1 %v8423_v9  ;;  %v4601_v27 = vpop.f32.mrb[29].mxu1  ;;  %6171 = vmatprep.subr.bf16.mxu1 %v8425_v45  ;;  %v4548_v26 = vpop.f32.mrb[31].mxu0  ;;  %v3512_v43 = vld [vmem:[%s9252_s1 + $0x3f8] sm:$0xff]  ;;  %v3344_v20 = vld [vmem:[#allocation5 + $0x81] sm:$0xff] }
 0x164   : > { %v4602_v24 = vadd.f32 %v4601_v27, %v4600_v3  ;;  %3726 = vmatmul.mubr.f32.gmra.mrb[120].mxu0 %v8839_v55  ;;  %3830 = vmatprep.mubr.f32.mxu1 %v3357_v15  ;;  %v4549_v9 = vadd.f32 %v4548_v26, %v4547_v14  ;;  %v9338_v60 = vld [vmem:[#allocation10_spill] sm:$0xff] }
 0x165   : > { %6145 = vmatpush3.bf16.msra.mxu0 %v6144_v48  ;;  %6173 = vmatpush3.bf16.msra.mxu1 %v8425_v45 }
 0x166   : > { %v4603_v19 = vpop.f32.mrb[30].mxu1  ;;  %3730 = vmatprep.mubr.f32.mxu0 %v3342_v47  ;;  %6147 = vmatprep.subr.bf16.mxu0 %v6146_v18  ;;  %v8869_v58 = vadd.f32 %v4602_v24, %v1280_v41  ;;  %v1285_v45 = vadd.f32 %v4549_v9, %v8718_v35  ;;  %v5408_v21 = vpop.f32.mrb[32].mxu0  ;;  %v3511_v35 = vld [vmem:[%s9252_s1 + $0x3f0] sm:$0xff]  ;;  %v8905_v41 = vld [vmem:[#allocation3 + $0x82] sm:$0xff] }
 0x167   : > { %3831 = vmatmul.mubr.f32.gmra.mrb[128].mxu1 %v3349_v56  ;;  %v4604_v44 = vpop.f32.mrb[31].mxu1  ;;  %6175 = vmatprep.subr.bf16.mxu1 %v8443_v63  ;;  %v1465_v32 = vadd.f32 %v5408_v21, %v8762_v30  ;;  %v1459_v49 = vpop.f32.mrb[33].mxu0  ;;  %v3359_v30 = vld [vmem:[#allocation5 + $0x72] sm:$0xff]  ;;  %v6154_v0 = vpack.c.bf16 %v3512_v43, %v3511_v35 }
 0x168   : > { %v4605_v25 = vadd.f32 %v4604_v44, %v4603_v19  ;;  %3731 = vmatmul.mubr.f32.gmra.mrb[122].mxu0 %v8861_v22  ;;  %3835 = vmatprep.mubr.f32.mxu1 %v3358_v2  ;;  %v1460_v31 = vadd.f32 %v1459_v49, %v8743_v1  ;;  %v3496_v1 = vld [vmem:[%s9252_s1 + $0x378] sm:$0xff]  ;;  %v3361_v19 = vld [vmem:[#allocation3 + $0x21] sm:$0xff] }
 0x169   : > { %6149 = vmatpush3.bf16.msra.mxu0 %v6148_v62  ;;  %6177 = vmatpush3.bf16.msra.mxu1 %v8443_v63  ;;  %v1505_v57 = vmul.f32 %v8876_v51, %v1465_v32  ;;  %v3351_v18 = vld [vmem:[#allocation6 + $0x71] sm:$0xff]  ;;  %v6156_v14 = vpack.c.bf16 %v3496_v1, %v3495_v52 }
 0x16a   : > { %3735 = vmatprep.mubr.f32.mxu0 %v3343_v37  ;;  %6151 = vmatprep.subr.bf16.mxu0 %v6150_v33  ;;  %v1390_v61 = vadd.f32 %v4605_v25, %v1285_v45  ;;  %v4662_v42 = vpop.f32.mrb[32].mxu1  ;;  %v5411_v63 = vpop.f32.mrb[34].mxu0  ;;  %v1504_v47 = vmul.f32 %v8876_v51, %v1460_v31  ;;  %v9340_v25 = vld [vmem:[#allocation9_spill] sm:$0xff]  ;;  %v3362_v31 = vld [vmem:[#allocation3 + $0x31] sm:$0xff] }
 0x16b   : > { %3836 = vmatmul.mubr.f32.gmra.mrb[130].mxu1 %v3350_v6  ;;  %6179 = vmatprep.subr.bf16.mxu1 %v8461_v11  ;;  %v4663_v54 = vpop.f32.mrb[33].mxu1  ;;  %v1475_v15 = vadd.f32 %v5411_v63, %v8804_v4  ;;  %v1469_v48 = vpop.f32.mrb[35].mxu0  ;;  %v1516_v3 = vsel %vm1512_vm0, %v1505_v57, 0.0  ;;  %v3360_v4 = vld [vmem:[#allocation5 + $0x82] sm:$0xff] }
 0x16c   : > { %3736 = vmatmul.mubr.f32.gmra.mrb[124].mxu0 %v8888_v10  ;;  %3840 = vmatprep.mubr.f32.mxu1 %v3359_v30  ;;  %v8901_v12 = vadd.f32 %v4663_v54, %v4662_v42  ;;  %v1470_v7 = vadd.f32 %v1469_v48, %v8782_v34 }
 0x16d   : > { %6153 = vmatpush3.bf16.msra.mxu0 %v6152_v59  ;;  %6181 = vmatpush3.bf16.msra.mxu1 %v8461_v11  ;;  %v1507_v27 = vmul.f32 %v8876_v51, %v1475_v15  ;;  %v9337_v11 = vld [vmem:[#allocation8_spill] sm:$0xff] }
 0x16e   : > { %1517 = vadd.xlane.f32.xlu0 %v1516_v3  ;;  %3740 = vmatprep.mubr.f32.mxu0 %v3344_v20  ;;  %v4665_v5 = vpop.f32.mrb[34].mxu1  ;;  %v5414_v13 = vpop.f32.mrb[36].mxu0  ;;  %v1506_v62 = vmul.f32 %v8876_v51, %v1470_v7  ;;  %v3364_v20 = vld [vmem:[#allocation3 + $0x51] sm:$0xff] }
 0x16f   : > { %3841 = vmatmul.mubr.f32.gmra.mrb[132].mxu1 %v3351_v18  ;;  %6155 = vmatprep.subr.bf16.mxu0 %v6154_v0  ;;  %v4666_v24 = vpop.f32.mrb[35].mxu1  ;;  %v1485_v34 = vadd.f32 %v5414_v13, %v8848_v53  ;;  %v1479_v26 = vpop.f32.mrb[37].mxu0  ;;  %v1522_v56 = vsel %vm1512_vm0, %v1507_v27, 0.0  ;;  %v1513_v53 = vsel %vm1512_vm0, %v1504_v47, 0.0  ;;  %v3367_v47 = vld [vmem:[#allocation3 + $0x81] sm:$0xff] }
 0x170   : > { %3741 = vmatmul.mubr.f32.gmra.mrb[126].mxu0 %v8905_v41  ;;  %6183 = vmatprep.subr.bf16.mxu1 %v9337_v11  ;;  %v8913_v9 = vadd.f32 %v4666_v24, %v4665_v5  ;;  %v1480_v2 = vadd.f32 %v1479_v26, %v8826_v38  ;;  %v9339_v38 = vld [vmem:[#allocation12_spill] sm:$0xff]  ;;  %v1519_v6 = vsel %vm1512_vm0, %v1506_v62, 0.0 }
 0x171   : > { %3845 = vmatprep.mubr.f32.mxu1 %v3360_v4  ;;  %6157 = vmatpush3.bf16.msra.mxu0 %v6156_v14  ;;  %v1509_v43 = vmul.f32 %v8876_v51, %v1485_v34 }
 0x172   : > { %6185 = vmatpush3.bf16.msra.mxu1 %v9337_v11  ;;  %1523 = vadd.xlane.f32.xlu1 %v1522_v56  ;;  %v4668_v33 = vpop.f32.mrb[36].mxu1  ;;  %v5417_v17 = vpop.f32.mrb[38].mxu0  ;;  %v1508_v45 = vmul.f32 %v8876_v51, %v1480_v2 }
 0x173   : > { %1514 = vadd.xlane.f32.xlu0 %v1513_v53  ;;  %3846 = vmatmul.mubr.f32.gmra.mrb[134].mxu1 %v9338_v60  ;;  %v4669_v44 = vpop.f32.mrb[37].mxu1  ;;  %v1495_v21 = vadd.f32 %v5417_v17, %v1390_v61  ;;  %v1489_v37 = vpop.f32.mrb[39].mxu0  ;;  %v3363_v61 = vld [vmem:[#allocation3 + $0x41] sm:$0xff] }
 0x174   : > { %3915 = vmatprep.mubr.f32.mxu0 %v9339_v38  ;;  %6187 = vmatprep.subr.bf16.mxu1 %v9340_v25  ;;  %v8923_v32 = vadd.f32 %v4669_v44, %v4668_v33  ;;  %v1490_v49 = vadd.f32 %v1489_v37, %v8869_v58  ;;  %v1525_v35 = vsel %vm1512_vm0, %v1508_v45, 0.0 }
 0x175   : > { %3916 = vmatmul.mubr.f32.vlgmr.msra.gmra.mrb[128].mxu0 %v3361_v19  ;;  %5538 = vmatprep.mubr.f32.mxu1 %v8773_v16  ;;  %v1528_v16 = vsel %vm1512_vm0, %v1509_v43, 0.0  ;;  %v1511_v1 = vmul.f32 %v8876_v51, %v1495_v21 }
 0x176   : > { %6189 = vmatpush3.bf16.msra.mxu1 %v9340_v25  ;;  %1520 = vadd.xlane.f32.xlu1 %v1519_v6  ;;  %v4671_v30 = vpop.f32.mrb[38].mxu1  ;;  %v1510_v59 = vmul.f32 %v8876_v51, %v1490_v49 }
 0x177   : > { %1526 = vadd.xlane.f32.xlu0 %v1525_v35  ;;  %3920 = vmatprep.mubr.f32.mxu0 %v8549_v50  ;;  %v4672_v58 = vpop.f32.mrb[39].mxu1 }
 0x178   : > { %v8933_v57 = vadd.f32 %v4672_v58, %v4671_v30  ;;  %v1531_v52 = vsel %vm1512_vm0, %v1510_v59, 0.0 }
 0x179   : > { %3921 = vmatmul.mubr.f32.gmra.mrb[130].mxu0 %v3362_v31  ;;  %5539 = vmatmul.mubr.f32.vlgmr.msra.gmra.mrb[136].mxu1 %v8795_v8  ;;  %v1534_v8 = vsel %vm1512_vm0, %v1511_v1, 0.0 }
 0x17a   : > { %1529 = vadd.xlane.f32.xlu1 %v1528_v16  ;;  %3925 = vmatprep.mubr.f32.mxu0 %v8568_v29  ;;  %v4674_v42 = vpop.f32.mrb[40].mxu1 }
 0x17b   : > { %1532 = vadd.xlane.f32.xlu0 %v1531_v52  ;;  %5541 = vmatprep.mubr.f32.mxu1 %v8817_v23  ;;  %v4675_v50 = vpop.f32.mrb[41].mxu1  ;;  %v3365_v23 = vld [vmem:[#allocation3 + $0x61] sm:$0xff] }
 0x17c   : > { %v8941_v63 = vadd.f32 %v4675_v50, %v4674_v42 }
 0x17d   : > { %3926 = vmatmul.mubr.f32.gmra.mrb[132].mxu0 %v3363_v61  ;;  %5542 = vmatmul.mubr.f32.gmra.mrb[138].mxu1 %v8839_v55  ;;  %v3384_v55 = vld [vmem:[#allocation3 + $0x92] sm:$0xff] }
 0x17e   : > { %1535 = vadd.xlane.f32.xlu1 %v1534_v8  ;;  %3930 = vmatprep.mubr.f32.mxu0 %v8583_v36  ;;  %v4677_v0 = vpop.f32.mrb[42].mxu1  ;;  %v8957_v36 = vld [vmem:[%s9253_s2] ss:$0 sm:$0xff] }
 0x17f   : > { %v4678_v54 = vpop.f32.mrb[43].mxu1  ;;  %5544 = vmatprep.mubr.f32.mxu1 %v8861_v22  ;;  %v1904_v26 = vadd.f32 %v8913_v9, %v8957_v36  ;;  %v1909_v60 = vadd.f32 %v8923_v32, %v8957_v36  ;;  %v1919_v58 = vadd.f32 %v8941_v63, %v8957_v36 }
 0x180   : > { %v8947_v29 = vadd.f32 %v4678_v54, %v4677_v0 }
 0x181   : > { %3931 = vmatmul.mubr.f32.gmra.mrb[134].mxu0 %v3364_v20  ;;  %5545 = vmatmul.mubr.f32.gmra.mrb[140].mxu1 %v8888_v10  ;;  %v3366_v10 = vld [vmem:[#allocation3 + $0x71] sm:$0xff] }
 0x182   : > { %3935 = vmatprep.mubr.f32.mxu0 %v8602_v39  ;;  %v4680_v15 = vpop.f32.mrb[44].mxu1  ;;  %5547 = vmatprep.mubr.f32.mxu1 %v8905_v41  ;;  %v1899_v41 = vadd.f32 %v8901_v12, %v8957_v36  ;;  %v3368_v12 = vld [vmem:[#allocation3 + $0x91] sm:$0xff]  ;;  %v1924_v20 = vadd.f32 %v8947_v29, %v8957_v36 }
 0x183   : > { %v4681_v48 = vpop.f32.mrb[45].mxu1 }
 0x184   : > { %v8952_v3 = vadd.f32 %v4681_v48, %v4680_v15 }
 0x185   : > { %3936 = vmatmul.mubr.f32.gmra.mrb[136].mxu0 %v3365_v23  ;;  %5548 = vmatmul.mubr.f32.gmra.mrb[142].mxu1 %v3384_v55 }
 0x186   : > { %3940 = vmatprep.mubr.f32.mxu0 %v8611_v28  ;;  %v4683_v22 = vpop.f32.mrb[46].mxu1 }
 0x187   : > { %v4718_v39 = vpop.f32.mrb[40].mxu0  ;;  %v4684_v18 = vpop.f32.mrb[47].mxu1 }
 0x188   : > { %v4719_v7 = vpop.f32.mrb[41].mxu0  ;;  %v8960_v14 = vadd.f32 %v4684_v18, %v4683_v22 }
 0x189   : > { %v4720_v4 = vadd.f32 %v4719_v7, %v4718_v39  ;;  %3941 = vmatmul.mubr.f32.gmra.mrb[138].mxu0 %v3366_v10  ;;  %v1929_v10 = vadd.f32 %v8952_v3, %v8957_v36 }
 0x18a   : > { %v4774_v27 = vpop.f32.mrb[48].mxu1  ;;  %3945 = vmatprep.mubr.f32.mxu0 %v8643_v40 }
 0x18b   : > { %v2004_v5 = vadd.f32 %v4720_v4, %v1899_v41  ;;  %v4721_v13 = vpop.f32.mrb[42].mxu0  ;;  %v4775_v24 = vpop.f32.mrb[49].mxu1 }
 0x18c   : > { %v4776_v28 = vadd.f32 %v4775_v24, %v4774_v27  ;;  %v4722_v34 = vpop.f32.mrb[43].mxu0 }
 0x18d   : > { %v4723_v11 = vadd.f32 %v4722_v34, %v4721_v13  ;;  %3946 = vmatmul.mubr.f32.gmra.mrb[140].mxu0 %v3367_v47 }
 0x18e   : > { %v8967_v56 = vadd.f32 %v4776_v28, %v2004_v5  ;;  %v4777_v2 = vpop.f32.mrb[50].mxu1  ;;  %3950 = vmatprep.mubr.f32.mxu0 %v8653_v46  ;;  %v1914_v46 = vadd.f32 %v8933_v57, %v8957_v36  ;;  %v1934_v5 = vadd.f32 %v8960_v14, %v8957_v36 }
 0x18f   : > { %v2009_v62 = vadd.f32 %v4723_v11, %v1904_v26  ;;  %v4724_v53 = vpop.f32.mrb[44].mxu0  ;;  %v4778_v40 = vpop.f32.mrb[51].mxu1 }
 0x190   : > { %v4779_v19 = vadd.f32 %v4778_v40, %v4777_v2  ;;  %v4725_v33 = vpop.f32.mrb[45].mxu0 }
 0x191   : > { %v4726_v17 = vadd.f32 %v4725_v33, %v4724_v53  ;;  %3951 = vmatmul.mubr.f32.gmra.mrb[142].mxu0 %v3368_v12 }
 0x192   : > { %v2114_v45 = vadd.f32 %v4779_v19, %v2009_v62  ;;  %v4780_v9 = vpop.f32.mrb[52].mxu1 }
 0x193   : > { %v2014_v44 = vadd.f32 %v4726_v17, %v1909_v60  ;;  %v4727_v21 = vpop.f32.mrb[46].mxu0  ;;  %v4781_v38 = vpop.f32.mrb[53].mxu1 }
 0x194   : > { %v4782_v37 = vadd.f32 %v4781_v38, %v4780_v9  ;;  %v4728_v25 = vpop.f32.mrb[47].mxu0 }
 0x195   : > { %v4729_v49 = vadd.f32 %v4728_v25, %v4727_v21 }
 0x196   : > { %v8974_v6 = vadd.f32 %v4782_v37, %v2014_v44  ;;  %v4783_v35 = vpop.f32.mrb[54].mxu1 }
 0x197   : > { %v2019_v43 = vadd.f32 %v4729_v49, %v1914_v46  ;;  %v4730_v31 = vpop.f32.mrb[48].mxu0  ;;  %v4784_v30 = vpop.f32.mrb[55].mxu1 }
 0x198   : > { %v4785_v32 = vadd.f32 %v4784_v30, %v4783_v35  ;;  %v4731_v59 = vpop.f32.mrb[49].mxu0 }
 0x199   : > { %v4732_v16 = vadd.f32 %v4731_v59, %v4730_v31 }
 0x19a   : > { %v2124_v52 = vadd.f32 %v4785_v32, %v2019_v43  ;;  %v4786_v1 = vpop.f32.mrb[56].mxu1 }
 0x19b   : > { %v2024_v61 = vadd.f32 %v4732_v16, %v1919_v58  ;;  %v4733_v42 = vpop.f32.mrb[50].mxu0  ;;  %v4787_v50 = vpop.f32.mrb[57].mxu1 }
 0x19c   : > { %v4788_v8 = vadd.f32 %v4787_v50, %v4786_v1  ;;  %v4734_v57 = vpop.f32.mrb[51].mxu0 }
 0x19d   : > { %v4735_v0 = vadd.f32 %v4734_v57, %v4733_v42 }
 0x19e   : > { %v8980_v54 = vadd.f32 %v4788_v8, %v2024_v61  ;;  %v4789_v23 = vpop.f32.mrb[58].mxu1 }
 0x19f   : > { %v2029_v15 = vadd.f32 %v4735_v0, %v1924_v20  ;;  %v4736_v55 = vpop.f32.mrb[52].mxu0  ;;  %v4790_v48 = vpop.f32.mrb[59].mxu1 }
 0x1a0   : > { %v4791_v22 = vadd.f32 %v4790_v48, %v4789_v23  ;;  %v4737_v63 = vpop.f32.mrb[53].mxu0 }
 0x1a1   : > { %v4738_v39 = vadd.f32 %v4737_v63, %v4736_v55 }
 0x1a2   : > { %v2134_v18 = vadd.f32 %v4791_v22, %v2029_v15  ;;  %v4792_v7 = vpop.f32.mrb[60].mxu1 }
 0x1a3   : > { %v2034_v41 = vadd.f32 %v4738_v39, %v1929_v10  ;;  %v4739_v4 = vpop.f32.mrb[54].mxu0  ;;  %v4793_v27 = vpop.f32.mrb[61].mxu1 }
 0x1a4   : > { %v4794_v47 = vadd.f32 %v4793_v27, %v4792_v7  ;;  %v4740_v29 = vpop.f32.mrb[55].mxu0 }
 0x1a5   : > { %v4741_v13 = vadd.f32 %v4740_v29, %v4739_v4 }
 0x1a6   : > { %v8986_v24 = vadd.f32 %v4794_v47, %v2034_v41  ;;  %v4795_v28 = vpop.f32.mrb[62].mxu1 }
 0x1a7   : > { %v2039_v34 = vadd.f32 %v4741_v13, %v1934_v5  ;;  %v4796_v26 = vpop.f32.mrb[63].mxu1  ;;  %v4830_v11 = vpop.f32.mrb[56].mxu0 }
 0x1a8   : > { %v4797_v2 = vadd.f32 %v4796_v26, %v4795_v28  ;;  %v4831_v3 = vpop.f32.mrb[57].mxu0 }
 0x1a9   : > { %v4832_v12 = vadd.f32 %v4831_v3, %v4830_v11 }
 0x1aa   : > { %v2144_v62 = vadd.f32 %v4797_v2, %v2039_v34  ;;  %v5452_v53 = vpop.f32.mrb[64].mxu1 }
 0x1ab   : > { %v4833_v40 = vpop.f32.mrb[58].mxu0  ;;  %v2214_v19 = vadd.f32 %v4832_v12, %v8967_v56  ;;  %v2318_v33 = vpop.f32.mrb[65].mxu1 }
 0x1ac   : > { %v4834_v60 = vpop.f32.mrb[59].mxu0 }
 0x1ad   : > { %v4835_v17 = vadd.f32 %v4834_v60, %v4833_v40  ;;  %v2319_v9 = vadd.f32 %v2318_v33, %v2214_v19 }
 0x1af   : > { %v2219_v14 = vadd.f32 %v4835_v17, %v2114_v45  ;;  %v4836_v44 = vpop.f32.mrb[60].mxu0  ;;  %v2357_v21 = vmul.f32 %v8876_v51, %v2319_v9 }
 0x1b0   : > { %v4837_v38 = vpop.f32.mrb[61].mxu0 }
 0x1b1   : > { %v4838_v37 = vadd.f32 %v4837_v38, %v4836_v44  ;;  %v2365_v25 = vsel %vm1512_vm0, %v2357_v21, 0.0  ;;  %v5455_v46 = vpop.f32.mrb[66].mxu1  ;;  %v2324_v49 = vadd.f32 %v5452_v53, %v2219_v14 }
 0x1b2   : > { %2366 = vadd.xlane.f32.xlu0 %v2365_v25  ;;  %v2328_v35 = vpop.f32.mrb[67].mxu1 }
 0x1b3   : > { %v4839_v43 = vpop.f32.mrb[62].mxu0  ;;  %v2224_v31 = vadd.f32 %v4838_v37, %v8974_v6  ;;  %v2358_v56 = vmul.f32 %v8876_v51, %v2324_v49 }
 0x1b4   : > { %v4840_v30 = vpop.f32.mrb[63].mxu0 }
 0x1b5   : > { %v4841_v32 = vadd.f32 %v4840_v30, %v4839_v43  ;;  %v2329_v59 = vadd.f32 %v2328_v35, %v2224_v31  ;;  %v2368_v45 = vsel %vm1512_vm0, %v2358_v56, 0.0 }
 0x1b6   : > { %2369 = vadd.xlane.f32.xlu1 %v2368_v45  ;;  %v5458_v58 = vpop.f32.mrb[68].mxu1 }
 0x1b7   : > { %v2229_v16 = vadd.f32 %v4841_v32, %v2124_v52  ;;  %v4842_v1 = vpop.f32.mrb[64].mxu0  ;;  %v2359_v61 = vmul.f32 %v8876_v51, %v2329_v59  ;;  %v2338_v42 = vpop.f32.mrb[69].mxu1 }
 0x1b8   : > { %v4843_v50 = vpop.f32.mrb[65].mxu0 }
 0x1b9   : > { %v4844_v8 = vadd.f32 %v4843_v50, %v4842_v1  ;;  %v2371_v57 = vsel %vm1512_vm0, %v2359_v61, 0.0  ;;  %v2334_v20 = vadd.f32 %v5455_v46, %v2229_v16 }
 0x1ba   : > { %2372 = vadd.xlane.f32.xlu0 %v2371_v57 }
 0x1bb   : > { %v4845_v6 = vpop.f32.mrb[66].mxu0  ;;  %v2234_v0 = vadd.f32 %v4844_v8, %v8980_v54  ;;  %v2360_v23 = vmul.f32 %v8876_v51, %v2334_v20 }
 0x1bc   : > { %v4846_v15 = vpop.f32.mrb[67].mxu0 }
 0x1bd   : > { %v4847_v55 = vadd.f32 %v4846_v15, %v4845_v6  ;;  %v2339_v48 = vadd.f32 %v2338_v42, %v2234_v0  ;;  %v2374_v52 = vsel %vm1512_vm0, %v2360_v23, 0.0 }
 0x1be   : > { %2375 = vadd.xlane.f32.xlu1 %v2374_v52  ;;  %v5461_v22 = vpop.f32.mrb[70].mxu1 }
 0x1bf   : > { %v2239_v63 = vadd.f32 %v4847_v55, %v2134_v18  ;;  %v4848_v10 = vpop.f32.mrb[68].mxu0  ;;  %v2361_v39 = vmul.f32 %v8876_v51, %v2339_v48  ;;  %v2348_v7 = vpop.f32.mrb[71].mxu1 }
 0x1c0   : > { %v4849_v41 = vpop.f32.mrb[69].mxu0 }
 0x1c1   : > { %v4850_v4 = vadd.f32 %v4849_v41, %v4848_v10  ;;  %v2377_v27 = vsel %vm1512_vm0, %v2361_v39, 0.0  ;;  %v2344_v47 = vadd.f32 %v5458_v58, %v2239_v63 }
 0x1c2   : > { %2378 = vadd.xlane.f32.xlu0 %v2377_v27 }
 0x1c3   : > { %v4851_v54 = vpop.f32.mrb[70].mxu0  ;;  %v2244_v29 = vadd.f32 %v4850_v4, %v8986_v24  ;;  %v2362_v5 = vmul.f32 %v8876_v51, %v2344_v47 }
 0x1c4   : > { %v4852_v13 = vpop.f32.mrb[71].mxu0 }
 0x1c5   : > { %v4853_v28 = vadd.f32 %v4852_v13, %v4851_v54  ;;  %v2349_v34 = vadd.f32 %v2348_v7, %v2244_v29  ;;  %v2380_v18 = vsel %vm1512_vm0, %v2362_v5, 0.0 }
 0x1c6   : > { %2381 = vadd.xlane.f32.xlu1 %v2380_v18 }
 0x1c7   : > { %v2249_v26 = vadd.f32 %v4853_v28, %v2144_v62  ;;  %v4910_v11 = vpop.f32.mrb[72].mxu0  ;;  %v2363_v2 = vmul.f32 %v8876_v51, %v2349_v34 }
 0x1c8   : > { %v4911_v3 = vpop.f32.mrb[73].mxu0 }
 0x1c9   : > { %v4912_v12 = vadd.f32 %v4911_v3, %v4910_v11  ;;  %v2383_v53 = vsel %vm1512_vm0, %v2363_v2, 0.0  ;;  %v2354_v40 = vadd.f32 %v5461_v22, %v2249_v26 }
 0x1ca   : > { %v4966_v19 = vpop.f32.mrb[72].mxu1  ;;  %2384 = vadd.xlane.f32.xlu0 %v2383_v53 }
 0x1cb   : > { %v2752_v24 = vadd.f32 %v4912_v12, %v8957_v36  ;;  %v4967_v33 = vpop.f32.mrb[73].mxu1  ;;  %v4913_v60 = vpop.f32.mrb[74].mxu0  ;;  %v2364_v17 = vmul.f32 %v8876_v51, %v2354_v40 }
 0x1cc   : > { %v4968_v9 = vadd.f32 %v4967_v33, %v4966_v19  ;;  %v4914_v14 = vpop.f32.mrb[75].mxu0 }
 0x1cd   : > { %v4915_v44 = vadd.f32 %v4914_v14, %v4913_v60  ;;  %v2386_v62 = vsel %vm1512_vm0, %v2364_v17, 0.0 }
 0x1ce   : > { %v2857_v21 = vadd.f32 %v4968_v9, %v2752_v24  ;;  %v4969_v38 = vpop.f32.mrb[74].mxu1  ;;  %2387 = vadd.xlane.f32.xlu1 %v2386_v62 }
 0x1cf   : > { %v2757_v37 = vadd.f32 %v4915_v44, %v8957_v36  ;;  %v4970_v25 = vpop.f32.mrb[75].mxu1  ;;  %v4916_v46 = vpop.f32.mrb[76].mxu0 }
 0x1d0   : > { %v4971_v49 = vadd.f32 %v4970_v25, %v4969_v38  ;;  %v4917_v35 = vpop.f32.mrb[77].mxu0 }
 0x1d1   : > { %v4918_v43 = vadd.f32 %v4917_v35, %v4916_v46 }
 0x1d2   : > { %v2862_v31 = vadd.f32 %v4971_v49, %v2757_v37  ;;  %v4972_v56 = vpop.f32.mrb[76].mxu1 }
 0x1d3   : > { %v2762_v30 = vadd.f32 %v4918_v43, %v8957_v36  ;;  %v4973_v32 = vpop.f32.mrb[77].mxu1  ;;  %v4919_v59 = vpop.f32.mrb[78].mxu0 }
 0x1d4   : > { %v4974_v45 = vadd.f32 %v4973_v32, %v4972_v56  ;;  %v4920_v58 = vpop.f32.mrb[79].mxu0 }
 0x1d5   : > { %v4921_v16 = vadd.f32 %v4920_v58, %v4919_v59 }
 0x1d6   : > { %v2867_v1 = vadd.f32 %v4974_v45, %v2762_v30  ;;  %v4975_v61 = vpop.f32.mrb[78].mxu1 }
 0x1d7   : > { %v2767_v42 = vadd.f32 %v4921_v16, %v8957_v36  ;;  %v4976_v50 = vpop.f32.mrb[79].mxu1  ;;  %v4922_v8 = vpop.f32.mrb[80].mxu0 }
 0x1d8   : > { %v4977_v57 = vadd.f32 %v4976_v50, %v4975_v61  ;;  %v4923_v20 = vpop.f32.mrb[81].mxu0 }
 0x1d9   : > { %v4924_v6 = vadd.f32 %v4923_v20, %v4922_v8 }
 0x1da   : > { %v2872_v0 = vadd.f32 %v4977_v57, %v2767_v42  ;;  %v4978_v23 = vpop.f32.mrb[80].mxu1 }
 0x1db   : > { %v2772_v15 = vadd.f32 %v4924_v6, %v8957_v36  ;;  %v4979_v55 = vpop.f32.mrb[81].mxu1  ;;  %v4925_v48 = vpop.f32.mrb[82].mxu0 }
 0x1dc   : > { %v4980_v52 = vadd.f32 %v4979_v55, %v4978_v23  ;;  %v4926_v22 = vpop.f32.mrb[83].mxu0 }
 0x1dd   : > { %v4927_v63 = vadd.f32 %v4926_v22, %v4925_v48  ;;  %v9028_v48 = vld [vmem:[#allocation7] ss:$0 sm:$0xff] }
 0x1de   : > { %v2877_v10 = vadd.f32 %v4980_v52, %v2772_v15  ;;  %v4981_v39 = vpop.f32.mrb[82].mxu1 }
 0x1df   : > { %v2777_v7 = vadd.f32 %v4927_v63, %v8957_v36  ;;  %v4982_v41 = vpop.f32.mrb[83].mxu1  ;;  %v4928_v4 = vpop.f32.mrb[84].mxu0 }
 0x1e0   : > { %v4983_v27 = vadd.f32 %v4982_v41, %v4981_v39  ;;  %v4929_v47 = vpop.f32.mrb[85].mxu0 }
 0x1e1   : > { %v4930_v54 = vadd.f32 %v4929_v47, %v4928_v4 }
 0x1e2   : > { %v9014_v29 = vadd.f32 %v4983_v27, %v2777_v7  ;;  %v4984_v5 = vpop.f32.mrb[84].mxu1 }
 0x1e3   : > { %v2782_v13 = vadd.f32 %v4930_v54, %v8957_v36  ;;  %v4985_v28 = vpop.f32.mrb[85].mxu1  ;;  %v4931_v34 = vpop.f32.mrb[86].mxu0 }
 0x1e4   : > { %v4986_v18 = vadd.f32 %v4985_v28, %v4984_v5  ;;  %v4932_v26 = vpop.f32.mrb[87].mxu0 }
 0x1e5   : > { %v4933_v11 = vadd.f32 %v4932_v26, %v4931_v34 }
 0x1e6   : > { %v9017_v2 = vadd.f32 %v4986_v18, %v2782_v13  ;;  %v4987_v3 = vpop.f32.mrb[86].mxu1 }
 0x1e7   : > { %v2787_v12 = vadd.f32 %v4933_v11, %v8957_v36  ;;  %v4988_v53 = vpop.f32.mrb[87].mxu1  ;;  %v5022_v40 = vpop.f32.mrb[88].mxu0 }
 0x1e8   : > { %v4989_v19 = vadd.f32 %v4988_v53, %v4987_v3  ;;  %v5023_v24 = vpop.f32.mrb[89].mxu0 }
 0x1e9   : > { %v5024_v33 = vadd.f32 %v5023_v24, %v5022_v40 }
 0x1ea   : > { %v9020_v60 = vadd.f32 %v4989_v19, %v2787_v12  ;;  %v5078_v17 = vpop.f32.mrb[88].mxu1 }
 0x1eb   : > { %v2962_v9 = vadd.f32 %v5024_v33, %v2857_v21  ;;  %v5079_v14 = vpop.f32.mrb[89].mxu1  ;;  %v5025_v44 = vpop.f32.mrb[90].mxu0 }
 0x1ec   : > { %v5080_v62 = vadd.f32 %v5079_v14, %v5078_v17  ;;  %v5026_v38 = vpop.f32.mrb[91].mxu0 }
 0x1ed   : > { %v5027_v37 = vadd.f32 %v5026_v38, %v5025_v44 }
 0x1ee   : > { %v5081_v25 = vpop.f32.mrb[90].mxu1  ;;  %v9022_v46 = vadd.f32 %v5080_v62, %v2962_v9 }
 0x1ef   : > { %v2967_v49 = vadd.f32 %v5027_v37, %v2862_v31  ;;  %v5082_v35 = vpop.f32.mrb[91].mxu1  ;;  %v5028_v43 = vpop.f32.mrb[92].mxu0 }
 0x1f0   : > { %v5083_v56 = vadd.f32 %v5082_v35, %v5081_v25  ;;  %v5029_v30 = vpop.f32.mrb[93].mxu0 }
 0x1f1   : > { %v5030_v32 = vadd.f32 %v5029_v30, %v5028_v43 }
 0x1f2   : > { %v5084_v59 = vpop.f32.mrb[92].mxu1  ;;  %v9024_v45 = vadd.f32 %v5083_v56, %v2967_v49 }
 0x1f3   : > { %v2972_v58 = vadd.f32 %v5030_v32, %v2867_v1  ;;  %v5085_v16 = vpop.f32.mrb[93].mxu1  ;;  %v5031_v21 = vpop.f32.mrb[94].mxu0 }
 0x1f4   : > { %v5086_v61 = vadd.f32 %v5085_v16, %v5084_v59  ;;  %v5032_v42 = vpop.f32.mrb[95].mxu0 }
 0x1f5   : > { %v5033_v50 = vadd.f32 %v5032_v42, %v5031_v21 }
 0x1f6   : > { %v5087_v8 = vpop.f32.mrb[94].mxu1  ;;  %v9026_v57 = vadd.f32 %v5086_v61, %v2972_v58 }
 0x1f7   : > { %v2977_v20 = vadd.f32 %v5033_v50, %v2872_v0  ;;  %v5088_v6 = vpop.f32.mrb[95].mxu1  ;;  %v5034_v31 = vpop.f32.mrb[96].mxu0 }
 0x1f8   : > { %v5089_v23 = vadd.f32 %v5088_v6, %v5087_v8  ;;  %v5035_v15 = vpop.f32.mrb[97].mxu0 }
 0x1f9   : > { %v5036_v55 = vadd.f32 %v5035_v15, %v5034_v31 }
 0x1fa   : > { %v5090_v52 = vpop.f32.mrb[96].mxu1  ;;  %v9030_v22 = vadd.f32 %v5089_v23, %v2977_v20 }
 0x1fb   : > { %v2982_v1 = vadd.f32 %v5036_v55, %v2877_v10  ;;  %v5091_v63 = vpop.f32.mrb[97].mxu1  ;;  %v1518_v39 = vpop.xlane.xlu0 %1517 }
 0x1fc   : > { %v5092_v7 = vadd.f32 %v5091_v63, %v5090_v52  ;;  %v1545_v41 = vadd.f32 %v9028_v48, %v1518_v39  ;;  %v5037_v4 = vpop.f32.mrb[98].mxu0 }
 0x1fd   : > { %v5038_v27 = vpop.f32.mrb[99].mxu0 }
 0x1fe   : > { %v4338_v47 = vmul.f32 -1.442695, %v1545_v41  ;;  %v5039_v0 = vadd.f32 %v5038_v27, %v5037_v4  ;;  %v5093_v54 = vpop.f32.mrb[98].mxu1  ;;  %v9033_v5 = vadd.f32 %v5092_v7, %v2982_v1 }
 0x1ff   : > { %v5094_v13 = vpop.f32.mrb[99].mxu1  ;;  %v1524_v28 = vpop.xlane.xlu1 %1523 }
 0x200   : > { %6199 = vpow2.f32 %v4338_v47  ;;  %v2987_v34 = vadd.f32 %v5039_v0, %v9014_v29  ;;  %v5095_v18 = vadd.f32 %v5094_v13, %v5093_v54  ;;  %v1547_v10 = vadd.f32 %v9028_v48, %v1524_v28  ;;  %v1515_v26 = vpop.xlane.xlu0 %1514  ;;  %v5040_v11 = vpop.f32.mrb[100].mxu0 }
 0x201   : > { %v1544_v3 = vadd.f32 %v9028_v48, %v1515_v26  ;;  %v5041_v12 = vpop.f32.mrb[101].mxu0 }
 0x202   : > { %v4340_v53 = vmul.f32 -1.442695, %v1547_v10  ;;  %v5042_v40 = vadd.f32 %v5041_v12, %v5040_v11  ;;  %v5096_v19 = vpop.f32.mrb[100].mxu1  ;;  %v9038_v24 = vadd.f32 %v5095_v18, %v2987_v34 }
 0x203   : > { %v4337_v33 = vmul.f32 -1.442695, %v1544_v3  ;;  %v5097_v17 = vpop.f32.mrb[101].mxu1  ;;  %v1521_v9 = vpop.xlane.xlu1 %1520 }
 0x204   : > { %6201 = vpow2.f32 %v4340_v53  ;;  %v2992_v14 = vadd.f32 %v5042_v40, %v9017_v2  ;;  %v5098_v29 = vadd.f32 %v5097_v17, %v5096_v19  ;;  %v1546_v44 = vadd.f32 %v9028_v48, %v1521_v9  ;;  %v5043_v62 = vpop.f32.mrb[102].mxu0  ;;  %v1527_v38 = vpop.xlane.xlu0 %1526 }
 0x205   : > { %6203 = vpow2.f32 %v4337_v33  ;;  %v1548_v37 = vadd.f32 %v9028_v48, %v1527_v38  ;;  %v5044_v25 = vpop.f32.mrb[103].mxu0 }
 0x206   : > { %v4339_v49 = vmul.f32 -1.442695, %v1546_v44  ;;  %v5045_v35 = vadd.f32 %v5044_v25, %v5043_v62  ;;  %v5099_v43 = vpop.f32.mrb[102].mxu1  ;;  %v9043_v56 = vadd.f32 %v5098_v29, %v2992_v14 }
 0x207   : > { %v4341_v30 = vmul.f32 -1.442695, %v1548_v37  ;;  %v5100_v32 = vpop.f32.mrb[103].mxu1  ;;  %v1530_v59 = vpop.xlane.xlu1 %1529 }
 0x208   : > { %6205 = vpow2.f32 %v4339_v49  ;;  %v2997_v2 = vadd.f32 %v5045_v35, %v9020_v60  ;;  %v5101_v58 = vadd.f32 %v5100_v32, %v5099_v43  ;;  %v1549_v16 = vadd.f32 %v9028_v48, %v1530_v59  ;;  %v5496_v21 = vpop.f32.mrb[104].mxu0  ;;  %v1533_v61 = vpop.xlane.xlu0 %1532 }
 0x209   : > { %6207 = vpow2.f32 %v4341_v30  ;;  %v3177_v42 = vadd.f32 %v5496_v21, %v9024_v45  ;;  %v1550_v50 = vadd.f32 %v9028_v48, %v1533_v61  ;;  %v3171_v8 = vpop.f32.mrb[105].mxu0 }
 0x20a   : > { %v6200_v20 = vpop.eup %6199  ;;  %v4342_v6 = vmul.f32 -1.442695, %v1549_v16  ;;  %v3172_v31 = vadd.f32 %v3171_v8, %v9022_v46  ;;  %v3102_v23 = vadd.f32 %v5101_v58, %v2997_v2  ;;  %v5158_v15 = vpop.f32.mrb[104].mxu1 }
 0x20b   : > { %v1577_v55 = vadd.f32 1.0, %v6200_v20  ;;  %v4343_v52 = vmul.f32 -1.442695, %v1550_v50  ;;  %v1536_v60 = vpop.xlane.xlu1 %1535  ;;  %v5499_v1 = vpop.f32.mrb[106].mxu0  ;;  %v3211_v63 = vmul.f32 %v8876_v51, %v3177_v42 }
 0x20c   : > { %6209 = vpow2.f32 %v4342_v6  ;;  %v1551_v39 = vadd.f32 %v9028_v48, %v1536_v60  ;;  %v3187_v45 = vadd.f32 %v5499_v1, %v9030_v22  ;;  %v3181_v7 = vpop.f32.mrb[107].mxu0  ;;  %v3210_v41 = vmul.f32 %v8876_v51, %v3172_v31  ;;  %v5159_v4 = vpop.f32.mrb[105].mxu1 }
 0x20d   : > { %6211 = vrcp.f32 %v1577_v55  ;;  %v3182_v46 = vadd.f32 %v3181_v7, %v9026_v57  ;;  %v3221_v27 = vsel %vm1512_vm0, %v3211_v63, 0.0  ;;  %v9056_v47 = vadd.f32 %v5159_v4, %v5158_v15 }
 0x20e   : > { %v6202_v0 = vpop.eup %6201  ;;  %6213 = vpow2.f32 %v4343_v52  ;;  %v4344_v54 = vmul.f32 -1.442695, %v1551_v39  ;;  %3222 = vadd.xlane.f32.xlu1 %v3221_v27  ;;  %v3218_v13 = vsel %vm1512_vm0, %v3210_v41, 0.0  ;;  %v3213_v28 = vmul.f32 %v8876_v51, %v3187_v45  ;;  %v5161_v22 = vpop.f32.mrb[106].mxu1 }
 0x20f   : > { %v6204_v34 = vpop.eup %6203  ;;  %v1579_v18 = vadd.f32 1.0, %v6202_v0  ;;  %3219 = vadd.xlane.f32.xlu0 %v3218_v13  ;;  %v5502_v10 = vpop.f32.mrb[108].mxu0  ;;  %v3212_v26 = vmul.f32 %v8876_v51, %v3182_v46 }
 0x210   : > { %v5162_v57 = vpop.f32.mrb[107].mxu1  ;;  %v1576_v11 = vadd.f32 1.0, %v6204_v34  ;;  %6215 = vpow2.f32 %v4344_v54  ;;  %v3197_v3 = vadd.f32 %v5502_v10, %v9038_v24  ;;  %v3191_v12 = vpop.f32.mrb[109].mxu0  ;;  %v3227_v53 = vsel %vm1512_vm0, %v3213_v28, 0.0 }
 0x211   : > { %6217 = vrcp.f32 %v1579_v18  ;;  %v3192_v40 = vadd.f32 %v3191_v12, %v9033_v5  ;;  %v3224_v19 = vsel %vm1512_vm0, %v3212_v26, 0.0  ;;  %v9065_v33 = vadd.f32 %v5162_v57, %v5161_v22 }
 0x212   : > { %v6206_v17 = vpop.eup %6205  ;;  %6219 = vrcp.f32 %v1576_v11  ;;  %3228 = vadd.xlane.f32.xlu1 %v3227_v53  ;;  %v3215_v9 = vmul.f32 %v8876_v51, %v3197_v3  ;;  %v5164_v14 = vpop.f32.mrb[108].mxu1  ;;  %v3603_v18 = vadd.f32 %v9056_v47, %v8957_v36 }
 0x213   : > { %v6208_v29 = vpop.eup %6207  ;;  %v1578_v44 = vadd.f32 1.0, %v6206_v17  ;;  %3225 = vadd.xlane.f32.xlu0 %v3224_v19  ;;  %v5505_v24 = vpop.f32.mrb[110].mxu0  ;;  %v3214_v62 = vmul.f32 %v8876_v51, %v3192_v40  ;;  %v3608_v40 = vadd.f32 %v9065_v33, %v8957_v36 }
 0x214   : > { %v5165_v38 = vpop.f32.mrb[109].mxu1  ;;  %v1580_v37 = vadd.f32 1.0, %v6208_v29  ;;  %v3207_v5 = vadd.f32 %v5505_v24, %v3102_v23  ;;  %v3201_v25 = vpop.f32.mrb[111].mxu0  ;;  %v3233_v49 = vsel %vm1512_vm0, %v3215_v9, 0.0 }
 0x215   : > { %v9070_v35 = vadd.f32 %v5165_v38, %v5164_v14  ;;  %6221 = vrcp.f32 %v1578_v44  ;;  %v3202_v43 = vadd.f32 %v3201_v25, %v9043_v56  ;;  %v3230_v30 = vsel %vm1512_vm0, %v3214_v62, 0.0 }
 0x216   : > { %v6210_v32 = vpop.eup %6209  ;;  %6223 = vrcp.f32 %v1580_v37  ;;  %3234 = vadd.xlane.f32.xlu1 %v3233_v49  ;;  %v3217_v59 = vmul.f32 %v8876_v51, %v3207_v5  ;;  %v5167_v2 = vpop.f32.mrb[110].mxu1 }
 0x217   : > { %v6212_v58 = vpop.eup %6211  ;;  %v1581_v16 = vadd.f32 1.0, %v6210_v32  ;;  %3231 = vadd.xlane.f32.xlu0 %v3230_v30  ;;  %v3216_v21 = vmul.f32 %v8876_v51, %v3202_v43  ;;  %v5168_v61 = vpop.f32.mrb[111].mxu1  ;;  %v3613_v47 = vadd.f32 %v9070_v35, %v8957_v36 }
 0x218   : > { %v6214_v42 = vpop.eup %6213  ;;  %1602 = vst.msk [vmem:[%s9076_s13 + $0x8] sm:$0xff] %vm1600_vm1, %v6212_v58  ;;  %v3239_v56 = vsel %vm1512_vm0, %v3217_v59, 0.0  ;;  %v9085_v50 = vadd.f32 %v5168_v61, %v5167_v2 }
 0x219   : > { %6225 = vrcp.f32 %v1581_v16  ;;  %v1582_v8 = vadd.f32 1.0, %v6214_v42  ;;  %v3236_v20 = vsel %vm1512_vm0, %v3216_v21, 0.0 }
 0x21a   : > { %v6216_v6 = vpop.eup %6215  ;;  %3240 = vadd.xlane.f32.xlu1 %v3239_v56  ;;  %v5170_v31 = vpop.f32.mrb[112].mxu1  ;;  %v3618_v32 = vadd.f32 %v9085_v50, %v8957_v36 }
 0x21b   : > { %v6218_v23 = vpop.eup %6217  ;;  %6227 = vrcp.f32 %v1582_v8  ;;  %v1583_v51 = vadd.f32 1.0, %v6216_v6  ;;  %3237 = vadd.xlane.f32.xlu0 %v3236_v20  ;;  %v5171_v15 = vpop.f32.mrb[113].mxu1 }
 0x21c   : > { %v6220_v55 = vpop.eup %6219  ;;  %1604 = vst.msk [vmem:[%s9076_s13 + $0x18] sm:$0xff] %vm1600_vm1, %v6218_v23  ;;  %v5172_v52 = vadd.f32 %v5171_v15, %v5170_v31 }
 0x21d   : > { %1601 = vst.msk [vmem:[%s9076_s13] sm:$0xff] %vm1600_vm1, %v6220_v55  ;;  %6229 = vrcp.f32 %v1583_v51 }
 0x21e   : > { %v5173_v60 = vpop.f32.mrb[114].mxu1  ;;  %v3623_v56 = vadd.f32 %v5172_v52, %v8957_v36 }
 0x21f   : > { %v6222_v1 = vpop.eup %6221  ;;  %v5174_v63 = vpop.f32.mrb[115].mxu1 }
 0x220   : > { %v6224_v39 = vpop.eup %6223  ;;  %1603 = vst.msk [vmem:[%s9076_s13 + $0x10] sm:$0xff] %vm1600_vm1, %v6222_v1  ;;  %v5175_v45 = vadd.f32 %v5174_v63, %v5173_v60 }
 0x221   : > { %1605 = vst.msk [vmem:[%s9076_s13 + $0x20] sm:$0xff] %vm1600_vm1, %v6224_v39 }
 0x222   : > { %v5176_v7 = vpop.f32.mrb[116].mxu1  ;;  %v3628_v55 = vadd.f32 %v5175_v45, %v8957_v36 }
 0x223   : > { %v6226_v41 = vpop.eup %6225  ;;  %v5177_v4 = vpop.f32.mrb[117].mxu1 }
 0x224   : > { %1606 = vst.msk [vmem:[%s9076_s13 + $0x28] sm:$0xff] %vm1600_vm1, %v6226_v41  ;;  %v9098_v46 = vadd.f32 %v5177_v4, %v5176_v7 }
 0x225   : > { %v6228_v27 = vpop.eup %6227 }
 0x226   : > { %1607 = vst.msk [vmem:[%s9076_s13 + $0x30] sm:$0xff] %vm1600_vm1, %v6228_v27  ;;  %v5179_v0 = vpop.f32.mrb[118].mxu1 }
 0x227   : > { %v6230_v54 = vpop.eup %6229  ;;  %v5214_v13 = vpop.f32.mrb[112].mxu0 }
 0x228   : > { %v5180_v28 = vpop.f32.mrb[119].mxu1  ;;  %1608 = vst.msk [vmem:[%s9076_s13 + $0x38] sm:$0xff] %vm1600_vm1, %v6230_v54  ;;  %v5215_v34 = vpop.f32.mrb[113].mxu0 }
 0x229   : > { %v9104_v22 = vadd.f32 %v5180_v28, %v5179_v0  ;;  %v5216_v10 = vadd.f32 %v5215_v34, %v5214_v13  ;;  %v3633_v0 = vadd.f32 %v9098_v46, %v8957_v36 }
 0x22a   : > { %v5270_v26 = vpop.f32.mrb[120].mxu1 }
 0x22b   : > { %v3708_v57 = vadd.f32 %v5216_v10, %v3603_v18  ;;  %v5271_v11 = vpop.f32.mrb[121].mxu1  ;;  %v5217_v3 = vpop.f32.mrb[114].mxu0 }
 0x22c   : > { %v5272_v12 = vadd.f32 %v5271_v11, %v5270_v26  ;;  %v5218_v53 = vpop.f32.mrb[115].mxu0 }
 0x22d   : > { %v5219_v19 = vadd.f32 %v5218_v53, %v5217_v3 }
 0x22e   : > { %v9110_v17 = vadd.f32 %v5272_v12, %v3708_v57  ;;  %v5273_v9 = vpop.f32.mrb[122].mxu1  ;;  %v3638_v12 = vadd.f32 %v9104_v22, %v8957_v36 }
 0x22f   : > { %v3713_v14 = vadd.f32 %v5219_v19, %v3608_v40  ;;  %v5274_v29 = vpop.f32.mrb[123].mxu1  ;;  %v5220_v44 = vpop.f32.mrb[116].mxu0 }
 0x230   : > { %v5275_v24 = vadd.f32 %v5274_v29, %v5273_v9  ;;  %v5221_v62 = vpop.f32.mrb[117].mxu0 }
 0x231   : > { %v5222_v38 = vadd.f32 %v5221_v62, %v5220_v44 }
 0x232   : > { %v9114_v37 = vadd.f32 %v5275_v24, %v3713_v14  ;;  %v5276_v5 = vpop.f32.mrb[124].mxu1 }
 0x233   : > { %v3718_v25 = vadd.f32 %v5222_v38, %v3613_v47  ;;  %v5277_v49 = vpop.f32.mrb[125].mxu1  ;;  %v5223_v43 = vpop.f32.mrb[118].mxu0 }
 0x234   : > { %v5278_v33 = vadd.f32 %v5277_v49, %v5276_v5  ;;  %v5224_v30 = vpop.f32.mrb[119].mxu0 }
 0x235   : > { %v5225_v59 = vadd.f32 %v5224_v30, %v5223_v43 }
 0x236   : > { %v9118_v2 = vadd.f32 %v5278_v33, %v3718_v25  ;;  %v5279_v58 = vpop.f32.mrb[126].mxu1 }
 0x237   : > { %v3723_v16 = vadd.f32 %v5225_v59, %v3618_v32  ;;  %v5280_v21 = vpop.f32.mrb[127].mxu1  ;;  %v5226_v61 = vpop.f32.mrb[120].mxu0 }
 0x238   : > { %v5281_v35 = vadd.f32 %v5280_v21, %v5279_v58  ;;  %v5227_v42 = vpop.f32.mrb[121].mxu0 }
 0x239   : > { %v5228_v8 = vadd.f32 %v5227_v42, %v5226_v61 }
 0x23a   : > { %v9121_v20 = vadd.f32 %v5281_v35, %v3723_v16  ;;  %v5282_v6 = vpop.f32.mrb[128].mxu1 }
 0x23b   : > { %v3728_v31 = vadd.f32 %v5228_v8, %v3623_v56  ;;  %v5283_v23 = vpop.f32.mrb[129].mxu1  ;;  %v5229_v51 = vpop.f32.mrb[122].mxu0 }
 0x23c   : > { %v5284_v15 = vadd.f32 %v5283_v23, %v5282_v6  ;;  %v5230_v50 = vpop.f32.mrb[123].mxu0 }
 0x23d   : > { %v5231_v60 = vadd.f32 %v5230_v50, %v5229_v51 }
 0x23e   : > { %v9124_v1 = vadd.f32 %v5284_v15, %v3728_v31  ;;  %v5285_v63 = vpop.f32.mrb[130].mxu1 }
 0x23f   : > { %v3733_v39 = vadd.f32 %v5231_v60, %v3628_v55  ;;  %v5286_v7 = vpop.f32.mrb[131].mxu1  ;;  %v5232_v41 = vpop.f32.mrb[124].mxu0 }
 0x240   : > { %v5287_v4 = vadd.f32 %v5286_v7, %v5285_v63  ;;  %v2367_v52 = vpop.xlane.xlu0 %2366  ;;  %v5233_v27 = vpop.f32.mrb[125].mxu0 }
 0x241   : > { %v2396_v54 = vadd.f32 %v9028_v48, %v2367_v52  ;;  %v5234_v13 = vadd.f32 %v5233_v27, %v5232_v41 }
 0x242   : > { %v9129_v28 = vadd.f32 %v5287_v4, %v3733_v39  ;;  %v5288_v34 = vpop.f32.mrb[132].mxu1 }
 0x243   : > { %v4347_v45 = vmul.f32 -1.442695, %v2396_v54  ;;  %v3738_v18 = vadd.f32 %v5234_v13, %v3633_v0  ;;  %v5289_v10 = vpop.f32.mrb[133].mxu1  ;;  %v5235_v26 = vpop.f32.mrb[126].mxu0 }
 0x244   : > { %v5290_v57 = vadd.f32 %v5289_v10, %v5288_v34  ;;  %v2370_v11 = vpop.xlane.xlu1 %2369  ;;  %v5236_v3 = vpop.f32.mrb[127].mxu0 }
 0x245   : > { %6231 = vpow2.f32 %v4347_v45  ;;  %v2397_v53 = vadd.f32 %v9028_v48, %v2370_v11  ;;  %v5237_v46 = vadd.f32 %v5236_v3, %v5235_v26 }
 0x246   : > { %v9134_v40 = vadd.f32 %v5290_v57, %v3738_v18  ;;  %v5291_v19 = vpop.f32.mrb[134].mxu1 }
 0x247   : > { %v4348_v9 = vmul.f32 -1.442695, %v2397_v53  ;;  %v3743_v14 = vadd.f32 %v5237_v46, %v3638_v12  ;;  %v5292_v29 = vpop.f32.mrb[135].mxu1  ;;  %v2373_v44 = vpop.xlane.xlu0 %2372 }
 0x248   : > { %v5293_v24 = vadd.f32 %v5292_v29, %v5291_v19  ;;  %v5326_v62 = vpop.f32.mrb[128].mxu0  ;;  %v2398_v47 = vadd.f32 %v9028_v48, %v2373_v44 }
 0x249   : > { %6233 = vpow2.f32 %v4348_v9  ;;  %v5327_v38 = vpop.f32.mrb[129].mxu0 }
 0x24a   : > { %v9137_v5 = vadd.f32 %v5293_v24, %v3743_v14  ;;  %v4349_v36 = vmul.f32 -1.442695, %v2398_v47  ;;  %v5328_v22 = vadd.f32 %v5327_v38, %v5326_v62 }
 0x24b   : > { %v2376_v25 = vpop.xlane.xlu1 %2375 }
 0x24c   : > { %6235 = vpow2.f32 %v4349_v36  ;;  %v5329_v49 = vpop.f32.mrb[130].mxu0  ;;  %v5540_v43 = vpop.f32.mrb[136].mxu1  ;;  %v2399_v33 = vadd.f32 %v9028_v48, %v2376_v25  ;;  %v3918_v30 = vadd.f32 %v5328_v22, %v9110_v17  ;;  %v9146_v17 = vld [vmem:[%s9254_s3] ss:$0 sm:$0xff] }
 0x24d   : > { %v5330_v32 = vpop.f32.mrb[131].mxu0  ;;  %v4022_v59 = vpop.f32.mrb[137].mxu1 }
 0x24e   : > { %v4350_v58 = vmul.f32 -1.442695, %v2399_v33  ;;  %v5331_v16 = vadd.f32 %v5330_v32, %v5329_v49  ;;  %v4023_v21 = vadd.f32 %v4022_v59, %v3918_v30 }
 0x24f   : > { %v6232_v61 = vpop.eup %6231  ;;  %v2379_v35 = vpop.xlane.xlu0 %2378 }
 0x250   : > { %v2428_v42 = vadd.f32 1.0, %v6232_v61  ;;  %6237 = vpow2.f32 %v4350_v58  ;;  %v3923_v56 = vadd.f32 %v5331_v16, %v9114_v37  ;;  %v5332_v8 = vpop.f32.mrb[132].mxu0  ;;  %v2400_v6 = vadd.f32 %v9028_v48, %v2379_v35  ;;  %v5543_v31 = vpop.f32.mrb[138].mxu1 }
 0x251   : > { %v5333_v23 = vpop.f32.mrb[133].mxu0  ;;  %v4061_v51 = vmul.f32 %v9146_v17, %v4023_v21  ;;  %v4032_v15 = vpop.f32.mrb[139].mxu1 }
 0x252   : > { %6239 = vrcp.f32 %v2428_v42  ;;  %v4351_v50 = vmul.f32 -1.442695, %v2400_v6  ;;  %v5334_v55 = vadd.f32 %v5333_v23, %v5332_v8  ;;  %v4028_v60 = vadd.f32 %v5540_v43, %v3923_v56 }
 0x253   : > { %v6234_v63 = vpop.eup %6233  ;;  %v4069_v37 = vsel %vm1512_vm0, %v4061_v51, 0.0  ;;  %v2382_v39 = vpop.xlane.xlu1 %2381 }
 0x254   : > { %v2429_v7 = vadd.f32 1.0, %v6234_v63  ;;  %6241 = vpow2.f32 %v4351_v50  ;;  %4070 = vadd.xlane.f32.xlu0 %v4069_v37  ;;  %v5335_v41 = vpop.f32.mrb[134].mxu0  ;;  %v2401_v4 = vadd.f32 %v9028_v48, %v2382_v39  ;;  %v3928_v52 = vadd.f32 %v5334_v55, %v9118_v2  ;;  %v5546_v27 = vpop.f32.mrb[140].mxu1 }
 0x255   : > { %v5336_v0 = vpop.f32.mrb[135].mxu0  ;;  %v4062_v54 = vmul.f32 %v9146_v17, %v4028_v60  ;;  %v4042_v13 = vpop.f32.mrb[141].mxu1 }
 0x256   : > { %v6236_v34 = vpop.eup %6235  ;;  %6243 = vrcp.f32 %v2429_v7  ;;  %v4352_v45 = vmul.f32 -1.442695, %v2401_v4  ;;  %v5337_v18 = vadd.f32 %v5336_v0, %v5335_v41  ;;  %v4033_v10 = vadd.f32 %v4032_v15, %v3928_v52 }
 0x257   : > { %v2430_v26 = vadd.f32 1.0, %v6236_v34  ;;  %v4072_v57 = vsel %vm1512_vm0, %v4062_v54, 0.0  ;;  %v2385_v11 = vpop.xlane.xlu0 %2384 }
 0x258   : > { %6245 = vpow2.f32 %v4352_v45  ;;  %v3933_v3 = vadd.f32 %v5337_v18, %v9121_v20  ;;  %4073 = vadd.xlane.f32.xlu1 %v4072_v57  ;;  %v5338_v2 = vpop.f32.mrb[136].mxu0  ;;  %v2402_v12 = vadd.f32 %v9028_v48, %v2385_v11  ;;  %v4063_v53 = vmul.f32 %v9146_v17, %v4033_v10  ;;  %v9157_v46 = vpop.f32.mrb[142].mxu1 }
 0x259   : > { %6247 = vrcp.f32 %v2430_v26  ;;  %v5339_v19 = vpop.f32.mrb[137].mxu0  ;;  %v4052_v9 = vpop.f32.mrb[143].mxu1 }
 0x25a   : > { %v6238_v14 = vpop.eup %6237  ;;  %v4353_v29 = vmul.f32 -1.442695, %v2402_v12  ;;  %v5340_v20 = vadd.f32 %v5339_v19, %v5338_v2  ;;  %v4075_v44 = vsel %vm1512_vm0, %v4063_v53, 0.0  ;;  %v4038_v24 = vadd.f32 %v5543_v31, %v3933_v3 }
 0x25b   : > { %v2431_v62 = vadd.f32 1.0, %v6238_v14  ;;  %4076 = vadd.xlane.f32.xlu0 %v4075_v44  ;;  %v2388_v47 = vpop.xlane.xlu1 %2387 }
 0x25c   : > { %v6240_v38 = vpop.eup %6239  ;;  %6249 = vpow2.f32 %v4353_v29  ;;  %v5341_v36 = vpop.f32.mrb[138].mxu0  ;;  %v2403_v22 = vadd.f32 %v9028_v48, %v2388_v47  ;;  %v3938_v25 = vadd.f32 %v5340_v20, %v9124_v1  ;;  %v4064_v49 = vmul.f32 %v9146_v17, %v4038_v24 }
 0x25d   : > { %2452 = vst.msk [vmem:[%s9163_s18] sm:$0xff] %vm1600_vm1, %v6240_v38  ;;  %6251 = vrcp.f32 %v2431_v62  ;;  %v5342_v43 = vpop.f32.mrb[139].mxu0 }
 0x25e   : > { %v6242_v33 = vpop.eup %6241  ;;  %v4354_v30 = vmul.f32 -1.442695, %v2403_v22  ;;  %v5343_v32 = vadd.f32 %v5342_v43, %v5341_v36  ;;  %v4043_v59 = vadd.f32 %v4042_v13, %v3938_v25  ;;  %v4078_v58 = vsel %vm1512_vm0, %v4064_v49, 0.0 }
 0x25f   : > { %v2432_v16 = vadd.f32 1.0, %v6242_v33  ;;  %4079 = vadd.xlane.f32.xlu1 %v4078_v58 }
 0x260   : > { %v6244_v21 = vpop.eup %6243  ;;  %6253 = vpow2.f32 %v4354_v30  ;;  %v3943_v1 = vadd.f32 %v5343_v32, %v9129_v28  ;;  %v5344_v61 = vpop.f32.mrb[140].mxu0  ;;  %v4065_v35 = vmul.f32 %v9146_v17, %v4043_v59 }
 0x261   : > { %2453 = vst.msk [vmem:[%s9163_s18 + $0x8] sm:$0xff] %vm1600_vm1, %v6244_v21  ;;  %6255 = vrcp.f32 %v2432_v16  ;;  %v5345_v42 = vpop.f32.mrb[141].mxu0 }
 0x262   : > { %v6246_v56 = vpop.eup %6245  ;;  %v5346_v8 = vadd.f32 %v5345_v42, %v5344_v61  ;;  %v4081_v6 = vsel %vm1512_vm0, %v4065_v35, 0.0  ;;  %v4048_v31 = vadd.f32 %v5546_v27, %v3943_v1 }
 0x263   : > { %v6248_v23 = vpop.eup %6247  ;;  %v2433_v51 = vadd.f32 1.0, %v6246_v56  ;;  %4082 = vadd.xlane.f32.xlu0 %v4081_v6 }
 0x264   : > { %2454 = vst.msk [vmem:[%s9163_s18 + $0x10] sm:$0xff] %vm1600_vm1, %v6248_v23  ;;  %v5347_v15 = vpop.f32.mrb[142].mxu0  ;;  %v3948_v28 = vadd.f32 %v5346_v8, %v9134_v40  ;;  %v4066_v50 = vmul.f32 %v9146_v17, %v4048_v31 }
 0x265   : > { %6257 = vrcp.f32 %v2433_v51  ;;  %v5348_v55 = vpop.f32.mrb[143].mxu0 }
 0x266   : > { %v6250_v60 = vpop.eup %6249  ;;  %v5349_v63 = vadd.f32 %v5348_v55, %v5347_v15  ;;  %v4053_v37 = vadd.f32 %v4052_v9, %v3948_v28  ;;  %v4084_v39 = vsel %vm1512_vm0, %v4066_v50, 0.0 }
 0x267   : > { %v6252_v7 = vpop.eup %6251  ;;  %v2434_v41 = vadd.f32 1.0, %v6250_v60  ;;  %4085 = vadd.xlane.f32.xlu1 %v4084_v39 }
 0x268   : > { %2455 = vst.msk [vmem:[%s9163_s18 + $0x18] sm:$0xff] %vm1600_vm1, %v6252_v7  ;;  %v3953_v4 = vadd.f32 %v5349_v63, %v9137_v5  ;;  %v4067_v40 = vmul.f32 %v9146_v17, %v4053_v37 }
 0x269   : > { %6259 = vrcp.f32 %v2434_v41 }
 0x26a   : > { %v6254_v52 = vpop.eup %6253  ;;  %v4087_v27 = vsel %vm1512_vm0, %v4067_v40, 0.0  ;;  %v4058_v0 = vadd.f32 %v9157_v46, %v3953_v4 }
 0x26b   : > { %v6256_v54 = vpop.eup %6255  ;;  %v2435_v13 = vadd.f32 1.0, %v6254_v52  ;;  %4088 = vadd.xlane.f32.xlu0 %v4087_v27 }
 0x26c   : > { %2456 = vst.msk [vmem:[%s9163_s18 + $0x20] sm:$0xff] %vm1600_vm1, %v6256_v54  ;;  %v4068_v34 = vmul.f32 %v9146_v17, %v4058_v0 }
 0x26d   : > { %6261 = vrcp.f32 %v2435_v13 }
 0x26e   : > { %v4090_v5 = vsel %vm1512_vm0, %v4068_v34, 0.0 }
 0x26f   : > { %v6258_v45 = vpop.eup %6257  ;;  %4091 = vadd.xlane.f32.xlu1 %v4090_v5 }
 0x270   : > { %2457 = vst.msk [vmem:[%s9163_s18 + $0x28] sm:$0xff] %vm1600_vm1, %v6258_v45 }
 0x273   : > { %v6260_v18 = vpop.eup %6259 }
 0x274   : > { %2458 = vst.msk [vmem:[%s9163_s18 + $0x30] sm:$0xff] %vm1600_vm1, %v6260_v18 }
 0x277   : > { %v6262_v10 = vpop.eup %6261 }
 0x278   : > { %2459 = vst.msk [vmem:[%s9163_s18 + $0x38] sm:$0xff] %vm1600_vm1, %v6262_v10 }
 0x29b   : > { %v3223_v26 = vpop.xlane.xlu1 %3222 }
 0x29c   : > { %v3250_v57 = vadd.f32 %v9028_v48, %v3223_v26  ;;  %v3220_v11 = vpop.xlane.xlu0 %3219 }
 0x29d   : > { %v3249_v3 = vadd.f32 %v9028_v48, %v3220_v11 }
 0x29e   : > { %v4358_v17 = vmul.f32 -1.442695, %v3250_v57 }
 0x29f   : > { %v4357_v2 = vmul.f32 -1.442695, %v3249_v3  ;;  %v3229_v12 = vpop.xlane.xlu1 %3228 }
 0x2a0   : > { %6263 = vpow2.f32 %v4358_v17  ;;  %v3252_v53 = vadd.f32 %v9028_v48, %v3229_v12  ;;  %v3226_v46 = vpop.xlane.xlu0 %3225 }
 0x2a1   : > { %6265 = vpow2.f32 %v4357_v2  ;;  %v3251_v19 = vadd.f32 %v9028_v48, %v3226_v46 }
 0x2a2   : > { %v4360_v9 = vmul.f32 -1.442695, %v3252_v53 }
 0x2a3   : > { %v4359_v14 = vmul.f32 -1.442695, %v3251_v19  ;;  %v3235_v29 = vpop.xlane.xlu1 %3234 }
 0x2a4   : > { %6267 = vpow2.f32 %v4360_v9  ;;  %v3254_v20 = vadd.f32 %v9028_v48, %v3235_v29  ;;  %v3232_v44 = vpop.xlane.xlu0 %3231 }
 0x2a5   : > { %6269 = vpow2.f32 %v4359_v14  ;;  %v3253_v24 = vadd.f32 %v9028_v48, %v3232_v44 }
 0x2a6   : > { %v4362_v62 = vmul.f32 -1.442695, %v3254_v20 }
 0x2a7   : > { %v4361_v47 = vmul.f32 -1.442695, %v3253_v24  ;;  %v3241_v38 = vpop.xlane.xlu1 %3240 }
 0x2a8   : > { %6271 = vpow2.f32 %v4362_v62  ;;  %v3256_v36 = vadd.f32 %v9028_v48, %v3241_v38  ;;  %v3238_v22 = vpop.xlane.xlu0 %3237 }
 0x2a9   : > { %6273 = vpow2.f32 %v4361_v47  ;;  %v3255_v25 = vadd.f32 %v9028_v48, %v3238_v22 }
 0x2aa   : > { %v6264_v49 = vpop.eup %6263  ;;  %v4364_v43 = vmul.f32 -1.442695, %v3256_v36 }
 0x2ab   : > { %v6266_v33 = vpop.eup %6265  ;;  %v3282_v30 = vadd.f32 1.0, %v6264_v49  ;;  %v4363_v32 = vmul.f32 -1.442695, %v3255_v25 }
 0x2ac   : > { %v3281_v59 = vadd.f32 1.0, %v6266_v33  ;;  %6275 = vpow2.f32 %v4364_v43 }
 0x2ad   : > { %6277 = vrcp.f32 %v3282_v30 }
 0x2ae   : > { %v6268_v58 = vpop.eup %6267  ;;  %6279 = vrcp.f32 %v3281_v59 }
 0x2af   : > { %v6270_v16 = vpop.eup %6269  ;;  %v3284_v21 = vadd.f32 1.0, %v6268_v58  ;;  %6281 = vpow2.f32 %v4363_v32 }
 0x2b0   : > { %v3283_v1 = vadd.f32 1.0, %v6270_v16 }
 0x2b1   : > { %6283 = vrcp.f32 %v3284_v21 }
 0x2b2   : > { %v6272_v61 = vpop.eup %6271  ;;  %6285 = vrcp.f32 %v3283_v1 }
 0x2b3   : > { %v6274_v35 = vpop.eup %6273  ;;  %v3286_v42 = vadd.f32 1.0, %v6272_v61 }
 0x2b4   : > { %v3285_v56 = vadd.f32 1.0, %v6274_v35 }
 0x2b5   : > { %6287 = vrcp.f32 %v3286_v42 }
 0x2b6   : > { %v6276_v8 = vpop.eup %6275  ;;  %6289 = vrcp.f32 %v3285_v56 }
 0x2b7   : > { %v6278_v6 = vpop.eup %6277  ;;  %v3288_v31 = vadd.f32 1.0, %v6276_v8 }
 0x2b8   : > { %v6280_v23 = vpop.eup %6279  ;;  %3306 = vst.msk [vmem:[%s339_s22 + $0x8] sm:$0xff] %vm1600_vm1, %v6278_v6 }
 0x2b9   : > { %v6282_v51 = vpop.eup %6281  ;;  %3305 = vst.msk [vmem:[%s339_s22] sm:$0xff] %vm1600_vm1, %v6280_v23  ;;  %6291 = vrcp.f32 %v3288_v31 }
 0x2ba   : > { %v3287_v15 = vadd.f32 1.0, %v6282_v51 }
 0x2bb   : > { %v6284_v28 = vpop.eup %6283 }
 0x2bc   : > { %v6286_v50 = vpop.eup %6285  ;;  %3308 = vst.msk [vmem:[%s339_s22 + $0x18] sm:$0xff] %vm1600_vm1, %v6284_v28  ;;  %6293 = vrcp.f32 %v3287_v15 }
 0x2bd   : > { %3307 = vst.msk [vmem:[%s339_s22 + $0x10] sm:$0xff] %vm1600_vm1, %v6286_v50 }
 0x2bf   : > { %v6288_v55 = vpop.eup %6287 }
 0x2c0   : > { %v6290_v60 = vpop.eup %6289  ;;  %3310 = vst.msk [vmem:[%s339_s22 + $0x28] sm:$0xff] %vm1600_vm1, %v6288_v55 }
 0x2c1   : > { %3309 = vst.msk [vmem:[%s339_s22 + $0x20] sm:$0xff] %vm1600_vm1, %v6290_v60 }
 0x2c3   : > { %v6292_v63 = vpop.eup %6291 }
 0x2c4   : > { %3312 = vst.msk [vmem:[%s339_s22 + $0x38] sm:$0xff] %vm1600_vm1, %v6292_v63 }
 0x2c6   : > { %v6294_v37 = vpop.eup %6293 }
 0x2c7   : > { %3311 = vst.msk [vmem:[%s339_s22 + $0x30] sm:$0xff] %vm1600_vm1, %v6294_v37 }
 0x2e1   : > { %v4071_v39 = vpop.xlane.xlu0 %4070 }
 0x2e2   : > { %v4100_v7 = vadd.f32 %v9028_v48, %v4071_v39 }
 0x2e4   : > { %v4367_v41 = vmul.f32 -1.442695, %v4100_v7 }
 0x2e5   : > { %v4074_v4 = vpop.xlane.xlu1 %4073 }
 0x2e6   : > { %6295 = vpow2.f32 %v4367_v41  ;;  %v4101_v40 = vadd.f32 %v9028_v48, %v4074_v4 }
 0x2e8   : > { %v4368_v52 = vmul.f32 -1.442695, %v4101_v40  ;;  %v4077_v27 = vpop.xlane.xlu0 %4076 }
 0x2e9   : > { %v4102_v0 = vadd.f32 %v9028_v48, %v4077_v27 }
 0x2ea   : > { %6297 = vpow2.f32 %v4368_v52 }
 0x2eb   : > { %v4369_v54 = vmul.f32 -1.442695, %v4102_v0 }
 0x2ec   : > { %v4080_v13 = vpop.xlane.xlu1 %4079 }
 0x2ed   : > { %6299 = vpow2.f32 %v4369_v54  ;;  %v4103_v34 = vadd.f32 %v9028_v48, %v4080_v13 }
 0x2ef   : > { %v4370_v5 = vmul.f32 -1.442695, %v4103_v34 }
 0x2f0   : > { %v6296_v45 = vpop.eup %6295  ;;  %v4083_v18 = vpop.xlane.xlu0 %4082 }
 0x2f1   : > { %v4132_v10 = vadd.f32 1.0, %v6296_v45  ;;  %6301 = vpow2.f32 %v4370_v5  ;;  %v4104_v26 = vadd.f32 %v9028_v48, %v4083_v18 }
 0x2f3   : > { %6303 = vrcp.f32 %v4132_v10  ;;  %v4371_v57 = vmul.f32 -1.442695, %v4104_v26 }
 0x2f4   : > { %v6298_v11 = vpop.eup %6297  ;;  %v4086_v3 = vpop.xlane.xlu1 %4085 }
 0x2f5   : > { %v4133_v17 = vadd.f32 1.0, %v6298_v11  ;;  %6305 = vpow2.f32 %v4371_v57  ;;  %v4105_v2 = vadd.f32 %v9028_v48, %v4086_v3 }
 0x2f7   : > { %v6300_v12 = vpop.eup %6299  ;;  %6307 = vrcp.f32 %v4133_v17  ;;  %v4372_v53 = vmul.f32 -1.442695, %v4105_v2 }
 0x2f8   : > { %v4134_v46 = vadd.f32 1.0, %v6300_v12  ;;  %v4089_v19 = vpop.xlane.xlu0 %4088 }
 0x2f9   : > { %6309 = vpow2.f32 %v4372_v53  ;;  %v4106_v9 = vadd.f32 %v9028_v48, %v4089_v19 }
 0x2fa   : > { %6311 = vrcp.f32 %v4134_v46 }
 0x2fb   : > { %v6302_v14 = vpop.eup %6301  ;;  %v4373_v29 = vmul.f32 -1.442695, %v4106_v9 }
 0x2fc   : > { %v4135_v20 = vadd.f32 1.0, %v6302_v14  ;;  %v4092_v44 = vpop.xlane.xlu1 %4091 }
 0x2fd   : > { %v6304_v24 = vpop.eup %6303  ;;  %6313 = vpow2.f32 %v4373_v29  ;;  %v4107_v62 = vadd.f32 %v9028_v48, %v4092_v44 }
 0x2fe   : > { %4156 = vst.msk [vmem:[%s9229_s25] sm:$0xff] %vm1600_vm1, %v6304_v24  ;;  %6315 = vrcp.f32 %v4135_v20 }
 0x2ff   : > { %v6306_v47 = vpop.eup %6305  ;;  %v4374_v38 = vmul.f32 -1.442695, %v4107_v62 }
 0x300   : > { %v4136_v36 = vadd.f32 1.0, %v6306_v47 }
 0x301   : > { %v6308_v22 = vpop.eup %6307  ;;  %6317 = vpow2.f32 %v4374_v38 }
 0x302   : > { %4157 = vst.msk [vmem:[%s9229_s25 + $0x8] sm:$0xff] %vm1600_vm1, %v6308_v22  ;;  %6319 = vrcp.f32 %v4136_v36 }
 0x303   : > { %v6310_v25 = vpop.eup %6309 }
 0x304   : > { %v6312_v49 = vpop.eup %6311  ;;  %v4137_v43 = vadd.f32 1.0, %v6310_v25 }
 0x305   : > { %4158 = vst.msk [vmem:[%s9229_s25 + $0x10] sm:$0xff] %vm1600_vm1, %v6312_v49 }
 0x306   : > { %6321 = vrcp.f32 %v4137_v43 }
 0x307   : > { %v6314_v48 = vpop.eup %6313 }
 0x308   : > { %v6316_v33 = vpop.eup %6315  ;;  %v4138_v30 = vadd.f32 1.0, %v6314_v48 }
 0x309   : > { %4159 = vst.msk [vmem:[%s9229_s25 + $0x18] sm:$0xff] %vm1600_vm1, %v6316_v33 }
 0x30a   : > { %6323 = vrcp.f32 %v4138_v30 }
 0x30b   : > { %v6318_v32 = vpop.eup %6317 }
 0x30c   : > { %v6320_v59 = vpop.eup %6319  ;;  %v4139_v58 = vadd.f32 1.0, %v6318_v32 }
 0x30d   : > { %4160 = vst.msk [vmem:[%s9229_s25 + $0x20] sm:$0xff] %vm1600_vm1, %v6320_v59 }
 0x30e   : > { %6325 = vrcp.f32 %v4139_v58 }
 0x310   : > { %v6322_v16 = vpop.eup %6321 }
 0x311   : > { %4161 = vst.msk [vmem:[%s9229_s25 + $0x28] sm:$0xff] %vm1600_vm1, %v6322_v16 }
 0x314   : > { %v6324_v21 = vpop.eup %6323 }
 0x315   : > { %4162 = vst.msk [vmem:[%s9229_s25 + $0x30] sm:$0xff] %vm1600_vm1, %v6324_v21 }
 0x318   : > { %v6326_v1 = vpop.eup %6325 }
 0x319   : > { %4163 = vst.msk [vmem:[%s9229_s25 + $0x38] sm:$0xff] %vm1600_vm1, %v6326_v1 }
 0x31a PF: > { %s21_s29 = sadd.s32 1, %s6335_s29  }
 0x31b   : > { %p18_p4 = scmp.ge.s32.totalorder %s21_s29, 4  }
 0x31d   :  { %20 = sbr.rel (!%p18_p4) target bundleno = 3 (0x3), region = 116 }

</bundles_post_ra>
